<compile_context>
chip_gen: v5e
topology: v5e:2x2
jax: 0.10.0
libtpu: 0.0.40
codegen_flags: <defaults>
</compile_context>

<pallas_src>
import jax
import jax.numpy as jnp
from jax.experimental import pallas as pl
from jax.experimental.pallas import tpu as pltpu


def _make_lora_delta_kernel(tn: int):
    def kernel(scale_ref, a_ref, b_ref, o_ref):
        # scale_ref: (1, 1) f32 in SMEM
        # a_ref:     (TM, r)   tile, resident across the TN axis
        # b_ref:     (r, H)    full B_i slab, resident across the whole grid
        # o_ref:     (TM, TN)  lane-dense output tile
        off = pl.multiple_of(pl.program_id(1) * tn, 128)
        acc = jnp.dot(
            a_ref[...],
            b_ref[:, pl.ds(off, tn)],
            preferred_element_type=jnp.float32,
        )
        # Scale the f32 accumulator (exact even for bf16/fp8 factors); this
        # VPU multiply hides under the output-store DMA.
        o_ref[...] = (acc * scale_ref[0, 0]).astype(o_ref.dtype)

    return kernel


def _pick_tile(dim: int, align: int, cap: int) -> int:
    """Largest t <= cap with t % align == 0 and dim % t == 0.

    Returns `dim` when dim <= cap (the full extent is always a legal block
    shape) and 0 when no aligned divisor exists (caller must fall back)."""
    if dim <= cap:
        return dim
    cap = (cap // align) * align
    for t in range(cap, 0, -align):
        if dim % t == 0:
            return t
    return 0


def _vmem_limit_bytes() -> int:
    """Generation-aware scoped-VMEM limit: half of physical VMEM per core
    (64 MiB on 128-MiB v5e/v6e parts, 32 MiB on 64-MiB v7x)."""
    try:
        cap = pltpu.get_tpu_info().vmem_capacity_bytes
    except Exception:  # non-TPU tracing or older runtime: assume smallest (v7x)
        cap = 64 * 1024 * 1024
    return min(cap, 128 * 1024 * 1024) // 2


def factorized_tensor_forward(A, B, *, scaling: float = 1.0,
                              min_pallas_hidden: int = 512):
    """Compute (ΔW_q, ΔW_k, ΔW_v) from stacked rank-r factors.

    A: (n=3, H, r),  B: (n=3, r, H)  ->  tuple of n (H, H) arrays.
    """
    n, H, r = A.shape
    assert B.shape == (n, r, H), (A.shape, B.shape)
    dtype = A.dtype
    itemsize = jnp.dtype(dtype).itemsize

    def _einsum_fallback():
        deltas = jnp.einsum("nhr,nrk->nhk", A, B) * jnp.asarray(scaling, dtype)
        return tuple(deltas[i] for i in range(n))

    # Small problems: pallas_call launch + pipeline prologue dominate a
    # few-step grid; XLA's fused batched matmul is already HBM-bound there.
    # TODO(synk): ideally ΔW would be fused into the consumer (x @ (W + s·A·B))
    # instead of being materialized at all; out of scope for this module.
    if H <= min_pallas_hidden:
        return _einsum_fallback()

    vmem_limit = _vmem_limit_bytes()

    # dtype-aware sublane alignment: f32 -> 8, bf16 -> 16, int8/fp8 -> 32.
    sublane_align = 8 * max(1, 4 // itemsize)
    TM = _pick_tile(H, sublane_align, 1024)

    TN = 0
    if TM:
        # Byte budget for the double-buffered output tile: the scoped limit
        # minus the resident B_i slab, the double-buffered A tile, and slack.
        reserve = 2 * r * H * itemsize + 2 * TM * r * itemsize + (1 << 20)
        out_budget = vmem_limit - reserve
        tn_cap = (out_budget // (2 * TM * itemsize)) // 128 * 128
        if tn_cap >= 128:
            TN = _pick_tile(H, 128, tn_cap)

    if not TM or not TN:
        # TODO(synk): add a padded / masked-edge tile path for hidden sizes
        # with no (sublane, lane)-aligned divisor (or huge r*H slabs); fall
        # back to XLA for now rather than emitting masked stores or OOM-ing.
        return _einsum_fallback()

    cost = pl.CostEstimate(
        flops=2 * H * H * r,
        transcendentals=0,
        bytes_accessed=(H * r + r * H + H * H) * itemsize,
    )

    call = pl.pallas_call(
        _make_lora_delta_kernel(TN),
        out_shape=jax.ShapeDtypeStruct((H, H), dtype),
        grid=(H // TM, H // TN),
        in_specs=[
            # scaling scalar lives in SMEM (no recompile per value).
            pl.BlockSpec(memory_space=pltpu.MemorySpace.SMEM),
            # A_i tile: independent of the TN axis -> resident across it.
            pl.BlockSpec((TM, r), lambda m, nb: (m, 0)),
            # B_i full slab: constant block index -> DMA'd exactly once.
            pl.BlockSpec((r, H), lambda m, nb: (0, 0)),
        ],
        out_specs=pl.BlockSpec((TM, TN), lambda m, nb: (m, nb)),
        compiler_params=pltpu.CompilerParams(
            dimension_semantics=("parallel", "parallel"),
            vmem_limit_bytes=vmem_limit,
        ),
        cost_estimate=cost,
    )

    scale_arr = jnp.full((1, 1), scaling, dtype=jnp.float32)

    # One call per head: each (H, H) delta is written directly into its own
    # output buffer — no post-hoc slice of a stacked result (write-bound op).
    # The (H, r) / (r, H) input slices are tiny relative to the output writes.
    return tuple(call(scale_arr, A[i], B[i]) for i in range(n))


if __name__ == "__main__":
    # -- Pallas path -----------------------------------------------------------
    hidden_size = 1024
    rank = 16
    alpha = 32.0
    scaling = alpha / rank

    key = jax.random.PRNGKey(0)
    k_a, k_b = jax.random.split(key)
    # Deterministic synthetic factors (nonzero B so the check is meaningful;
    # real LoRA inits B to zero, which would trivially pass).
    A = jax.random.normal(k_a, (3, hidden_size, rank), dtype=jnp.float32) * 0.02
    B = jax.random.normal(k_b, (3, rank, hidden_size), dtype=jnp.float32) * 0.02

    dq, dk, dv = factorized_tensor_forward(A, B, scaling=scaling)
    jax.block_until_ready((dq, dk, dv))

    ref = jnp.einsum("nhr,nrk->nhk", A, B) * scaling
    assert dq.shape == (hidden_size, hidden_size)
    assert dk.shape == (hidden_size, hidden_size)
    assert dv.shape == (hidden_size, hidden_size)
    assert jnp.allclose(dq, ref[0], atol=1e-6)
    assert jnp.allclose(dk, ref[1], atol=1e-6)
    assert jnp.allclose(dv, ref[2], atol=1e-6)

    # -- Tiny-problem fallback path (H=32, as in the module's toy config) -----
    A2 = jax.random.normal(k_a, (3, 32, 8), dtype=jnp.float32) * 0.02
    B2 = jax.random.normal(k_b, (3, 8, 32), dtype=jnp.float32) * 0.02
    sq, sk, sv = factorized_tensor_forward(A2, B2, scaling=2.0)
    jax.block_until_ready((sq, sk, sv))
    ref2 = jnp.einsum("nhr,nrk->nhk", A2, B2) * 2.0
    assert jnp.allclose(sq, ref2[0], atol=1e-6)
    assert jnp.allclose(sk, ref2[1], atol=1e-6)
    assert jnp.allclose(sv, ref2[2], atol=1e-6)

    print("KERNEL_OK")
</pallas_src>

<mosaic_0001>
module attributes {stable_mosaic.version = 11 : i64} {
  func.func @kernel(%arg0: i32, %arg1: i32, %arg2: memref<1x1xf32, #tpu.memory_space<smem>>, %arg3: memref<1024x16xf32, #tpu.memory_space<vmem>>, %arg4: memref<16x1024xf32, #tpu.memory_space<vmem>>, %arg5: memref<1024x1024xf32, #tpu.memory_space<vmem>>) attributes {dimension_semantics = [#tpu.dimension_semantics<parallel>, #tpu.dimension_semantics<parallel>], iteration_bounds = array<i64: 1, 1>, scalar_prefetch = 0 : i64, scratch_operands = 0 : i64, tpu.core_type = #tpu.core_type<tc>, window_params = [{transform_indices = @transform_0, window_bounds = array<i64: 1, 1>}, {transform_indices = @transform_1, window_bounds = array<i64: 1024, 16>}, {pipeline_mode = #tpu.pipeline_mode<synchronous>, transform_indices = @transform_2, window_bounds = array<i64: 16, 1024>}, {transform_indices = @transform_3, window_bounds = array<i64: 1024, 1024>}]} {
    %c1024_i32 = arith.constant 1024 : i32
    %0 = arith.muli %arg1, %c1024_i32 : i32
    %1 = tpu.assume_multiple %0, 128 : i32
    %c0 = arith.constant 0 : index
    %c0_0 = arith.constant 0 : index
    %2 = vector.load %arg3[%c0, %c0_0] : memref<1024x16xf32, #tpu.memory_space<vmem>>, vector<1024x16xf32>
    %c0_1 = arith.constant 0 : index
    %3 = arith.index_cast %1 : i32 to index
    %4 = vector.load %arg4[%c0_1, %3] : memref<16x1024xf32, #tpu.memory_space<vmem>>, vector<16x1024xf32>
    %cst = arith.constant dense<0.000000e+00> : vector<1024x1024xf32>
    %5 = tpu.matmul %2, %4, %cst {dimension_numbers = #tpu.dot_dimension_numbers<[1], [0], [0], [1], [0, 0, 1, 1], [], []>} : vector<1024x16xf32>, vector<16x1024xf32>, vector<1024x1024xf32> -> vector<1024x1024xf32>
    %c0_2 = arith.constant 0 : index
    %c0_3 = arith.constant 0 : index
    %6 = memref.load %arg2[%c0_2, %c0_3] : memref<1x1xf32, #tpu.memory_space<smem>>
    %7 = vector.broadcast %6 : f32 to vector<1024x1024xf32>
    %8 = arith.mulf %5, %7 : vector<1024x1024xf32>
    %c0_4 = arith.constant 0 : index
    %c0_5 = arith.constant 0 : index
    %9 = vector.load %arg5[%c0_4, %c0_5] : memref<1024x1024xf32, #tpu.memory_space<vmem>>, vector<1024x1024xf32>
    tpu.vector_store %arg5[%c0_4, %c0_5], %8 {strides = array<i32>} : memref<1024x1024xf32, #tpu.memory_space<vmem>>, vector<1024x1024xf32>,
    return
  }
  func.func @transform_0(%arg0: i32, %arg1: i32) -> (i32, i32) {
    %c0_i32 = arith.constant 0 : i32
    %c0_i32_0 = arith.constant 0 : i32
    %c0_i32_1 = arith.constant 0 : i32
    return %c0_i32, %c0_i32_0 : i32, i32
  }
  func.func @transform_1(%arg0: i32, %arg1: i32) -> (i32, i32) {
    %c0_i32 = arith.constant 0 : i32
    %c0_i32_0 = arith.constant 0 : i32
    return %arg0, %c0_i32 : i32, i32
  }
  func.func @transform_2(%arg0: i32, %arg1: i32) -> (i32, i32) {
    %c0_i32 = arith.constant 0 : i32
    %c0_i32_0 = arith.constant 0 : i32
    %c0_i32_1 = arith.constant 0 : i32
    return %c0_i32, %c0_i32_0 : i32, i32
  }
  func.func @transform_3(%arg0: i32, %arg1: i32) -> (i32, i32) {
    %c0_i32 = arith.constant 0 : i32
    return %arg0, %arg1 : i32, i32
  }
}

</mosaic_0001>

<bundles_post_ra>
// kernel: tpu_custom_call.1
= control target key start
LH: loop header
LB: loop body
LE: loop exit
PB: predicated region body
PF: predicated region fallthrough
CT: control target
= control target key end

     0   :  { %9 = vsyncpa [#allocation4], 0  ;;  %s9910_s0 = inlined_call_operand.<no memory space> [shape: f32[1,1], index: 0, kind: input, shape index: {}]   ;;  %s9911_s1 = inlined_call_operand.vmem [shape: f32[1024,16], index: 1, kind: input, shape index: {}]   ;;  %s9912_s2 = inlined_call_operand.hbm [shape: f32[16,1024], index: 2, kind: input, shape index: {}]   ;;  %s9913_s3 = inlined_call_operand.hbm [shape: f32[1024,1024], index: 3, kind: output, shape index: {}]  }
   0x1   :  { %10 = vsyncpa [#allocation5], 0  ;;  %s19_s14 = sshll.u32 %s9912_s2, 4  ;;  %s7053_s15 = smov [#allocation3]   ;;  %s20_s14 = int_to_ptr.hbm [resolvable:$true] %s19_s14 }
   0x2   :  { %s21_s16 = sshll.u32 %s7053_s15, 4  ;;  %s7054_s17 = smov 1024   ;;  %s22_s16 = int_to_ptr.vmem [resolvable:$true] %s21_s16 }
   0x3   :  { %s7055_s18 = smov 64  }
   0x4   :  { %27 = dma.hbm_to_vmem [thread:$0]  %s20_s14, 2048, %s22_s16, [#allocation4], %s7054_s17, %s7054_s17, %s7055_s18  }
   0x5   :  { %7049 = dma.done.wait [#allocation4], 2048  }
   0x6   :  { %7050 = vsyncadd [#allocation4], 4294965248  ;;  %v175_v0 = vld [vmem:[#allocation3 + $0x50] sm:$0xff]  ;;  %v176_v1 = vld [vmem:[#allocation3 + $0x58] sm:$0xff]  ;;  %vm181_vm0 = vcmask 130048   ;;  %v7203_v29 = vstv %s9910_s0  ;;  %s5830_s23 = sshll.u32 %s9913_s3, 4  ;;  %s5831_s23 = int_to_ptr.hbm [resolvable:$true] %s5830_s23 }
   0x7   :  { %v167_v2 = vld [vmem:[#allocation3 + $0x10] sm:$0xff]  ;;  %1382 = vmatpush.msra.mxu2 %v175_v0  ;;  %1783 = vmatpush.msra.mxu3 %v176_v1  ;;  %v168_v3 = vld [vmem:[#allocation3 + $0x18] sm:$0xff]  ;;  %v33_v4 = vld [vmem:[%s9911_s1] sm:$0xff] }
   0x8   :  { %v179_v5 = vld [vmem:[#allocation3 + $0x70] sm:$0xff]  ;;  %v180_v6 = vld [vmem:[#allocation3 + $0x78] sm:$0xff]  ;;  %v173_v7 = vld [vmem:[#allocation3 + $0x40] sm:$0xff] }
   0x9   :  { %1383 = vmatpush.msra.mxu2 %v167_v2  ;;  %1784 = vmatpush.msra.mxu3 %v168_v3  ;;  %v174_v8 = vld [vmem:[#allocation3 + $0x48] sm:$0xff]  ;;  %v165_v9 = vld [vmem:[#allocation3] sm:$0xff]  ;;  %v35_v14 = vld [vmem:[%s9911_s1 + $0x10] sm:$0xff] }
   0xa   :  { %6101 = vmatmul.msk.f32.vlgmr.msra.gmra.mxu2 %vm181_vm0, %v33_v4  ;;  %6229 = vmatmul.msk.f32.vlgmr.msra.gmra.mxu3 %vm181_vm0, %v33_v4  ;;  %v166_v10 = vld [vmem:[#allocation3 + $0x8] sm:$0xff]  ;;  %v177_v11 = vld [vmem:[#allocation3 + $0x60] sm:$0xff]  ;;  %v36_v15 = vld [vmem:[%s9911_s1 + $0x18] sm:$0xff] }
   0xb   :  { %2986 = vmatpush.msrb.mxu2 %v179_v5  ;;  %3387 = vmatpush.msrb.mxu3 %v180_v6  ;;  %v178_v12 = vld [vmem:[#allocation3 + $0x68] sm:$0xff]  ;;  %v37_v16 = vld [vmem:[%s9911_s1 + $0x20] sm:$0xff]  ;;  %v39_v18 = vld [vmem:[%s9911_s1 + $0x30] sm:$0xff] }
   0xc   :  { %580 = vmatpush.msra.mxu0 %v173_v7  ;;  %981 = vmatpush.msra.mxu1 %v174_v8  ;;  %v34_v13 = vld [vmem:[%s9911_s1 + $0x8] sm:$0xff]  ;;  %v40_v19 = vld [vmem:[%s9911_s1 + $0x38] sm:$0xff]  ;;  %v41_v20 = vld [vmem:[%s9911_s1 + $0x40] sm:$0xff] }
   0xd   :  { %v38_v17 = vld [vmem:[%s9911_s1 + $0x28] sm:$0xff]  ;;  %v43_v22 = vld [vmem:[%s9911_s1 + $0x50] sm:$0xff]  ;;  %v44_v23 = vld [vmem:[%s9911_s1 + $0x58] sm:$0xff] }
   0xe   :  { %581 = vmatpush.msra.mxu0 %v165_v9  ;;  %982 = vmatpush.msra.mxu1 %v166_v10  ;;  %v42_v21 = vld [vmem:[%s9911_s1 + $0x48] sm:$0xff]  ;;  %v45_v24 = vld [vmem:[%s9911_s1 + $0x60] sm:$0xff]  ;;  %v47_v26 = vld [vmem:[%s9911_s1 + $0x70] sm:$0xff] }
   0xf   :  { %5845 = vmatmul.msk.f32.vlgmr.msra.gmra.mxu0 %vm181_vm0, %v33_v4  ;;  %5973 = vmatmul.msk.f32.vlgmr.msra.gmra.mxu1 %vm181_vm0, %v33_v4  ;;  %v46_v25 = vld [vmem:[%s9911_s1 + $0x68] sm:$0xff]  ;;  %v48_v27 = vld [vmem:[%s9911_s1 + $0x78] sm:$0xff]  ;;  %v49_v28 = vld [vmem:[%s9911_s1 + $0x80] sm:$0xff] }
  0x10   :  { %2184 = vmatpush.msrb.mxu0 %v177_v11  ;;  %2585 = vmatpush.msrb.mxu1 %v178_v12  ;;  %v50_v38 = vld [vmem:[%s9911_s1 + $0x88] sm:$0xff]  ;;  %v51_v47 = vld [vmem:[%s9911_s1 + $0x90] sm:$0xff]  ;;  %v52_v56 = vld [vmem:[%s9911_s1 + $0x98] sm:$0xff] }
  0x11   :  { %v53_v1 = vld [vmem:[%s9911_s1 + $0xa0] sm:$0xff]  ;;  %v54_v10 = vld [vmem:[%s9911_s1 + $0xa8] sm:$0xff] }
  0x12   :  { %6102 = vmatmul.msk.f32.gmra.mxu2 %vm181_vm0, %v34_v13  ;;  %6230 = vmatmul.msk.f32.gmra.mxu3 %vm181_vm0, %v34_v13 }
  0x17   :  { %5846 = vmatmul.msk.f32.gmra.mxu0 %vm181_vm0, %v34_v13  ;;  %5974 = vmatmul.msk.f32.gmra.mxu1 %vm181_vm0, %v34_v13 }
  0x1a   :  { %6103 = vmatmul.msk.f32.gmra.mxu2 %vm181_vm0, %v35_v14  ;;  %6231 = vmatmul.msk.f32.gmra.mxu3 %vm181_vm0, %v35_v14 }
  0x1f   :  { %5847 = vmatmul.msk.f32.gmra.mxu0 %vm181_vm0, %v35_v14  ;;  %5975 = vmatmul.msk.f32.gmra.mxu1 %vm181_vm0, %v35_v14 }
  0x22   :  { %6104 = vmatmul.msk.f32.gmra.mxu2 %vm181_vm0, %v36_v15  ;;  %6232 = vmatmul.msk.f32.gmra.mxu3 %vm181_vm0, %v36_v15 }
  0x27   :  { %5848 = vmatmul.msk.f32.gmra.mxu0 %vm181_vm0, %v36_v15  ;;  %5976 = vmatmul.msk.f32.gmra.mxu1 %vm181_vm0, %v36_v15 }
  0x2a   :  { %6105 = vmatmul.msk.f32.gmra.mxu2 %vm181_vm0, %v37_v16  ;;  %6233 = vmatmul.msk.f32.gmra.mxu3 %vm181_vm0, %v37_v16 }
  0x2f   :  { %5849 = vmatmul.msk.f32.gmra.mxu0 %vm181_vm0, %v37_v16  ;;  %5977 = vmatmul.msk.f32.gmra.mxu1 %vm181_vm0, %v37_v16 }
  0x32   :  { %6106 = vmatmul.msk.f32.gmra.mxu2 %vm181_vm0, %v38_v17  ;;  %6234 = vmatmul.msk.f32.gmra.mxu3 %vm181_vm0, %v38_v17 }
  0x37   :  { %5850 = vmatmul.msk.f32.gmra.mxu0 %vm181_vm0, %v38_v17  ;;  %5978 = vmatmul.msk.f32.gmra.mxu1 %vm181_vm0, %v38_v17 }
  0x3a   :  { %6107 = vmatmul.msk.f32.gmra.mxu2 %vm181_vm0, %v39_v18  ;;  %6235 = vmatmul.msk.f32.gmra.mxu3 %vm181_vm0, %v39_v18 }
  0x3f   :  { %5851 = vmatmul.msk.f32.gmra.mxu0 %vm181_vm0, %v39_v18  ;;  %5979 = vmatmul.msk.f32.gmra.mxu1 %vm181_vm0, %v39_v18 }
  0x42   :  { %6108 = vmatmul.msk.f32.gmra.mxu2 %vm181_vm0, %v40_v19  ;;  %6236 = vmatmul.msk.f32.gmra.mxu3 %vm181_vm0, %v40_v19 }
  0x47   :  { %5852 = vmatmul.msk.f32.gmra.mxu0 %vm181_vm0, %v40_v19  ;;  %5980 = vmatmul.msk.f32.gmra.mxu1 %vm181_vm0, %v40_v19  ;;  %v55_v19 = vld [vmem:[%s9911_s1 + $0xb0] sm:$0xff] }
  0x4a   :  { %6109 = vmatmul.msk.f32.gmra.mxu2 %vm181_vm0, %v41_v20  ;;  %6237 = vmatmul.msk.f32.gmra.mxu3 %vm181_vm0, %v41_v20 }
  0x4f   :  { %5853 = vmatmul.msk.f32.gmra.mxu0 %vm181_vm0, %v41_v20  ;;  %5981 = vmatmul.msk.f32.gmra.mxu1 %vm181_vm0, %v41_v20 }
  0x52   :  { %6110 = vmatmul.msk.f32.gmra.mxu2 %vm181_vm0, %v42_v21  ;;  %6238 = vmatmul.msk.f32.gmra.mxu3 %vm181_vm0, %v42_v21 }
  0x57   :  { %5854 = vmatmul.msk.f32.gmra.mxu0 %vm181_vm0, %v42_v21  ;;  %5982 = vmatmul.msk.f32.gmra.mxu1 %vm181_vm0, %v42_v21 }
  0x5a   :  { %6111 = vmatmul.msk.f32.gmra.mxu2 %vm181_vm0, %v43_v22  ;;  %6239 = vmatmul.msk.f32.gmra.mxu3 %vm181_vm0, %v43_v22 }
  0x5f   :  { %5855 = vmatmul.msk.f32.gmra.mxu0 %vm181_vm0, %v43_v22  ;;  %5983 = vmatmul.msk.f32.gmra.mxu1 %vm181_vm0, %v43_v22 }
  0x62   :  { %6112 = vmatmul.msk.f32.gmra.mxu2 %vm181_vm0, %v44_v23  ;;  %6240 = vmatmul.msk.f32.gmra.mxu3 %vm181_vm0, %v44_v23 }
  0x67   :  { %5856 = vmatmul.msk.f32.gmra.mxu0 %vm181_vm0, %v44_v23  ;;  %5984 = vmatmul.msk.f32.gmra.mxu1 %vm181_vm0, %v44_v23 }
  0x6a   :  { %6113 = vmatmul.msk.f32.gmra.mxu2 %vm181_vm0, %v45_v24  ;;  %6241 = vmatmul.msk.f32.gmra.mxu3 %vm181_vm0, %v45_v24 }
  0x6f   :  { %5857 = vmatmul.msk.f32.gmra.mxu0 %vm181_vm0, %v45_v24  ;;  %5985 = vmatmul.msk.f32.gmra.mxu1 %vm181_vm0, %v45_v24 }
  0x72   :  { %6114 = vmatmul.msk.f32.gmra.mxu2 %vm181_vm0, %v46_v25  ;;  %6242 = vmatmul.msk.f32.gmra.mxu3 %vm181_vm0, %v46_v25 }
  0x77   :  { %5858 = vmatmul.msk.f32.gmra.mxu0 %vm181_vm0, %v46_v25  ;;  %5986 = vmatmul.msk.f32.gmra.mxu1 %vm181_vm0, %v46_v25 }
  0x7a   :  { %6115 = vmatmul.msk.f32.gmra.mxu2 %vm181_vm0, %v47_v26  ;;  %6243 = vmatmul.msk.f32.gmra.mxu3 %vm181_vm0, %v47_v26 }
  0x7f   :  { %5859 = vmatmul.msk.f32.gmra.mxu0 %vm181_vm0, %v47_v26  ;;  %5987 = vmatmul.msk.f32.gmra.mxu1 %vm181_vm0, %v47_v26 }
  0x82   :  { %6116 = vmatmul.msk.f32.gmra.mxu2 %vm181_vm0, %v48_v27  ;;  %6244 = vmatmul.msk.f32.gmra.mxu3 %vm181_vm0, %v48_v27 }
  0x87   :  { %5860 = vmatmul.msk.f32.gmra.mxu0 %vm181_vm0, %v48_v27  ;;  %5988 = vmatmul.msk.f32.gmra.mxu1 %vm181_vm0, %v48_v27 }
  0x8a   :  { %6117 = vmatmul.msk.f32.gmra.mxu2 %vm181_vm0, %v49_v28  ;;  %6245 = vmatmul.msk.f32.gmra.mxu3 %vm181_vm0, %v49_v28 }
  0x8c   :  { %v583_v30 = vpop.f32.mrf.mxu0  ;;  %v984_v31 = vpop.f32.mrf.mxu1 }
  0x8d   :  { %v3776_v32 = vmul.f32 %v7203_v29, %v583_v30  ;;  %v3777_v33 = vmul.f32 %v7203_v29, %v984_v31  ;;  %v1385_v34 = vpop.f32.mrf.mxu2  ;;  %v1786_v35 = vpop.f32.mrf.mxu3 }
  0x8e   :  { %v3778_v36 = vmul.f32 %v7203_v29, %v1385_v34  ;;  %v3779_v37 = vmul.f32 %v7203_v29, %v1786_v35 }
  0x8f   :  { %4800 = vst [vmem:[#allocation6] sm:$0xff] %v3776_v32  ;;  %5861 = vmatmul.msk.f32.gmra.mxu0 %vm181_vm0, %v49_v28  ;;  %5989 = vmatmul.msk.f32.gmra.mxu1 %vm181_vm0, %v49_v28  ;;  %v56_v28 = vld [vmem:[%s9911_s1 + $0xb8] sm:$0xff] }
  0x90   :  { %4801 = vst [vmem:[#allocation6 + $0x8] sm:$0xff] %v3777_v33 }
  0x91   :  { %4802 = vst [vmem:[#allocation6 + $0x10] sm:$0xff] %v3778_v36 }
  0x92   :  { %4803 = vst [vmem:[#allocation6 + $0x18] sm:$0xff] %v3779_v37  ;;  %6118 = vmatmul.msk.f32.gmra.mxu2 %vm181_vm0, %v50_v38  ;;  %6246 = vmatmul.msk.f32.gmra.mxu3 %vm181_vm0, %v50_v38 }
  0x94   :  { %v586_v39 = vpop.f32.mrf.mxu0  ;;  %v987_v40 = vpop.f32.mrf.mxu1 }
  0x95   :  { %v3784_v41 = vmul.f32 %v7203_v29, %v586_v39  ;;  %v3785_v42 = vmul.f32 %v7203_v29, %v987_v40  ;;  %v1388_v43 = vpop.f32.mrf.mxu2  ;;  %v1789_v44 = vpop.f32.mrf.mxu3 }
  0x96   :  { %v3786_v45 = vmul.f32 %v7203_v29, %v1388_v43  ;;  %v3787_v46 = vmul.f32 %v7203_v29, %v1789_v44 }
  0x97   :  { %4808 = vst [vmem:[#allocation6 + $0x40] sm:$0xff] %v3784_v41  ;;  %5862 = vmatmul.msk.f32.gmra.mxu0 %vm181_vm0, %v50_v38  ;;  %5990 = vmatmul.msk.f32.gmra.mxu1 %vm181_vm0, %v50_v38  ;;  %v57_v38 = vld [vmem:[%s9911_s1 + $0xc0] sm:$0xff] }
  0x98   :  { %4809 = vst [vmem:[#allocation6 + $0x48] sm:$0xff] %v3785_v42 }
  0x99   :  { %4810 = vst [vmem:[#allocation6 + $0x50] sm:$0xff] %v3786_v45 }
  0x9a   :  { %4811 = vst [vmem:[#allocation6 + $0x58] sm:$0xff] %v3787_v46  ;;  %6119 = vmatmul.msk.f32.gmra.mxu2 %vm181_vm0, %v51_v47  ;;  %6247 = vmatmul.msk.f32.gmra.mxu3 %vm181_vm0, %v51_v47 }
  0x9c   :  { %v589_v48 = vpop.f32.mrf.mxu0  ;;  %v990_v49 = vpop.f32.mrf.mxu1 }
  0x9d   :  { %v3792_v50 = vmul.f32 %v7203_v29, %v589_v48  ;;  %v3793_v51 = vmul.f32 %v7203_v29, %v990_v49  ;;  %v1391_v52 = vpop.f32.mrf.mxu2  ;;  %v1792_v53 = vpop.f32.mrf.mxu3 }
  0x9e   :  { %v3794_v54 = vmul.f32 %v7203_v29, %v1391_v52  ;;  %v3795_v55 = vmul.f32 %v7203_v29, %v1792_v53 }
  0x9f   :  { %4816 = vst [vmem:[#allocation6 + $0x80] sm:$0xff] %v3792_v50  ;;  %5863 = vmatmul.msk.f32.gmra.mxu0 %vm181_vm0, %v51_v47  ;;  %5991 = vmatmul.msk.f32.gmra.mxu1 %vm181_vm0, %v51_v47  ;;  %v58_v47 = vld [vmem:[%s9911_s1 + $0xc8] sm:$0xff] }
  0xa0   :  { %4817 = vst [vmem:[#allocation6 + $0x88] sm:$0xff] %v3793_v51 }
  0xa1   :  { %4818 = vst [vmem:[#allocation6 + $0x90] sm:$0xff] %v3794_v54 }
  0xa2   :  { %4819 = vst [vmem:[#allocation6 + $0x98] sm:$0xff] %v3795_v55  ;;  %6120 = vmatmul.msk.f32.gmra.mxu2 %vm181_vm0, %v52_v56  ;;  %6248 = vmatmul.msk.f32.gmra.mxu3 %vm181_vm0, %v52_v56 }
  0xa4   :  { %v592_v57 = vpop.f32.mrf.mxu0  ;;  %v993_v58 = vpop.f32.mrf.mxu1 }
  0xa5   :  { %v3800_v59 = vmul.f32 %v7203_v29, %v592_v57  ;;  %v3801_v60 = vmul.f32 %v7203_v29, %v993_v58  ;;  %v1394_v61 = vpop.f32.mrf.mxu2  ;;  %v1795_v62 = vpop.f32.mrf.mxu3 }
  0xa6   :  { %v3802_v63 = vmul.f32 %v7203_v29, %v1394_v61  ;;  %v3803_v0 = vmul.f32 %v7203_v29, %v1795_v62 }
  0xa7   :  { %4824 = vst [vmem:[#allocation6 + $0xc0] sm:$0xff] %v3800_v59  ;;  %5864 = vmatmul.msk.f32.gmra.mxu0 %vm181_vm0, %v52_v56  ;;  %5992 = vmatmul.msk.f32.gmra.mxu1 %vm181_vm0, %v52_v56  ;;  %v59_v56 = vld [vmem:[%s9911_s1 + $0xd0] sm:$0xff] }
  0xa8   :  { %4825 = vst [vmem:[#allocation6 + $0xc8] sm:$0xff] %v3801_v60 }
  0xa9   :  { %4826 = vst [vmem:[#allocation6 + $0xd0] sm:$0xff] %v3802_v63 }
  0xaa   :  { %4827 = vst [vmem:[#allocation6 + $0xd8] sm:$0xff] %v3803_v0  ;;  %6121 = vmatmul.msk.f32.gmra.mxu2 %vm181_vm0, %v53_v1  ;;  %6249 = vmatmul.msk.f32.gmra.mxu3 %vm181_vm0, %v53_v1 }
  0xac   :  { %v595_v2 = vpop.f32.mrf.mxu0  ;;  %v996_v3 = vpop.f32.mrf.mxu1 }
  0xad   :  { %v3808_v4 = vmul.f32 %v7203_v29, %v595_v2  ;;  %v3809_v5 = vmul.f32 %v7203_v29, %v996_v3  ;;  %v1397_v6 = vpop.f32.mrf.mxu2  ;;  %v1798_v7 = vpop.f32.mrf.mxu3 }
  0xae   :  { %v3810_v8 = vmul.f32 %v7203_v29, %v1397_v6  ;;  %v3811_v9 = vmul.f32 %v7203_v29, %v1798_v7 }
  0xaf   :  { %4832 = vst [vmem:[#allocation6 + $0x100] sm:$0xff] %v3808_v4  ;;  %5865 = vmatmul.msk.f32.gmra.mxu0 %vm181_vm0, %v53_v1  ;;  %5993 = vmatmul.msk.f32.gmra.mxu1 %vm181_vm0, %v53_v1  ;;  %v60_v1 = vld [vmem:[%s9911_s1 + $0xd8] sm:$0xff] }
  0xb0   :  { %4833 = vst [vmem:[#allocation6 + $0x108] sm:$0xff] %v3809_v5 }
  0xb1   :  { %4834 = vst [vmem:[#allocation6 + $0x110] sm:$0xff] %v3810_v8 }
  0xb2   :  { %4835 = vst [vmem:[#allocation6 + $0x118] sm:$0xff] %v3811_v9  ;;  %6122 = vmatmul.msk.f32.gmra.mxu2 %vm181_vm0, %v54_v10  ;;  %6250 = vmatmul.msk.f32.gmra.mxu3 %vm181_vm0, %v54_v10 }
  0xb4   :  { %v598_v11 = vpop.f32.mrf.mxu0  ;;  %v999_v12 = vpop.f32.mrf.mxu1 }
  0xb5   :  { %v3816_v13 = vmul.f32 %v7203_v29, %v598_v11  ;;  %v3817_v14 = vmul.f32 %v7203_v29, %v999_v12  ;;  %v1400_v15 = vpop.f32.mrf.mxu2  ;;  %v1801_v16 = vpop.f32.mrf.mxu3 }
  0xb6   :  { %v3818_v17 = vmul.f32 %v7203_v29, %v1400_v15  ;;  %v3819_v18 = vmul.f32 %v7203_v29, %v1801_v16 }
  0xb7   :  { %4840 = vst [vmem:[#allocation6 + $0x140] sm:$0xff] %v3816_v13  ;;  %5866 = vmatmul.msk.f32.gmra.mxu0 %vm181_vm0, %v54_v10  ;;  %5994 = vmatmul.msk.f32.gmra.mxu1 %vm181_vm0, %v54_v10  ;;  %v61_v10 = vld [vmem:[%s9911_s1 + $0xe0] sm:$0xff] }
  0xb8   :  { %4841 = vst [vmem:[#allocation6 + $0x148] sm:$0xff] %v3817_v14 }
  0xb9   :  { %4842 = vst [vmem:[#allocation6 + $0x150] sm:$0xff] %v3818_v17 }
  0xba   :  { %4843 = vst [vmem:[#allocation6 + $0x158] sm:$0xff] %v3819_v18  ;;  %6123 = vmatmul.msk.f32.gmra.mxu2 %vm181_vm0, %v55_v19  ;;  %6251 = vmatmul.msk.f32.gmra.mxu3 %vm181_vm0, %v55_v19 }
  0xbc   :  { %v601_v20 = vpop.f32.mrf.mxu0  ;;  %v1002_v21 = vpop.f32.mrf.mxu1 }
  0xbd   :  { %v3824_v22 = vmul.f32 %v7203_v29, %v601_v20  ;;  %v3825_v23 = vmul.f32 %v7203_v29, %v1002_v21  ;;  %v1403_v24 = vpop.f32.mrf.mxu2  ;;  %v1804_v25 = vpop.f32.mrf.mxu3 }
  0xbe   :  { %v3826_v26 = vmul.f32 %v7203_v29, %v1403_v24  ;;  %v3827_v27 = vmul.f32 %v7203_v29, %v1804_v25 }
  0xbf   :  { %4848 = vst [vmem:[#allocation6 + $0x180] sm:$0xff] %v3824_v22  ;;  %5867 = vmatmul.msk.f32.gmra.mxu0 %vm181_vm0, %v55_v19  ;;  %5995 = vmatmul.msk.f32.gmra.mxu1 %vm181_vm0, %v55_v19  ;;  %v62_v19 = vld [vmem:[%s9911_s1 + $0xe8] sm:$0xff] }
  0xc0   :  { %4849 = vst [vmem:[#allocation6 + $0x188] sm:$0xff] %v3825_v23 }
  0xc1   :  { %4850 = vst [vmem:[#allocation6 + $0x190] sm:$0xff] %v3826_v26 }
  0xc2   :  { %4851 = vst [vmem:[#allocation6 + $0x198] sm:$0xff] %v3827_v27  ;;  %6124 = vmatmul.msk.f32.gmra.mxu2 %vm181_vm0, %v56_v28  ;;  %6252 = vmatmul.msk.f32.gmra.mxu3 %vm181_vm0, %v56_v28 }
  0xc4   :  { %v604_v30 = vpop.f32.mrf.mxu0  ;;  %v1005_v31 = vpop.f32.mrf.mxu1 }
  0xc5   :  { %v3832_v32 = vmul.f32 %v7203_v29, %v604_v30  ;;  %v3833_v33 = vmul.f32 %v7203_v29, %v1005_v31  ;;  %v1406_v34 = vpop.f32.mrf.mxu2  ;;  %v1807_v35 = vpop.f32.mrf.mxu3 }
  0xc6   :  { %v3834_v36 = vmul.f32 %v7203_v29, %v1406_v34  ;;  %v3835_v37 = vmul.f32 %v7203_v29, %v1807_v35 }
  0xc7   :  { %4856 = vst [vmem:[#allocation6 + $0x1c0] sm:$0xff] %v3832_v32  ;;  %5868 = vmatmul.msk.f32.gmra.mxu0 %vm181_vm0, %v56_v28  ;;  %5996 = vmatmul.msk.f32.gmra.mxu1 %vm181_vm0, %v56_v28  ;;  %v63_v28 = vld [vmem:[%s9911_s1 + $0xf0] sm:$0xff] }
  0xc8   :  { %4857 = vst [vmem:[#allocation6 + $0x1c8] sm:$0xff] %v3833_v33 }
  0xc9   :  { %4858 = vst [vmem:[#allocation6 + $0x1d0] sm:$0xff] %v3834_v36 }
  0xca   :  { %4859 = vst [vmem:[#allocation6 + $0x1d8] sm:$0xff] %v3835_v37  ;;  %6125 = vmatmul.msk.f32.gmra.mxu2 %vm181_vm0, %v57_v38  ;;  %6253 = vmatmul.msk.f32.gmra.mxu3 %vm181_vm0, %v57_v38 }
  0xcc   :  { %v607_v39 = vpop.f32.mrf.mxu0  ;;  %v1008_v40 = vpop.f32.mrf.mxu1 }
  0xcd   :  { %v3840_v41 = vmul.f32 %v7203_v29, %v607_v39  ;;  %v3841_v42 = vmul.f32 %v7203_v29, %v1008_v40  ;;  %v1409_v43 = vpop.f32.mrf.mxu2  ;;  %v1810_v44 = vpop.f32.mrf.mxu3 }
  0xce   :  { %v3842_v45 = vmul.f32 %v7203_v29, %v1409_v43  ;;  %v3843_v46 = vmul.f32 %v7203_v29, %v1810_v44 }
  0xcf   :  { %4864 = vst [vmem:[#allocation6 + $0x200] sm:$0xff] %v3840_v41  ;;  %5869 = vmatmul.msk.f32.gmra.mxu0 %vm181_vm0, %v57_v38  ;;  %5997 = vmatmul.msk.f32.gmra.mxu1 %vm181_vm0, %v57_v38  ;;  %v64_v38 = vld [vmem:[%s9911_s1 + $0xf8] sm:$0xff] }
  0xd0   :  { %4865 = vst [vmem:[#allocation6 + $0x208] sm:$0xff] %v3841_v42 }
  0xd1   :  { %4866 = vst [vmem:[#allocation6 + $0x210] sm:$0xff] %v3842_v45 }
  0xd2   :  { %4867 = vst [vmem:[#allocation6 + $0x218] sm:$0xff] %v3843_v46  ;;  %6126 = vmatmul.msk.f32.gmra.mxu2 %vm181_vm0, %v58_v47  ;;  %6254 = vmatmul.msk.f32.gmra.mxu3 %vm181_vm0, %v58_v47 }
  0xd4   :  { %v610_v48 = vpop.f32.mrf.mxu0  ;;  %v1011_v49 = vpop.f32.mrf.mxu1 }
  0xd5   :  { %v3848_v50 = vmul.f32 %v7203_v29, %v610_v48  ;;  %v3849_v51 = vmul.f32 %v7203_v29, %v1011_v49  ;;  %v1412_v52 = vpop.f32.mrf.mxu2  ;;  %v1813_v53 = vpop.f32.mrf.mxu3 }
  0xd6   :  { %v3850_v54 = vmul.f32 %v7203_v29, %v1412_v52  ;;  %v3851_v55 = vmul.f32 %v7203_v29, %v1813_v53 }
  0xd7   :  { %4872 = vst [vmem:[#allocation6 + $0x240] sm:$0xff] %v3848_v50  ;;  %5870 = vmatmul.msk.f32.gmra.mxu0 %vm181_vm0, %v58_v47  ;;  %5998 = vmatmul.msk.f32.gmra.mxu1 %vm181_vm0, %v58_v47  ;;  %v65_v47 = vld [vmem:[%s9911_s1 + $0x100] sm:$0xff] }
  0xd8   :  { %4873 = vst [vmem:[#allocation6 + $0x248] sm:$0xff] %v3849_v51 }
  0xd9   :  { %4874 = vst [vmem:[#allocation6 + $0x250] sm:$0xff] %v3850_v54 }
  0xda   :  { %4875 = vst [vmem:[#allocation6 + $0x258] sm:$0xff] %v3851_v55  ;;  %6127 = vmatmul.msk.f32.gmra.mxu2 %vm181_vm0, %v59_v56  ;;  %6255 = vmatmul.msk.f32.gmra.mxu3 %vm181_vm0, %v59_v56 }
  0xdc   :  { %v613_v57 = vpop.f32.mrf.mxu0  ;;  %v1014_v58 = vpop.f32.mrf.mxu1 }
  0xdd   :  { %v3856_v59 = vmul.f32 %v7203_v29, %v613_v57  ;;  %v3857_v60 = vmul.f32 %v7203_v29, %v1014_v58  ;;  %v1415_v61 = vpop.f32.mrf.mxu2  ;;  %v1816_v62 = vpop.f32.mrf.mxu3 }
  0xde   :  { %v3858_v63 = vmul.f32 %v7203_v29, %v1415_v61  ;;  %v3859_v0 = vmul.f32 %v7203_v29, %v1816_v62 }
  0xdf   :  { %4880 = vst [vmem:[#allocation6 + $0x280] sm:$0xff] %v3856_v59  ;;  %5871 = vmatmul.msk.f32.gmra.mxu0 %vm181_vm0, %v59_v56  ;;  %5999 = vmatmul.msk.f32.gmra.mxu1 %vm181_vm0, %v59_v56  ;;  %v66_v56 = vld [vmem:[%s9911_s1 + $0x108] sm:$0xff] }
  0xe0   :  { %4881 = vst [vmem:[#allocation6 + $0x288] sm:$0xff] %v3857_v60 }
  0xe1   :  { %4882 = vst [vmem:[#allocation6 + $0x290] sm:$0xff] %v3858_v63 }
  0xe2   :  { %4883 = vst [vmem:[#allocation6 + $0x298] sm:$0xff] %v3859_v0  ;;  %6128 = vmatmul.msk.f32.gmra.mxu2 %vm181_vm0, %v60_v1  ;;  %6256 = vmatmul.msk.f32.gmra.mxu3 %vm181_vm0, %v60_v1 }
  0xe4   :  { %v616_v2 = vpop.f32.mrf.mxu0  ;;  %v1017_v3 = vpop.f32.mrf.mxu1 }
  0xe5   :  { %v3864_v4 = vmul.f32 %v7203_v29, %v616_v2  ;;  %v3865_v5 = vmul.f32 %v7203_v29, %v1017_v3  ;;  %v1418_v6 = vpop.f32.mrf.mxu2  ;;  %v1819_v7 = vpop.f32.mrf.mxu3 }
  0xe6   :  { %v3866_v8 = vmul.f32 %v7203_v29, %v1418_v6  ;;  %v3867_v9 = vmul.f32 %v7203_v29, %v1819_v7 }
  0xe7   :  { %4888 = vst [vmem:[#allocation6 + $0x2c0] sm:$0xff] %v3864_v4  ;;  %5872 = vmatmul.msk.f32.gmra.mxu0 %vm181_vm0, %v60_v1  ;;  %6000 = vmatmul.msk.f32.gmra.mxu1 %vm181_vm0, %v60_v1  ;;  %v67_v1 = vld [vmem:[%s9911_s1 + $0x110] sm:$0xff] }
  0xe8   :  { %4889 = vst [vmem:[#allocation6 + $0x2c8] sm:$0xff] %v3865_v5 }
  0xe9   :  { %4890 = vst [vmem:[#allocation6 + $0x2d0] sm:$0xff] %v3866_v8 }
  0xea   :  { %4891 = vst [vmem:[#allocation6 + $0x2d8] sm:$0xff] %v3867_v9  ;;  %6129 = vmatmul.msk.f32.gmra.mxu2 %vm181_vm0, %v61_v10  ;;  %6257 = vmatmul.msk.f32.gmra.mxu3 %vm181_vm0, %v61_v10 }
  0xec   :  { %v619_v11 = vpop.f32.mrf.mxu0  ;;  %v1020_v12 = vpop.f32.mrf.mxu1 }
  0xed   :  { %v3872_v13 = vmul.f32 %v7203_v29, %v619_v11  ;;  %v3873_v14 = vmul.f32 %v7203_v29, %v1020_v12  ;;  %v1421_v15 = vpop.f32.mrf.mxu2  ;;  %v1822_v16 = vpop.f32.mrf.mxu3 }
  0xee   :  { %v3874_v17 = vmul.f32 %v7203_v29, %v1421_v15  ;;  %v3875_v18 = vmul.f32 %v7203_v29, %v1822_v16 }
  0xef   :  { %4896 = vst [vmem:[#allocation6 + $0x300] sm:$0xff] %v3872_v13  ;;  %5873 = vmatmul.msk.f32.gmra.mxu0 %vm181_vm0, %v61_v10  ;;  %6001 = vmatmul.msk.f32.gmra.mxu1 %vm181_vm0, %v61_v10  ;;  %v68_v10 = vld [vmem:[%s9911_s1 + $0x118] sm:$0xff] }
  0xf0   :  { %4897 = vst [vmem:[#allocation6 + $0x308] sm:$0xff] %v3873_v14 }
  0xf1   :  { %4898 = vst [vmem:[#allocation6 + $0x310] sm:$0xff] %v3874_v17 }
  0xf2   :  { %4899 = vst [vmem:[#allocation6 + $0x318] sm:$0xff] %v3875_v18  ;;  %6130 = vmatmul.msk.f32.gmra.mxu2 %vm181_vm0, %v62_v19  ;;  %6258 = vmatmul.msk.f32.gmra.mxu3 %vm181_vm0, %v62_v19 }
  0xf4   :  { %v622_v20 = vpop.f32.mrf.mxu0  ;;  %v1023_v21 = vpop.f32.mrf.mxu1 }
  0xf5   :  { %v3880_v22 = vmul.f32 %v7203_v29, %v622_v20  ;;  %v3881_v23 = vmul.f32 %v7203_v29, %v1023_v21  ;;  %v1424_v24 = vpop.f32.mrf.mxu2  ;;  %v1825_v25 = vpop.f32.mrf.mxu3 }
  0xf6   :  { %v3882_v26 = vmul.f32 %v7203_v29, %v1424_v24  ;;  %v3883_v27 = vmul.f32 %v7203_v29, %v1825_v25 }
  0xf7   :  { %4904 = vst [vmem:[#allocation6 + $0x340] sm:$0xff] %v3880_v22  ;;  %5874 = vmatmul.msk.f32.gmra.mxu0 %vm181_vm0, %v62_v19  ;;  %6002 = vmatmul.msk.f32.gmra.mxu1 %vm181_vm0, %v62_v19  ;;  %v69_v19 = vld [vmem:[%s9911_s1 + $0x120] sm:$0xff] }
  0xf8   :  { %4905 = vst [vmem:[#allocation6 + $0x348] sm:$0xff] %v3881_v23 }
  0xf9   :  { %4906 = vst [vmem:[#allocation6 + $0x350] sm:$0xff] %v3882_v26 }
  0xfa   :  { %4907 = vst [vmem:[#allocation6 + $0x358] sm:$0xff] %v3883_v27  ;;  %6131 = vmatmul.msk.f32.gmra.mxu2 %vm181_vm0, %v63_v28  ;;  %6259 = vmatmul.msk.f32.gmra.mxu3 %vm181_vm0, %v63_v28 }
  0xfc   :  { %v625_v30 = vpop.f32.mrf.mxu0  ;;  %v1026_v31 = vpop.f32.mrf.mxu1 }
  0xfd   :  { %v3888_v32 = vmul.f32 %v7203_v29, %v625_v30  ;;  %v3889_v33 = vmul.f32 %v7203_v29, %v1026_v31  ;;  %v1427_v34 = vpop.f32.mrf.mxu2  ;;  %v1828_v35 = vpop.f32.mrf.mxu3 }
  0xfe   :  { %v3890_v36 = vmul.f32 %v7203_v29, %v1427_v34  ;;  %v3891_v37 = vmul.f32 %v7203_v29, %v1828_v35 }
  0xff   :  { %4912 = vst [vmem:[#allocation6 + $0x380] sm:$0xff] %v3888_v32  ;;  %5875 = vmatmul.msk.f32.gmra.mxu0 %vm181_vm0, %v63_v28  ;;  %6003 = vmatmul.msk.f32.gmra.mxu1 %vm181_vm0, %v63_v28  ;;  %v70_v28 = vld [vmem:[%s9911_s1 + $0x128] sm:$0xff] }
 0x100   :  { %4913 = vst [vmem:[#allocation6 + $0x388] sm:$0xff] %v3889_v33 }
 0x101   :  { %4914 = vst [vmem:[#allocation6 + $0x390] sm:$0xff] %v3890_v36 }
 0x102   :  { %4915 = vst [vmem:[#allocation6 + $0x398] sm:$0xff] %v3891_v37  ;;  %6132 = vmatmul.msk.f32.gmra.mxu2 %vm181_vm0, %v64_v38  ;;  %6260 = vmatmul.msk.f32.gmra.mxu3 %vm181_vm0, %v64_v38 }
 0x104   :  { %v628_v39 = vpop.f32.mrf.mxu0  ;;  %v1029_v40 = vpop.f32.mrf.mxu1 }
 0x105   :  { %v3896_v41 = vmul.f32 %v7203_v29, %v628_v39  ;;  %v3897_v42 = vmul.f32 %v7203_v29, %v1029_v40  ;;  %v1430_v43 = vpop.f32.mrf.mxu2  ;;  %v1831_v44 = vpop.f32.mrf.mxu3 }
 0x106   :  { %v3898_v45 = vmul.f32 %v7203_v29, %v1430_v43  ;;  %v3899_v46 = vmul.f32 %v7203_v29, %v1831_v44 }
 0x107   :  { %4920 = vst [vmem:[#allocation6 + $0x3c0] sm:$0xff] %v3896_v41  ;;  %5876 = vmatmul.msk.f32.gmra.mxu0 %vm181_vm0, %v64_v38  ;;  %6004 = vmatmul.msk.f32.gmra.mxu1 %vm181_vm0, %v64_v38  ;;  %v71_v38 = vld [vmem:[%s9911_s1 + $0x130] sm:$0xff] }
 0x108   :  { %4921 = vst [vmem:[#allocation6 + $0x3c8] sm:$0xff] %v3897_v42 }
 0x109   :  { %4922 = vst [vmem:[#allocation6 + $0x3d0] sm:$0xff] %v3898_v45 }
 0x10a   :  { %4923 = vst [vmem:[#allocation6 + $0x3d8] sm:$0xff] %v3899_v46  ;;  %6133 = vmatmul.msk.f32.gmra.mxu2 %vm181_vm0, %v65_v47  ;;  %6261 = vmatmul.msk.f32.gmra.mxu3 %vm181_vm0, %v65_v47 }
 0x10c   :  { %v631_v48 = vpop.f32.mrf.mxu0  ;;  %v1032_v49 = vpop.f32.mrf.mxu1 }
 0x10d   :  { %v3904_v50 = vmul.f32 %v7203_v29, %v631_v48  ;;  %v3905_v51 = vmul.f32 %v7203_v29, %v1032_v49  ;;  %v1433_v52 = vpop.f32.mrf.mxu2  ;;  %v1834_v53 = vpop.f32.mrf.mxu3 }
 0x10e   :  { %v3906_v54 = vmul.f32 %v7203_v29, %v1433_v52  ;;  %v3907_v55 = vmul.f32 %v7203_v29, %v1834_v53 }
 0x10f   :  { %4928 = vst [vmem:[#allocation6 + $0x400] sm:$0xff] %v3904_v50  ;;  %5877 = vmatmul.msk.f32.gmra.mxu0 %vm181_vm0, %v65_v47  ;;  %6005 = vmatmul.msk.f32.gmra.mxu1 %vm181_vm0, %v65_v47  ;;  %v72_v47 = vld [vmem:[%s9911_s1 + $0x138] sm:$0xff] }
 0x110   :  { %4929 = vst [vmem:[#allocation6 + $0x408] sm:$0xff] %v3905_v51 }
 0x111   :  { %4930 = vst [vmem:[#allocation6 + $0x410] sm:$0xff] %v3906_v54 }
 0x112   :  { %4931 = vst [vmem:[#allocation6 + $0x418] sm:$0xff] %v3907_v55  ;;  %6134 = vmatmul.msk.f32.gmra.mxu2 %vm181_vm0, %v66_v56  ;;  %6262 = vmatmul.msk.f32.gmra.mxu3 %vm181_vm0, %v66_v56 }
 0x114   :  { %v634_v57 = vpop.f32.mrf.mxu0  ;;  %v1035_v58 = vpop.f32.mrf.mxu1 }
 0x115   :  { %v3912_v59 = vmul.f32 %v7203_v29, %v634_v57  ;;  %v3913_v60 = vmul.f32 %v7203_v29, %v1035_v58  ;;  %v1436_v61 = vpop.f32.mrf.mxu2  ;;  %v1837_v62 = vpop.f32.mrf.mxu3 }
 0x116   :  { %v3914_v63 = vmul.f32 %v7203_v29, %v1436_v61  ;;  %v3915_v0 = vmul.f32 %v7203_v29, %v1837_v62 }
 0x117   :  { %4936 = vst [vmem:[#allocation6 + $0x440] sm:$0xff] %v3912_v59  ;;  %5878 = vmatmul.msk.f32.gmra.mxu0 %vm181_vm0, %v66_v56  ;;  %6006 = vmatmul.msk.f32.gmra.mxu1 %vm181_vm0, %v66_v56  ;;  %v73_v56 = vld [vmem:[%s9911_s1 + $0x140] sm:$0xff] }
 0x118   :  { %4937 = vst [vmem:[#allocation6 + $0x448] sm:$0xff] %v3913_v60 }
 0x119   :  { %4938 = vst [vmem:[#allocation6 + $0x450] sm:$0xff] %v3914_v63 }
 0x11a   :  { %4939 = vst [vmem:[#allocation6 + $0x458] sm:$0xff] %v3915_v0  ;;  %6135 = vmatmul.msk.f32.gmra.mxu2 %vm181_vm0, %v67_v1  ;;  %6263 = vmatmul.msk.f32.gmra.mxu3 %vm181_vm0, %v67_v1 }
 0x11c   :  { %v637_v2 = vpop.f32.mrf.mxu0  ;;  %v1038_v3 = vpop.f32.mrf.mxu1 }
 0x11d   :  { %v3920_v4 = vmul.f32 %v7203_v29, %v637_v2  ;;  %v3921_v5 = vmul.f32 %v7203_v29, %v1038_v3  ;;  %v1439_v6 = vpop.f32.mrf.mxu2  ;;  %v1840_v7 = vpop.f32.mrf.mxu3 }
 0x11e   :  { %v3922_v8 = vmul.f32 %v7203_v29, %v1439_v6  ;;  %v3923_v9 = vmul.f32 %v7203_v29, %v1840_v7 }
 0x11f   :  { %4944 = vst [vmem:[#allocation6 + $0x480] sm:$0xff] %v3920_v4  ;;  %5879 = vmatmul.msk.f32.gmra.mxu0 %vm181_vm0, %v67_v1  ;;  %6007 = vmatmul.msk.f32.gmra.mxu1 %vm181_vm0, %v67_v1  ;;  %v74_v1 = vld [vmem:[%s9911_s1 + $0x148] sm:$0xff] }
 0x120   :  { %4945 = vst [vmem:[#allocation6 + $0x488] sm:$0xff] %v3921_v5 }
 0x121   :  { %4946 = vst [vmem:[#allocation6 + $0x490] sm:$0xff] %v3922_v8 }
 0x122   :  { %4947 = vst [vmem:[#allocation6 + $0x498] sm:$0xff] %v3923_v9  ;;  %6136 = vmatmul.msk.f32.gmra.mxu2 %vm181_vm0, %v68_v10  ;;  %6264 = vmatmul.msk.f32.gmra.mxu3 %vm181_vm0, %v68_v10 }
 0x124   :  { %v640_v11 = vpop.f32.mrf.mxu0  ;;  %v1041_v12 = vpop.f32.mrf.mxu1 }
 0x125   :  { %v3928_v13 = vmul.f32 %v7203_v29, %v640_v11  ;;  %v3929_v14 = vmul.f32 %v7203_v29, %v1041_v12  ;;  %v1442_v15 = vpop.f32.mrf.mxu2  ;;  %v1843_v16 = vpop.f32.mrf.mxu3 }
 0x126   :  { %v3930_v17 = vmul.f32 %v7203_v29, %v1442_v15  ;;  %v3931_v18 = vmul.f32 %v7203_v29, %v1843_v16 }
 0x127   :  { %4952 = vst [vmem:[#allocation6 + $0x4c0] sm:$0xff] %v3928_v13  ;;  %5880 = vmatmul.msk.f32.gmra.mxu0 %vm181_vm0, %v68_v10  ;;  %6008 = vmatmul.msk.f32.gmra.mxu1 %vm181_vm0, %v68_v10  ;;  %v75_v10 = vld [vmem:[%s9911_s1 + $0x150] sm:$0xff] }
 0x128   :  { %4953 = vst [vmem:[#allocation6 + $0x4c8] sm:$0xff] %v3929_v14 }
 0x129   :  { %4954 = vst [vmem:[#allocation6 + $0x4d0] sm:$0xff] %v3930_v17 }
 0x12a   :  { %4955 = vst [vmem:[#allocation6 + $0x4d8] sm:$0xff] %v3931_v18  ;;  %6137 = vmatmul.msk.f32.gmra.mxu2 %vm181_vm0, %v69_v19  ;;  %6265 = vmatmul.msk.f32.gmra.mxu3 %vm181_vm0, %v69_v19 }
 0x12c   :  { %v643_v20 = vpop.f32.mrf.mxu0  ;;  %v1044_v21 = vpop.f32.mrf.mxu1 }
 0x12d   :  { %v3936_v22 = vmul.f32 %v7203_v29, %v643_v20  ;;  %v3937_v23 = vmul.f32 %v7203_v29, %v1044_v21  ;;  %v1445_v24 = vpop.f32.mrf.mxu2  ;;  %v1846_v25 = vpop.f32.mrf.mxu3 }
 0x12e   :  { %v3938_v26 = vmul.f32 %v7203_v29, %v1445_v24  ;;  %v3939_v27 = vmul.f32 %v7203_v29, %v1846_v25 }
 0x12f   :  { %4960 = vst [vmem:[#allocation6 + $0x500] sm:$0xff] %v3936_v22  ;;  %5881 = vmatmul.msk.f32.gmra.mxu0 %vm181_vm0, %v69_v19  ;;  %6009 = vmatmul.msk.f32.gmra.mxu1 %vm181_vm0, %v69_v19  ;;  %v76_v19 = vld [vmem:[%s9911_s1 + $0x158] sm:$0xff] }
 0x130   :  { %4961 = vst [vmem:[#allocation6 + $0x508] sm:$0xff] %v3937_v23 }
 0x131   :  { %4962 = vst [vmem:[#allocation6 + $0x510] sm:$0xff] %v3938_v26 }
 0x132   :  { %4963 = vst [vmem:[#allocation6 + $0x518] sm:$0xff] %v3939_v27  ;;  %6138 = vmatmul.msk.f32.gmra.mxu2 %vm181_vm0, %v70_v28  ;;  %6266 = vmatmul.msk.f32.gmra.mxu3 %vm181_vm0, %v70_v28 }
 0x134   :  { %v646_v30 = vpop.f32.mrf.mxu0  ;;  %v1047_v31 = vpop.f32.mrf.mxu1 }
 0x135   :  { %v3944_v32 = vmul.f32 %v7203_v29, %v646_v30  ;;  %v3945_v33 = vmul.f32 %v7203_v29, %v1047_v31  ;;  %v1448_v34 = vpop.f32.mrf.mxu2  ;;  %v1849_v35 = vpop.f32.mrf.mxu3 }
 0x136   :  { %v3946_v36 = vmul.f32 %v7203_v29, %v1448_v34  ;;  %v3947_v37 = vmul.f32 %v7203_v29, %v1849_v35 }
 0x137   :  { %4968 = vst [vmem:[#allocation6 + $0x540] sm:$0xff] %v3944_v32  ;;  %5882 = vmatmul.msk.f32.gmra.mxu0 %vm181_vm0, %v70_v28  ;;  %6010 = vmatmul.msk.f32.gmra.mxu1 %vm181_vm0, %v70_v28  ;;  %v77_v28 = vld [vmem:[%s9911_s1 + $0x160] sm:$0xff] }
 0x138   :  { %4969 = vst [vmem:[#allocation6 + $0x548] sm:$0xff] %v3945_v33 }
 0x139   :  { %4970 = vst [vmem:[#allocation6 + $0x550] sm:$0xff] %v3946_v36 }
 0x13a   :  { %4971 = vst [vmem:[#allocation6 + $0x558] sm:$0xff] %v3947_v37  ;;  %6139 = vmatmul.msk.f32.gmra.mxu2 %vm181_vm0, %v71_v38  ;;  %6267 = vmatmul.msk.f32.gmra.mxu3 %vm181_vm0, %v71_v38 }
 0x13c   :  { %v649_v39 = vpop.f32.mrf.mxu0  ;;  %v1050_v40 = vpop.f32.mrf.mxu1 }
 0x13d   :  { %v3952_v41 = vmul.f32 %v7203_v29, %v649_v39  ;;  %v3953_v42 = vmul.f32 %v7203_v29, %v1050_v40  ;;  %v1451_v43 = vpop.f32.mrf.mxu2  ;;  %v1852_v44 = vpop.f32.mrf.mxu3 }
 0x13e   :  { %v3954_v45 = vmul.f32 %v7203_v29, %v1451_v43  ;;  %v3955_v46 = vmul.f32 %v7203_v29, %v1852_v44 }
 0x13f   :  { %4976 = vst [vmem:[#allocation6 + $0x580] sm:$0xff] %v3952_v41  ;;  %5883 = vmatmul.msk.f32.gmra.mxu0 %vm181_vm0, %v71_v38  ;;  %6011 = vmatmul.msk.f32.gmra.mxu1 %vm181_vm0, %v71_v38  ;;  %v78_v38 = vld [vmem:[%s9911_s1 + $0x168] sm:$0xff] }
 0x140   :  { %4977 = vst [vmem:[#allocation6 + $0x588] sm:$0xff] %v3953_v42 }
 0x141   :  { %4978 = vst [vmem:[#allocation6 + $0x590] sm:$0xff] %v3954_v45 }
 0x142   :  { %4979 = vst [vmem:[#allocation6 + $0x598] sm:$0xff] %v3955_v46  ;;  %6140 = vmatmul.msk.f32.gmra.mxu2 %vm181_vm0, %v72_v47  ;;  %6268 = vmatmul.msk.f32.gmra.mxu3 %vm181_vm0, %v72_v47 }
 0x144   :  { %v652_v48 = vpop.f32.mrf.mxu0  ;;  %v1053_v49 = vpop.f32.mrf.mxu1 }
 0x145   :  { %v3960_v50 = vmul.f32 %v7203_v29, %v652_v48  ;;  %v3961_v51 = vmul.f32 %v7203_v29, %v1053_v49  ;;  %v1454_v52 = vpop.f32.mrf.mxu2  ;;  %v1855_v53 = vpop.f32.mrf.mxu3 }
 0x146   :  { %v3962_v54 = vmul.f32 %v7203_v29, %v1454_v52  ;;  %v3963_v55 = vmul.f32 %v7203_v29, %v1855_v53 }
 0x147   :  { %4984 = vst [vmem:[#allocation6 + $0x5c0] sm:$0xff] %v3960_v50  ;;  %5884 = vmatmul.msk.f32.gmra.mxu0 %vm181_vm0, %v72_v47  ;;  %6012 = vmatmul.msk.f32.gmra.mxu1 %vm181_vm0, %v72_v47  ;;  %v79_v47 = vld [vmem:[%s9911_s1 + $0x170] sm:$0xff] }
 0x148   :  { %4985 = vst [vmem:[#allocation6 + $0x5c8] sm:$0xff] %v3961_v51 }
 0x149   :  { %4986 = vst [vmem:[#allocation6 + $0x5d0] sm:$0xff] %v3962_v54 }
 0x14a   :  { %4987 = vst [vmem:[#allocation6 + $0x5d8] sm:$0xff] %v3963_v55  ;;  %6141 = vmatmul.msk.f32.gmra.mxu2 %vm181_vm0, %v73_v56  ;;  %6269 = vmatmul.msk.f32.gmra.mxu3 %vm181_vm0, %v73_v56 }
 0x14c   :  { %v655_v57 = vpop.f32.mrf.mxu0  ;;  %v1056_v58 = vpop.f32.mrf.mxu1 }
 0x14d   :  { %v3968_v59 = vmul.f32 %v7203_v29, %v655_v57  ;;  %v3969_v60 = vmul.f32 %v7203_v29, %v1056_v58  ;;  %v1457_v61 = vpop.f32.mrf.mxu2  ;;  %v1858_v62 = vpop.f32.mrf.mxu3 }
 0x14e   :  { %v3970_v63 = vmul.f32 %v7203_v29, %v1457_v61  ;;  %v3971_v0 = vmul.f32 %v7203_v29, %v1858_v62 }
 0x14f   :  { %4992 = vst [vmem:[#allocation6 + $0x600] sm:$0xff] %v3968_v59  ;;  %5885 = vmatmul.msk.f32.gmra.mxu0 %vm181_vm0, %v73_v56  ;;  %6013 = vmatmul.msk.f32.gmra.mxu1 %vm181_vm0, %v73_v56  ;;  %v80_v56 = vld [vmem:[%s9911_s1 + $0x178] sm:$0xff] }
 0x150   :  { %4993 = vst [vmem:[#allocation6 + $0x608] sm:$0xff] %v3969_v60 }
 0x151   :  { %4994 = vst [vmem:[#allocation6 + $0x610] sm:$0xff] %v3970_v63 }
 0x152   :  { %4995 = vst [vmem:[#allocation6 + $0x618] sm:$0xff] %v3971_v0  ;;  %6142 = vmatmul.msk.f32.gmra.mxu2 %vm181_vm0, %v74_v1  ;;  %6270 = vmatmul.msk.f32.gmra.mxu3 %vm181_vm0, %v74_v1 }
 0x154   :  { %v658_v2 = vpop.f32.mrf.mxu0  ;;  %v1059_v3 = vpop.f32.mrf.mxu1 }
 0x155   :  { %v3976_v4 = vmul.f32 %v7203_v29, %v658_v2  ;;  %v3977_v5 = vmul.f32 %v7203_v29, %v1059_v3  ;;  %v1460_v6 = vpop.f32.mrf.mxu2  ;;  %v1861_v7 = vpop.f32.mrf.mxu3 }
 0x156   :  { %v3978_v8 = vmul.f32 %v7203_v29, %v1460_v6  ;;  %v3979_v9 = vmul.f32 %v7203_v29, %v1861_v7 }
 0x157   :  { %5000 = vst [vmem:[#allocation6 + $0x640] sm:$0xff] %v3976_v4  ;;  %5886 = vmatmul.msk.f32.gmra.mxu0 %vm181_vm0, %v74_v1  ;;  %6014 = vmatmul.msk.f32.gmra.mxu1 %vm181_vm0, %v74_v1  ;;  %v81_v1 = vld [vmem:[%s9911_s1 + $0x180] sm:$0xff] }
 0x158   :  { %5001 = vst [vmem:[#allocation6 + $0x648] sm:$0xff] %v3977_v5 }
 0x159   :  { %5002 = vst [vmem:[#allocation6 + $0x650] sm:$0xff] %v3978_v8 }
 0x15a   :  { %5003 = vst [vmem:[#allocation6 + $0x658] sm:$0xff] %v3979_v9  ;;  %6143 = vmatmul.msk.f32.gmra.mxu2 %vm181_vm0, %v75_v10  ;;  %6271 = vmatmul.msk.f32.gmra.mxu3 %vm181_vm0, %v75_v10 }
 0x15c   :  { %v661_v11 = vpop.f32.mrf.mxu0  ;;  %v1062_v12 = vpop.f32.mrf.mxu1 }
 0x15d   :  { %v3984_v13 = vmul.f32 %v7203_v29, %v661_v11  ;;  %v3985_v14 = vmul.f32 %v7203_v29, %v1062_v12  ;;  %v1463_v15 = vpop.f32.mrf.mxu2  ;;  %v1864_v16 = vpop.f32.mrf.mxu3 }
 0x15e   :  { %v3986_v17 = vmul.f32 %v7203_v29, %v1463_v15  ;;  %v3987_v18 = vmul.f32 %v7203_v29, %v1864_v16 }
 0x15f   :  { %5008 = vst [vmem:[#allocation6 + $0x680] sm:$0xff] %v3984_v13  ;;  %5887 = vmatmul.msk.f32.gmra.mxu0 %vm181_vm0, %v75_v10  ;;  %6015 = vmatmul.msk.f32.gmra.mxu1 %vm181_vm0, %v75_v10  ;;  %v82_v10 = vld [vmem:[%s9911_s1 + $0x188] sm:$0xff] }
 0x160   :  { %5009 = vst [vmem:[#allocation6 + $0x688] sm:$0xff] %v3985_v14 }
 0x161   :  { %5010 = vst [vmem:[#allocation6 + $0x690] sm:$0xff] %v3986_v17 }
 0x162   :  { %5011 = vst [vmem:[#allocation6 + $0x698] sm:$0xff] %v3987_v18  ;;  %6144 = vmatmul.msk.f32.gmra.mxu2 %vm181_vm0, %v76_v19  ;;  %6272 = vmatmul.msk.f32.gmra.mxu3 %vm181_vm0, %v76_v19 }
 0x164   :  { %v664_v20 = vpop.f32.mrf.mxu0  ;;  %v1065_v21 = vpop.f32.mrf.mxu1 }
 0x165   :  { %v3992_v22 = vmul.f32 %v7203_v29, %v664_v20  ;;  %v3993_v23 = vmul.f32 %v7203_v29, %v1065_v21  ;;  %v1466_v24 = vpop.f32.mrf.mxu2  ;;  %v1867_v25 = vpop.f32.mrf.mxu3 }
 0x166   :  { %v3994_v26 = vmul.f32 %v7203_v29, %v1466_v24  ;;  %v3995_v27 = vmul.f32 %v7203_v29, %v1867_v25 }
 0x167   :  { %5016 = vst [vmem:[#allocation6 + $0x6c0] sm:$0xff] %v3992_v22  ;;  %5888 = vmatmul.msk.f32.gmra.mxu0 %vm181_vm0, %v76_v19  ;;  %6016 = vmatmul.msk.f32.gmra.mxu1 %vm181_vm0, %v76_v19  ;;  %v83_v19 = vld [vmem:[%s9911_s1 + $0x190] sm:$0xff] }
 0x168   :  { %5017 = vst [vmem:[#allocation6 + $0x6c8] sm:$0xff] %v3993_v23 }
 0x169   :  { %5018 = vst [vmem:[#allocation6 + $0x6d0] sm:$0xff] %v3994_v26 }
 0x16a   :  { %5019 = vst [vmem:[#allocation6 + $0x6d8] sm:$0xff] %v3995_v27  ;;  %6145 = vmatmul.msk.f32.gmra.mxu2 %vm181_vm0, %v77_v28  ;;  %6273 = vmatmul.msk.f32.gmra.mxu3 %vm181_vm0, %v77_v28 }
 0x16c   :  { %v667_v30 = vpop.f32.mrf.mxu0  ;;  %v1068_v31 = vpop.f32.mrf.mxu1 }
 0x16d   :  { %v4000_v32 = vmul.f32 %v7203_v29, %v667_v30  ;;  %v4001_v33 = vmul.f32 %v7203_v29, %v1068_v31  ;;  %v1469_v34 = vpop.f32.mrf.mxu2  ;;  %v1870_v35 = vpop.f32.mrf.mxu3 }
 0x16e   :  { %v4002_v36 = vmul.f32 %v7203_v29, %v1469_v34  ;;  %v4003_v37 = vmul.f32 %v7203_v29, %v1870_v35 }
 0x16f   :  { %5024 = vst [vmem:[#allocation6 + $0x700] sm:$0xff] %v4000_v32  ;;  %5889 = vmatmul.msk.f32.gmra.mxu0 %vm181_vm0, %v77_v28  ;;  %6017 = vmatmul.msk.f32.gmra.mxu1 %vm181_vm0, %v77_v28  ;;  %v84_v28 = vld [vmem:[%s9911_s1 + $0x198] sm:$0xff] }
 0x170   :  { %5025 = vst [vmem:[#allocation6 + $0x708] sm:$0xff] %v4001_v33 }
 0x171   :  { %5026 = vst [vmem:[#allocation6 + $0x710] sm:$0xff] %v4002_v36 }
 0x172   :  { %5027 = vst [vmem:[#allocation6 + $0x718] sm:$0xff] %v4003_v37  ;;  %6146 = vmatmul.msk.f32.gmra.mxu2 %vm181_vm0, %v78_v38  ;;  %6274 = vmatmul.msk.f32.gmra.mxu3 %vm181_vm0, %v78_v38 }
 0x174   :  { %v670_v39 = vpop.f32.mrf.mxu0  ;;  %v1071_v40 = vpop.f32.mrf.mxu1 }
 0x175   :  { %v4008_v41 = vmul.f32 %v7203_v29, %v670_v39  ;;  %v4009_v42 = vmul.f32 %v7203_v29, %v1071_v40  ;;  %v1472_v43 = vpop.f32.mrf.mxu2  ;;  %v1873_v44 = vpop.f32.mrf.mxu3 }
 0x176   :  { %v4010_v45 = vmul.f32 %v7203_v29, %v1472_v43  ;;  %v4011_v46 = vmul.f32 %v7203_v29, %v1873_v44 }
 0x177   :  { %5032 = vst [vmem:[#allocation6 + $0x740] sm:$0xff] %v4008_v41  ;;  %5890 = vmatmul.msk.f32.gmra.mxu0 %vm181_vm0, %v78_v38  ;;  %6018 = vmatmul.msk.f32.gmra.mxu1 %vm181_vm0, %v78_v38  ;;  %v85_v38 = vld [vmem:[%s9911_s1 + $0x1a0] sm:$0xff] }
 0x178   :  { %5033 = vst [vmem:[#allocation6 + $0x748] sm:$0xff] %v4009_v42 }
 0x179   :  { %5034 = vst [vmem:[#allocation6 + $0x750] sm:$0xff] %v4010_v45 }
 0x17a   :  { %5035 = vst [vmem:[#allocation6 + $0x758] sm:$0xff] %v4011_v46  ;;  %6147 = vmatmul.msk.f32.gmra.mxu2 %vm181_vm0, %v79_v47  ;;  %6275 = vmatmul.msk.f32.gmra.mxu3 %vm181_vm0, %v79_v47 }
 0x17c   :  { %v673_v48 = vpop.f32.mrf.mxu0  ;;  %v1074_v49 = vpop.f32.mrf.mxu1 }
 0x17d   :  { %v4016_v50 = vmul.f32 %v7203_v29, %v673_v48  ;;  %v4017_v51 = vmul.f32 %v7203_v29, %v1074_v49  ;;  %v1475_v52 = vpop.f32.mrf.mxu2  ;;  %v1876_v53 = vpop.f32.mrf.mxu3 }
 0x17e   :  { %v4018_v54 = vmul.f32 %v7203_v29, %v1475_v52  ;;  %v4019_v55 = vmul.f32 %v7203_v29, %v1876_v53 }
 0x17f   :  { %5040 = vst [vmem:[#allocation6 + $0x780] sm:$0xff] %v4016_v50  ;;  %5891 = vmatmul.msk.f32.gmra.mxu0 %vm181_vm0, %v79_v47  ;;  %6019 = vmatmul.msk.f32.gmra.mxu1 %vm181_vm0, %v79_v47  ;;  %v86_v47 = vld [vmem:[%s9911_s1 + $0x1a8] sm:$0xff] }
 0x180   :  { %5041 = vst [vmem:[#allocation6 + $0x788] sm:$0xff] %v4017_v51 }
 0x181   :  { %5042 = vst [vmem:[#allocation6 + $0x790] sm:$0xff] %v4018_v54 }
 0x182   :  { %5043 = vst [vmem:[#allocation6 + $0x798] sm:$0xff] %v4019_v55  ;;  %6148 = vmatmul.msk.f32.gmra.mxu2 %vm181_vm0, %v80_v56  ;;  %6276 = vmatmul.msk.f32.gmra.mxu3 %vm181_vm0, %v80_v56 }
 0x184   :  { %v676_v57 = vpop.f32.mrf.mxu0  ;;  %v1077_v58 = vpop.f32.mrf.mxu1 }
 0x185   :  { %v4024_v59 = vmul.f32 %v7203_v29, %v676_v57  ;;  %v4025_v60 = vmul.f32 %v7203_v29, %v1077_v58  ;;  %v1478_v61 = vpop.f32.mrf.mxu2  ;;  %v1879_v62 = vpop.f32.mrf.mxu3 }
 0x186   :  { %v4026_v63 = vmul.f32 %v7203_v29, %v1478_v61  ;;  %v4027_v0 = vmul.f32 %v7203_v29, %v1879_v62 }
 0x187   :  { %5048 = vst [vmem:[#allocation6 + $0x7c0] sm:$0xff] %v4024_v59  ;;  %5892 = vmatmul.msk.f32.gmra.mxu0 %vm181_vm0, %v80_v56  ;;  %6020 = vmatmul.msk.f32.gmra.mxu1 %vm181_vm0, %v80_v56  ;;  %v87_v56 = vld [vmem:[%s9911_s1 + $0x1b0] sm:$0xff] }
 0x188   :  { %5049 = vst [vmem:[#allocation6 + $0x7c8] sm:$0xff] %v4025_v60 }
 0x189   :  { %5050 = vst [vmem:[#allocation6 + $0x7d0] sm:$0xff] %v4026_v63 }
 0x18a   :  { %5051 = vst [vmem:[#allocation6 + $0x7d8] sm:$0xff] %v4027_v0  ;;  %6149 = vmatmul.msk.f32.gmra.mxu2 %vm181_vm0, %v81_v1  ;;  %6277 = vmatmul.msk.f32.gmra.mxu3 %vm181_vm0, %v81_v1 }
 0x18c   :  { %v679_v2 = vpop.f32.mrf.mxu0  ;;  %v1080_v3 = vpop.f32.mrf.mxu1 }
 0x18d   :  { %v4032_v4 = vmul.f32 %v7203_v29, %v679_v2  ;;  %v4033_v5 = vmul.f32 %v7203_v29, %v1080_v3  ;;  %v1481_v6 = vpop.f32.mrf.mxu2  ;;  %v1882_v7 = vpop.f32.mrf.mxu3 }
 0x18e   :  { %v4034_v8 = vmul.f32 %v7203_v29, %v1481_v6  ;;  %v4035_v9 = vmul.f32 %v7203_v29, %v1882_v7 }
 0x18f   :  { %5056 = vst [vmem:[#allocation6 + $0x800] sm:$0xff] %v4032_v4  ;;  %5893 = vmatmul.msk.f32.gmra.mxu0 %vm181_vm0, %v81_v1  ;;  %6021 = vmatmul.msk.f32.gmra.mxu1 %vm181_vm0, %v81_v1  ;;  %v88_v1 = vld [vmem:[%s9911_s1 + $0x1b8] sm:$0xff] }
 0x190   :  { %5057 = vst [vmem:[#allocation6 + $0x808] sm:$0xff] %v4033_v5 }
 0x191   :  { %5058 = vst [vmem:[#allocation6 + $0x810] sm:$0xff] %v4034_v8 }
 0x192   :  { %5059 = vst [vmem:[#allocation6 + $0x818] sm:$0xff] %v4035_v9  ;;  %6150 = vmatmul.msk.f32.gmra.mxu2 %vm181_vm0, %v82_v10  ;;  %6278 = vmatmul.msk.f32.gmra.mxu3 %vm181_vm0, %v82_v10 }
 0x194   :  { %v682_v11 = vpop.f32.mrf.mxu0  ;;  %v1083_v12 = vpop.f32.mrf.mxu1 }
 0x195   :  { %v4040_v13 = vmul.f32 %v7203_v29, %v682_v11  ;;  %v4041_v14 = vmul.f32 %v7203_v29, %v1083_v12  ;;  %v1484_v15 = vpop.f32.mrf.mxu2  ;;  %v1885_v16 = vpop.f32.mrf.mxu3 }
 0x196   :  { %v4042_v17 = vmul.f32 %v7203_v29, %v1484_v15  ;;  %v4043_v18 = vmul.f32 %v7203_v29, %v1885_v16 }
 0x197   :  { %5064 = vst [vmem:[#allocation6 + $0x840] sm:$0xff] %v4040_v13  ;;  %5894 = vmatmul.msk.f32.gmra.mxu0 %vm181_vm0, %v82_v10  ;;  %6022 = vmatmul.msk.f32.gmra.mxu1 %vm181_vm0, %v82_v10  ;;  %v89_v10 = vld [vmem:[%s9911_s1 + $0x1c0] sm:$0xff] }
 0x198   :  { %5065 = vst [vmem:[#allocation6 + $0x848] sm:$0xff] %v4041_v14 }
 0x199   :  { %5066 = vst [vmem:[#allocation6 + $0x850] sm:$0xff] %v4042_v17 }
 0x19a   :  { %5067 = vst [vmem:[#allocation6 + $0x858] sm:$0xff] %v4043_v18  ;;  %6151 = vmatmul.msk.f32.gmra.mxu2 %vm181_vm0, %v83_v19  ;;  %6279 = vmatmul.msk.f32.gmra.mxu3 %vm181_vm0, %v83_v19 }
 0x19c   :  { %v685_v20 = vpop.f32.mrf.mxu0  ;;  %v1086_v21 = vpop.f32.mrf.mxu1 }
 0x19d   :  { %v4048_v22 = vmul.f32 %v7203_v29, %v685_v20  ;;  %v4049_v23 = vmul.f32 %v7203_v29, %v1086_v21  ;;  %v1487_v24 = vpop.f32.mrf.mxu2  ;;  %v1888_v25 = vpop.f32.mrf.mxu3 }
 0x19e   :  { %v4050_v26 = vmul.f32 %v7203_v29, %v1487_v24  ;;  %v4051_v27 = vmul.f32 %v7203_v29, %v1888_v25 }
 0x19f   :  { %5072 = vst [vmem:[#allocation6 + $0x880] sm:$0xff] %v4048_v22  ;;  %5895 = vmatmul.msk.f32.gmra.mxu0 %vm181_vm0, %v83_v19  ;;  %6023 = vmatmul.msk.f32.gmra.mxu1 %vm181_vm0, %v83_v19  ;;  %v90_v19 = vld [vmem:[%s9911_s1 + $0x1c8] sm:$0xff] }
 0x1a0   :  { %5073 = vst [vmem:[#allocation6 + $0x888] sm:$0xff] %v4049_v23 }
 0x1a1   :  { %5074 = vst [vmem:[#allocation6 + $0x890] sm:$0xff] %v4050_v26 }
 0x1a2   :  { %5075 = vst [vmem:[#allocation6 + $0x898] sm:$0xff] %v4051_v27  ;;  %6152 = vmatmul.msk.f32.gmra.mxu2 %vm181_vm0, %v84_v28  ;;  %6280 = vmatmul.msk.f32.gmra.mxu3 %vm181_vm0, %v84_v28 }
 0x1a4   :  { %v688_v30 = vpop.f32.mrf.mxu0  ;;  %v1089_v31 = vpop.f32.mrf.mxu1 }
 0x1a5   :  { %v4056_v32 = vmul.f32 %v7203_v29, %v688_v30  ;;  %v4057_v33 = vmul.f32 %v7203_v29, %v1089_v31  ;;  %v1490_v34 = vpop.f32.mrf.mxu2  ;;  %v1891_v35 = vpop.f32.mrf.mxu3 }
 0x1a6   :  { %v4058_v36 = vmul.f32 %v7203_v29, %v1490_v34  ;;  %v4059_v37 = vmul.f32 %v7203_v29, %v1891_v35 }
 0x1a7   :  { %5080 = vst [vmem:[#allocation6 + $0x8c0] sm:$0xff] %v4056_v32  ;;  %5896 = vmatmul.msk.f32.gmra.mxu0 %vm181_vm0, %v84_v28  ;;  %6024 = vmatmul.msk.f32.gmra.mxu1 %vm181_vm0, %v84_v28  ;;  %v91_v28 = vld [vmem:[%s9911_s1 + $0x1d0] sm:$0xff] }
 0x1a8   :  { %5081 = vst [vmem:[#allocation6 + $0x8c8] sm:$0xff] %v4057_v33 }
 0x1a9   :  { %5082 = vst [vmem:[#allocation6 + $0x8d0] sm:$0xff] %v4058_v36 }
 0x1aa   :  { %5083 = vst [vmem:[#allocation6 + $0x8d8] sm:$0xff] %v4059_v37  ;;  %6153 = vmatmul.msk.f32.gmra.mxu2 %vm181_vm0, %v85_v38  ;;  %6281 = vmatmul.msk.f32.gmra.mxu3 %vm181_vm0, %v85_v38 }
 0x1ac   :  { %v691_v39 = vpop.f32.mrf.mxu0  ;;  %v1092_v40 = vpop.f32.mrf.mxu1 }
 0x1ad   :  { %v4064_v41 = vmul.f32 %v7203_v29, %v691_v39  ;;  %v4065_v42 = vmul.f32 %v7203_v29, %v1092_v40  ;;  %v1493_v43 = vpop.f32.mrf.mxu2  ;;  %v1894_v44 = vpop.f32.mrf.mxu3 }
 0x1ae   :  { %v4066_v45 = vmul.f32 %v7203_v29, %v1493_v43  ;;  %v4067_v46 = vmul.f32 %v7203_v29, %v1894_v44 }
 0x1af   :  { %5088 = vst [vmem:[#allocation6 + $0x900] sm:$0xff] %v4064_v41  ;;  %5897 = vmatmul.msk.f32.gmra.mxu0 %vm181_vm0, %v85_v38  ;;  %6025 = vmatmul.msk.f32.gmra.mxu1 %vm181_vm0, %v85_v38  ;;  %v92_v38 = vld [vmem:[%s9911_s1 + $0x1d8] sm:$0xff] }
 0x1b0   :  { %5089 = vst [vmem:[#allocation6 + $0x908] sm:$0xff] %v4065_v42 }
 0x1b1   :  { %5090 = vst [vmem:[#allocation6 + $0x910] sm:$0xff] %v4066_v45 }
 0x1b2   :  { %5091 = vst [vmem:[#allocation6 + $0x918] sm:$0xff] %v4067_v46  ;;  %6154 = vmatmul.msk.f32.gmra.mxu2 %vm181_vm0, %v86_v47  ;;  %6282 = vmatmul.msk.f32.gmra.mxu3 %vm181_vm0, %v86_v47 }
 0x1b4   :  { %v694_v48 = vpop.f32.mrf.mxu0  ;;  %v1095_v49 = vpop.f32.mrf.mxu1 }
 0x1b5   :  { %v4072_v50 = vmul.f32 %v7203_v29, %v694_v48  ;;  %v4073_v51 = vmul.f32 %v7203_v29, %v1095_v49  ;;  %v1496_v52 = vpop.f32.mrf.mxu2  ;;  %v1897_v53 = vpop.f32.mrf.mxu3  ;;  %v171_v48 = vld [vmem:[#allocation3 + $0x30] sm:$0xff]  ;;  %v172_v49 = vld [vmem:[#allocation3 + $0x38] sm:$0xff] }
 0x1b6   :  { %v4074_v54 = vmul.f32 %v7203_v29, %v1496_v52  ;;  %v4075_v55 = vmul.f32 %v7203_v29, %v1897_v53  ;;  %2987 = vmatpush.msrb.mxu2 %v171_v48  ;;  %3388 = vmatpush.msrb.mxu3 %v172_v49 }
 0x1b7   :  { %5096 = vst [vmem:[#allocation6 + $0x940] sm:$0xff] %v4072_v50  ;;  %5898 = vmatmul.msk.f32.gmra.mxu0 %vm181_vm0, %v86_v47  ;;  %6026 = vmatmul.msk.f32.gmra.mxu1 %vm181_vm0, %v86_v47  ;;  %v93_v47 = vld [vmem:[%s9911_s1 + $0x1e0] sm:$0xff] }
 0x1b8   :  { %5097 = vst [vmem:[#allocation6 + $0x948] sm:$0xff] %v4073_v51 }
 0x1b9   :  { %5098 = vst [vmem:[#allocation6 + $0x950] sm:$0xff] %v4074_v54 }
 0x1ba   :  { %5099 = vst [vmem:[#allocation6 + $0x958] sm:$0xff] %v4075_v55  ;;  %6155 = vmatmul.msk.f32.gmra.mxu2 %vm181_vm0, %v87_v56  ;;  %6283 = vmatmul.msk.f32.gmra.mxu3 %vm181_vm0, %v87_v56 }
 0x1bc   :  { %v697_v57 = vpop.f32.mrf.mxu0  ;;  %v1098_v58 = vpop.f32.mrf.mxu1 }
 0x1bd   :  { %v4080_v59 = vmul.f32 %v7203_v29, %v697_v57  ;;  %v4081_v60 = vmul.f32 %v7203_v29, %v1098_v58  ;;  %v1499_v61 = vpop.f32.mrf.mxu2  ;;  %v1900_v62 = vpop.f32.mrf.mxu3  ;;  %v94_v58 = vld [vmem:[%s9911_s1 + $0x1e8] sm:$0xff] }
 0x1be   :  { %v4082_v63 = vmul.f32 %v7203_v29, %v1499_v61  ;;  %v4083_v0 = vmul.f32 %v7203_v29, %v1900_v62 }
 0x1bf   :  { %5104 = vst [vmem:[#allocation6 + $0x980] sm:$0xff] %v4080_v59  ;;  %5899 = vmatmul.msk.f32.gmra.mxu0 %vm181_vm0, %v87_v56  ;;  %6027 = vmatmul.msk.f32.gmra.mxu1 %vm181_vm0, %v87_v56  ;;  %v169_v59 = vld [vmem:[#allocation3 + $0x20] sm:$0xff] }
 0x1c0   :  { %5105 = vst [vmem:[#allocation6 + $0x988] sm:$0xff] %v4081_v60  ;;  %v170_v60 = vld [vmem:[#allocation3 + $0x28] sm:$0xff]  ;;  %2185 = vmatpush.msrb.mxu0 %v169_v59 }
 0x1c1   :  { %5106 = vst [vmem:[#allocation6 + $0x990] sm:$0xff] %v4082_v63  ;;  %2586 = vmatpush.msrb.mxu1 %v170_v60  ;;  %v101_v60 = vld [vmem:[%s9911_s1 + $0x220] sm:$0xff] }
 0x1c2   :  { %5107 = vst [vmem:[#allocation6 + $0x998] sm:$0xff] %v4083_v0  ;;  %6156 = vmatmul.msk.f32.gmra.mxu2 %vm181_vm0, %v88_v1  ;;  %6284 = vmatmul.msk.f32.gmra.mxu3 %vm181_vm0, %v88_v1 }
 0x1c4   :  { %v700_v2 = vpop.f32.mrf.mxu0  ;;  %v1101_v3 = vpop.f32.mrf.mxu1 }
 0x1c5   :  { %v4088_v4 = vmul.f32 %v7203_v29, %v700_v2  ;;  %v4089_v5 = vmul.f32 %v7203_v29, %v1101_v3  ;;  %v1502_v6 = vpop.f32.mrf.mxu2  ;;  %v1903_v7 = vpop.f32.mrf.mxu3 }
 0x1c6   :  { %v4090_v8 = vmul.f32 %v7203_v29, %v1502_v6  ;;  %v4091_v9 = vmul.f32 %v7203_v29, %v1903_v7 }
 0x1c7   :  { %5112 = vst [vmem:[#allocation6 + $0x9c0] sm:$0xff] %v4088_v4  ;;  %5900 = vmatmul.msk.f32.gmra.mxu0 %vm181_vm0, %v88_v1  ;;  %6028 = vmatmul.msk.f32.gmra.mxu1 %vm181_vm0, %v88_v1 }
 0x1c8   :  { %5113 = vst [vmem:[#allocation6 + $0x9c8] sm:$0xff] %v4089_v5  ;;  %v95_v5 = vld [vmem:[%s9911_s1 + $0x1f0] sm:$0xff] }
 0x1c9   :  { %5114 = vst [vmem:[#allocation6 + $0x9d0] sm:$0xff] %v4090_v8 }
 0x1ca   :  { %5115 = vst [vmem:[#allocation6 + $0x9d8] sm:$0xff] %v4091_v9  ;;  %6157 = vmatmul.msk.f32.gmra.mxu2 %vm181_vm0, %v89_v10  ;;  %6285 = vmatmul.msk.f32.gmra.mxu3 %vm181_vm0, %v89_v10 }
 0x1cc   :  { %v703_v11 = vpop.f32.mrf.mxu0  ;;  %v1104_v12 = vpop.f32.mrf.mxu1 }
 0x1cd   :  { %v4096_v13 = vmul.f32 %v7203_v29, %v703_v11  ;;  %v4097_v14 = vmul.f32 %v7203_v29, %v1104_v12  ;;  %v1505_v15 = vpop.f32.mrf.mxu2  ;;  %v1906_v16 = vpop.f32.mrf.mxu3 }
 0x1ce   :  { %v4098_v17 = vmul.f32 %v7203_v29, %v1505_v15  ;;  %v4099_v18 = vmul.f32 %v7203_v29, %v1906_v16 }
 0x1cf   :  { %5120 = vst [vmem:[#allocation6 + $0xa00] sm:$0xff] %v4096_v13  ;;  %5901 = vmatmul.msk.f32.gmra.mxu0 %vm181_vm0, %v89_v10  ;;  %6029 = vmatmul.msk.f32.gmra.mxu1 %vm181_vm0, %v89_v10 }
 0x1d0   :  { %5121 = vst [vmem:[#allocation6 + $0xa08] sm:$0xff] %v4097_v14  ;;  %v96_v14 = vld [vmem:[%s9911_s1 + $0x1f8] sm:$0xff] }
 0x1d1   :  { %5122 = vst [vmem:[#allocation6 + $0xa10] sm:$0xff] %v4098_v17 }
 0x1d2   :  { %5123 = vst [vmem:[#allocation6 + $0xa18] sm:$0xff] %v4099_v18  ;;  %6158 = vmatmul.msk.f32.gmra.mxu2 %vm181_vm0, %v90_v19  ;;  %6286 = vmatmul.msk.f32.gmra.mxu3 %vm181_vm0, %v90_v19 }
 0x1d4   :  { %v706_v20 = vpop.f32.mrf.mxu0  ;;  %v1107_v21 = vpop.f32.mrf.mxu1 }
 0x1d5   :  { %v4104_v22 = vmul.f32 %v7203_v29, %v706_v20  ;;  %v4105_v23 = vmul.f32 %v7203_v29, %v1107_v21  ;;  %v1508_v24 = vpop.f32.mrf.mxu2  ;;  %v1909_v25 = vpop.f32.mrf.mxu3 }
 0x1d6   :  { %v4106_v26 = vmul.f32 %v7203_v29, %v1508_v24  ;;  %v4107_v27 = vmul.f32 %v7203_v29, %v1909_v25 }
 0x1d7   :  { %5128 = vst [vmem:[#allocation6 + $0xa40] sm:$0xff] %v4104_v22  ;;  %5902 = vmatmul.msk.f32.gmra.mxu0 %vm181_vm0, %v90_v19  ;;  %6030 = vmatmul.msk.f32.gmra.mxu1 %vm181_vm0, %v90_v19 }
 0x1d8   :  { %5129 = vst [vmem:[#allocation6 + $0xa48] sm:$0xff] %v4105_v23  ;;  %v97_v23 = vld [vmem:[%s9911_s1 + $0x200] sm:$0xff] }
 0x1d9   :  { %5130 = vst [vmem:[#allocation6 + $0xa50] sm:$0xff] %v4106_v26 }
 0x1da   :  { %5131 = vst [vmem:[#allocation6 + $0xa58] sm:$0xff] %v4107_v27  ;;  %6159 = vmatmul.msk.f32.gmra.mxu2 %vm181_vm0, %v91_v28  ;;  %6287 = vmatmul.msk.f32.gmra.mxu3 %vm181_vm0, %v91_v28 }
 0x1dc   :  { %v709_v30 = vpop.f32.mrf.mxu0  ;;  %v1110_v31 = vpop.f32.mrf.mxu1 }
 0x1dd   :  { %v4112_v32 = vmul.f32 %v7203_v29, %v709_v30  ;;  %v4113_v33 = vmul.f32 %v7203_v29, %v1110_v31  ;;  %v1511_v34 = vpop.f32.mrf.mxu2  ;;  %v1912_v35 = vpop.f32.mrf.mxu3 }
 0x1de   :  { %v4114_v36 = vmul.f32 %v7203_v29, %v1511_v34  ;;  %v4115_v37 = vmul.f32 %v7203_v29, %v1912_v35 }
 0x1df   :  { %5136 = vst [vmem:[#allocation6 + $0xa80] sm:$0xff] %v4112_v32  ;;  %5903 = vmatmul.msk.f32.gmra.mxu0 %vm181_vm0, %v91_v28  ;;  %6031 = vmatmul.msk.f32.gmra.mxu1 %vm181_vm0, %v91_v28 }
 0x1e0   :  { %5137 = vst [vmem:[#allocation6 + $0xa88] sm:$0xff] %v4113_v33  ;;  %v98_v33 = vld [vmem:[%s9911_s1 + $0x208] sm:$0xff] }
 0x1e1   :  { %5138 = vst [vmem:[#allocation6 + $0xa90] sm:$0xff] %v4114_v36 }
 0x1e2   :  { %5139 = vst [vmem:[#allocation6 + $0xa98] sm:$0xff] %v4115_v37  ;;  %6160 = vmatmul.msk.f32.gmra.mxu2 %vm181_vm0, %v92_v38  ;;  %6288 = vmatmul.msk.f32.gmra.mxu3 %vm181_vm0, %v92_v38 }
 0x1e4   :  { %v712_v39 = vpop.f32.mrf.mxu0  ;;  %v1113_v40 = vpop.f32.mrf.mxu1 }
 0x1e5   :  { %v4120_v41 = vmul.f32 %v7203_v29, %v712_v39  ;;  %v4121_v42 = vmul.f32 %v7203_v29, %v1113_v40  ;;  %v1514_v43 = vpop.f32.mrf.mxu2  ;;  %v1915_v44 = vpop.f32.mrf.mxu3 }
 0x1e6   :  { %v4122_v45 = vmul.f32 %v7203_v29, %v1514_v43  ;;  %v4123_v46 = vmul.f32 %v7203_v29, %v1915_v44 }
 0x1e7   :  { %5144 = vst [vmem:[#allocation6 + $0xac0] sm:$0xff] %v4120_v41  ;;  %5904 = vmatmul.msk.f32.gmra.mxu0 %vm181_vm0, %v92_v38  ;;  %6032 = vmatmul.msk.f32.gmra.mxu1 %vm181_vm0, %v92_v38 }
 0x1e8   :  { %5145 = vst [vmem:[#allocation6 + $0xac8] sm:$0xff] %v4121_v42  ;;  %v99_v42 = vld [vmem:[%s9911_s1 + $0x210] sm:$0xff] }
 0x1e9   :  { %5146 = vst [vmem:[#allocation6 + $0xad0] sm:$0xff] %v4122_v45 }
 0x1ea   :  { %5147 = vst [vmem:[#allocation6 + $0xad8] sm:$0xff] %v4123_v46  ;;  %6161 = vmatmul.msk.f32.gmra.mxu2 %vm181_vm0, %v93_v47  ;;  %6289 = vmatmul.msk.f32.gmra.mxu3 %vm181_vm0, %v93_v47 }
 0x1ec   :  { %v715_v50 = vpop.f32.mrf.mxu0  ;;  %v1116_v51 = vpop.f32.mrf.mxu1 }
 0x1ed   :  { %v4128_v52 = vmul.f32 %v7203_v29, %v715_v50  ;;  %v4129_v53 = vmul.f32 %v7203_v29, %v1116_v51  ;;  %v1517_v54 = vpop.f32.mrf.mxu2  ;;  %v1918_v55 = vpop.f32.mrf.mxu3  ;;  %v100_v51 = vld [vmem:[%s9911_s1 + $0x218] sm:$0xff] }
 0x1ee   :  { %v4130_v56 = vmul.f32 %v7203_v29, %v1517_v54  ;;  %v4131_v57 = vmul.f32 %v7203_v29, %v1918_v55 }
 0x1ef   :  { %5152 = vst [vmem:[#allocation6 + $0xb00] sm:$0xff] %v4128_v52  ;;  %5905 = vmatmul.msk.f32.gmra.mxu0 %vm181_vm0, %v93_v47  ;;  %6033 = vmatmul.msk.f32.gmra.mxu1 %vm181_vm0, %v93_v47 }
 0x1f0   :  { %5153 = vst [vmem:[#allocation6 + $0xb08] sm:$0xff] %v4129_v53 }
 0x1f1   :  { %5154 = vst [vmem:[#allocation6 + $0xb10] sm:$0xff] %v4130_v56 }
 0x1f2   :  { %5155 = vst [vmem:[#allocation6 + $0xb18] sm:$0xff] %v4131_v57  ;;  %6162 = vmatmul.msk.f32.gmra.mxu2 %vm181_vm0, %v94_v58  ;;  %6290 = vmatmul.msk.f32.gmra.mxu3 %vm181_vm0, %v94_v58 }
 0x1f4   :  { %v718_v61 = vpop.f32.mrf.mxu0  ;;  %v1119_v62 = vpop.f32.mrf.mxu1 }
 0x1f5   :  { %v4136_v63 = vmul.f32 %v7203_v29, %v718_v61  ;;  %v4137_v0 = vmul.f32 %v7203_v29, %v1119_v62  ;;  %v1520_v1 = vpop.f32.mrf.mxu2  ;;  %v1921_v2 = vpop.f32.mrf.mxu3 }
 0x1f6   :  { %v4138_v3 = vmul.f32 %v7203_v29, %v1520_v1  ;;  %v4139_v4 = vmul.f32 %v7203_v29, %v1921_v2 }
 0x1f7   :  { %5160 = vst [vmem:[#allocation6 + $0xb40] sm:$0xff] %v4136_v63  ;;  %5906 = vmatmul.msk.f32.gmra.mxu0 %vm181_vm0, %v94_v58  ;;  %6034 = vmatmul.msk.f32.gmra.mxu1 %vm181_vm0, %v94_v58 }
 0x1f8   :  { %5161 = vst [vmem:[#allocation6 + $0xb48] sm:$0xff] %v4137_v0 }
 0x1f9   :  { %5162 = vst [vmem:[#allocation6 + $0xb50] sm:$0xff] %v4138_v3 }
 0x1fa   :  { %5163 = vst [vmem:[#allocation6 + $0xb58] sm:$0xff] %v4139_v4  ;;  %6163 = vmatmul.msk.f32.gmra.mxu2 %vm181_vm0, %v95_v5  ;;  %6291 = vmatmul.msk.f32.gmra.mxu3 %vm181_vm0, %v95_v5 }
 0x1fc   :  { %v721_v6 = vpop.f32.mrf.mxu0  ;;  %v1122_v7 = vpop.f32.mrf.mxu1 }
 0x1fd   :  { %v4144_v8 = vmul.f32 %v7203_v29, %v721_v6  ;;  %v4145_v9 = vmul.f32 %v7203_v29, %v1122_v7  ;;  %v1523_v10 = vpop.f32.mrf.mxu2  ;;  %v1924_v11 = vpop.f32.mrf.mxu3 }
 0x1fe   :  { %v4146_v12 = vmul.f32 %v7203_v29, %v1523_v10  ;;  %v4147_v13 = vmul.f32 %v7203_v29, %v1924_v11 }
 0x1ff   :  { %5168 = vst [vmem:[#allocation6 + $0xb80] sm:$0xff] %v4144_v8  ;;  %5907 = vmatmul.msk.f32.gmra.mxu0 %vm181_vm0, %v95_v5  ;;  %6035 = vmatmul.msk.f32.gmra.mxu1 %vm181_vm0, %v95_v5  ;;  %v102_v5 = vld [vmem:[%s9911_s1 + $0x228] sm:$0xff] }
 0x200   :  { %5169 = vst [vmem:[#allocation6 + $0xb88] sm:$0xff] %v4145_v9 }
 0x201   :  { %5170 = vst [vmem:[#allocation6 + $0xb90] sm:$0xff] %v4146_v12 }
 0x202   :  { %5171 = vst [vmem:[#allocation6 + $0xb98] sm:$0xff] %v4147_v13  ;;  %6164 = vmatmul.msk.f32.gmra.mxu2 %vm181_vm0, %v96_v14  ;;  %6292 = vmatmul.msk.f32.gmra.mxu3 %vm181_vm0, %v96_v14 }
 0x204   :  { %v724_v15 = vpop.f32.mrf.mxu0  ;;  %v1125_v16 = vpop.f32.mrf.mxu1 }
 0x205   :  { %v4152_v17 = vmul.f32 %v7203_v29, %v724_v15  ;;  %v4153_v18 = vmul.f32 %v7203_v29, %v1125_v16  ;;  %v1526_v19 = vpop.f32.mrf.mxu2  ;;  %v1927_v20 = vpop.f32.mrf.mxu3 }
 0x206   :  { %v4154_v21 = vmul.f32 %v7203_v29, %v1526_v19  ;;  %v4155_v22 = vmul.f32 %v7203_v29, %v1927_v20 }
 0x207   :  { %5176 = vst [vmem:[#allocation6 + $0xbc0] sm:$0xff] %v4152_v17  ;;  %5908 = vmatmul.msk.f32.gmra.mxu0 %vm181_vm0, %v96_v14  ;;  %6036 = vmatmul.msk.f32.gmra.mxu1 %vm181_vm0, %v96_v14  ;;  %v103_v14 = vld [vmem:[%s9911_s1 + $0x230] sm:$0xff] }
 0x208   :  { %5177 = vst [vmem:[#allocation6 + $0xbc8] sm:$0xff] %v4153_v18 }
 0x209   :  { %5178 = vst [vmem:[#allocation6 + $0xbd0] sm:$0xff] %v4154_v21 }
 0x20a   :  { %5179 = vst [vmem:[#allocation6 + $0xbd8] sm:$0xff] %v4155_v22  ;;  %6165 = vmatmul.msk.f32.gmra.mxu2 %vm181_vm0, %v97_v23  ;;  %6293 = vmatmul.msk.f32.gmra.mxu3 %vm181_vm0, %v97_v23 }
 0x20c   :  { %v727_v24 = vpop.f32.mrf.mxu0  ;;  %v1128_v25 = vpop.f32.mrf.mxu1 }
 0x20d   :  { %v4160_v26 = vmul.f32 %v7203_v29, %v727_v24  ;;  %v4161_v27 = vmul.f32 %v7203_v29, %v1128_v25  ;;  %v1529_v28 = vpop.f32.mrf.mxu2  ;;  %v1930_v30 = vpop.f32.mrf.mxu3 }
 0x20e   :  { %v4162_v31 = vmul.f32 %v7203_v29, %v1529_v28  ;;  %v4163_v32 = vmul.f32 %v7203_v29, %v1930_v30 }
 0x20f   :  { %5184 = vst [vmem:[#allocation6 + $0xc00] sm:$0xff] %v4160_v26  ;;  %5909 = vmatmul.msk.f32.gmra.mxu0 %vm181_vm0, %v97_v23  ;;  %6037 = vmatmul.msk.f32.gmra.mxu1 %vm181_vm0, %v97_v23  ;;  %v104_v23 = vld [vmem:[%s9911_s1 + $0x238] sm:$0xff] }
 0x210   :  { %5185 = vst [vmem:[#allocation6 + $0xc08] sm:$0xff] %v4161_v27 }
 0x211   :  { %5186 = vst [vmem:[#allocation6 + $0xc10] sm:$0xff] %v4162_v31 }
 0x212   :  { %5187 = vst [vmem:[#allocation6 + $0xc18] sm:$0xff] %v4163_v32  ;;  %6166 = vmatmul.msk.f32.gmra.mxu2 %vm181_vm0, %v98_v33  ;;  %6294 = vmatmul.msk.f32.gmra.mxu3 %vm181_vm0, %v98_v33 }
 0x214   :  { %v730_v34 = vpop.f32.mrf.mxu0  ;;  %v1131_v35 = vpop.f32.mrf.mxu1 }
 0x215   :  { %v4168_v36 = vmul.f32 %v7203_v29, %v730_v34  ;;  %v4169_v37 = vmul.f32 %v7203_v29, %v1131_v35  ;;  %v1532_v38 = vpop.f32.mrf.mxu2  ;;  %v1933_v39 = vpop.f32.mrf.mxu3 }
 0x216   :  { %v4170_v40 = vmul.f32 %v7203_v29, %v1532_v38  ;;  %v4171_v41 = vmul.f32 %v7203_v29, %v1933_v39 }
 0x217   :  { %5192 = vst [vmem:[#allocation6 + $0xc40] sm:$0xff] %v4168_v36  ;;  %5910 = vmatmul.msk.f32.gmra.mxu0 %vm181_vm0, %v98_v33  ;;  %6038 = vmatmul.msk.f32.gmra.mxu1 %vm181_vm0, %v98_v33  ;;  %v105_v33 = vld [vmem:[%s9911_s1 + $0x240] sm:$0xff] }
 0x218   :  { %5193 = vst [vmem:[#allocation6 + $0xc48] sm:$0xff] %v4169_v37 }
 0x219   :  { %5194 = vst [vmem:[#allocation6 + $0xc50] sm:$0xff] %v4170_v40 }
 0x21a   :  { %5195 = vst [vmem:[#allocation6 + $0xc58] sm:$0xff] %v4171_v41  ;;  %6167 = vmatmul.msk.f32.gmra.mxu2 %vm181_vm0, %v99_v42  ;;  %6295 = vmatmul.msk.f32.gmra.mxu3 %vm181_vm0, %v99_v42 }
 0x21c   :  { %v733_v43 = vpop.f32.mrf.mxu0  ;;  %v1134_v44 = vpop.f32.mrf.mxu1 }
 0x21d   :  { %v4176_v45 = vmul.f32 %v7203_v29, %v733_v43  ;;  %v4177_v46 = vmul.f32 %v7203_v29, %v1134_v44  ;;  %v1535_v47 = vpop.f32.mrf.mxu2  ;;  %v1936_v48 = vpop.f32.mrf.mxu3 }
 0x21e   :  { %v4178_v49 = vmul.f32 %v7203_v29, %v1535_v47  ;;  %v4179_v50 = vmul.f32 %v7203_v29, %v1936_v48 }
 0x21f   :  { %5200 = vst [vmem:[#allocation6 + $0xc80] sm:$0xff] %v4176_v45  ;;  %5911 = vmatmul.msk.f32.gmra.mxu0 %vm181_vm0, %v99_v42  ;;  %6039 = vmatmul.msk.f32.gmra.mxu1 %vm181_vm0, %v99_v42  ;;  %v106_v42 = vld [vmem:[%s9911_s1 + $0x248] sm:$0xff] }
 0x220   :  { %5201 = vst [vmem:[#allocation6 + $0xc88] sm:$0xff] %v4177_v46 }
 0x221   :  { %5202 = vst [vmem:[#allocation6 + $0xc90] sm:$0xff] %v4178_v49 }
 0x222   :  { %5203 = vst [vmem:[#allocation6 + $0xc98] sm:$0xff] %v4179_v50  ;;  %6168 = vmatmul.msk.f32.gmra.mxu2 %vm181_vm0, %v100_v51  ;;  %6296 = vmatmul.msk.f32.gmra.mxu3 %vm181_vm0, %v100_v51 }
 0x224   :  { %v736_v52 = vpop.f32.mrf.mxu0  ;;  %v1137_v53 = vpop.f32.mrf.mxu1 }
 0x225   :  { %v4184_v54 = vmul.f32 %v7203_v29, %v736_v52  ;;  %v4185_v55 = vmul.f32 %v7203_v29, %v1137_v53  ;;  %v1538_v56 = vpop.f32.mrf.mxu2  ;;  %v1939_v57 = vpop.f32.mrf.mxu3 }
 0x226   :  { %v4186_v58 = vmul.f32 %v7203_v29, %v1538_v56  ;;  %v4187_v59 = vmul.f32 %v7203_v29, %v1939_v57 }
 0x227   :  { %5208 = vst [vmem:[#allocation6 + $0xcc0] sm:$0xff] %v4184_v54  ;;  %5912 = vmatmul.msk.f32.gmra.mxu0 %vm181_vm0, %v100_v51  ;;  %6040 = vmatmul.msk.f32.gmra.mxu1 %vm181_vm0, %v100_v51  ;;  %v107_v51 = vld [vmem:[%s9911_s1 + $0x250] sm:$0xff] }
 0x228   :  { %5209 = vst [vmem:[#allocation6 + $0xcc8] sm:$0xff] %v4185_v55 }
 0x229   :  { %5210 = vst [vmem:[#allocation6 + $0xcd0] sm:$0xff] %v4186_v58 }
 0x22a   :  { %5211 = vst [vmem:[#allocation6 + $0xcd8] sm:$0xff] %v4187_v59  ;;  %6169 = vmatmul.msk.f32.gmra.mxu2 %vm181_vm0, %v101_v60  ;;  %6297 = vmatmul.msk.f32.gmra.mxu3 %vm181_vm0, %v101_v60 }
 0x22c   :  { %v739_v61 = vpop.f32.mrf.mxu0  ;;  %v1140_v62 = vpop.f32.mrf.mxu1 }
 0x22d   :  { %v4192_v63 = vmul.f32 %v7203_v29, %v739_v61  ;;  %v4193_v0 = vmul.f32 %v7203_v29, %v1140_v62  ;;  %v1541_v1 = vpop.f32.mrf.mxu2  ;;  %v1942_v2 = vpop.f32.mrf.mxu3 }
 0x22e   :  { %v4194_v3 = vmul.f32 %v7203_v29, %v1541_v1  ;;  %v4195_v4 = vmul.f32 %v7203_v29, %v1942_v2 }
 0x22f   :  { %5216 = vst [vmem:[#allocation6 + $0xd00] sm:$0xff] %v4192_v63  ;;  %5913 = vmatmul.msk.f32.gmra.mxu0 %vm181_vm0, %v101_v60  ;;  %6041 = vmatmul.msk.f32.gmra.mxu1 %vm181_vm0, %v101_v60  ;;  %v108_v60 = vld [vmem:[%s9911_s1 + $0x258] sm:$0xff] }
 0x230   :  { %5217 = vst [vmem:[#allocation6 + $0xd08] sm:$0xff] %v4193_v0 }
 0x231   :  { %5218 = vst [vmem:[#allocation6 + $0xd10] sm:$0xff] %v4194_v3 }
 0x232   :  { %5219 = vst [vmem:[#allocation6 + $0xd18] sm:$0xff] %v4195_v4  ;;  %6170 = vmatmul.msk.f32.gmra.mxu2 %vm181_vm0, %v102_v5  ;;  %6298 = vmatmul.msk.f32.gmra.mxu3 %vm181_vm0, %v102_v5 }
 0x234   :  { %v742_v6 = vpop.f32.mrf.mxu0  ;;  %v1143_v7 = vpop.f32.mrf.mxu1 }
 0x235   :  { %v4200_v8 = vmul.f32 %v7203_v29, %v742_v6  ;;  %v4201_v9 = vmul.f32 %v7203_v29, %v1143_v7  ;;  %v1544_v10 = vpop.f32.mrf.mxu2  ;;  %v1945_v11 = vpop.f32.mrf.mxu3 }
 0x236   :  { %v4202_v12 = vmul.f32 %v7203_v29, %v1544_v10  ;;  %v4203_v13 = vmul.f32 %v7203_v29, %v1945_v11 }
 0x237   :  { %5224 = vst [vmem:[#allocation6 + $0xd40] sm:$0xff] %v4200_v8  ;;  %5914 = vmatmul.msk.f32.gmra.mxu0 %vm181_vm0, %v102_v5  ;;  %6042 = vmatmul.msk.f32.gmra.mxu1 %vm181_vm0, %v102_v5  ;;  %v109_v5 = vld [vmem:[%s9911_s1 + $0x260] sm:$0xff] }
 0x238   :  { %5225 = vst [vmem:[#allocation6 + $0xd48] sm:$0xff] %v4201_v9 }
 0x239   :  { %5226 = vst [vmem:[#allocation6 + $0xd50] sm:$0xff] %v4202_v12 }
 0x23a   :  { %5227 = vst [vmem:[#allocation6 + $0xd58] sm:$0xff] %v4203_v13  ;;  %6171 = vmatmul.msk.f32.gmra.mxu2 %vm181_vm0, %v103_v14  ;;  %6299 = vmatmul.msk.f32.gmra.mxu3 %vm181_vm0, %v103_v14 }
 0x23c   :  { %v745_v15 = vpop.f32.mrf.mxu0  ;;  %v1146_v16 = vpop.f32.mrf.mxu1 }
 0x23d   :  { %v4208_v17 = vmul.f32 %v7203_v29, %v745_v15  ;;  %v4209_v18 = vmul.f32 %v7203_v29, %v1146_v16  ;;  %v1547_v19 = vpop.f32.mrf.mxu2  ;;  %v1948_v20 = vpop.f32.mrf.mxu3 }
 0x23e   :  { %v4210_v21 = vmul.f32 %v7203_v29, %v1547_v19  ;;  %v4211_v22 = vmul.f32 %v7203_v29, %v1948_v20 }
 0x23f   :  { %5232 = vst [vmem:[#allocation6 + $0xd80] sm:$0xff] %v4208_v17  ;;  %5915 = vmatmul.msk.f32.gmra.mxu0 %vm181_vm0, %v103_v14  ;;  %6043 = vmatmul.msk.f32.gmra.mxu1 %vm181_vm0, %v103_v14  ;;  %v110_v14 = vld [vmem:[%s9911_s1 + $0x268] sm:$0xff] }
 0x240   :  { %5233 = vst [vmem:[#allocation6 + $0xd88] sm:$0xff] %v4209_v18 }
 0x241   :  { %5234 = vst [vmem:[#allocation6 + $0xd90] sm:$0xff] %v4210_v21 }
 0x242   :  { %5235 = vst [vmem:[#allocation6 + $0xd98] sm:$0xff] %v4211_v22  ;;  %6172 = vmatmul.msk.f32.gmra.mxu2 %vm181_vm0, %v104_v23  ;;  %6300 = vmatmul.msk.f32.gmra.mxu3 %vm181_vm0, %v104_v23 }
 0x244   :  { %v748_v24 = vpop.f32.mrf.mxu0  ;;  %v1149_v25 = vpop.f32.mrf.mxu1 }
 0x245   :  { %v4216_v26 = vmul.f32 %v7203_v29, %v748_v24  ;;  %v4217_v27 = vmul.f32 %v7203_v29, %v1149_v25  ;;  %v1550_v28 = vpop.f32.mrf.mxu2  ;;  %v1951_v30 = vpop.f32.mrf.mxu3 }
 0x246   :  { %v4218_v31 = vmul.f32 %v7203_v29, %v1550_v28  ;;  %v4219_v32 = vmul.f32 %v7203_v29, %v1951_v30 }
 0x247   :  { %5240 = vst [vmem:[#allocation6 + $0xdc0] sm:$0xff] %v4216_v26  ;;  %5916 = vmatmul.msk.f32.gmra.mxu0 %vm181_vm0, %v104_v23  ;;  %6044 = vmatmul.msk.f32.gmra.mxu1 %vm181_vm0, %v104_v23  ;;  %v111_v23 = vld [vmem:[%s9911_s1 + $0x270] sm:$0xff] }
 0x248   :  { %5241 = vst [vmem:[#allocation6 + $0xdc8] sm:$0xff] %v4217_v27 }
 0x249   :  { %5242 = vst [vmem:[#allocation6 + $0xdd0] sm:$0xff] %v4218_v31 }
 0x24a   :  { %5243 = vst [vmem:[#allocation6 + $0xdd8] sm:$0xff] %v4219_v32  ;;  %6173 = vmatmul.msk.f32.gmra.mxu2 %vm181_vm0, %v105_v33  ;;  %6301 = vmatmul.msk.f32.gmra.mxu3 %vm181_vm0, %v105_v33 }
 0x24c   :  { %v751_v34 = vpop.f32.mrf.mxu0  ;;  %v1152_v35 = vpop.f32.mrf.mxu1 }
 0x24d   :  { %v4224_v36 = vmul.f32 %v7203_v29, %v751_v34  ;;  %v4225_v37 = vmul.f32 %v7203_v29, %v1152_v35  ;;  %v1553_v38 = vpop.f32.mrf.mxu2  ;;  %v1954_v39 = vpop.f32.mrf.mxu3 }
 0x24e   :  { %v4226_v40 = vmul.f32 %v7203_v29, %v1553_v38  ;;  %v4227_v41 = vmul.f32 %v7203_v29, %v1954_v39 }
 0x24f   :  { %5248 = vst [vmem:[#allocation6 + $0xe00] sm:$0xff] %v4224_v36  ;;  %5917 = vmatmul.msk.f32.gmra.mxu0 %vm181_vm0, %v105_v33  ;;  %6045 = vmatmul.msk.f32.gmra.mxu1 %vm181_vm0, %v105_v33  ;;  %v112_v33 = vld [vmem:[%s9911_s1 + $0x278] sm:$0xff] }
 0x250   :  { %5249 = vst [vmem:[#allocation6 + $0xe08] sm:$0xff] %v4225_v37 }
 0x251   :  { %5250 = vst [vmem:[#allocation6 + $0xe10] sm:$0xff] %v4226_v40 }
 0x252   :  { %5251 = vst [vmem:[#allocation6 + $0xe18] sm:$0xff] %v4227_v41  ;;  %6174 = vmatmul.msk.f32.gmra.mxu2 %vm181_vm0, %v106_v42  ;;  %6302 = vmatmul.msk.f32.gmra.mxu3 %vm181_vm0, %v106_v42 }
 0x254   :  { %v754_v43 = vpop.f32.mrf.mxu0  ;;  %v1155_v44 = vpop.f32.mrf.mxu1 }
 0x255   :  { %v4232_v45 = vmul.f32 %v7203_v29, %v754_v43  ;;  %v4233_v46 = vmul.f32 %v7203_v29, %v1155_v44  ;;  %v1556_v47 = vpop.f32.mrf.mxu2  ;;  %v1957_v48 = vpop.f32.mrf.mxu3 }
 0x256   :  { %v4234_v49 = vmul.f32 %v7203_v29, %v1556_v47  ;;  %v4235_v50 = vmul.f32 %v7203_v29, %v1957_v48 }
 0x257   :  { %5256 = vst [vmem:[#allocation6 + $0xe40] sm:$0xff] %v4232_v45  ;;  %5918 = vmatmul.msk.f32.gmra.mxu0 %vm181_vm0, %v106_v42  ;;  %6046 = vmatmul.msk.f32.gmra.mxu1 %vm181_vm0, %v106_v42  ;;  %v113_v42 = vld [vmem:[%s9911_s1 + $0x280] sm:$0xff] }
 0x258   :  { %5257 = vst [vmem:[#allocation6 + $0xe48] sm:$0xff] %v4233_v46 }
 0x259   :  { %5258 = vst [vmem:[#allocation6 + $0xe50] sm:$0xff] %v4234_v49 }
 0x25a   :  { %5259 = vst [vmem:[#allocation6 + $0xe58] sm:$0xff] %v4235_v50  ;;  %6175 = vmatmul.msk.f32.gmra.mxu2 %vm181_vm0, %v107_v51  ;;  %6303 = vmatmul.msk.f32.gmra.mxu3 %vm181_vm0, %v107_v51 }
 0x25c   :  { %v757_v52 = vpop.f32.mrf.mxu0  ;;  %v1158_v53 = vpop.f32.mrf.mxu1 }
 0x25d   :  { %v4240_v54 = vmul.f32 %v7203_v29, %v757_v52  ;;  %v4241_v55 = vmul.f32 %v7203_v29, %v1158_v53  ;;  %v1559_v56 = vpop.f32.mrf.mxu2  ;;  %v1960_v57 = vpop.f32.mrf.mxu3 }
 0x25e   :  { %v4242_v58 = vmul.f32 %v7203_v29, %v1559_v56  ;;  %v4243_v59 = vmul.f32 %v7203_v29, %v1960_v57 }
 0x25f   :  { %5264 = vst [vmem:[#allocation6 + $0xe80] sm:$0xff] %v4240_v54  ;;  %5919 = vmatmul.msk.f32.gmra.mxu0 %vm181_vm0, %v107_v51  ;;  %6047 = vmatmul.msk.f32.gmra.mxu1 %vm181_vm0, %v107_v51  ;;  %v114_v51 = vld [vmem:[%s9911_s1 + $0x288] sm:$0xff] }
 0x260   :  { %5265 = vst [vmem:[#allocation6 + $0xe88] sm:$0xff] %v4241_v55 }
 0x261   :  { %5266 = vst [vmem:[#allocation6 + $0xe90] sm:$0xff] %v4242_v58 }
 0x262   :  { %5267 = vst [vmem:[#allocation6 + $0xe98] sm:$0xff] %v4243_v59  ;;  %6176 = vmatmul.msk.f32.gmra.mxu2 %vm181_vm0, %v108_v60  ;;  %6304 = vmatmul.msk.f32.gmra.mxu3 %vm181_vm0, %v108_v60 }
 0x264   :  { %v760_v61 = vpop.f32.mrf.mxu0  ;;  %v1161_v62 = vpop.f32.mrf.mxu1 }
 0x265   :  { %v4248_v63 = vmul.f32 %v7203_v29, %v760_v61  ;;  %v4249_v0 = vmul.f32 %v7203_v29, %v1161_v62  ;;  %v1562_v1 = vpop.f32.mrf.mxu2  ;;  %v1963_v2 = vpop.f32.mrf.mxu3 }
 0x266   :  { %v4250_v3 = vmul.f32 %v7203_v29, %v1562_v1  ;;  %v4251_v4 = vmul.f32 %v7203_v29, %v1963_v2 }
 0x267   :  { %5272 = vst [vmem:[#allocation6 + $0xec0] sm:$0xff] %v4248_v63  ;;  %5920 = vmatmul.msk.f32.gmra.mxu0 %vm181_vm0, %v108_v60  ;;  %6048 = vmatmul.msk.f32.gmra.mxu1 %vm181_vm0, %v108_v60  ;;  %v115_v60 = vld [vmem:[%s9911_s1 + $0x290] sm:$0xff] }
 0x268   :  { %5273 = vst [vmem:[#allocation6 + $0xec8] sm:$0xff] %v4249_v0 }
 0x269   :  { %5274 = vst [vmem:[#allocation6 + $0xed0] sm:$0xff] %v4250_v3 }
 0x26a   :  { %5275 = vst [vmem:[#allocation6 + $0xed8] sm:$0xff] %v4251_v4  ;;  %6177 = vmatmul.msk.f32.gmra.mxu2 %vm181_vm0, %v109_v5  ;;  %6305 = vmatmul.msk.f32.gmra.mxu3 %vm181_vm0, %v109_v5 }
 0x26c   :  { %v763_v6 = vpop.f32.mrf.mxu0  ;;  %v1164_v7 = vpop.f32.mrf.mxu1 }
 0x26d   :  { %v4256_v8 = vmul.f32 %v7203_v29, %v763_v6  ;;  %v4257_v9 = vmul.f32 %v7203_v29, %v1164_v7  ;;  %v1565_v10 = vpop.f32.mrf.mxu2  ;;  %v1966_v11 = vpop.f32.mrf.mxu3 }
 0x26e   :  { %v4258_v12 = vmul.f32 %v7203_v29, %v1565_v10  ;;  %v4259_v13 = vmul.f32 %v7203_v29, %v1966_v11 }
 0x26f   :  { %5280 = vst [vmem:[#allocation6 + $0xf00] sm:$0xff] %v4256_v8  ;;  %5921 = vmatmul.msk.f32.gmra.mxu0 %vm181_vm0, %v109_v5  ;;  %6049 = vmatmul.msk.f32.gmra.mxu1 %vm181_vm0, %v109_v5  ;;  %v116_v5 = vld [vmem:[%s9911_s1 + $0x298] sm:$0xff] }
 0x270   :  { %5281 = vst [vmem:[#allocation6 + $0xf08] sm:$0xff] %v4257_v9 }
 0x271   :  { %5282 = vst [vmem:[#allocation6 + $0xf10] sm:$0xff] %v4258_v12 }
 0x272   :  { %5283 = vst [vmem:[#allocation6 + $0xf18] sm:$0xff] %v4259_v13  ;;  %6178 = vmatmul.msk.f32.gmra.mxu2 %vm181_vm0, %v110_v14  ;;  %6306 = vmatmul.msk.f32.gmra.mxu3 %vm181_vm0, %v110_v14 }
 0x274   :  { %v766_v15 = vpop.f32.mrf.mxu0  ;;  %v1167_v16 = vpop.f32.mrf.mxu1 }
 0x275   :  { %v4264_v17 = vmul.f32 %v7203_v29, %v766_v15  ;;  %v4265_v18 = vmul.f32 %v7203_v29, %v1167_v16  ;;  %v1568_v19 = vpop.f32.mrf.mxu2  ;;  %v1969_v20 = vpop.f32.mrf.mxu3 }
 0x276   :  { %v4266_v21 = vmul.f32 %v7203_v29, %v1568_v19  ;;  %v4267_v22 = vmul.f32 %v7203_v29, %v1969_v20 }
 0x277   :  { %5288 = vst [vmem:[#allocation6 + $0xf40] sm:$0xff] %v4264_v17  ;;  %5922 = vmatmul.msk.f32.gmra.mxu0 %vm181_vm0, %v110_v14  ;;  %6050 = vmatmul.msk.f32.gmra.mxu1 %vm181_vm0, %v110_v14  ;;  %v117_v14 = vld [vmem:[%s9911_s1 + $0x2a0] sm:$0xff] }
 0x278   :  { %5289 = vst [vmem:[#allocation6 + $0xf48] sm:$0xff] %v4265_v18 }
 0x279   :  { %5290 = vst [vmem:[#allocation6 + $0xf50] sm:$0xff] %v4266_v21 }
 0x27a   :  { %5291 = vst [vmem:[#allocation6 + $0xf58] sm:$0xff] %v4267_v22  ;;  %6179 = vmatmul.msk.f32.gmra.mxu2 %vm181_vm0, %v111_v23  ;;  %6307 = vmatmul.msk.f32.gmra.mxu3 %vm181_vm0, %v111_v23 }
 0x27c   :  { %v769_v24 = vpop.f32.mrf.mxu0  ;;  %v1170_v25 = vpop.f32.mrf.mxu1 }
 0x27d   :  { %v4272_v26 = vmul.f32 %v7203_v29, %v769_v24  ;;  %v4273_v27 = vmul.f32 %v7203_v29, %v1170_v25  ;;  %v1571_v28 = vpop.f32.mrf.mxu2  ;;  %v1972_v30 = vpop.f32.mrf.mxu3 }
 0x27e   :  { %v4274_v31 = vmul.f32 %v7203_v29, %v1571_v28  ;;  %v4275_v32 = vmul.f32 %v7203_v29, %v1972_v30 }
 0x27f   :  { %5296 = vst [vmem:[#allocation6 + $0xf80] sm:$0xff] %v4272_v26  ;;  %5923 = vmatmul.msk.f32.gmra.mxu0 %vm181_vm0, %v111_v23  ;;  %6051 = vmatmul.msk.f32.gmra.mxu1 %vm181_vm0, %v111_v23  ;;  %v118_v23 = vld [vmem:[%s9911_s1 + $0x2a8] sm:$0xff] }
 0x280   :  { %5297 = vst [vmem:[#allocation6 + $0xf88] sm:$0xff] %v4273_v27 }
 0x281   :  { %5298 = vst [vmem:[#allocation6 + $0xf90] sm:$0xff] %v4274_v31 }
 0x282   :  { %5299 = vst [vmem:[#allocation6 + $0xf98] sm:$0xff] %v4275_v32  ;;  %6180 = vmatmul.msk.f32.gmra.mxu2 %vm181_vm0, %v112_v33  ;;  %6308 = vmatmul.msk.f32.gmra.mxu3 %vm181_vm0, %v112_v33 }
 0x284   :  { %v772_v34 = vpop.f32.mrf.mxu0  ;;  %v1173_v35 = vpop.f32.mrf.mxu1 }
 0x285   :  { %v4280_v36 = vmul.f32 %v7203_v29, %v772_v34  ;;  %v4281_v37 = vmul.f32 %v7203_v29, %v1173_v35  ;;  %v1574_v38 = vpop.f32.mrf.mxu2  ;;  %v1975_v39 = vpop.f32.mrf.mxu3 }
 0x286   :  { %v4282_v40 = vmul.f32 %v7203_v29, %v1574_v38  ;;  %v4283_v41 = vmul.f32 %v7203_v29, %v1975_v39 }
 0x287   :  { %5304 = vst [vmem:[#allocation6 + $0xfc0] sm:$0xff] %v4280_v36  ;;  %5924 = vmatmul.msk.f32.gmra.mxu0 %vm181_vm0, %v112_v33  ;;  %6052 = vmatmul.msk.f32.gmra.mxu1 %vm181_vm0, %v112_v33  ;;  %v119_v33 = vld [vmem:[%s9911_s1 + $0x2b0] sm:$0xff] }
 0x288   :  { %5305 = vst [vmem:[#allocation6 + $0xfc8] sm:$0xff] %v4281_v37 }
 0x289   :  { %5306 = vst [vmem:[#allocation6 + $0xfd0] sm:$0xff] %v4282_v40 }
 0x28a   :  { %5307 = vst [vmem:[#allocation6 + $0xfd8] sm:$0xff] %v4283_v41  ;;  %6181 = vmatmul.msk.f32.gmra.mxu2 %vm181_vm0, %v113_v42  ;;  %6309 = vmatmul.msk.f32.gmra.mxu3 %vm181_vm0, %v113_v42 }
 0x28c   :  { %v775_v43 = vpop.f32.mrf.mxu0  ;;  %v1176_v44 = vpop.f32.mrf.mxu1 }
 0x28d   :  { %v4288_v45 = vmul.f32 %v7203_v29, %v775_v43  ;;  %v4289_v46 = vmul.f32 %v7203_v29, %v1176_v44  ;;  %v1577_v47 = vpop.f32.mrf.mxu2  ;;  %v1978_v48 = vpop.f32.mrf.mxu3 }
 0x28e   :  { %v4290_v49 = vmul.f32 %v7203_v29, %v1577_v47  ;;  %v4291_v50 = vmul.f32 %v7203_v29, %v1978_v48 }
 0x28f   :  { %5312 = vst [vmem:[#allocation6 + $0x1000] sm:$0xff] %v4288_v45  ;;  %5925 = vmatmul.msk.f32.gmra.mxu0 %vm181_vm0, %v113_v42  ;;  %6053 = vmatmul.msk.f32.gmra.mxu1 %vm181_vm0, %v113_v42  ;;  %v120_v42 = vld [vmem:[%s9911_s1 + $0x2b8] sm:$0xff] }
 0x290   :  { %5313 = vst [vmem:[#allocation6 + $0x1008] sm:$0xff] %v4289_v46 }
 0x291   :  { %5314 = vst [vmem:[#allocation6 + $0x1010] sm:$0xff] %v4290_v49 }
 0x292   :  { %5315 = vst [vmem:[#allocation6 + $0x1018] sm:$0xff] %v4291_v50  ;;  %6182 = vmatmul.msk.f32.gmra.mxu2 %vm181_vm0, %v114_v51  ;;  %6310 = vmatmul.msk.f32.gmra.mxu3 %vm181_vm0, %v114_v51 }
 0x294   :  { %v778_v52 = vpop.f32.mrf.mxu0  ;;  %v1179_v53 = vpop.f32.mrf.mxu1 }
 0x295   :  { %v4296_v54 = vmul.f32 %v7203_v29, %v778_v52  ;;  %v4297_v55 = vmul.f32 %v7203_v29, %v1179_v53  ;;  %v1580_v56 = vpop.f32.mrf.mxu2  ;;  %v1981_v57 = vpop.f32.mrf.mxu3 }
 0x296   :  { %v4298_v58 = vmul.f32 %v7203_v29, %v1580_v56  ;;  %v4299_v59 = vmul.f32 %v7203_v29, %v1981_v57 }
 0x297   :  { %5320 = vst [vmem:[#allocation6 + $0x1040] sm:$0xff] %v4296_v54  ;;  %5926 = vmatmul.msk.f32.gmra.mxu0 %vm181_vm0, %v114_v51  ;;  %6054 = vmatmul.msk.f32.gmra.mxu1 %vm181_vm0, %v114_v51  ;;  %v121_v51 = vld [vmem:[%s9911_s1 + $0x2c0] sm:$0xff] }
 0x298   :  { %5321 = vst [vmem:[#allocation6 + $0x1048] sm:$0xff] %v4297_v55 }
 0x299   :  { %5322 = vst [vmem:[#allocation6 + $0x1050] sm:$0xff] %v4298_v58 }
 0x29a   :  { %5323 = vst [vmem:[#allocation6 + $0x1058] sm:$0xff] %v4299_v59  ;;  %6183 = vmatmul.msk.f32.gmra.mxu2 %vm181_vm0, %v115_v60  ;;  %6311 = vmatmul.msk.f32.gmra.mxu3 %vm181_vm0, %v115_v60 }
 0x29c   :  { %v781_v61 = vpop.f32.mrf.mxu0  ;;  %v1182_v62 = vpop.f32.mrf.mxu1 }
 0x29d   :  { %v4304_v63 = vmul.f32 %v7203_v29, %v781_v61  ;;  %v4305_v0 = vmul.f32 %v7203_v29, %v1182_v62  ;;  %v1583_v1 = vpop.f32.mrf.mxu2  ;;  %v1984_v2 = vpop.f32.mrf.mxu3 }
 0x29e   :  { %v4306_v3 = vmul.f32 %v7203_v29, %v1583_v1  ;;  %v4307_v4 = vmul.f32 %v7203_v29, %v1984_v2 }
 0x29f   :  { %5328 = vst [vmem:[#allocation6 + $0x1080] sm:$0xff] %v4304_v63  ;;  %5927 = vmatmul.msk.f32.gmra.mxu0 %vm181_vm0, %v115_v60  ;;  %6055 = vmatmul.msk.f32.gmra.mxu1 %vm181_vm0, %v115_v60  ;;  %v122_v60 = vld [vmem:[%s9911_s1 + $0x2c8] sm:$0xff] }
 0x2a0   :  { %5329 = vst [vmem:[#allocation6 + $0x1088] sm:$0xff] %v4305_v0 }
 0x2a1   :  { %5330 = vst [vmem:[#allocation6 + $0x1090] sm:$0xff] %v4306_v3 }
 0x2a2   :  { %5331 = vst [vmem:[#allocation6 + $0x1098] sm:$0xff] %v4307_v4  ;;  %6184 = vmatmul.msk.f32.gmra.mxu2 %vm181_vm0, %v116_v5  ;;  %6312 = vmatmul.msk.f32.gmra.mxu3 %vm181_vm0, %v116_v5 }
 0x2a4   :  { %v784_v6 = vpop.f32.mrf.mxu0  ;;  %v1185_v7 = vpop.f32.mrf.mxu1 }
 0x2a5   :  { %v4312_v8 = vmul.f32 %v7203_v29, %v784_v6  ;;  %v4313_v9 = vmul.f32 %v7203_v29, %v1185_v7  ;;  %v1586_v10 = vpop.f32.mrf.mxu2  ;;  %v1987_v11 = vpop.f32.mrf.mxu3 }
 0x2a6   :  { %v4314_v12 = vmul.f32 %v7203_v29, %v1586_v10  ;;  %v4315_v13 = vmul.f32 %v7203_v29, %v1987_v11 }
 0x2a7   :  { %5336 = vst [vmem:[#allocation6 + $0x10c0] sm:$0xff] %v4312_v8  ;;  %5928 = vmatmul.msk.f32.gmra.mxu0 %vm181_vm0, %v116_v5  ;;  %6056 = vmatmul.msk.f32.gmra.mxu1 %vm181_vm0, %v116_v5  ;;  %v123_v5 = vld [vmem:[%s9911_s1 + $0x2d0] sm:$0xff] }
 0x2a8   :  { %5337 = vst [vmem:[#allocation6 + $0x10c8] sm:$0xff] %v4313_v9 }
 0x2a9   :  { %5338 = vst [vmem:[#allocation6 + $0x10d0] sm:$0xff] %v4314_v12 }
 0x2aa   :  { %5339 = vst [vmem:[#allocation6 + $0x10d8] sm:$0xff] %v4315_v13  ;;  %6185 = vmatmul.msk.f32.gmra.mxu2 %vm181_vm0, %v117_v14  ;;  %6313 = vmatmul.msk.f32.gmra.mxu3 %vm181_vm0, %v117_v14 }
 0x2ac   :  { %v787_v15 = vpop.f32.mrf.mxu0  ;;  %v1188_v16 = vpop.f32.mrf.mxu1 }
 0x2ad   :  { %v4320_v17 = vmul.f32 %v7203_v29, %v787_v15  ;;  %v4321_v18 = vmul.f32 %v7203_v29, %v1188_v16  ;;  %v1589_v19 = vpop.f32.mrf.mxu2  ;;  %v1990_v20 = vpop.f32.mrf.mxu3 }
 0x2ae   :  { %v4322_v21 = vmul.f32 %v7203_v29, %v1589_v19  ;;  %v4323_v22 = vmul.f32 %v7203_v29, %v1990_v20 }
 0x2af   :  { %5344 = vst [vmem:[#allocation6 + $0x1100] sm:$0xff] %v4320_v17  ;;  %5929 = vmatmul.msk.f32.gmra.mxu0 %vm181_vm0, %v117_v14  ;;  %6057 = vmatmul.msk.f32.gmra.mxu1 %vm181_vm0, %v117_v14  ;;  %v124_v14 = vld [vmem:[%s9911_s1 + $0x2d8] sm:$0xff] }
 0x2b0   :  { %5345 = vst [vmem:[#allocation6 + $0x1108] sm:$0xff] %v4321_v18 }
 0x2b1   :  { %5346 = vst [vmem:[#allocation6 + $0x1110] sm:$0xff] %v4322_v21 }
 0x2b2   :  { %5347 = vst [vmem:[#allocation6 + $0x1118] sm:$0xff] %v4323_v22  ;;  %6186 = vmatmul.msk.f32.gmra.mxu2 %vm181_vm0, %v118_v23  ;;  %6314 = vmatmul.msk.f32.gmra.mxu3 %vm181_vm0, %v118_v23 }
 0x2b4   :  { %v790_v24 = vpop.f32.mrf.mxu0  ;;  %v1191_v25 = vpop.f32.mrf.mxu1 }
 0x2b5   :  { %v4328_v26 = vmul.f32 %v7203_v29, %v790_v24  ;;  %v4329_v27 = vmul.f32 %v7203_v29, %v1191_v25  ;;  %v1592_v28 = vpop.f32.mrf.mxu2  ;;  %v1993_v30 = vpop.f32.mrf.mxu3 }
 0x2b6   :  { %v4330_v31 = vmul.f32 %v7203_v29, %v1592_v28  ;;  %v4331_v32 = vmul.f32 %v7203_v29, %v1993_v30 }
 0x2b7   :  { %5352 = vst [vmem:[#allocation6 + $0x1140] sm:$0xff] %v4328_v26  ;;  %5930 = vmatmul.msk.f32.gmra.mxu0 %vm181_vm0, %v118_v23  ;;  %6058 = vmatmul.msk.f32.gmra.mxu1 %vm181_vm0, %v118_v23  ;;  %v125_v23 = vld [vmem:[%s9911_s1 + $0x2e0] sm:$0xff] }
 0x2b8   :  { %5353 = vst [vmem:[#allocation6 + $0x1148] sm:$0xff] %v4329_v27 }
 0x2b9   :  { %5354 = vst [vmem:[#allocation6 + $0x1150] sm:$0xff] %v4330_v31 }
 0x2ba   :  { %5355 = vst [vmem:[#allocation6 + $0x1158] sm:$0xff] %v4331_v32  ;;  %6187 = vmatmul.msk.f32.gmra.mxu2 %vm181_vm0, %v119_v33  ;;  %6315 = vmatmul.msk.f32.gmra.mxu3 %vm181_vm0, %v119_v33 }
 0x2bc   :  { %v793_v34 = vpop.f32.mrf.mxu0  ;;  %v1194_v35 = vpop.f32.mrf.mxu1 }
 0x2bd   :  { %v4336_v36 = vmul.f32 %v7203_v29, %v793_v34  ;;  %v4337_v37 = vmul.f32 %v7203_v29, %v1194_v35  ;;  %v1595_v38 = vpop.f32.mrf.mxu2  ;;  %v1996_v39 = vpop.f32.mrf.mxu3 }
 0x2be   :  { %v4338_v40 = vmul.f32 %v7203_v29, %v1595_v38  ;;  %v4339_v41 = vmul.f32 %v7203_v29, %v1996_v39 }
 0x2bf   :  { %5360 = vst [vmem:[#allocation6 + $0x1180] sm:$0xff] %v4336_v36  ;;  %5931 = vmatmul.msk.f32.gmra.mxu0 %vm181_vm0, %v119_v33  ;;  %6059 = vmatmul.msk.f32.gmra.mxu1 %vm181_vm0, %v119_v33  ;;  %v126_v33 = vld [vmem:[%s9911_s1 + $0x2e8] sm:$0xff] }
 0x2c0   :  { %5361 = vst [vmem:[#allocation6 + $0x1188] sm:$0xff] %v4337_v37 }
 0x2c1   :  { %5362 = vst [vmem:[#allocation6 + $0x1190] sm:$0xff] %v4338_v40 }
 0x2c2   :  { %5363 = vst [vmem:[#allocation6 + $0x1198] sm:$0xff] %v4339_v41  ;;  %6188 = vmatmul.msk.f32.gmra.mxu2 %vm181_vm0, %v120_v42  ;;  %6316 = vmatmul.msk.f32.gmra.mxu3 %vm181_vm0, %v120_v42 }
 0x2c4   :  { %v796_v43 = vpop.f32.mrf.mxu0  ;;  %v1197_v44 = vpop.f32.mrf.mxu1 }
 0x2c5   :  { %v4344_v45 = vmul.f32 %v7203_v29, %v796_v43  ;;  %v4345_v46 = vmul.f32 %v7203_v29, %v1197_v44  ;;  %v1598_v47 = vpop.f32.mrf.mxu2  ;;  %v1999_v48 = vpop.f32.mrf.mxu3 }
 0x2c6   :  { %v4346_v49 = vmul.f32 %v7203_v29, %v1598_v47  ;;  %v4347_v50 = vmul.f32 %v7203_v29, %v1999_v48 }
 0x2c7   :  { %5368 = vst [vmem:[#allocation6 + $0x11c0] sm:$0xff] %v4344_v45  ;;  %5932 = vmatmul.msk.f32.gmra.mxu0 %vm181_vm0, %v120_v42  ;;  %6060 = vmatmul.msk.f32.gmra.mxu1 %vm181_vm0, %v120_v42  ;;  %v127_v42 = vld [vmem:[%s9911_s1 + $0x2f0] sm:$0xff] }
 0x2c8   :  { %5369 = vst [vmem:[#allocation6 + $0x11c8] sm:$0xff] %v4345_v46 }
 0x2c9   :  { %5370 = vst [vmem:[#allocation6 + $0x11d0] sm:$0xff] %v4346_v49 }
 0x2ca   :  { %5371 = vst [vmem:[#allocation6 + $0x11d8] sm:$0xff] %v4347_v50  ;;  %6189 = vmatmul.msk.f32.gmra.mxu2 %vm181_vm0, %v121_v51  ;;  %6317 = vmatmul.msk.f32.gmra.mxu3 %vm181_vm0, %v121_v51 }
 0x2cc   :  { %v799_v52 = vpop.f32.mrf.mxu0  ;;  %v1200_v53 = vpop.f32.mrf.mxu1 }
 0x2cd   :  { %v4352_v54 = vmul.f32 %v7203_v29, %v799_v52  ;;  %v4353_v55 = vmul.f32 %v7203_v29, %v1200_v53  ;;  %v1601_v56 = vpop.f32.mrf.mxu2  ;;  %v2002_v57 = vpop.f32.mrf.mxu3 }
 0x2ce   :  { %v4354_v58 = vmul.f32 %v7203_v29, %v1601_v56  ;;  %v4355_v59 = vmul.f32 %v7203_v29, %v2002_v57 }
 0x2cf   :  { %5376 = vst [vmem:[#allocation6 + $0x1200] sm:$0xff] %v4352_v54  ;;  %5933 = vmatmul.msk.f32.gmra.mxu0 %vm181_vm0, %v121_v51  ;;  %6061 = vmatmul.msk.f32.gmra.mxu1 %vm181_vm0, %v121_v51  ;;  %v128_v51 = vld [vmem:[%s9911_s1 + $0x2f8] sm:$0xff] }
 0x2d0   :  { %5377 = vst [vmem:[#allocation6 + $0x1208] sm:$0xff] %v4353_v55 }
 0x2d1   :  { %5378 = vst [vmem:[#allocation6 + $0x1210] sm:$0xff] %v4354_v58 }
 0x2d2   :  { %5379 = vst [vmem:[#allocation6 + $0x1218] sm:$0xff] %v4355_v59  ;;  %6190 = vmatmul.msk.f32.gmra.mxu2 %vm181_vm0, %v122_v60  ;;  %6318 = vmatmul.msk.f32.gmra.mxu3 %vm181_vm0, %v122_v60 }
 0x2d4   :  { %v802_v61 = vpop.f32.mrf.mxu0  ;;  %v1203_v62 = vpop.f32.mrf.mxu1 }
 0x2d5   :  { %v4360_v63 = vmul.f32 %v7203_v29, %v802_v61  ;;  %v4361_v0 = vmul.f32 %v7203_v29, %v1203_v62  ;;  %v1604_v1 = vpop.f32.mrf.mxu2  ;;  %v2005_v2 = vpop.f32.mrf.mxu3 }
 0x2d6   :  { %v4362_v3 = vmul.f32 %v7203_v29, %v1604_v1  ;;  %v4363_v4 = vmul.f32 %v7203_v29, %v2005_v2 }
 0x2d7   :  { %5384 = vst [vmem:[#allocation6 + $0x1240] sm:$0xff] %v4360_v63  ;;  %5934 = vmatmul.msk.f32.gmra.mxu0 %vm181_vm0, %v122_v60  ;;  %6062 = vmatmul.msk.f32.gmra.mxu1 %vm181_vm0, %v122_v60  ;;  %v129_v60 = vld [vmem:[%s9911_s1 + $0x300] sm:$0xff] }
 0x2d8   :  { %5385 = vst [vmem:[#allocation6 + $0x1248] sm:$0xff] %v4361_v0 }
 0x2d9   :  { %5386 = vst [vmem:[#allocation6 + $0x1250] sm:$0xff] %v4362_v3 }
 0x2da   :  { %5387 = vst [vmem:[#allocation6 + $0x1258] sm:$0xff] %v4363_v4  ;;  %6191 = vmatmul.msk.f32.gmra.mxu2 %vm181_vm0, %v123_v5  ;;  %6319 = vmatmul.msk.f32.gmra.mxu3 %vm181_vm0, %v123_v5 }
 0x2dc   :  { %v805_v6 = vpop.f32.mrf.mxu0  ;;  %v1206_v7 = vpop.f32.mrf.mxu1 }
 0x2dd   :  { %v4368_v8 = vmul.f32 %v7203_v29, %v805_v6  ;;  %v4369_v9 = vmul.f32 %v7203_v29, %v1206_v7  ;;  %v1607_v10 = vpop.f32.mrf.mxu2  ;;  %v2008_v11 = vpop.f32.mrf.mxu3 }
 0x2de   :  { %v4370_v12 = vmul.f32 %v7203_v29, %v1607_v10  ;;  %v4371_v13 = vmul.f32 %v7203_v29, %v2008_v11 }
 0x2df   :  { %5392 = vst [vmem:[#allocation6 + $0x1280] sm:$0xff] %v4368_v8  ;;  %5935 = vmatmul.msk.f32.gmra.mxu0 %vm181_vm0, %v123_v5  ;;  %6063 = vmatmul.msk.f32.gmra.mxu1 %vm181_vm0, %v123_v5  ;;  %v130_v5 = vld [vmem:[%s9911_s1 + $0x308] sm:$0xff] }
 0x2e0   :  { %5393 = vst [vmem:[#allocation6 + $0x1288] sm:$0xff] %v4369_v9 }
 0x2e1   :  { %5394 = vst [vmem:[#allocation6 + $0x1290] sm:$0xff] %v4370_v12 }
 0x2e2   :  { %5395 = vst [vmem:[#allocation6 + $0x1298] sm:$0xff] %v4371_v13  ;;  %6192 = vmatmul.msk.f32.gmra.mxu2 %vm181_vm0, %v124_v14  ;;  %6320 = vmatmul.msk.f32.gmra.mxu3 %vm181_vm0, %v124_v14 }
 0x2e4   :  { %v808_v15 = vpop.f32.mrf.mxu0  ;;  %v1209_v16 = vpop.f32.mrf.mxu1 }
 0x2e5   :  { %v4376_v17 = vmul.f32 %v7203_v29, %v808_v15  ;;  %v4377_v18 = vmul.f32 %v7203_v29, %v1209_v16  ;;  %v1610_v19 = vpop.f32.mrf.mxu2  ;;  %v2011_v20 = vpop.f32.mrf.mxu3 }
 0x2e6   :  { %v4378_v21 = vmul.f32 %v7203_v29, %v1610_v19  ;;  %v4379_v22 = vmul.f32 %v7203_v29, %v2011_v20 }
 0x2e7   :  { %5400 = vst [vmem:[#allocation6 + $0x12c0] sm:$0xff] %v4376_v17  ;;  %5936 = vmatmul.msk.f32.gmra.mxu0 %vm181_vm0, %v124_v14  ;;  %6064 = vmatmul.msk.f32.gmra.mxu1 %vm181_vm0, %v124_v14  ;;  %v131_v14 = vld [vmem:[%s9911_s1 + $0x310] sm:$0xff] }
 0x2e8   :  { %5401 = vst [vmem:[#allocation6 + $0x12c8] sm:$0xff] %v4377_v18 }
 0x2e9   :  { %5402 = vst [vmem:[#allocation6 + $0x12d0] sm:$0xff] %v4378_v21 }
 0x2ea   :  { %5403 = vst [vmem:[#allocation6 + $0x12d8] sm:$0xff] %v4379_v22  ;;  %6193 = vmatmul.msk.f32.gmra.mxu2 %vm181_vm0, %v125_v23  ;;  %6321 = vmatmul.msk.f32.gmra.mxu3 %vm181_vm0, %v125_v23 }
 0x2ec   :  { %v811_v24 = vpop.f32.mrf.mxu0  ;;  %v1212_v25 = vpop.f32.mrf.mxu1 }
 0x2ed   :  { %v4384_v26 = vmul.f32 %v7203_v29, %v811_v24  ;;  %v4385_v27 = vmul.f32 %v7203_v29, %v1212_v25  ;;  %v1613_v28 = vpop.f32.mrf.mxu2  ;;  %v2014_v30 = vpop.f32.mrf.mxu3 }
 0x2ee   :  { %v4386_v31 = vmul.f32 %v7203_v29, %v1613_v28  ;;  %v4387_v32 = vmul.f32 %v7203_v29, %v2014_v30 }
 0x2ef   :  { %5408 = vst [vmem:[#allocation6 + $0x1300] sm:$0xff] %v4384_v26  ;;  %5937 = vmatmul.msk.f32.gmra.mxu0 %vm181_vm0, %v125_v23  ;;  %6065 = vmatmul.msk.f32.gmra.mxu1 %vm181_vm0, %v125_v23  ;;  %v132_v23 = vld [vmem:[%s9911_s1 + $0x318] sm:$0xff] }
 0x2f0   :  { %5409 = vst [vmem:[#allocation6 + $0x1308] sm:$0xff] %v4385_v27 }
 0x2f1   :  { %5410 = vst [vmem:[#allocation6 + $0x1310] sm:$0xff] %v4386_v31 }
 0x2f2   :  { %5411 = vst [vmem:[#allocation6 + $0x1318] sm:$0xff] %v4387_v32  ;;  %6194 = vmatmul.msk.f32.gmra.mxu2 %vm181_vm0, %v126_v33  ;;  %6322 = vmatmul.msk.f32.gmra.mxu3 %vm181_vm0, %v126_v33 }
 0x2f4   :  { %v814_v34 = vpop.f32.mrf.mxu0  ;;  %v1215_v35 = vpop.f32.mrf.mxu1 }
 0x2f5   :  { %v4392_v36 = vmul.f32 %v7203_v29, %v814_v34  ;;  %v4393_v37 = vmul.f32 %v7203_v29, %v1215_v35  ;;  %v1616_v38 = vpop.f32.mrf.mxu2  ;;  %v2017_v39 = vpop.f32.mrf.mxu3 }
 0x2f6   :  { %v4394_v40 = vmul.f32 %v7203_v29, %v1616_v38  ;;  %v4395_v41 = vmul.f32 %v7203_v29, %v2017_v39 }
 0x2f7   :  { %5416 = vst [vmem:[#allocation6 + $0x1340] sm:$0xff] %v4392_v36  ;;  %5938 = vmatmul.msk.f32.gmra.mxu0 %vm181_vm0, %v126_v33  ;;  %6066 = vmatmul.msk.f32.gmra.mxu1 %vm181_vm0, %v126_v33  ;;  %v133_v33 = vld [vmem:[%s9911_s1 + $0x320] sm:$0xff] }
 0x2f8   :  { %5417 = vst [vmem:[#allocation6 + $0x1348] sm:$0xff] %v4393_v37 }
 0x2f9   :  { %5418 = vst [vmem:[#allocation6 + $0x1350] sm:$0xff] %v4394_v40 }
 0x2fa   :  { %5419 = vst [vmem:[#allocation6 + $0x1358] sm:$0xff] %v4395_v41  ;;  %6195 = vmatmul.msk.f32.gmra.mxu2 %vm181_vm0, %v127_v42  ;;  %6323 = vmatmul.msk.f32.gmra.mxu3 %vm181_vm0, %v127_v42 }
 0x2fc   :  { %v817_v43 = vpop.f32.mrf.mxu0  ;;  %v1218_v44 = vpop.f32.mrf.mxu1 }
 0x2fd   :  { %v4400_v45 = vmul.f32 %v7203_v29, %v817_v43  ;;  %v4401_v46 = vmul.f32 %v7203_v29, %v1218_v44  ;;  %v1619_v47 = vpop.f32.mrf.mxu2  ;;  %v2020_v48 = vpop.f32.mrf.mxu3 }
 0x2fe   :  { %v4402_v49 = vmul.f32 %v7203_v29, %v1619_v47  ;;  %v4403_v50 = vmul.f32 %v7203_v29, %v2020_v48 }
 0x2ff   :  { %5424 = vst [vmem:[#allocation6 + $0x1380] sm:$0xff] %v4400_v45  ;;  %5939 = vmatmul.msk.f32.gmra.mxu0 %vm181_vm0, %v127_v42  ;;  %6067 = vmatmul.msk.f32.gmra.mxu1 %vm181_vm0, %v127_v42  ;;  %v134_v42 = vld [vmem:[%s9911_s1 + $0x328] sm:$0xff] }
 0x300   :  { %5425 = vst [vmem:[#allocation6 + $0x1388] sm:$0xff] %v4401_v46 }
 0x301   :  { %5426 = vst [vmem:[#allocation6 + $0x1390] sm:$0xff] %v4402_v49 }
 0x302   :  { %5427 = vst [vmem:[#allocation6 + $0x1398] sm:$0xff] %v4403_v50  ;;  %6196 = vmatmul.msk.f32.gmra.mxu2 %vm181_vm0, %v128_v51  ;;  %6324 = vmatmul.msk.f32.gmra.mxu3 %vm181_vm0, %v128_v51 }
 0x304   :  { %v820_v52 = vpop.f32.mrf.mxu0  ;;  %v1221_v53 = vpop.f32.mrf.mxu1 }
 0x305   :  { %v4408_v54 = vmul.f32 %v7203_v29, %v820_v52  ;;  %v4409_v55 = vmul.f32 %v7203_v29, %v1221_v53  ;;  %v1622_v56 = vpop.f32.mrf.mxu2  ;;  %v2023_v57 = vpop.f32.mrf.mxu3 }
 0x306   :  { %v4410_v58 = vmul.f32 %v7203_v29, %v1622_v56  ;;  %v4411_v59 = vmul.f32 %v7203_v29, %v2023_v57 }
 0x307   :  { %5432 = vst [vmem:[#allocation6 + $0x13c0] sm:$0xff] %v4408_v54  ;;  %5940 = vmatmul.msk.f32.gmra.mxu0 %vm181_vm0, %v128_v51  ;;  %6068 = vmatmul.msk.f32.gmra.mxu1 %vm181_vm0, %v128_v51  ;;  %v135_v51 = vld [vmem:[%s9911_s1 + $0x330] sm:$0xff] }
 0x308   :  { %5433 = vst [vmem:[#allocation6 + $0x13c8] sm:$0xff] %v4409_v55 }
 0x309   :  { %5434 = vst [vmem:[#allocation6 + $0x13d0] sm:$0xff] %v4410_v58 }
 0x30a   :  { %5435 = vst [vmem:[#allocation6 + $0x13d8] sm:$0xff] %v4411_v59  ;;  %6197 = vmatmul.msk.f32.gmra.mxu2 %vm181_vm0, %v129_v60  ;;  %6325 = vmatmul.msk.f32.gmra.mxu3 %vm181_vm0, %v129_v60 }
 0x30c   :  { %v823_v61 = vpop.f32.mrf.mxu0  ;;  %v1224_v62 = vpop.f32.mrf.mxu1 }
 0x30d   :  { %v4416_v63 = vmul.f32 %v7203_v29, %v823_v61  ;;  %v4417_v0 = vmul.f32 %v7203_v29, %v1224_v62  ;;  %v1625_v1 = vpop.f32.mrf.mxu2  ;;  %v2026_v2 = vpop.f32.mrf.mxu3 }
 0x30e   :  { %v4418_v3 = vmul.f32 %v7203_v29, %v1625_v1  ;;  %v4419_v4 = vmul.f32 %v7203_v29, %v2026_v2 }
 0x30f   :  { %5440 = vst [vmem:[#allocation6 + $0x1400] sm:$0xff] %v4416_v63  ;;  %5941 = vmatmul.msk.f32.gmra.mxu0 %vm181_vm0, %v129_v60  ;;  %6069 = vmatmul.msk.f32.gmra.mxu1 %vm181_vm0, %v129_v60  ;;  %v136_v60 = vld [vmem:[%s9911_s1 + $0x338] sm:$0xff] }
 0x310   :  { %5441 = vst [vmem:[#allocation6 + $0x1408] sm:$0xff] %v4417_v0 }
 0x311   :  { %5442 = vst [vmem:[#allocation6 + $0x1410] sm:$0xff] %v4418_v3 }
 0x312   :  { %5443 = vst [vmem:[#allocation6 + $0x1418] sm:$0xff] %v4419_v4  ;;  %6198 = vmatmul.msk.f32.gmra.mxu2 %vm181_vm0, %v130_v5  ;;  %6326 = vmatmul.msk.f32.gmra.mxu3 %vm181_vm0, %v130_v5 }
 0x314   :  { %v826_v6 = vpop.f32.mrf.mxu0  ;;  %v1227_v7 = vpop.f32.mrf.mxu1 }
 0x315   :  { %v4424_v8 = vmul.f32 %v7203_v29, %v826_v6  ;;  %v4425_v9 = vmul.f32 %v7203_v29, %v1227_v7  ;;  %v1628_v10 = vpop.f32.mrf.mxu2  ;;  %v2029_v11 = vpop.f32.mrf.mxu3 }
 0x316   :  { %v4426_v12 = vmul.f32 %v7203_v29, %v1628_v10  ;;  %v4427_v13 = vmul.f32 %v7203_v29, %v2029_v11 }
 0x317   :  { %5448 = vst [vmem:[#allocation6 + $0x1440] sm:$0xff] %v4424_v8  ;;  %5942 = vmatmul.msk.f32.gmra.mxu0 %vm181_vm0, %v130_v5  ;;  %6070 = vmatmul.msk.f32.gmra.mxu1 %vm181_vm0, %v130_v5  ;;  %v137_v5 = vld [vmem:[%s9911_s1 + $0x340] sm:$0xff] }
 0x318   :  { %5449 = vst [vmem:[#allocation6 + $0x1448] sm:$0xff] %v4425_v9 }
 0x319   :  { %5450 = vst [vmem:[#allocation6 + $0x1450] sm:$0xff] %v4426_v12 }
 0x31a   :  { %5451 = vst [vmem:[#allocation6 + $0x1458] sm:$0xff] %v4427_v13  ;;  %6199 = vmatmul.msk.f32.gmra.mxu2 %vm181_vm0, %v131_v14  ;;  %6327 = vmatmul.msk.f32.gmra.mxu3 %vm181_vm0, %v131_v14 }
 0x31c   :  { %v829_v15 = vpop.f32.mrf.mxu0  ;;  %v1230_v16 = vpop.f32.mrf.mxu1 }
 0x31d   :  { %v4432_v17 = vmul.f32 %v7203_v29, %v829_v15  ;;  %v4433_v18 = vmul.f32 %v7203_v29, %v1230_v16  ;;  %v1631_v19 = vpop.f32.mrf.mxu2  ;;  %v2032_v20 = vpop.f32.mrf.mxu3 }
 0x31e   :  { %v4434_v21 = vmul.f32 %v7203_v29, %v1631_v19  ;;  %v4435_v22 = vmul.f32 %v7203_v29, %v2032_v20 }
 0x31f   :  { %5456 = vst [vmem:[#allocation6 + $0x1480] sm:$0xff] %v4432_v17  ;;  %5943 = vmatmul.msk.f32.gmra.mxu0 %vm181_vm0, %v131_v14  ;;  %6071 = vmatmul.msk.f32.gmra.mxu1 %vm181_vm0, %v131_v14  ;;  %v138_v14 = vld [vmem:[%s9911_s1 + $0x348] sm:$0xff] }
 0x320   :  { %5457 = vst [vmem:[#allocation6 + $0x1488] sm:$0xff] %v4433_v18 }
 0x321   :  { %5458 = vst [vmem:[#allocation6 + $0x1490] sm:$0xff] %v4434_v21 }
 0x322   :  { %5459 = vst [vmem:[#allocation6 + $0x1498] sm:$0xff] %v4435_v22  ;;  %6200 = vmatmul.msk.f32.gmra.mxu2 %vm181_vm0, %v132_v23  ;;  %6328 = vmatmul.msk.f32.gmra.mxu3 %vm181_vm0, %v132_v23 }
 0x324   :  { %v832_v24 = vpop.f32.mrf.mxu0  ;;  %v1233_v25 = vpop.f32.mrf.mxu1 }
 0x325   :  { %v4440_v26 = vmul.f32 %v7203_v29, %v832_v24  ;;  %v4441_v27 = vmul.f32 %v7203_v29, %v1233_v25  ;;  %v1634_v28 = vpop.f32.mrf.mxu2  ;;  %v2035_v30 = vpop.f32.mrf.mxu3 }
 0x326   :  { %v4442_v31 = vmul.f32 %v7203_v29, %v1634_v28  ;;  %v4443_v32 = vmul.f32 %v7203_v29, %v2035_v30 }
 0x327   :  { %5464 = vst [vmem:[#allocation6 + $0x14c0] sm:$0xff] %v4440_v26  ;;  %5944 = vmatmul.msk.f32.gmra.mxu0 %vm181_vm0, %v132_v23  ;;  %6072 = vmatmul.msk.f32.gmra.mxu1 %vm181_vm0, %v132_v23  ;;  %v139_v23 = vld [vmem:[%s9911_s1 + $0x350] sm:$0xff] }
 0x328   :  { %5465 = vst [vmem:[#allocation6 + $0x14c8] sm:$0xff] %v4441_v27 }
 0x329   :  { %5466 = vst [vmem:[#allocation6 + $0x14d0] sm:$0xff] %v4442_v31 }
 0x32a   :  { %5467 = vst [vmem:[#allocation6 + $0x14d8] sm:$0xff] %v4443_v32  ;;  %6201 = vmatmul.msk.f32.gmra.mxu2 %vm181_vm0, %v133_v33  ;;  %6329 = vmatmul.msk.f32.gmra.mxu3 %vm181_vm0, %v133_v33 }
 0x32c   :  { %v835_v34 = vpop.f32.mrf.mxu0  ;;  %v1236_v35 = vpop.f32.mrf.mxu1 }
 0x32d   :  { %v4448_v36 = vmul.f32 %v7203_v29, %v835_v34  ;;  %v4449_v37 = vmul.f32 %v7203_v29, %v1236_v35  ;;  %v1637_v38 = vpop.f32.mrf.mxu2  ;;  %v2038_v39 = vpop.f32.mrf.mxu3 }
 0x32e   :  { %v4450_v40 = vmul.f32 %v7203_v29, %v1637_v38  ;;  %v4451_v41 = vmul.f32 %v7203_v29, %v2038_v39 }
 0x32f   :  { %5472 = vst [vmem:[#allocation6 + $0x1500] sm:$0xff] %v4448_v36  ;;  %5945 = vmatmul.msk.f32.gmra.mxu0 %vm181_vm0, %v133_v33  ;;  %6073 = vmatmul.msk.f32.gmra.mxu1 %vm181_vm0, %v133_v33  ;;  %v140_v33 = vld [vmem:[%s9911_s1 + $0x358] sm:$0xff] }
 0x330   :  { %5473 = vst [vmem:[#allocation6 + $0x1508] sm:$0xff] %v4449_v37 }
 0x331   :  { %5474 = vst [vmem:[#allocation6 + $0x1510] sm:$0xff] %v4450_v40 }
 0x332   :  { %5475 = vst [vmem:[#allocation6 + $0x1518] sm:$0xff] %v4451_v41  ;;  %6202 = vmatmul.msk.f32.gmra.mxu2 %vm181_vm0, %v134_v42  ;;  %6330 = vmatmul.msk.f32.gmra.mxu3 %vm181_vm0, %v134_v42 }
 0x334   :  { %v838_v43 = vpop.f32.mrf.mxu0  ;;  %v1239_v44 = vpop.f32.mrf.mxu1 }
 0x335   :  { %v4456_v45 = vmul.f32 %v7203_v29, %v838_v43  ;;  %v4457_v46 = vmul.f32 %v7203_v29, %v1239_v44  ;;  %v1640_v47 = vpop.f32.mrf.mxu2  ;;  %v2041_v48 = vpop.f32.mrf.mxu3 }
 0x336   :  { %v4458_v49 = vmul.f32 %v7203_v29, %v1640_v47  ;;  %v4459_v50 = vmul.f32 %v7203_v29, %v2041_v48 }
 0x337   :  { %5480 = vst [vmem:[#allocation6 + $0x1540] sm:$0xff] %v4456_v45  ;;  %5946 = vmatmul.msk.f32.gmra.mxu0 %vm181_vm0, %v134_v42  ;;  %6074 = vmatmul.msk.f32.gmra.mxu1 %vm181_vm0, %v134_v42  ;;  %v141_v42 = vld [vmem:[%s9911_s1 + $0x360] sm:$0xff] }
 0x338   :  { %5481 = vst [vmem:[#allocation6 + $0x1548] sm:$0xff] %v4457_v46 }
 0x339   :  { %5482 = vst [vmem:[#allocation6 + $0x1550] sm:$0xff] %v4458_v49 }
 0x33a   :  { %5483 = vst [vmem:[#allocation6 + $0x1558] sm:$0xff] %v4459_v50  ;;  %6203 = vmatmul.msk.f32.gmra.mxu2 %vm181_vm0, %v135_v51  ;;  %6331 = vmatmul.msk.f32.gmra.mxu3 %vm181_vm0, %v135_v51 }
 0x33c   :  { %v841_v52 = vpop.f32.mrf.mxu0  ;;  %v1242_v53 = vpop.f32.mrf.mxu1 }
 0x33d   :  { %v4464_v54 = vmul.f32 %v7203_v29, %v841_v52  ;;  %v4465_v55 = vmul.f32 %v7203_v29, %v1242_v53  ;;  %v1643_v56 = vpop.f32.mrf.mxu2  ;;  %v2044_v57 = vpop.f32.mrf.mxu3 }
 0x33e   :  { %v4466_v58 = vmul.f32 %v7203_v29, %v1643_v56  ;;  %v4467_v59 = vmul.f32 %v7203_v29, %v2044_v57 }
 0x33f   :  { %5488 = vst [vmem:[#allocation6 + $0x1580] sm:$0xff] %v4464_v54  ;;  %5947 = vmatmul.msk.f32.gmra.mxu0 %vm181_vm0, %v135_v51  ;;  %6075 = vmatmul.msk.f32.gmra.mxu1 %vm181_vm0, %v135_v51  ;;  %v142_v51 = vld [vmem:[%s9911_s1 + $0x368] sm:$0xff] }
 0x340   :  { %5489 = vst [vmem:[#allocation6 + $0x1588] sm:$0xff] %v4465_v55 }
 0x341   :  { %5490 = vst [vmem:[#allocation6 + $0x1590] sm:$0xff] %v4466_v58 }
 0x342   :  { %5491 = vst [vmem:[#allocation6 + $0x1598] sm:$0xff] %v4467_v59  ;;  %6204 = vmatmul.msk.f32.gmra.mxu2 %vm181_vm0, %v136_v60  ;;  %6332 = vmatmul.msk.f32.gmra.mxu3 %vm181_vm0, %v136_v60 }
 0x344   :  { %v844_v61 = vpop.f32.mrf.mxu0  ;;  %v1245_v62 = vpop.f32.mrf.mxu1 }
 0x345   :  { %v4472_v63 = vmul.f32 %v7203_v29, %v844_v61  ;;  %v4473_v0 = vmul.f32 %v7203_v29, %v1245_v62  ;;  %v1646_v1 = vpop.f32.mrf.mxu2  ;;  %v2047_v2 = vpop.f32.mrf.mxu3 }
 0x346   :  { %v4474_v3 = vmul.f32 %v7203_v29, %v1646_v1  ;;  %v4475_v4 = vmul.f32 %v7203_v29, %v2047_v2 }
 0x347   :  { %5496 = vst [vmem:[#allocation6 + $0x15c0] sm:$0xff] %v4472_v63  ;;  %5948 = vmatmul.msk.f32.gmra.mxu0 %vm181_vm0, %v136_v60  ;;  %6076 = vmatmul.msk.f32.gmra.mxu1 %vm181_vm0, %v136_v60  ;;  %v143_v60 = vld [vmem:[%s9911_s1 + $0x370] sm:$0xff] }
 0x348   :  { %5497 = vst [vmem:[#allocation6 + $0x15c8] sm:$0xff] %v4473_v0 }
 0x349   :  { %5498 = vst [vmem:[#allocation6 + $0x15d0] sm:$0xff] %v4474_v3 }
 0x34a   :  { %5499 = vst [vmem:[#allocation6 + $0x15d8] sm:$0xff] %v4475_v4  ;;  %6205 = vmatmul.msk.f32.gmra.mxu2 %vm181_vm0, %v137_v5  ;;  %6333 = vmatmul.msk.f32.gmra.mxu3 %vm181_vm0, %v137_v5 }
 0x34c   :  { %v847_v6 = vpop.f32.mrf.mxu0  ;;  %v1248_v7 = vpop.f32.mrf.mxu1 }
 0x34d   :  { %v4480_v8 = vmul.f32 %v7203_v29, %v847_v6  ;;  %v4481_v9 = vmul.f32 %v7203_v29, %v1248_v7  ;;  %v1649_v10 = vpop.f32.mrf.mxu2  ;;  %v2050_v11 = vpop.f32.mrf.mxu3 }
 0x34e   :  { %v4482_v12 = vmul.f32 %v7203_v29, %v1649_v10  ;;  %v4483_v13 = vmul.f32 %v7203_v29, %v2050_v11 }
 0x34f   :  { %5504 = vst [vmem:[#allocation6 + $0x1600] sm:$0xff] %v4480_v8  ;;  %5949 = vmatmul.msk.f32.gmra.mxu0 %vm181_vm0, %v137_v5  ;;  %6077 = vmatmul.msk.f32.gmra.mxu1 %vm181_vm0, %v137_v5  ;;  %v144_v5 = vld [vmem:[%s9911_s1 + $0x378] sm:$0xff] }
 0x350   :  { %5505 = vst [vmem:[#allocation6 + $0x1608] sm:$0xff] %v4481_v9 }
 0x351   :  { %5506 = vst [vmem:[#allocation6 + $0x1610] sm:$0xff] %v4482_v12 }
 0x352   :  { %5507 = vst [vmem:[#allocation6 + $0x1618] sm:$0xff] %v4483_v13  ;;  %6206 = vmatmul.msk.f32.gmra.mxu2 %vm181_vm0, %v138_v14  ;;  %6334 = vmatmul.msk.f32.gmra.mxu3 %vm181_vm0, %v138_v14 }
 0x354   :  { %v850_v15 = vpop.f32.mrf.mxu0  ;;  %v1251_v16 = vpop.f32.mrf.mxu1 }
 0x355   :  { %v4488_v17 = vmul.f32 %v7203_v29, %v850_v15  ;;  %v4489_v18 = vmul.f32 %v7203_v29, %v1251_v16  ;;  %v1652_v19 = vpop.f32.mrf.mxu2  ;;  %v2053_v20 = vpop.f32.mrf.mxu3 }
 0x356   :  { %v4490_v21 = vmul.f32 %v7203_v29, %v1652_v19  ;;  %v4491_v22 = vmul.f32 %v7203_v29, %v2053_v20 }
 0x357   :  { %5512 = vst [vmem:[#allocation6 + $0x1640] sm:$0xff] %v4488_v17  ;;  %5950 = vmatmul.msk.f32.gmra.mxu0 %vm181_vm0, %v138_v14  ;;  %6078 = vmatmul.msk.f32.gmra.mxu1 %vm181_vm0, %v138_v14  ;;  %v145_v14 = vld [vmem:[%s9911_s1 + $0x380] sm:$0xff] }
 0x358   :  { %5513 = vst [vmem:[#allocation6 + $0x1648] sm:$0xff] %v4489_v18 }
 0x359   :  { %5514 = vst [vmem:[#allocation6 + $0x1650] sm:$0xff] %v4490_v21 }
 0x35a   :  { %5515 = vst [vmem:[#allocation6 + $0x1658] sm:$0xff] %v4491_v22  ;;  %6207 = vmatmul.msk.f32.gmra.mxu2 %vm181_vm0, %v139_v23  ;;  %6335 = vmatmul.msk.f32.gmra.mxu3 %vm181_vm0, %v139_v23 }
 0x35c   :  { %v853_v24 = vpop.f32.mrf.mxu0  ;;  %v1254_v25 = vpop.f32.mrf.mxu1 }
 0x35d   :  { %v4496_v26 = vmul.f32 %v7203_v29, %v853_v24  ;;  %v4497_v27 = vmul.f32 %v7203_v29, %v1254_v25  ;;  %v1655_v28 = vpop.f32.mrf.mxu2  ;;  %v2056_v30 = vpop.f32.mrf.mxu3 }
 0x35e   :  { %v4498_v31 = vmul.f32 %v7203_v29, %v1655_v28  ;;  %v4499_v32 = vmul.f32 %v7203_v29, %v2056_v30 }
 0x35f   :  { %5520 = vst [vmem:[#allocation6 + $0x1680] sm:$0xff] %v4496_v26  ;;  %5951 = vmatmul.msk.f32.gmra.mxu0 %vm181_vm0, %v139_v23  ;;  %6079 = vmatmul.msk.f32.gmra.mxu1 %vm181_vm0, %v139_v23  ;;  %v146_v23 = vld [vmem:[%s9911_s1 + $0x388] sm:$0xff] }
 0x360   :  { %5521 = vst [vmem:[#allocation6 + $0x1688] sm:$0xff] %v4497_v27 }
 0x361   :  { %5522 = vst [vmem:[#allocation6 + $0x1690] sm:$0xff] %v4498_v31 }
 0x362   :  { %5523 = vst [vmem:[#allocation6 + $0x1698] sm:$0xff] %v4499_v32  ;;  %6208 = vmatmul.msk.f32.gmra.mxu2 %vm181_vm0, %v140_v33  ;;  %6336 = vmatmul.msk.f32.gmra.mxu3 %vm181_vm0, %v140_v33 }
 0x364   :  { %v856_v34 = vpop.f32.mrf.mxu0  ;;  %v1257_v35 = vpop.f32.mrf.mxu1 }
 0x365   :  { %v4504_v36 = vmul.f32 %v7203_v29, %v856_v34  ;;  %v4505_v37 = vmul.f32 %v7203_v29, %v1257_v35  ;;  %v1658_v38 = vpop.f32.mrf.mxu2  ;;  %v2059_v39 = vpop.f32.mrf.mxu3 }
 0x366   :  { %v4506_v40 = vmul.f32 %v7203_v29, %v1658_v38  ;;  %v4507_v41 = vmul.f32 %v7203_v29, %v2059_v39 }
 0x367   :  { %5528 = vst [vmem:[#allocation6 + $0x16c0] sm:$0xff] %v4504_v36  ;;  %5952 = vmatmul.msk.f32.gmra.mxu0 %vm181_vm0, %v140_v33  ;;  %6080 = vmatmul.msk.f32.gmra.mxu1 %vm181_vm0, %v140_v33  ;;  %v147_v33 = vld [vmem:[%s9911_s1 + $0x390] sm:$0xff] }
 0x368   :  { %5529 = vst [vmem:[#allocation6 + $0x16c8] sm:$0xff] %v4505_v37 }
 0x369   :  { %5530 = vst [vmem:[#allocation6 + $0x16d0] sm:$0xff] %v4506_v40 }
 0x36a   :  { %5531 = vst [vmem:[#allocation6 + $0x16d8] sm:$0xff] %v4507_v41  ;;  %6209 = vmatmul.msk.f32.gmra.mxu2 %vm181_vm0, %v141_v42  ;;  %6337 = vmatmul.msk.f32.gmra.mxu3 %vm181_vm0, %v141_v42 }
 0x36c   :  { %v859_v43 = vpop.f32.mrf.mxu0  ;;  %v1260_v44 = vpop.f32.mrf.mxu1 }
 0x36d   :  { %v4512_v45 = vmul.f32 %v7203_v29, %v859_v43  ;;  %v4513_v46 = vmul.f32 %v7203_v29, %v1260_v44  ;;  %v1661_v47 = vpop.f32.mrf.mxu2  ;;  %v2062_v48 = vpop.f32.mrf.mxu3 }
 0x36e   :  { %v4514_v49 = vmul.f32 %v7203_v29, %v1661_v47  ;;  %v4515_v50 = vmul.f32 %v7203_v29, %v2062_v48 }
 0x36f   :  { %5536 = vst [vmem:[#allocation6 + $0x1700] sm:$0xff] %v4512_v45  ;;  %5953 = vmatmul.msk.f32.gmra.mxu0 %vm181_vm0, %v141_v42  ;;  %6081 = vmatmul.msk.f32.gmra.mxu1 %vm181_vm0, %v141_v42  ;;  %v148_v42 = vld [vmem:[%s9911_s1 + $0x398] sm:$0xff] }
 0x370   :  { %5537 = vst [vmem:[#allocation6 + $0x1708] sm:$0xff] %v4513_v46 }
 0x371   :  { %5538 = vst [vmem:[#allocation6 + $0x1710] sm:$0xff] %v4514_v49 }
 0x372   :  { %5539 = vst [vmem:[#allocation6 + $0x1718] sm:$0xff] %v4515_v50  ;;  %6210 = vmatmul.msk.f32.gmra.mxu2 %vm181_vm0, %v142_v51  ;;  %6338 = vmatmul.msk.f32.gmra.mxu3 %vm181_vm0, %v142_v51 }
 0x374   :  { %v862_v52 = vpop.f32.mrf.mxu0  ;;  %v1263_v53 = vpop.f32.mrf.mxu1 }
 0x375   :  { %v4520_v54 = vmul.f32 %v7203_v29, %v862_v52  ;;  %v4521_v55 = vmul.f32 %v7203_v29, %v1263_v53  ;;  %v1664_v56 = vpop.f32.mrf.mxu2  ;;  %v2065_v57 = vpop.f32.mrf.mxu3 }
 0x376   :  { %v4522_v58 = vmul.f32 %v7203_v29, %v1664_v56  ;;  %v4523_v59 = vmul.f32 %v7203_v29, %v2065_v57 }
 0x377   :  { %5544 = vst [vmem:[#allocation6 + $0x1740] sm:$0xff] %v4520_v54  ;;  %5954 = vmatmul.msk.f32.gmra.mxu0 %vm181_vm0, %v142_v51  ;;  %6082 = vmatmul.msk.f32.gmra.mxu1 %vm181_vm0, %v142_v51  ;;  %v149_v51 = vld [vmem:[%s9911_s1 + $0x3a0] sm:$0xff] }
 0x378   :  { %5545 = vst [vmem:[#allocation6 + $0x1748] sm:$0xff] %v4521_v55 }
 0x379   :  { %5546 = vst [vmem:[#allocation6 + $0x1750] sm:$0xff] %v4522_v58 }
 0x37a   :  { %5547 = vst [vmem:[#allocation6 + $0x1758] sm:$0xff] %v4523_v59  ;;  %6211 = vmatmul.msk.f32.gmra.mxu2 %vm181_vm0, %v143_v60  ;;  %6339 = vmatmul.msk.f32.gmra.mxu3 %vm181_vm0, %v143_v60 }
 0x37c   :  { %v865_v61 = vpop.f32.mrf.mxu0  ;;  %v1266_v62 = vpop.f32.mrf.mxu1 }
 0x37d   :  { %v4528_v63 = vmul.f32 %v7203_v29, %v865_v61  ;;  %v4529_v0 = vmul.f32 %v7203_v29, %v1266_v62  ;;  %v1667_v1 = vpop.f32.mrf.mxu2  ;;  %v2068_v2 = vpop.f32.mrf.mxu3 }
 0x37e   :  { %v4530_v3 = vmul.f32 %v7203_v29, %v1667_v1  ;;  %v4531_v4 = vmul.f32 %v7203_v29, %v2068_v2 }
 0x37f   :  { %5552 = vst [vmem:[#allocation6 + $0x1780] sm:$0xff] %v4528_v63  ;;  %5955 = vmatmul.msk.f32.gmra.mxu0 %vm181_vm0, %v143_v60  ;;  %6083 = vmatmul.msk.f32.gmra.mxu1 %vm181_vm0, %v143_v60  ;;  %v150_v60 = vld [vmem:[%s9911_s1 + $0x3a8] sm:$0xff] }
 0x380   :  { %5553 = vst [vmem:[#allocation6 + $0x1788] sm:$0xff] %v4529_v0 }
 0x381   :  { %5554 = vst [vmem:[#allocation6 + $0x1790] sm:$0xff] %v4530_v3 }
 0x382   :  { %5555 = vst [vmem:[#allocation6 + $0x1798] sm:$0xff] %v4531_v4  ;;  %6212 = vmatmul.msk.f32.gmra.mxu2 %vm181_vm0, %v144_v5  ;;  %6340 = vmatmul.msk.f32.gmra.mxu3 %vm181_vm0, %v144_v5 }
 0x384   :  { %v868_v6 = vpop.f32.mrf.mxu0  ;;  %v1269_v7 = vpop.f32.mrf.mxu1 }
 0x385   :  { %v4536_v8 = vmul.f32 %v7203_v29, %v868_v6  ;;  %v4537_v9 = vmul.f32 %v7203_v29, %v1269_v7  ;;  %v1670_v10 = vpop.f32.mrf.mxu2  ;;  %v2071_v11 = vpop.f32.mrf.mxu3 }
 0x386   :  { %v4538_v12 = vmul.f32 %v7203_v29, %v1670_v10  ;;  %v4539_v13 = vmul.f32 %v7203_v29, %v2071_v11 }
 0x387   :  { %5560 = vst [vmem:[#allocation6 + $0x17c0] sm:$0xff] %v4536_v8  ;;  %5956 = vmatmul.msk.f32.gmra.mxu0 %vm181_vm0, %v144_v5  ;;  %6084 = vmatmul.msk.f32.gmra.mxu1 %vm181_vm0, %v144_v5  ;;  %v151_v5 = vld [vmem:[%s9911_s1 + $0x3b0] sm:$0xff] }
 0x388   :  { %5561 = vst [vmem:[#allocation6 + $0x17c8] sm:$0xff] %v4537_v9 }
 0x389   :  { %5562 = vst [vmem:[#allocation6 + $0x17d0] sm:$0xff] %v4538_v12 }
 0x38a   :  { %5563 = vst [vmem:[#allocation6 + $0x17d8] sm:$0xff] %v4539_v13  ;;  %6213 = vmatmul.msk.f32.gmra.mxu2 %vm181_vm0, %v145_v14  ;;  %6341 = vmatmul.msk.f32.gmra.mxu3 %vm181_vm0, %v145_v14 }
 0x38c   :  { %v871_v15 = vpop.f32.mrf.mxu0  ;;  %v1272_v16 = vpop.f32.mrf.mxu1 }
 0x38d   :  { %v4544_v17 = vmul.f32 %v7203_v29, %v871_v15  ;;  %v4545_v18 = vmul.f32 %v7203_v29, %v1272_v16  ;;  %v1673_v19 = vpop.f32.mrf.mxu2  ;;  %v2074_v20 = vpop.f32.mrf.mxu3 }
 0x38e   :  { %v4546_v21 = vmul.f32 %v7203_v29, %v1673_v19  ;;  %v4547_v22 = vmul.f32 %v7203_v29, %v2074_v20 }
 0x38f   :  { %5568 = vst [vmem:[#allocation6 + $0x1800] sm:$0xff] %v4544_v17  ;;  %5957 = vmatmul.msk.f32.gmra.mxu0 %vm181_vm0, %v145_v14  ;;  %6085 = vmatmul.msk.f32.gmra.mxu1 %vm181_vm0, %v145_v14  ;;  %v152_v14 = vld [vmem:[%s9911_s1 + $0x3b8] sm:$0xff] }
 0x390   :  { %5569 = vst [vmem:[#allocation6 + $0x1808] sm:$0xff] %v4545_v18 }
 0x391   :  { %5570 = vst [vmem:[#allocation6 + $0x1810] sm:$0xff] %v4546_v21 }
 0x392   :  { %5571 = vst [vmem:[#allocation6 + $0x1818] sm:$0xff] %v4547_v22  ;;  %6214 = vmatmul.msk.f32.gmra.mxu2 %vm181_vm0, %v146_v23  ;;  %6342 = vmatmul.msk.f32.gmra.mxu3 %vm181_vm0, %v146_v23 }
 0x394   :  { %v874_v24 = vpop.f32.mrf.mxu0  ;;  %v1275_v25 = vpop.f32.mrf.mxu1 }
 0x395   :  { %v4552_v26 = vmul.f32 %v7203_v29, %v874_v24  ;;  %v4553_v27 = vmul.f32 %v7203_v29, %v1275_v25  ;;  %v1676_v28 = vpop.f32.mrf.mxu2  ;;  %v2077_v30 = vpop.f32.mrf.mxu3 }
 0x396   :  { %v4554_v31 = vmul.f32 %v7203_v29, %v1676_v28  ;;  %v4555_v32 = vmul.f32 %v7203_v29, %v2077_v30 }
 0x397   :  { %5576 = vst [vmem:[#allocation6 + $0x1840] sm:$0xff] %v4552_v26  ;;  %5958 = vmatmul.msk.f32.gmra.mxu0 %vm181_vm0, %v146_v23  ;;  %6086 = vmatmul.msk.f32.gmra.mxu1 %vm181_vm0, %v146_v23  ;;  %v153_v23 = vld [vmem:[%s9911_s1 + $0x3c0] sm:$0xff] }
 0x398   :  { %5577 = vst [vmem:[#allocation6 + $0x1848] sm:$0xff] %v4553_v27 }
 0x399   :  { %5578 = vst [vmem:[#allocation6 + $0x1850] sm:$0xff] %v4554_v31 }
 0x39a   :  { %5579 = vst [vmem:[#allocation6 + $0x1858] sm:$0xff] %v4555_v32  ;;  %6215 = vmatmul.msk.f32.gmra.mxu2 %vm181_vm0, %v147_v33  ;;  %6343 = vmatmul.msk.f32.gmra.mxu3 %vm181_vm0, %v147_v33 }
 0x39c   :  { %v877_v34 = vpop.f32.mrf.mxu0  ;;  %v1278_v35 = vpop.f32.mrf.mxu1 }
 0x39d   :  { %v4560_v36 = vmul.f32 %v7203_v29, %v877_v34  ;;  %v4561_v37 = vmul.f32 %v7203_v29, %v1278_v35  ;;  %v1679_v38 = vpop.f32.mrf.mxu2  ;;  %v2080_v39 = vpop.f32.mrf.mxu3 }
 0x39e   :  { %v4562_v40 = vmul.f32 %v7203_v29, %v1679_v38  ;;  %v4563_v41 = vmul.f32 %v7203_v29, %v2080_v39 }
 0x39f   :  { %5584 = vst [vmem:[#allocation6 + $0x1880] sm:$0xff] %v4560_v36  ;;  %5959 = vmatmul.msk.f32.gmra.mxu0 %vm181_vm0, %v147_v33  ;;  %6087 = vmatmul.msk.f32.gmra.mxu1 %vm181_vm0, %v147_v33  ;;  %v154_v33 = vld [vmem:[%s9911_s1 + $0x3c8] sm:$0xff] }
 0x3a0   :  { %5585 = vst [vmem:[#allocation6 + $0x1888] sm:$0xff] %v4561_v37 }
 0x3a1   :  { %5586 = vst [vmem:[#allocation6 + $0x1890] sm:$0xff] %v4562_v40 }
 0x3a2   :  { %5587 = vst [vmem:[#allocation6 + $0x1898] sm:$0xff] %v4563_v41  ;;  %6216 = vmatmul.msk.f32.gmra.mxu2 %vm181_vm0, %v148_v42  ;;  %6344 = vmatmul.msk.f32.gmra.mxu3 %vm181_vm0, %v148_v42 }
 0x3a4   :  { %v880_v43 = vpop.f32.mrf.mxu0  ;;  %v1281_v44 = vpop.f32.mrf.mxu1 }
 0x3a5   :  { %v4568_v45 = vmul.f32 %v7203_v29, %v880_v43  ;;  %v4569_v46 = vmul.f32 %v7203_v29, %v1281_v44  ;;  %v1682_v47 = vpop.f32.mrf.mxu2  ;;  %v2083_v48 = vpop.f32.mrf.mxu3 }
 0x3a6   :  { %v4570_v49 = vmul.f32 %v7203_v29, %v1682_v47  ;;  %v4571_v50 = vmul.f32 %v7203_v29, %v2083_v48 }
 0x3a7   :  { %5592 = vst [vmem:[#allocation6 + $0x18c0] sm:$0xff] %v4568_v45  ;;  %5960 = vmatmul.msk.f32.gmra.mxu0 %vm181_vm0, %v148_v42  ;;  %6088 = vmatmul.msk.f32.gmra.mxu1 %vm181_vm0, %v148_v42  ;;  %v155_v42 = vld [vmem:[%s9911_s1 + $0x3d0] sm:$0xff] }
 0x3a8   :  { %5593 = vst [vmem:[#allocation6 + $0x18c8] sm:$0xff] %v4569_v46 }
 0x3a9   :  { %5594 = vst [vmem:[#allocation6 + $0x18d0] sm:$0xff] %v4570_v49 }
 0x3aa   :  { %5595 = vst [vmem:[#allocation6 + $0x18d8] sm:$0xff] %v4571_v50  ;;  %6217 = vmatmul.msk.f32.gmra.mxu2 %vm181_vm0, %v149_v51  ;;  %6345 = vmatmul.msk.f32.gmra.mxu3 %vm181_vm0, %v149_v51 }
 0x3ac   :  { %v883_v52 = vpop.f32.mrf.mxu0  ;;  %v1284_v53 = vpop.f32.mrf.mxu1 }
 0x3ad   :  { %v4576_v54 = vmul.f32 %v7203_v29, %v883_v52  ;;  %v4577_v55 = vmul.f32 %v7203_v29, %v1284_v53  ;;  %v1685_v56 = vpop.f32.mrf.mxu2  ;;  %v2086_v57 = vpop.f32.mrf.mxu3 }
 0x3ae   :  { %v4578_v58 = vmul.f32 %v7203_v29, %v1685_v56  ;;  %v4579_v59 = vmul.f32 %v7203_v29, %v2086_v57 }
 0x3af   :  { %5600 = vst [vmem:[#allocation6 + $0x1900] sm:$0xff] %v4576_v54  ;;  %5961 = vmatmul.msk.f32.gmra.mxu0 %vm181_vm0, %v149_v51  ;;  %6089 = vmatmul.msk.f32.gmra.mxu1 %vm181_vm0, %v149_v51  ;;  %v156_v51 = vld [vmem:[%s9911_s1 + $0x3d8] sm:$0xff] }
 0x3b0   :  { %5601 = vst [vmem:[#allocation6 + $0x1908] sm:$0xff] %v4577_v55 }
 0x3b1   :  { %5602 = vst [vmem:[#allocation6 + $0x1910] sm:$0xff] %v4578_v58 }
 0x3b2   :  { %5603 = vst [vmem:[#allocation6 + $0x1918] sm:$0xff] %v4579_v59  ;;  %6218 = vmatmul.msk.f32.gmra.mxu2 %vm181_vm0, %v150_v60  ;;  %6346 = vmatmul.msk.f32.gmra.mxu3 %vm181_vm0, %v150_v60 }
 0x3b4   :  { %v886_v61 = vpop.f32.mrf.mxu0  ;;  %v1287_v62 = vpop.f32.mrf.mxu1 }
 0x3b5   :  { %v4584_v63 = vmul.f32 %v7203_v29, %v886_v61  ;;  %v4585_v0 = vmul.f32 %v7203_v29, %v1287_v62  ;;  %v1688_v1 = vpop.f32.mrf.mxu2  ;;  %v2089_v2 = vpop.f32.mrf.mxu3 }
 0x3b6   :  { %v4586_v3 = vmul.f32 %v7203_v29, %v1688_v1  ;;  %v4587_v4 = vmul.f32 %v7203_v29, %v2089_v2 }
 0x3b7   :  { %5608 = vst [vmem:[#allocation6 + $0x1940] sm:$0xff] %v4584_v63  ;;  %5962 = vmatmul.msk.f32.gmra.mxu0 %vm181_vm0, %v150_v60  ;;  %6090 = vmatmul.msk.f32.gmra.mxu1 %vm181_vm0, %v150_v60  ;;  %v157_v60 = vld [vmem:[%s9911_s1 + $0x3e0] sm:$0xff] }
 0x3b8   :  { %5609 = vst [vmem:[#allocation6 + $0x1948] sm:$0xff] %v4585_v0 }
 0x3b9   :  { %5610 = vst [vmem:[#allocation6 + $0x1950] sm:$0xff] %v4586_v3 }
 0x3ba   :  { %5611 = vst [vmem:[#allocation6 + $0x1958] sm:$0xff] %v4587_v4  ;;  %6219 = vmatmul.msk.f32.gmra.mxu2 %vm181_vm0, %v151_v5  ;;  %6347 = vmatmul.msk.f32.gmra.mxu3 %vm181_vm0, %v151_v5 }
 0x3bc   :  { %v889_v6 = vpop.f32.mrf.mxu0  ;;  %v1290_v7 = vpop.f32.mrf.mxu1 }
 0x3bd   :  { %v4592_v8 = vmul.f32 %v7203_v29, %v889_v6  ;;  %v4593_v9 = vmul.f32 %v7203_v29, %v1290_v7  ;;  %v1691_v10 = vpop.f32.mrf.mxu2  ;;  %v2092_v11 = vpop.f32.mrf.mxu3 }
 0x3be   :  { %v4594_v12 = vmul.f32 %v7203_v29, %v1691_v10  ;;  %v4595_v13 = vmul.f32 %v7203_v29, %v2092_v11 }
 0x3bf   :  { %5616 = vst [vmem:[#allocation6 + $0x1980] sm:$0xff] %v4592_v8  ;;  %5963 = vmatmul.msk.f32.gmra.mxu0 %vm181_vm0, %v151_v5  ;;  %6091 = vmatmul.msk.f32.gmra.mxu1 %vm181_vm0, %v151_v5  ;;  %v158_v5 = vld [vmem:[%s9911_s1 + $0x3e8] sm:$0xff] }
 0x3c0   :  { %5617 = vst [vmem:[#allocation6 + $0x1988] sm:$0xff] %v4593_v9 }
 0x3c1   :  { %5618 = vst [vmem:[#allocation6 + $0x1990] sm:$0xff] %v4594_v12 }
 0x3c2   :  { %5619 = vst [vmem:[#allocation6 + $0x1998] sm:$0xff] %v4595_v13  ;;  %6220 = vmatmul.msk.f32.gmra.mxu2 %vm181_vm0, %v152_v14  ;;  %6348 = vmatmul.msk.f32.gmra.mxu3 %vm181_vm0, %v152_v14 }
 0x3c4   :  { %v892_v15 = vpop.f32.mrf.mxu0  ;;  %v1293_v16 = vpop.f32.mrf.mxu1 }
 0x3c5   :  { %v4600_v17 = vmul.f32 %v7203_v29, %v892_v15  ;;  %v4601_v18 = vmul.f32 %v7203_v29, %v1293_v16  ;;  %v1694_v19 = vpop.f32.mrf.mxu2  ;;  %v2095_v20 = vpop.f32.mrf.mxu3 }
 0x3c6   :  { %v4602_v21 = vmul.f32 %v7203_v29, %v1694_v19  ;;  %v4603_v22 = vmul.f32 %v7203_v29, %v2095_v20 }
 0x3c7   :  { %5624 = vst [vmem:[#allocation6 + $0x19c0] sm:$0xff] %v4600_v17  ;;  %5964 = vmatmul.msk.f32.gmra.mxu0 %vm181_vm0, %v152_v14  ;;  %6092 = vmatmul.msk.f32.gmra.mxu1 %vm181_vm0, %v152_v14  ;;  %v159_v14 = vld [vmem:[%s9911_s1 + $0x3f0] sm:$0xff] }
 0x3c8   :  { %5625 = vst [vmem:[#allocation6 + $0x19c8] sm:$0xff] %v4601_v18 }
 0x3c9   :  { %5626 = vst [vmem:[#allocation6 + $0x19d0] sm:$0xff] %v4602_v21 }
 0x3ca   :  { %5627 = vst [vmem:[#allocation6 + $0x19d8] sm:$0xff] %v4603_v22  ;;  %6221 = vmatmul.msk.f32.gmra.mxu2 %vm181_vm0, %v153_v23  ;;  %6349 = vmatmul.msk.f32.gmra.mxu3 %vm181_vm0, %v153_v23 }
 0x3cc   :  { %v895_v24 = vpop.f32.mrf.mxu0  ;;  %v1296_v25 = vpop.f32.mrf.mxu1 }
 0x3cd   :  { %v4608_v26 = vmul.f32 %v7203_v29, %v895_v24  ;;  %v4609_v27 = vmul.f32 %v7203_v29, %v1296_v25  ;;  %v1697_v28 = vpop.f32.mrf.mxu2  ;;  %v2098_v30 = vpop.f32.mrf.mxu3 }
 0x3ce   :  { %v4610_v31 = vmul.f32 %v7203_v29, %v1697_v28  ;;  %v4611_v32 = vmul.f32 %v7203_v29, %v2098_v30 }
 0x3cf   :  { %5632 = vst [vmem:[#allocation6 + $0x1a00] sm:$0xff] %v4608_v26  ;;  %5965 = vmatmul.msk.f32.gmra.mxu0 %vm181_vm0, %v153_v23  ;;  %6093 = vmatmul.msk.f32.gmra.mxu1 %vm181_vm0, %v153_v23  ;;  %v160_v23 = vld [vmem:[%s9911_s1 + $0x3f8] sm:$0xff] }
 0x3d0   :  { %5633 = vst [vmem:[#allocation6 + $0x1a08] sm:$0xff] %v4609_v27 }
 0x3d1   :  { %5634 = vst [vmem:[#allocation6 + $0x1a10] sm:$0xff] %v4610_v31 }
 0x3d2   :  { %5635 = vst [vmem:[#allocation6 + $0x1a18] sm:$0xff] %v4611_v32  ;;  %6222 = vmatmul.msk.f32.gmra.mxu2 %vm181_vm0, %v154_v33  ;;  %6350 = vmatmul.msk.f32.gmra.mxu3 %vm181_vm0, %v154_v33 }
 0x3d4   :  { %v898_v34 = vpop.f32.mrf.mxu0  ;;  %v1299_v35 = vpop.f32.mrf.mxu1 }
 0x3d5   :  { %v4616_v36 = vmul.f32 %v7203_v29, %v898_v34  ;;  %v4617_v37 = vmul.f32 %v7203_v29, %v1299_v35  ;;  %v1700_v38 = vpop.f32.mrf.mxu2  ;;  %v2101_v39 = vpop.f32.mrf.mxu3 }
 0x3d6   :  { %v4618_v40 = vmul.f32 %v7203_v29, %v1700_v38  ;;  %v4619_v41 = vmul.f32 %v7203_v29, %v2101_v39 }
 0x3d7   :  { %5640 = vst [vmem:[#allocation6 + $0x1a40] sm:$0xff] %v4616_v36  ;;  %5966 = vmatmul.msk.f32.gmra.mxu0 %vm181_vm0, %v154_v33  ;;  %6094 = vmatmul.msk.f32.gmra.mxu1 %vm181_vm0, %v154_v33  ;;  %v6873_v33 = vld [vmem:[%s9911_s1] sm:$0xff] }
 0x3d8   :  { %5641 = vst [vmem:[#allocation6 + $0x1a48] sm:$0xff] %v4617_v37 }
 0x3d9   :  { %5642 = vst [vmem:[#allocation6 + $0x1a50] sm:$0xff] %v4618_v40 }
 0x3da   :  { %5643 = vst [vmem:[#allocation6 + $0x1a58] sm:$0xff] %v4619_v41  ;;  %6223 = vmatmul.msk.f32.gmra.mxu2 %vm181_vm0, %v155_v42  ;;  %6351 = vmatmul.msk.f32.gmra.mxu3 %vm181_vm0, %v155_v42 }
 0x3dc   :  { %v901_v43 = vpop.f32.mrf.mxu0  ;;  %v1302_v44 = vpop.f32.mrf.mxu1 }
 0x3dd   :  { %v4624_v45 = vmul.f32 %v7203_v29, %v901_v43  ;;  %v4625_v46 = vmul.f32 %v7203_v29, %v1302_v44  ;;  %v1703_v47 = vpop.f32.mrf.mxu2  ;;  %v2104_v48 = vpop.f32.mrf.mxu3 }
 0x3de   :  { %v4626_v49 = vmul.f32 %v7203_v29, %v1703_v47  ;;  %v4627_v50 = vmul.f32 %v7203_v29, %v2104_v48 }
 0x3df   :  { %5648 = vst [vmem:[#allocation6 + $0x1a80] sm:$0xff] %v4624_v45  ;;  %5967 = vmatmul.msk.f32.gmra.mxu0 %vm181_vm0, %v155_v42  ;;  %6095 = vmatmul.msk.f32.gmra.mxu1 %vm181_vm0, %v155_v42  ;;  %v6874_v42 = vld [vmem:[%s9911_s1 + $0x8] sm:$0xff] }
 0x3e0   :  { %5649 = vst [vmem:[#allocation6 + $0x1a88] sm:$0xff] %v4625_v46 }
 0x3e1   :  { %5650 = vst [vmem:[#allocation6 + $0x1a90] sm:$0xff] %v4626_v49 }
 0x3e2   :  { %5651 = vst [vmem:[#allocation6 + $0x1a98] sm:$0xff] %v4627_v50  ;;  %6224 = vmatmul.msk.f32.gmra.mxu2 %vm181_vm0, %v156_v51  ;;  %6352 = vmatmul.msk.f32.gmra.mxu3 %vm181_vm0, %v156_v51 }
 0x3e4   :  { %v904_v52 = vpop.f32.mrf.mxu0  ;;  %v1305_v53 = vpop.f32.mrf.mxu1 }
 0x3e5   :  { %v4632_v54 = vmul.f32 %v7203_v29, %v904_v52  ;;  %v4633_v55 = vmul.f32 %v7203_v29, %v1305_v53  ;;  %v1706_v56 = vpop.f32.mrf.mxu2  ;;  %v2107_v57 = vpop.f32.mrf.mxu3 }
 0x3e6   :  { %v4634_v58 = vmul.f32 %v7203_v29, %v1706_v56  ;;  %v4635_v59 = vmul.f32 %v7203_v29, %v2107_v57 }
 0x3e7   :  { %5656 = vst [vmem:[#allocation6 + $0x1ac0] sm:$0xff] %v4632_v54  ;;  %5968 = vmatmul.msk.f32.gmra.mxu0 %vm181_vm0, %v156_v51  ;;  %6096 = vmatmul.msk.f32.gmra.mxu1 %vm181_vm0, %v156_v51  ;;  %v6875_v51 = vld [vmem:[%s9911_s1 + $0x10] sm:$0xff] }
 0x3e8   :  { %5657 = vst [vmem:[#allocation6 + $0x1ac8] sm:$0xff] %v4633_v55 }
 0x3e9   :  { %5658 = vst [vmem:[#allocation6 + $0x1ad0] sm:$0xff] %v4634_v58 }
 0x3ea   :  { %5659 = vst [vmem:[#allocation6 + $0x1ad8] sm:$0xff] %v4635_v59  ;;  %6225 = vmatmul.msk.f32.gmra.mxu2 %vm181_vm0, %v157_v60  ;;  %6353 = vmatmul.msk.f32.gmra.mxu3 %vm181_vm0, %v157_v60 }
 0x3ec   :  { %v907_v61 = vpop.f32.mrf.mxu0  ;;  %v1308_v62 = vpop.f32.mrf.mxu1 }
 0x3ed   :  { %v4640_v63 = vmul.f32 %v7203_v29, %v907_v61  ;;  %v4641_v0 = vmul.f32 %v7203_v29, %v1308_v62  ;;  %v1709_v1 = vpop.f32.mrf.mxu2  ;;  %v2110_v2 = vpop.f32.mrf.mxu3 }
 0x3ee   :  { %v4642_v3 = vmul.f32 %v7203_v29, %v1709_v1  ;;  %v4643_v4 = vmul.f32 %v7203_v29, %v2110_v2 }
 0x3ef   :  { %5664 = vst [vmem:[#allocation6 + $0x1b00] sm:$0xff] %v4640_v63  ;;  %5969 = vmatmul.msk.f32.gmra.mxu0 %vm181_vm0, %v157_v60  ;;  %6097 = vmatmul.msk.f32.gmra.mxu1 %vm181_vm0, %v157_v60  ;;  %v6876_v60 = vld [vmem:[%s9911_s1 + $0x18] sm:$0xff] }
 0x3f0   :  { %5665 = vst [vmem:[#allocation6 + $0x1b08] sm:$0xff] %v4641_v0 }
 0x3f1   :  { %5666 = vst [vmem:[#allocation6 + $0x1b10] sm:$0xff] %v4642_v3 }
 0x3f2   :  { %5667 = vst [vmem:[#allocation6 + $0x1b18] sm:$0xff] %v4643_v4  ;;  %6226 = vmatmul.msk.f32.gmra.mxu2 %vm181_vm0, %v158_v5  ;;  %6354 = vmatmul.msk.f32.gmra.mxu3 %vm181_vm0, %v158_v5 }
 0x3f4   :  { %v910_v6 = vpop.f32.mrf.mxu0  ;;  %v1311_v7 = vpop.f32.mrf.mxu1 }
 0x3f5   :  { %v4648_v8 = vmul.f32 %v7203_v29, %v910_v6  ;;  %v4649_v9 = vmul.f32 %v7203_v29, %v1311_v7  ;;  %v1712_v10 = vpop.f32.mrf.mxu2  ;;  %v2113_v11 = vpop.f32.mrf.mxu3 }
 0x3f6   :  { %v4650_v12 = vmul.f32 %v7203_v29, %v1712_v10  ;;  %v4651_v13 = vmul.f32 %v7203_v29, %v2113_v11 }
 0x3f7   :  { %5672 = vst [vmem:[#allocation6 + $0x1b40] sm:$0xff] %v4648_v8  ;;  %5970 = vmatmul.msk.f32.gmra.mxu0 %vm181_vm0, %v158_v5  ;;  %6098 = vmatmul.msk.f32.gmra.mxu1 %vm181_vm0, %v158_v5  ;;  %v6877_v5 = vld [vmem:[%s9911_s1 + $0x20] sm:$0xff] }
 0x3f8   :  { %5673 = vst [vmem:[#allocation6 + $0x1b48] sm:$0xff] %v4649_v9 }
 0x3f9   :  { %5674 = vst [vmem:[#allocation6 + $0x1b50] sm:$0xff] %v4650_v12 }
 0x3fa   :  { %5675 = vst [vmem:[#allocation6 + $0x1b58] sm:$0xff] %v4651_v13  ;;  %6227 = vmatmul.msk.f32.gmra.mxu2 %vm181_vm0, %v159_v14  ;;  %6355 = vmatmul.msk.f32.gmra.mxu3 %vm181_vm0, %v159_v14 }
 0x3fc   :  { %v913_v15 = vpop.f32.mrf.mxu0  ;;  %v1314_v16 = vpop.f32.mrf.mxu1 }
 0x3fd   :  { %v4656_v17 = vmul.f32 %v7203_v29, %v913_v15  ;;  %v4657_v18 = vmul.f32 %v7203_v29, %v1314_v16  ;;  %v1715_v19 = vpop.f32.mrf.mxu2  ;;  %v2116_v20 = vpop.f32.mrf.mxu3 }
 0x3fe   :  { %v4658_v21 = vmul.f32 %v7203_v29, %v1715_v19  ;;  %v4659_v22 = vmul.f32 %v7203_v29, %v2116_v20 }
 0x3ff   :  { %5680 = vst [vmem:[#allocation6 + $0x1b80] sm:$0xff] %v4656_v17  ;;  %5971 = vmatmul.msk.f32.gmra.mxu0 %vm181_vm0, %v159_v14  ;;  %6099 = vmatmul.msk.f32.gmra.mxu1 %vm181_vm0, %v159_v14  ;;  %v6878_v14 = vld [vmem:[%s9911_s1 + $0x28] sm:$0xff] }
 0x400   :  { %5681 = vst [vmem:[#allocation6 + $0x1b88] sm:$0xff] %v4657_v18 }
 0x401   :  { %5682 = vst [vmem:[#allocation6 + $0x1b90] sm:$0xff] %v4658_v21 }
 0x402   :  { %5683 = vst [vmem:[#allocation6 + $0x1b98] sm:$0xff] %v4659_v22  ;;  %6228 = vmatmul.msk.f32.gmra.mxu2 %vm181_vm0, %v160_v23  ;;  %6356 = vmatmul.msk.f32.gmra.mxu3 %vm181_vm0, %v160_v23 }
 0x404   :  { %v916_v24 = vpop.f32.mrf.mxu0  ;;  %v1317_v25 = vpop.f32.mrf.mxu1 }
 0x405   :  { %v4664_v26 = vmul.f32 %v7203_v29, %v916_v24  ;;  %v4665_v27 = vmul.f32 %v7203_v29, %v1317_v25  ;;  %v1718_v28 = vpop.f32.mrf.mxu2  ;;  %v2119_v30 = vpop.f32.mrf.mxu3 }
 0x406   :  { %v4666_v31 = vmul.f32 %v7203_v29, %v1718_v28  ;;  %v4667_v32 = vmul.f32 %v7203_v29, %v2119_v30 }
 0x407   :  { %5688 = vst [vmem:[#allocation6 + $0x1bc0] sm:$0xff] %v4664_v26  ;;  %5972 = vmatmul.msk.f32.gmra.mxu0 %vm181_vm0, %v160_v23  ;;  %6100 = vmatmul.msk.f32.gmra.mxu1 %vm181_vm0, %v160_v23  ;;  %v6879_v23 = vld [vmem:[%s9911_s1 + $0x30] sm:$0xff] }
 0x408   :  { %5689 = vst [vmem:[#allocation6 + $0x1bc8] sm:$0xff] %v4665_v27 }
 0x409   :  { %5690 = vst [vmem:[#allocation6 + $0x1bd0] sm:$0xff] %v4666_v31 }
 0x40a   :  { %5691 = vst [vmem:[#allocation6 + $0x1bd8] sm:$0xff] %v4667_v32  ;;  %6613 = vmatmul.msk.f32.vlgmr.msrb.gmra.mxu2 %vm181_vm0, %v6873_v33  ;;  %6741 = vmatmul.msk.f32.vlgmr.msrb.gmra.mxu3 %vm181_vm0, %v6873_v33 }
 0x40c   :  { %v919_v34 = vpop.f32.mrf.mxu0  ;;  %v1320_v35 = vpop.f32.mrf.mxu1 }
 0x40d   :  { %v4672_v36 = vmul.f32 %v7203_v29, %v919_v34  ;;  %v4673_v37 = vmul.f32 %v7203_v29, %v1320_v35  ;;  %v1721_v38 = vpop.f32.mrf.mxu2  ;;  %v2122_v39 = vpop.f32.mrf.mxu3 }
 0x40e   :  { %v4674_v40 = vmul.f32 %v7203_v29, %v1721_v38  ;;  %v4675_v41 = vmul.f32 %v7203_v29, %v2122_v39 }
 0x40f   :  { %5696 = vst [vmem:[#allocation6 + $0x1c00] sm:$0xff] %v4672_v36  ;;  %6357 = vmatmul.msk.f32.vlgmr.msrb.gmra.mxu0 %vm181_vm0, %v6873_v33  ;;  %6485 = vmatmul.msk.f32.vlgmr.msrb.gmra.mxu1 %vm181_vm0, %v6873_v33  ;;  %v6880_v33 = vld [vmem:[%s9911_s1 + $0x38] sm:$0xff] }
 0x410   :  { %5697 = vst [vmem:[#allocation6 + $0x1c08] sm:$0xff] %v4673_v37 }
 0x411   :  { %5698 = vst [vmem:[#allocation6 + $0x1c10] sm:$0xff] %v4674_v40 }
 0x412   :  { %5699 = vst [vmem:[#allocation6 + $0x1c18] sm:$0xff] %v4675_v41  ;;  %6614 = vmatmul.msk.f32.gmra.mxu2 %vm181_vm0, %v6874_v42  ;;  %6742 = vmatmul.msk.f32.gmra.mxu3 %vm181_vm0, %v6874_v42 }
 0x414   :  { %v922_v43 = vpop.f32.mrf.mxu0  ;;  %v1323_v44 = vpop.f32.mrf.mxu1 }
 0x415   :  { %v4680_v45 = vmul.f32 %v7203_v29, %v922_v43  ;;  %v4681_v46 = vmul.f32 %v7203_v29, %v1323_v44  ;;  %v1724_v47 = vpop.f32.mrf.mxu2  ;;  %v2125_v48 = vpop.f32.mrf.mxu3 }
 0x416   :  { %v4682_v49 = vmul.f32 %v7203_v29, %v1724_v47  ;;  %v4683_v50 = vmul.f32 %v7203_v29, %v2125_v48 }
 0x417   :  { %5704 = vst [vmem:[#allocation6 + $0x1c40] sm:$0xff] %v4680_v45  ;;  %6358 = vmatmul.msk.f32.gmra.mxu0 %vm181_vm0, %v6874_v42  ;;  %6486 = vmatmul.msk.f32.gmra.mxu1 %vm181_vm0, %v6874_v42  ;;  %v6881_v42 = vld [vmem:[%s9911_s1 + $0x40] sm:$0xff] }
 0x418   :  { %5705 = vst [vmem:[#allocation6 + $0x1c48] sm:$0xff] %v4681_v46 }
 0x419   :  { %5706 = vst [vmem:[#allocation6 + $0x1c50] sm:$0xff] %v4682_v49 }
 0x41a   :  { %5707 = vst [vmem:[#allocation6 + $0x1c58] sm:$0xff] %v4683_v50  ;;  %6615 = vmatmul.msk.f32.gmra.mxu2 %vm181_vm0, %v6875_v51  ;;  %6743 = vmatmul.msk.f32.gmra.mxu3 %vm181_vm0, %v6875_v51 }
 0x41c   :  { %v925_v52 = vpop.f32.mrf.mxu0  ;;  %v1326_v53 = vpop.f32.mrf.mxu1 }
 0x41d   :  { %v4688_v54 = vmul.f32 %v7203_v29, %v925_v52  ;;  %v4689_v55 = vmul.f32 %v7203_v29, %v1326_v53  ;;  %v1727_v56 = vpop.f32.mrf.mxu2  ;;  %v2128_v57 = vpop.f32.mrf.mxu3 }
 0x41e   :  { %v4690_v58 = vmul.f32 %v7203_v29, %v1727_v56  ;;  %v4691_v59 = vmul.f32 %v7203_v29, %v2128_v57 }
 0x41f   :  { %5712 = vst [vmem:[#allocation6 + $0x1c80] sm:$0xff] %v4688_v54  ;;  %6359 = vmatmul.msk.f32.gmra.mxu0 %vm181_vm0, %v6875_v51  ;;  %6487 = vmatmul.msk.f32.gmra.mxu1 %vm181_vm0, %v6875_v51  ;;  %v6882_v51 = vld [vmem:[%s9911_s1 + $0x48] sm:$0xff] }
 0x420   :  { %5713 = vst [vmem:[#allocation6 + $0x1c88] sm:$0xff] %v4689_v55 }
 0x421   :  { %5714 = vst [vmem:[#allocation6 + $0x1c90] sm:$0xff] %v4690_v58 }
 0x422   :  { %5715 = vst [vmem:[#allocation6 + $0x1c98] sm:$0xff] %v4691_v59  ;;  %6616 = vmatmul.msk.f32.gmra.mxu2 %vm181_vm0, %v6876_v60  ;;  %6744 = vmatmul.msk.f32.gmra.mxu3 %vm181_vm0, %v6876_v60 }
 0x424   :  { %v928_v61 = vpop.f32.mrf.mxu0  ;;  %v1329_v62 = vpop.f32.mrf.mxu1 }
 0x425   :  { %v4696_v63 = vmul.f32 %v7203_v29, %v928_v61  ;;  %v4697_v0 = vmul.f32 %v7203_v29, %v1329_v62  ;;  %v1730_v1 = vpop.f32.mrf.mxu2  ;;  %v2131_v2 = vpop.f32.mrf.mxu3 }
 0x426   :  { %v4698_v3 = vmul.f32 %v7203_v29, %v1730_v1  ;;  %v4699_v4 = vmul.f32 %v7203_v29, %v2131_v2 }
 0x427   :  { %5720 = vst [vmem:[#allocation6 + $0x1cc0] sm:$0xff] %v4696_v63  ;;  %6360 = vmatmul.msk.f32.gmra.mxu0 %vm181_vm0, %v6876_v60  ;;  %6488 = vmatmul.msk.f32.gmra.mxu1 %vm181_vm0, %v6876_v60  ;;  %v6883_v60 = vld [vmem:[%s9911_s1 + $0x50] sm:$0xff] }
 0x428   :  { %5721 = vst [vmem:[#allocation6 + $0x1cc8] sm:$0xff] %v4697_v0 }
 0x429   :  { %5722 = vst [vmem:[#allocation6 + $0x1cd0] sm:$0xff] %v4698_v3 }
 0x42a   :  { %5723 = vst [vmem:[#allocation6 + $0x1cd8] sm:$0xff] %v4699_v4  ;;  %6617 = vmatmul.msk.f32.gmra.mxu2 %vm181_vm0, %v6877_v5  ;;  %6745 = vmatmul.msk.f32.gmra.mxu3 %vm181_vm0, %v6877_v5 }
 0x42c   :  { %v931_v6 = vpop.f32.mrf.mxu0  ;;  %v1332_v7 = vpop.f32.mrf.mxu1 }
 0x42d   :  { %v4704_v8 = vmul.f32 %v7203_v29, %v931_v6  ;;  %v4705_v9 = vmul.f32 %v7203_v29, %v1332_v7  ;;  %v1733_v10 = vpop.f32.mrf.mxu2  ;;  %v2134_v11 = vpop.f32.mrf.mxu3 }
 0x42e   :  { %v4706_v12 = vmul.f32 %v7203_v29, %v1733_v10  ;;  %v4707_v13 = vmul.f32 %v7203_v29, %v2134_v11 }
 0x42f   :  { %5728 = vst [vmem:[#allocation6 + $0x1d00] sm:$0xff] %v4704_v8  ;;  %6361 = vmatmul.msk.f32.gmra.mxu0 %vm181_vm0, %v6877_v5  ;;  %6489 = vmatmul.msk.f32.gmra.mxu1 %vm181_vm0, %v6877_v5  ;;  %v6884_v5 = vld [vmem:[%s9911_s1 + $0x58] sm:$0xff] }
 0x430   :  { %5729 = vst [vmem:[#allocation6 + $0x1d08] sm:$0xff] %v4705_v9 }
 0x431   :  { %5730 = vst [vmem:[#allocation6 + $0x1d10] sm:$0xff] %v4706_v12 }
 0x432   :  { %5731 = vst [vmem:[#allocation6 + $0x1d18] sm:$0xff] %v4707_v13  ;;  %6618 = vmatmul.msk.f32.gmra.mxu2 %vm181_vm0, %v6878_v14  ;;  %6746 = vmatmul.msk.f32.gmra.mxu3 %vm181_vm0, %v6878_v14 }
 0x434   :  { %v934_v15 = vpop.f32.mrf.mxu0  ;;  %v1335_v16 = vpop.f32.mrf.mxu1 }
 0x435   :  { %v4712_v17 = vmul.f32 %v7203_v29, %v934_v15  ;;  %v4713_v18 = vmul.f32 %v7203_v29, %v1335_v16  ;;  %v1736_v19 = vpop.f32.mrf.mxu2  ;;  %v2137_v20 = vpop.f32.mrf.mxu3 }
 0x436   :  { %v4714_v21 = vmul.f32 %v7203_v29, %v1736_v19  ;;  %v4715_v22 = vmul.f32 %v7203_v29, %v2137_v20 }
 0x437   :  { %5736 = vst [vmem:[#allocation6 + $0x1d40] sm:$0xff] %v4712_v17  ;;  %6362 = vmatmul.msk.f32.gmra.mxu0 %vm181_vm0, %v6878_v14  ;;  %6490 = vmatmul.msk.f32.gmra.mxu1 %vm181_vm0, %v6878_v14  ;;  %v6885_v14 = vld [vmem:[%s9911_s1 + $0x60] sm:$0xff] }
 0x438   :  { %5737 = vst [vmem:[#allocation6 + $0x1d48] sm:$0xff] %v4713_v18 }
 0x439   :  { %5738 = vst [vmem:[#allocation6 + $0x1d50] sm:$0xff] %v4714_v21 }
 0x43a   :  { %5739 = vst [vmem:[#allocation6 + $0x1d58] sm:$0xff] %v4715_v22  ;;  %6619 = vmatmul.msk.f32.gmra.mxu2 %vm181_vm0, %v6879_v23  ;;  %6747 = vmatmul.msk.f32.gmra.mxu3 %vm181_vm0, %v6879_v23 }
 0x43c   :  { %v937_v24 = vpop.f32.mrf.mxu0  ;;  %v1338_v25 = vpop.f32.mrf.mxu1 }
 0x43d   :  { %v4720_v26 = vmul.f32 %v7203_v29, %v937_v24  ;;  %v4721_v27 = vmul.f32 %v7203_v29, %v1338_v25  ;;  %v1739_v28 = vpop.f32.mrf.mxu2  ;;  %v2140_v30 = vpop.f32.mrf.mxu3 }
 0x43e   :  { %v4722_v31 = vmul.f32 %v7203_v29, %v1739_v28  ;;  %v4723_v32 = vmul.f32 %v7203_v29, %v2140_v30 }
 0x43f   :  { %5744 = vst [vmem:[#allocation6 + $0x1d80] sm:$0xff] %v4720_v26  ;;  %6363 = vmatmul.msk.f32.gmra.mxu0 %vm181_vm0, %v6879_v23  ;;  %6491 = vmatmul.msk.f32.gmra.mxu1 %vm181_vm0, %v6879_v23  ;;  %v6886_v23 = vld [vmem:[%s9911_s1 + $0x68] sm:$0xff] }
 0x440   :  { %5745 = vst [vmem:[#allocation6 + $0x1d88] sm:$0xff] %v4721_v27 }
 0x441   :  { %5746 = vst [vmem:[#allocation6 + $0x1d90] sm:$0xff] %v4722_v31 }
 0x442   :  { %5747 = vst [vmem:[#allocation6 + $0x1d98] sm:$0xff] %v4723_v32  ;;  %6620 = vmatmul.msk.f32.gmra.mxu2 %vm181_vm0, %v6880_v33  ;;  %6748 = vmatmul.msk.f32.gmra.mxu3 %vm181_vm0, %v6880_v33 }
 0x444   :  { %v940_v34 = vpop.f32.mrf.mxu0  ;;  %v1341_v35 = vpop.f32.mrf.mxu1 }
 0x445   :  { %v4728_v36 = vmul.f32 %v7203_v29, %v940_v34  ;;  %v4729_v37 = vmul.f32 %v7203_v29, %v1341_v35  ;;  %v1742_v38 = vpop.f32.mrf.mxu2  ;;  %v2143_v39 = vpop.f32.mrf.mxu3 }
 0x446   :  { %v4730_v40 = vmul.f32 %v7203_v29, %v1742_v38  ;;  %v4731_v41 = vmul.f32 %v7203_v29, %v2143_v39 }
 0x447   :  { %5752 = vst [vmem:[#allocation6 + $0x1dc0] sm:$0xff] %v4728_v36  ;;  %6364 = vmatmul.msk.f32.gmra.mxu0 %vm181_vm0, %v6880_v33  ;;  %6492 = vmatmul.msk.f32.gmra.mxu1 %vm181_vm0, %v6880_v33  ;;  %v6887_v33 = vld [vmem:[%s9911_s1 + $0x70] sm:$0xff] }
 0x448   :  { %5753 = vst [vmem:[#allocation6 + $0x1dc8] sm:$0xff] %v4729_v37 }
 0x449   :  { %5754 = vst [vmem:[#allocation6 + $0x1dd0] sm:$0xff] %v4730_v40 }
 0x44a   :  { %5755 = vst [vmem:[#allocation6 + $0x1dd8] sm:$0xff] %v4731_v41  ;;  %6621 = vmatmul.msk.f32.gmra.mxu2 %vm181_vm0, %v6881_v42  ;;  %6749 = vmatmul.msk.f32.gmra.mxu3 %vm181_vm0, %v6881_v42 }
 0x44c   :  { %v943_v43 = vpop.f32.mrf.mxu0  ;;  %v1344_v44 = vpop.f32.mrf.mxu1 }
 0x44d   :  { %v4736_v45 = vmul.f32 %v7203_v29, %v943_v43  ;;  %v4737_v46 = vmul.f32 %v7203_v29, %v1344_v44  ;;  %v1745_v47 = vpop.f32.mrf.mxu2  ;;  %v2146_v48 = vpop.f32.mrf.mxu3 }
 0x44e   :  { %v4738_v49 = vmul.f32 %v7203_v29, %v1745_v47  ;;  %v4739_v50 = vmul.f32 %v7203_v29, %v2146_v48 }
 0x44f   :  { %5760 = vst [vmem:[#allocation6 + $0x1e00] sm:$0xff] %v4736_v45  ;;  %6365 = vmatmul.msk.f32.gmra.mxu0 %vm181_vm0, %v6881_v42  ;;  %6493 = vmatmul.msk.f32.gmra.mxu1 %vm181_vm0, %v6881_v42  ;;  %v6888_v42 = vld [vmem:[%s9911_s1 + $0x78] sm:$0xff] }
 0x450   :  { %5761 = vst [vmem:[#allocation6 + $0x1e08] sm:$0xff] %v4737_v46 }
 0x451   :  { %5762 = vst [vmem:[#allocation6 + $0x1e10] sm:$0xff] %v4738_v49 }
 0x452   :  { %5763 = vst [vmem:[#allocation6 + $0x1e18] sm:$0xff] %v4739_v50  ;;  %6622 = vmatmul.msk.f32.gmra.mxu2 %vm181_vm0, %v6882_v51  ;;  %6750 = vmatmul.msk.f32.gmra.mxu3 %vm181_vm0, %v6882_v51 }
 0x454   :  { %v946_v52 = vpop.f32.mrf.mxu0  ;;  %v1347_v53 = vpop.f32.mrf.mxu1 }
 0x455   :  { %v4744_v54 = vmul.f32 %v7203_v29, %v946_v52  ;;  %v4745_v55 = vmul.f32 %v7203_v29, %v1347_v53  ;;  %v1748_v56 = vpop.f32.mrf.mxu2  ;;  %v2149_v57 = vpop.f32.mrf.mxu3 }
 0x456   :  { %v4746_v58 = vmul.f32 %v7203_v29, %v1748_v56  ;;  %v4747_v59 = vmul.f32 %v7203_v29, %v2149_v57 }
 0x457   :  { %5768 = vst [vmem:[#allocation6 + $0x1e40] sm:$0xff] %v4744_v54  ;;  %6366 = vmatmul.msk.f32.gmra.mxu0 %vm181_vm0, %v6882_v51  ;;  %6494 = vmatmul.msk.f32.gmra.mxu1 %vm181_vm0, %v6882_v51  ;;  %v6889_v51 = vld [vmem:[%s9911_s1 + $0x80] sm:$0xff] }
 0x458   :  { %5769 = vst [vmem:[#allocation6 + $0x1e48] sm:$0xff] %v4745_v55 }
 0x459   :  { %5770 = vst [vmem:[#allocation6 + $0x1e50] sm:$0xff] %v4746_v58 }
 0x45a   :  { %5771 = vst [vmem:[#allocation6 + $0x1e58] sm:$0xff] %v4747_v59  ;;  %6623 = vmatmul.msk.f32.gmra.mxu2 %vm181_vm0, %v6883_v60  ;;  %6751 = vmatmul.msk.f32.gmra.mxu3 %vm181_vm0, %v6883_v60 }
 0x45c   :  { %v949_v61 = vpop.f32.mrf.mxu0  ;;  %v1350_v62 = vpop.f32.mrf.mxu1 }
 0x45d   :  { %v4752_v63 = vmul.f32 %v7203_v29, %v949_v61  ;;  %v4753_v0 = vmul.f32 %v7203_v29, %v1350_v62  ;;  %v1751_v1 = vpop.f32.mrf.mxu2  ;;  %v2152_v2 = vpop.f32.mrf.mxu3 }
 0x45e   :  { %v4754_v3 = vmul.f32 %v7203_v29, %v1751_v1  ;;  %v4755_v4 = vmul.f32 %v7203_v29, %v2152_v2 }
 0x45f   :  { %5776 = vst [vmem:[#allocation6 + $0x1e80] sm:$0xff] %v4752_v63  ;;  %6367 = vmatmul.msk.f32.gmra.mxu0 %vm181_vm0, %v6883_v60  ;;  %6495 = vmatmul.msk.f32.gmra.mxu1 %vm181_vm0, %v6883_v60  ;;  %v6890_v60 = vld [vmem:[%s9911_s1 + $0x88] sm:$0xff] }
 0x460   :  { %5777 = vst [vmem:[#allocation6 + $0x1e88] sm:$0xff] %v4753_v0 }
 0x461   :  { %5778 = vst [vmem:[#allocation6 + $0x1e90] sm:$0xff] %v4754_v3 }
 0x462   :  { %5779 = vst [vmem:[#allocation6 + $0x1e98] sm:$0xff] %v4755_v4  ;;  %6624 = vmatmul.msk.f32.gmra.mxu2 %vm181_vm0, %v6884_v5  ;;  %6752 = vmatmul.msk.f32.gmra.mxu3 %vm181_vm0, %v6884_v5 }
 0x464   :  { %v952_v6 = vpop.f32.mrf.mxu0  ;;  %v1353_v7 = vpop.f32.mrf.mxu1 }
 0x465   :  { %v4760_v8 = vmul.f32 %v7203_v29, %v952_v6  ;;  %v4761_v9 = vmul.f32 %v7203_v29, %v1353_v7  ;;  %v1754_v10 = vpop.f32.mrf.mxu2  ;;  %v2155_v11 = vpop.f32.mrf.mxu3 }
 0x466   :  { %v4762_v12 = vmul.f32 %v7203_v29, %v1754_v10  ;;  %v4763_v13 = vmul.f32 %v7203_v29, %v2155_v11 }
 0x467   :  { %5784 = vst [vmem:[#allocation6 + $0x1ec0] sm:$0xff] %v4760_v8  ;;  %6368 = vmatmul.msk.f32.gmra.mxu0 %vm181_vm0, %v6884_v5  ;;  %6496 = vmatmul.msk.f32.gmra.mxu1 %vm181_vm0, %v6884_v5  ;;  %v6891_v5 = vld [vmem:[%s9911_s1 + $0x90] sm:$0xff] }
 0x468   :  { %5785 = vst [vmem:[#allocation6 + $0x1ec8] sm:$0xff] %v4761_v9 }
 0x469   :  { %5786 = vst [vmem:[#allocation6 + $0x1ed0] sm:$0xff] %v4762_v12 }
 0x46a   :  { %5787 = vst [vmem:[#allocation6 + $0x1ed8] sm:$0xff] %v4763_v13  ;;  %6625 = vmatmul.msk.f32.gmra.mxu2 %vm181_vm0, %v6885_v14  ;;  %6753 = vmatmul.msk.f32.gmra.mxu3 %vm181_vm0, %v6885_v14 }
 0x46c   :  { %v955_v15 = vpop.f32.mrf.mxu0  ;;  %v1356_v16 = vpop.f32.mrf.mxu1 }
 0x46d   :  { %v4768_v17 = vmul.f32 %v7203_v29, %v955_v15  ;;  %v4769_v18 = vmul.f32 %v7203_v29, %v1356_v16  ;;  %v1757_v19 = vpop.f32.mrf.mxu2  ;;  %v2158_v20 = vpop.f32.mrf.mxu3 }
 0x46e   :  { %v4770_v21 = vmul.f32 %v7203_v29, %v1757_v19  ;;  %v4771_v22 = vmul.f32 %v7203_v29, %v2158_v20 }
 0x46f   :  { %5792 = vst [vmem:[#allocation6 + $0x1f00] sm:$0xff] %v4768_v17  ;;  %6369 = vmatmul.msk.f32.gmra.mxu0 %vm181_vm0, %v6885_v14  ;;  %6497 = vmatmul.msk.f32.gmra.mxu1 %vm181_vm0, %v6885_v14  ;;  %v6892_v14 = vld [vmem:[%s9911_s1 + $0x98] sm:$0xff] }
 0x470   :  { %5793 = vst [vmem:[#allocation6 + $0x1f08] sm:$0xff] %v4769_v18 }
 0x471   :  { %5794 = vst [vmem:[#allocation6 + $0x1f10] sm:$0xff] %v4770_v21 }
 0x472   :  { %5795 = vst [vmem:[#allocation6 + $0x1f18] sm:$0xff] %v4771_v22  ;;  %6626 = vmatmul.msk.f32.gmra.mxu2 %vm181_vm0, %v6886_v23  ;;  %6754 = vmatmul.msk.f32.gmra.mxu3 %vm181_vm0, %v6886_v23 }
 0x474   :  { %v958_v24 = vpop.f32.mrf.mxu0  ;;  %v1359_v25 = vpop.f32.mrf.mxu1 }
 0x475   :  { %v4776_v26 = vmul.f32 %v7203_v29, %v958_v24  ;;  %v4777_v27 = vmul.f32 %v7203_v29, %v1359_v25  ;;  %v1760_v28 = vpop.f32.mrf.mxu2  ;;  %v2161_v30 = vpop.f32.mrf.mxu3 }
 0x476   :  { %v4778_v31 = vmul.f32 %v7203_v29, %v1760_v28  ;;  %v4779_v32 = vmul.f32 %v7203_v29, %v2161_v30 }
 0x477   :  { %5800 = vst [vmem:[#allocation6 + $0x1f40] sm:$0xff] %v4776_v26  ;;  %6370 = vmatmul.msk.f32.gmra.mxu0 %vm181_vm0, %v6886_v23  ;;  %6498 = vmatmul.msk.f32.gmra.mxu1 %vm181_vm0, %v6886_v23  ;;  %v6893_v23 = vld [vmem:[%s9911_s1 + $0xa0] sm:$0xff] }
 0x478   :  { %5801 = vst [vmem:[#allocation6 + $0x1f48] sm:$0xff] %v4777_v27 }
 0x479   :  { %5802 = vst [vmem:[#allocation6 + $0x1f50] sm:$0xff] %v4778_v31 }
 0x47a   :  { %5803 = vst [vmem:[#allocation6 + $0x1f58] sm:$0xff] %v4779_v32  ;;  %6627 = vmatmul.msk.f32.gmra.mxu2 %vm181_vm0, %v6887_v33  ;;  %6755 = vmatmul.msk.f32.gmra.mxu3 %vm181_vm0, %v6887_v33 }
 0x47c   :  { %v961_v34 = vpop.f32.mrf.mxu0  ;;  %v1362_v35 = vpop.f32.mrf.mxu1 }
 0x47d   :  { %v4784_v36 = vmul.f32 %v7203_v29, %v961_v34  ;;  %v4785_v37 = vmul.f32 %v7203_v29, %v1362_v35  ;;  %v1763_v38 = vpop.f32.mrf.mxu2  ;;  %v2164_v39 = vpop.f32.mrf.mxu3 }
 0x47e   :  { %v4786_v40 = vmul.f32 %v7203_v29, %v1763_v38  ;;  %v4787_v41 = vmul.f32 %v7203_v29, %v2164_v39 }
 0x47f   :  { %5808 = vst [vmem:[#allocation6 + $0x1f80] sm:$0xff] %v4784_v36  ;;  %6371 = vmatmul.msk.f32.gmra.mxu0 %vm181_vm0, %v6887_v33  ;;  %6499 = vmatmul.msk.f32.gmra.mxu1 %vm181_vm0, %v6887_v33  ;;  %v6894_v33 = vld [vmem:[%s9911_s1 + $0xa8] sm:$0xff] }
 0x480   :  { %5809 = vst [vmem:[#allocation6 + $0x1f88] sm:$0xff] %v4785_v37 }
 0x481   :  { %5810 = vst [vmem:[#allocation6 + $0x1f90] sm:$0xff] %v4786_v40 }
 0x482   :  { %5811 = vst [vmem:[#allocation6 + $0x1f98] sm:$0xff] %v4787_v41  ;;  %6628 = vmatmul.msk.f32.gmra.mxu2 %vm181_vm0, %v6888_v42  ;;  %6756 = vmatmul.msk.f32.gmra.mxu3 %vm181_vm0, %v6888_v42 }
 0x484   :  { %v964_v43 = vpop.f32.mrf.mxu0  ;;  %v1365_v44 = vpop.f32.mrf.mxu1 }
 0x485   :  { %v4792_v45 = vmul.f32 %v7203_v29, %v964_v43  ;;  %v4793_v46 = vmul.f32 %v7203_v29, %v1365_v44  ;;  %v1766_v47 = vpop.f32.mrf.mxu2  ;;  %v2167_v48 = vpop.f32.mrf.mxu3 }
 0x486   :  { %v4794_v49 = vmul.f32 %v7203_v29, %v1766_v47  ;;  %v4795_v50 = vmul.f32 %v7203_v29, %v2167_v48 }
 0x487   :  { %5816 = vst [vmem:[#allocation6 + $0x1fc0] sm:$0xff] %v4792_v45  ;;  %6372 = vmatmul.msk.f32.gmra.mxu0 %vm181_vm0, %v6888_v42  ;;  %6500 = vmatmul.msk.f32.gmra.mxu1 %vm181_vm0, %v6888_v42  ;;  %v6895_v42 = vld [vmem:[%s9911_s1 + $0xb0] sm:$0xff] }
 0x488   :  { %5817 = vst [vmem:[#allocation6 + $0x1fc8] sm:$0xff] %v4793_v46 }
 0x489   :  { %5818 = vst [vmem:[#allocation6 + $0x1fd0] sm:$0xff] %v4794_v49 }
 0x48a   :  { %5819 = vst [vmem:[#allocation6 + $0x1fd8] sm:$0xff] %v4795_v50  ;;  %6629 = vmatmul.msk.f32.gmra.mxu2 %vm181_vm0, %v6889_v51  ;;  %6757 = vmatmul.msk.f32.gmra.mxu3 %vm181_vm0, %v6889_v51 }
 0x48c   :  { %v2187_v52 = vpop.f32.mrf.mxu0  ;;  %v2588_v53 = vpop.f32.mrf.mxu1 }
 0x48d   :  { %v3780_v54 = vmul.f32 %v7203_v29, %v2187_v52  ;;  %v3781_v55 = vmul.f32 %v7203_v29, %v2588_v53  ;;  %v2989_v56 = vpop.f32.mrf.mxu2  ;;  %v3390_v57 = vpop.f32.mrf.mxu3 }
 0x48e   :  { %v3782_v58 = vmul.f32 %v7203_v29, %v2989_v56  ;;  %v3783_v59 = vmul.f32 %v7203_v29, %v3390_v57 }
 0x48f   :  { %4804 = vst [vmem:[#allocation6 + $0x20] sm:$0xff] %v3780_v54  ;;  %6373 = vmatmul.msk.f32.gmra.mxu0 %vm181_vm0, %v6889_v51  ;;  %6501 = vmatmul.msk.f32.gmra.mxu1 %vm181_vm0, %v6889_v51  ;;  %v6896_v51 = vld [vmem:[%s9911_s1 + $0xb8] sm:$0xff] }
 0x490   :  { %4805 = vst [vmem:[#allocation6 + $0x28] sm:$0xff] %v3781_v55 }
 0x491   :  { %4806 = vst [vmem:[#allocation6 + $0x30] sm:$0xff] %v3782_v58 }
 0x492   :  { %4807 = vst [vmem:[#allocation6 + $0x38] sm:$0xff] %v3783_v59  ;;  %6630 = vmatmul.msk.f32.gmra.mxu2 %vm181_vm0, %v6890_v60  ;;  %6758 = vmatmul.msk.f32.gmra.mxu3 %vm181_vm0, %v6890_v60 }
 0x494   :  { %v2190_v61 = vpop.f32.mrf.mxu0  ;;  %v2591_v62 = vpop.f32.mrf.mxu1 }
 0x495   :  { %v3788_v63 = vmul.f32 %v7203_v29, %v2190_v61  ;;  %v3789_v0 = vmul.f32 %v7203_v29, %v2591_v62  ;;  %v2992_v1 = vpop.f32.mrf.mxu2  ;;  %v3393_v2 = vpop.f32.mrf.mxu3 }
 0x496   :  { %v3790_v3 = vmul.f32 %v7203_v29, %v2992_v1  ;;  %v3791_v4 = vmul.f32 %v7203_v29, %v3393_v2 }
 0x497   :  { %4812 = vst [vmem:[#allocation6 + $0x60] sm:$0xff] %v3788_v63  ;;  %6374 = vmatmul.msk.f32.gmra.mxu0 %vm181_vm0, %v6890_v60  ;;  %6502 = vmatmul.msk.f32.gmra.mxu1 %vm181_vm0, %v6890_v60  ;;  %v6897_v60 = vld [vmem:[%s9911_s1 + $0xc0] sm:$0xff] }
 0x498   :  { %4813 = vst [vmem:[#allocation6 + $0x68] sm:$0xff] %v3789_v0 }
 0x499   :  { %4814 = vst [vmem:[#allocation6 + $0x70] sm:$0xff] %v3790_v3 }
 0x49a   :  { %4815 = vst [vmem:[#allocation6 + $0x78] sm:$0xff] %v3791_v4  ;;  %6631 = vmatmul.msk.f32.gmra.mxu2 %vm181_vm0, %v6891_v5  ;;  %6759 = vmatmul.msk.f32.gmra.mxu3 %vm181_vm0, %v6891_v5 }
 0x49c   :  { %v2193_v6 = vpop.f32.mrf.mxu0  ;;  %v2594_v7 = vpop.f32.mrf.mxu1 }
 0x49d   :  { %v3796_v8 = vmul.f32 %v7203_v29, %v2193_v6  ;;  %v3797_v9 = vmul.f32 %v7203_v29, %v2594_v7  ;;  %v2995_v10 = vpop.f32.mrf.mxu2  ;;  %v3396_v11 = vpop.f32.mrf.mxu3 }
 0x49e   :  { %v3798_v12 = vmul.f32 %v7203_v29, %v2995_v10  ;;  %v3799_v13 = vmul.f32 %v7203_v29, %v3396_v11 }
 0x49f   :  { %4820 = vst [vmem:[#allocation6 + $0xa0] sm:$0xff] %v3796_v8  ;;  %6375 = vmatmul.msk.f32.gmra.mxu0 %vm181_vm0, %v6891_v5  ;;  %6503 = vmatmul.msk.f32.gmra.mxu1 %vm181_vm0, %v6891_v5  ;;  %v6898_v5 = vld [vmem:[%s9911_s1 + $0xc8] sm:$0xff] }
 0x4a0   :  { %4821 = vst [vmem:[#allocation6 + $0xa8] sm:$0xff] %v3797_v9 }
 0x4a1   :  { %4822 = vst [vmem:[#allocation6 + $0xb0] sm:$0xff] %v3798_v12 }
 0x4a2   :  { %4823 = vst [vmem:[#allocation6 + $0xb8] sm:$0xff] %v3799_v13  ;;  %6632 = vmatmul.msk.f32.gmra.mxu2 %vm181_vm0, %v6892_v14  ;;  %6760 = vmatmul.msk.f32.gmra.mxu3 %vm181_vm0, %v6892_v14 }
 0x4a4   :  { %v2196_v15 = vpop.f32.mrf.mxu0  ;;  %v2597_v16 = vpop.f32.mrf.mxu1 }
 0x4a5   :  { %v3804_v17 = vmul.f32 %v7203_v29, %v2196_v15  ;;  %v3805_v18 = vmul.f32 %v7203_v29, %v2597_v16  ;;  %v2998_v19 = vpop.f32.mrf.mxu2  ;;  %v3399_v20 = vpop.f32.mrf.mxu3 }
 0x4a6   :  { %v3806_v21 = vmul.f32 %v7203_v29, %v2998_v19  ;;  %v3807_v22 = vmul.f32 %v7203_v29, %v3399_v20 }
 0x4a7   :  { %4828 = vst [vmem:[#allocation6 + $0xe0] sm:$0xff] %v3804_v17  ;;  %6376 = vmatmul.msk.f32.gmra.mxu0 %vm181_vm0, %v6892_v14  ;;  %6504 = vmatmul.msk.f32.gmra.mxu1 %vm181_vm0, %v6892_v14  ;;  %v6899_v14 = vld [vmem:[%s9911_s1 + $0xd0] sm:$0xff] }
 0x4a8   :  { %4829 = vst [vmem:[#allocation6 + $0xe8] sm:$0xff] %v3805_v18 }
 0x4a9   :  { %4830 = vst [vmem:[#allocation6 + $0xf0] sm:$0xff] %v3806_v21 }
 0x4aa   :  { %4831 = vst [vmem:[#allocation6 + $0xf8] sm:$0xff] %v3807_v22  ;;  %6633 = vmatmul.msk.f32.gmra.mxu2 %vm181_vm0, %v6893_v23  ;;  %6761 = vmatmul.msk.f32.gmra.mxu3 %vm181_vm0, %v6893_v23 }
 0x4ac   :  { %v2199_v24 = vpop.f32.mrf.mxu0  ;;  %v2600_v25 = vpop.f32.mrf.mxu1 }
 0x4ad   :  { %v3812_v26 = vmul.f32 %v7203_v29, %v2199_v24  ;;  %v3813_v27 = vmul.f32 %v7203_v29, %v2600_v25  ;;  %v3001_v28 = vpop.f32.mrf.mxu2  ;;  %v3402_v30 = vpop.f32.mrf.mxu3 }
 0x4ae   :  { %v3814_v31 = vmul.f32 %v7203_v29, %v3001_v28  ;;  %v3815_v32 = vmul.f32 %v7203_v29, %v3402_v30 }
 0x4af   :  { %4836 = vst [vmem:[#allocation6 + $0x120] sm:$0xff] %v3812_v26  ;;  %6377 = vmatmul.msk.f32.gmra.mxu0 %vm181_vm0, %v6893_v23  ;;  %6505 = vmatmul.msk.f32.gmra.mxu1 %vm181_vm0, %v6893_v23  ;;  %v6900_v23 = vld [vmem:[%s9911_s1 + $0xd8] sm:$0xff] }
 0x4b0   :  { %4837 = vst [vmem:[#allocation6 + $0x128] sm:$0xff] %v3813_v27 }
 0x4b1   :  { %4838 = vst [vmem:[#allocation6 + $0x130] sm:$0xff] %v3814_v31 }
 0x4b2   :  { %4839 = vst [vmem:[#allocation6 + $0x138] sm:$0xff] %v3815_v32  ;;  %6634 = vmatmul.msk.f32.gmra.mxu2 %vm181_vm0, %v6894_v33  ;;  %6762 = vmatmul.msk.f32.gmra.mxu3 %vm181_vm0, %v6894_v33 }
 0x4b4   :  { %v2202_v34 = vpop.f32.mrf.mxu0  ;;  %v2603_v35 = vpop.f32.mrf.mxu1 }
 0x4b5   :  { %v3820_v36 = vmul.f32 %v7203_v29, %v2202_v34  ;;  %v3821_v37 = vmul.f32 %v7203_v29, %v2603_v35  ;;  %v3004_v38 = vpop.f32.mrf.mxu2  ;;  %v3405_v39 = vpop.f32.mrf.mxu3 }
 0x4b6   :  { %v3822_v40 = vmul.f32 %v7203_v29, %v3004_v38  ;;  %v3823_v41 = vmul.f32 %v7203_v29, %v3405_v39 }
 0x4b7   :  { %4844 = vst [vmem:[#allocation6 + $0x160] sm:$0xff] %v3820_v36  ;;  %6378 = vmatmul.msk.f32.gmra.mxu0 %vm181_vm0, %v6894_v33  ;;  %6506 = vmatmul.msk.f32.gmra.mxu1 %vm181_vm0, %v6894_v33  ;;  %v6901_v33 = vld [vmem:[%s9911_s1 + $0xe0] sm:$0xff] }
 0x4b8   :  { %4845 = vst [vmem:[#allocation6 + $0x168] sm:$0xff] %v3821_v37 }
 0x4b9   :  { %4846 = vst [vmem:[#allocation6 + $0x170] sm:$0xff] %v3822_v40 }
 0x4ba   :  { %4847 = vst [vmem:[#allocation6 + $0x178] sm:$0xff] %v3823_v41  ;;  %6635 = vmatmul.msk.f32.gmra.mxu2 %vm181_vm0, %v6895_v42  ;;  %6763 = vmatmul.msk.f32.gmra.mxu3 %vm181_vm0, %v6895_v42 }
 0x4bc   :  { %v2205_v43 = vpop.f32.mrf.mxu0  ;;  %v2606_v44 = vpop.f32.mrf.mxu1 }
 0x4bd   :  { %v3828_v45 = vmul.f32 %v7203_v29, %v2205_v43  ;;  %v3829_v46 = vmul.f32 %v7203_v29, %v2606_v44  ;;  %v3007_v47 = vpop.f32.mrf.mxu2  ;;  %v3408_v48 = vpop.f32.mrf.mxu3 }
 0x4be   :  { %v3830_v49 = vmul.f32 %v7203_v29, %v3007_v47  ;;  %v3831_v50 = vmul.f32 %v7203_v29, %v3408_v48 }
 0x4bf   :  { %4852 = vst [vmem:[#allocation6 + $0x1a0] sm:$0xff] %v3828_v45  ;;  %6379 = vmatmul.msk.f32.gmra.mxu0 %vm181_vm0, %v6895_v42  ;;  %6507 = vmatmul.msk.f32.gmra.mxu1 %vm181_vm0, %v6895_v42  ;;  %v6902_v42 = vld [vmem:[%s9911_s1 + $0xe8] sm:$0xff] }
 0x4c0   :  { %4853 = vst [vmem:[#allocation6 + $0x1a8] sm:$0xff] %v3829_v46 }
 0x4c1   :  { %4854 = vst [vmem:[#allocation6 + $0x1b0] sm:$0xff] %v3830_v49 }
 0x4c2   :  { %4855 = vst [vmem:[#allocation6 + $0x1b8] sm:$0xff] %v3831_v50  ;;  %6636 = vmatmul.msk.f32.gmra.mxu2 %vm181_vm0, %v6896_v51  ;;  %6764 = vmatmul.msk.f32.gmra.mxu3 %vm181_vm0, %v6896_v51 }
 0x4c4   :  { %v2208_v52 = vpop.f32.mrf.mxu0  ;;  %v2609_v53 = vpop.f32.mrf.mxu1 }
 0x4c5   :  { %v3836_v54 = vmul.f32 %v7203_v29, %v2208_v52  ;;  %v3837_v55 = vmul.f32 %v7203_v29, %v2609_v53  ;;  %v3010_v56 = vpop.f32.mrf.mxu2  ;;  %v3411_v57 = vpop.f32.mrf.mxu3 }
 0x4c6   :  { %v3838_v58 = vmul.f32 %v7203_v29, %v3010_v56  ;;  %v3839_v59 = vmul.f32 %v7203_v29, %v3411_v57 }
 0x4c7   :  { %4860 = vst [vmem:[#allocation6 + $0x1e0] sm:$0xff] %v3836_v54  ;;  %6380 = vmatmul.msk.f32.gmra.mxu0 %vm181_vm0, %v6896_v51  ;;  %6508 = vmatmul.msk.f32.gmra.mxu1 %vm181_vm0, %v6896_v51  ;;  %v6903_v51 = vld [vmem:[%s9911_s1 + $0xf0] sm:$0xff] }
 0x4c8   :  { %4861 = vst [vmem:[#allocation6 + $0x1e8] sm:$0xff] %v3837_v55 }
 0x4c9   :  { %4862 = vst [vmem:[#allocation6 + $0x1f0] sm:$0xff] %v3838_v58 }
 0x4ca   :  { %4863 = vst [vmem:[#allocation6 + $0x1f8] sm:$0xff] %v3839_v59  ;;  %6637 = vmatmul.msk.f32.gmra.mxu2 %vm181_vm0, %v6897_v60  ;;  %6765 = vmatmul.msk.f32.gmra.mxu3 %vm181_vm0, %v6897_v60 }
 0x4cc   :  { %v2211_v61 = vpop.f32.mrf.mxu0  ;;  %v2612_v62 = vpop.f32.mrf.mxu1 }
 0x4cd   :  { %v3844_v63 = vmul.f32 %v7203_v29, %v2211_v61  ;;  %v3845_v0 = vmul.f32 %v7203_v29, %v2612_v62  ;;  %v3013_v1 = vpop.f32.mrf.mxu2  ;;  %v3414_v2 = vpop.f32.mrf.mxu3 }
 0x4ce   :  { %v3846_v3 = vmul.f32 %v7203_v29, %v3013_v1  ;;  %v3847_v4 = vmul.f32 %v7203_v29, %v3414_v2 }
 0x4cf   :  { %4868 = vst [vmem:[#allocation6 + $0x220] sm:$0xff] %v3844_v63  ;;  %6381 = vmatmul.msk.f32.gmra.mxu0 %vm181_vm0, %v6897_v60  ;;  %6509 = vmatmul.msk.f32.gmra.mxu1 %vm181_vm0, %v6897_v60  ;;  %v6904_v60 = vld [vmem:[%s9911_s1 + $0xf8] sm:$0xff] }
 0x4d0   :  { %4869 = vst [vmem:[#allocation6 + $0x228] sm:$0xff] %v3845_v0 }
 0x4d1   :  { %4870 = vst [vmem:[#allocation6 + $0x230] sm:$0xff] %v3846_v3 }
 0x4d2   :  { %4871 = vst [vmem:[#allocation6 + $0x238] sm:$0xff] %v3847_v4  ;;  %6638 = vmatmul.msk.f32.gmra.mxu2 %vm181_vm0, %v6898_v5  ;;  %6766 = vmatmul.msk.f32.gmra.mxu3 %vm181_vm0, %v6898_v5 }
 0x4d4   :  { %v2214_v6 = vpop.f32.mrf.mxu0  ;;  %v2615_v7 = vpop.f32.mrf.mxu1 }
 0x4d5   :  { %v3852_v8 = vmul.f32 %v7203_v29, %v2214_v6  ;;  %v3853_v9 = vmul.f32 %v7203_v29, %v2615_v7  ;;  %v3016_v10 = vpop.f32.mrf.mxu2  ;;  %v3417_v11 = vpop.f32.mrf.mxu3 }
 0x4d6   :  { %v3854_v12 = vmul.f32 %v7203_v29, %v3016_v10  ;;  %v3855_v13 = vmul.f32 %v7203_v29, %v3417_v11 }
 0x4d7   :  { %4876 = vst [vmem:[#allocation6 + $0x260] sm:$0xff] %v3852_v8  ;;  %6382 = vmatmul.msk.f32.gmra.mxu0 %vm181_vm0, %v6898_v5  ;;  %6510 = vmatmul.msk.f32.gmra.mxu1 %vm181_vm0, %v6898_v5  ;;  %v6905_v5 = vld [vmem:[%s9911_s1 + $0x100] sm:$0xff] }
 0x4d8   :  { %4877 = vst [vmem:[#allocation6 + $0x268] sm:$0xff] %v3853_v9 }
 0x4d9   :  { %4878 = vst [vmem:[#allocation6 + $0x270] sm:$0xff] %v3854_v12 }
 0x4da   :  { %4879 = vst [vmem:[#allocation6 + $0x278] sm:$0xff] %v3855_v13  ;;  %6639 = vmatmul.msk.f32.gmra.mxu2 %vm181_vm0, %v6899_v14  ;;  %6767 = vmatmul.msk.f32.gmra.mxu3 %vm181_vm0, %v6899_v14 }
 0x4dc   :  { %v2217_v15 = vpop.f32.mrf.mxu0  ;;  %v2618_v16 = vpop.f32.mrf.mxu1 }
 0x4dd   :  { %v3860_v17 = vmul.f32 %v7203_v29, %v2217_v15  ;;  %v3861_v18 = vmul.f32 %v7203_v29, %v2618_v16  ;;  %v3019_v19 = vpop.f32.mrf.mxu2  ;;  %v3420_v20 = vpop.f32.mrf.mxu3 }
 0x4de   :  { %v3862_v21 = vmul.f32 %v7203_v29, %v3019_v19  ;;  %v3863_v22 = vmul.f32 %v7203_v29, %v3420_v20 }
 0x4df   :  { %4884 = vst [vmem:[#allocation6 + $0x2a0] sm:$0xff] %v3860_v17  ;;  %6383 = vmatmul.msk.f32.gmra.mxu0 %vm181_vm0, %v6899_v14  ;;  %6511 = vmatmul.msk.f32.gmra.mxu1 %vm181_vm0, %v6899_v14  ;;  %v6906_v14 = vld [vmem:[%s9911_s1 + $0x108] sm:$0xff] }
 0x4e0   :  { %4885 = vst [vmem:[#allocation6 + $0x2a8] sm:$0xff] %v3861_v18 }
 0x4e1   :  { %4886 = vst [vmem:[#allocation6 + $0x2b0] sm:$0xff] %v3862_v21 }
 0x4e2   :  { %4887 = vst [vmem:[#allocation6 + $0x2b8] sm:$0xff] %v3863_v22  ;;  %6640 = vmatmul.msk.f32.gmra.mxu2 %vm181_vm0, %v6900_v23  ;;  %6768 = vmatmul.msk.f32.gmra.mxu3 %vm181_vm0, %v6900_v23 }
 0x4e4   :  { %v2220_v24 = vpop.f32.mrf.mxu0  ;;  %v2621_v25 = vpop.f32.mrf.mxu1 }
 0x4e5   :  { %v3868_v26 = vmul.f32 %v7203_v29, %v2220_v24  ;;  %v3869_v27 = vmul.f32 %v7203_v29, %v2621_v25  ;;  %v3022_v28 = vpop.f32.mrf.mxu2  ;;  %v3423_v30 = vpop.f32.mrf.mxu3 }
 0x4e6   :  { %v3870_v31 = vmul.f32 %v7203_v29, %v3022_v28  ;;  %v3871_v32 = vmul.f32 %v7203_v29, %v3423_v30 }
 0x4e7   :  { %4892 = vst [vmem:[#allocation6 + $0x2e0] sm:$0xff] %v3868_v26  ;;  %6384 = vmatmul.msk.f32.gmra.mxu0 %vm181_vm0, %v6900_v23  ;;  %6512 = vmatmul.msk.f32.gmra.mxu1 %vm181_vm0, %v6900_v23  ;;  %v6907_v23 = vld [vmem:[%s9911_s1 + $0x110] sm:$0xff] }
 0x4e8   :  { %4893 = vst [vmem:[#allocation6 + $0x2e8] sm:$0xff] %v3869_v27 }
 0x4e9   :  { %4894 = vst [vmem:[#allocation6 + $0x2f0] sm:$0xff] %v3870_v31 }
 0x4ea   :  { %4895 = vst [vmem:[#allocation6 + $0x2f8] sm:$0xff] %v3871_v32  ;;  %6641 = vmatmul.msk.f32.gmra.mxu2 %vm181_vm0, %v6901_v33  ;;  %6769 = vmatmul.msk.f32.gmra.mxu3 %vm181_vm0, %v6901_v33 }
 0x4ec   :  { %v2223_v34 = vpop.f32.mrf.mxu0  ;;  %v2624_v35 = vpop.f32.mrf.mxu1 }
 0x4ed   :  { %v3876_v36 = vmul.f32 %v7203_v29, %v2223_v34  ;;  %v3877_v37 = vmul.f32 %v7203_v29, %v2624_v35  ;;  %v3025_v38 = vpop.f32.mrf.mxu2  ;;  %v3426_v39 = vpop.f32.mrf.mxu3 }
 0x4ee   :  { %v3878_v40 = vmul.f32 %v7203_v29, %v3025_v38  ;;  %v3879_v41 = vmul.f32 %v7203_v29, %v3426_v39 }
 0x4ef   :  { %4900 = vst [vmem:[#allocation6 + $0x320] sm:$0xff] %v3876_v36  ;;  %6385 = vmatmul.msk.f32.gmra.mxu0 %vm181_vm0, %v6901_v33  ;;  %6513 = vmatmul.msk.f32.gmra.mxu1 %vm181_vm0, %v6901_v33  ;;  %v6908_v33 = vld [vmem:[%s9911_s1 + $0x118] sm:$0xff] }
 0x4f0   :  { %4901 = vst [vmem:[#allocation6 + $0x328] sm:$0xff] %v3877_v37 }
 0x4f1   :  { %4902 = vst [vmem:[#allocation6 + $0x330] sm:$0xff] %v3878_v40 }
 0x4f2   :  { %4903 = vst [vmem:[#allocation6 + $0x338] sm:$0xff] %v3879_v41  ;;  %6642 = vmatmul.msk.f32.gmra.mxu2 %vm181_vm0, %v6902_v42  ;;  %6770 = vmatmul.msk.f32.gmra.mxu3 %vm181_vm0, %v6902_v42 }
 0x4f4   :  { %v2226_v43 = vpop.f32.mrf.mxu0  ;;  %v2627_v44 = vpop.f32.mrf.mxu1 }
 0x4f5   :  { %v3884_v45 = vmul.f32 %v7203_v29, %v2226_v43  ;;  %v3885_v46 = vmul.f32 %v7203_v29, %v2627_v44  ;;  %v3028_v47 = vpop.f32.mrf.mxu2  ;;  %v3429_v48 = vpop.f32.mrf.mxu3 }
 0x4f6   :  { %v3886_v49 = vmul.f32 %v7203_v29, %v3028_v47  ;;  %v3887_v50 = vmul.f32 %v7203_v29, %v3429_v48 }
 0x4f7   :  { %4908 = vst [vmem:[#allocation6 + $0x360] sm:$0xff] %v3884_v45  ;;  %6386 = vmatmul.msk.f32.gmra.mxu0 %vm181_vm0, %v6902_v42  ;;  %6514 = vmatmul.msk.f32.gmra.mxu1 %vm181_vm0, %v6902_v42  ;;  %v6909_v42 = vld [vmem:[%s9911_s1 + $0x120] sm:$0xff] }
 0x4f8   :  { %4909 = vst [vmem:[#allocation6 + $0x368] sm:$0xff] %v3885_v46 }
 0x4f9   :  { %4910 = vst [vmem:[#allocation6 + $0x370] sm:$0xff] %v3886_v49 }
 0x4fa   :  { %4911 = vst [vmem:[#allocation6 + $0x378] sm:$0xff] %v3887_v50  ;;  %6643 = vmatmul.msk.f32.gmra.mxu2 %vm181_vm0, %v6903_v51  ;;  %6771 = vmatmul.msk.f32.gmra.mxu3 %vm181_vm0, %v6903_v51 }
 0x4fc   :  { %v2229_v52 = vpop.f32.mrf.mxu0  ;;  %v2630_v53 = vpop.f32.mrf.mxu1 }
 0x4fd   :  { %v3892_v54 = vmul.f32 %v7203_v29, %v2229_v52  ;;  %v3893_v55 = vmul.f32 %v7203_v29, %v2630_v53  ;;  %v3031_v56 = vpop.f32.mrf.mxu2  ;;  %v3432_v57 = vpop.f32.mrf.mxu3 }
 0x4fe   :  { %v3894_v58 = vmul.f32 %v7203_v29, %v3031_v56  ;;  %v3895_v59 = vmul.f32 %v7203_v29, %v3432_v57 }
 0x4ff   :  { %4916 = vst [vmem:[#allocation6 + $0x3a0] sm:$0xff] %v3892_v54  ;;  %6387 = vmatmul.msk.f32.gmra.mxu0 %vm181_vm0, %v6903_v51  ;;  %6515 = vmatmul.msk.f32.gmra.mxu1 %vm181_vm0, %v6903_v51  ;;  %v6910_v51 = vld [vmem:[%s9911_s1 + $0x128] sm:$0xff] }
 0x500   :  { %4917 = vst [vmem:[#allocation6 + $0x3a8] sm:$0xff] %v3893_v55 }
 0x501   :  { %4918 = vst [vmem:[#allocation6 + $0x3b0] sm:$0xff] %v3894_v58 }
 0x502   :  { %4919 = vst [vmem:[#allocation6 + $0x3b8] sm:$0xff] %v3895_v59  ;;  %6644 = vmatmul.msk.f32.gmra.mxu2 %vm181_vm0, %v6904_v60  ;;  %6772 = vmatmul.msk.f32.gmra.mxu3 %vm181_vm0, %v6904_v60 }
 0x504   :  { %v2232_v61 = vpop.f32.mrf.mxu0  ;;  %v2633_v62 = vpop.f32.mrf.mxu1 }
 0x505   :  { %v3900_v63 = vmul.f32 %v7203_v29, %v2232_v61  ;;  %v3901_v0 = vmul.f32 %v7203_v29, %v2633_v62  ;;  %v3034_v1 = vpop.f32.mrf.mxu2  ;;  %v3435_v2 = vpop.f32.mrf.mxu3 }
 0x506   :  { %v3902_v3 = vmul.f32 %v7203_v29, %v3034_v1  ;;  %v3903_v4 = vmul.f32 %v7203_v29, %v3435_v2 }
 0x507   :  { %4924 = vst [vmem:[#allocation6 + $0x3e0] sm:$0xff] %v3900_v63  ;;  %6388 = vmatmul.msk.f32.gmra.mxu0 %vm181_vm0, %v6904_v60  ;;  %6516 = vmatmul.msk.f32.gmra.mxu1 %vm181_vm0, %v6904_v60  ;;  %v6911_v60 = vld [vmem:[%s9911_s1 + $0x130] sm:$0xff] }
 0x508   :  { %4925 = vst [vmem:[#allocation6 + $0x3e8] sm:$0xff] %v3901_v0 }
 0x509   :  { %4926 = vst [vmem:[#allocation6 + $0x3f0] sm:$0xff] %v3902_v3 }
 0x50a   :  { %4927 = vst [vmem:[#allocation6 + $0x3f8] sm:$0xff] %v3903_v4  ;;  %6645 = vmatmul.msk.f32.gmra.mxu2 %vm181_vm0, %v6905_v5  ;;  %6773 = vmatmul.msk.f32.gmra.mxu3 %vm181_vm0, %v6905_v5 }
 0x50c   :  { %v2235_v6 = vpop.f32.mrf.mxu0  ;;  %v2636_v7 = vpop.f32.mrf.mxu1 }
 0x50d   :  { %v3908_v8 = vmul.f32 %v7203_v29, %v2235_v6  ;;  %v3909_v9 = vmul.f32 %v7203_v29, %v2636_v7  ;;  %v3037_v10 = vpop.f32.mrf.mxu2  ;;  %v3438_v11 = vpop.f32.mrf.mxu3 }
 0x50e   :  { %v3910_v12 = vmul.f32 %v7203_v29, %v3037_v10  ;;  %v3911_v13 = vmul.f32 %v7203_v29, %v3438_v11 }
 0x50f   :  { %4932 = vst [vmem:[#allocation6 + $0x420] sm:$0xff] %v3908_v8  ;;  %6389 = vmatmul.msk.f32.gmra.mxu0 %vm181_vm0, %v6905_v5  ;;  %6517 = vmatmul.msk.f32.gmra.mxu1 %vm181_vm0, %v6905_v5  ;;  %v6912_v5 = vld [vmem:[%s9911_s1 + $0x138] sm:$0xff] }
 0x510   :  { %4933 = vst [vmem:[#allocation6 + $0x428] sm:$0xff] %v3909_v9 }
 0x511   :  { %4934 = vst [vmem:[#allocation6 + $0x430] sm:$0xff] %v3910_v12 }
 0x512   :  { %4935 = vst [vmem:[#allocation6 + $0x438] sm:$0xff] %v3911_v13  ;;  %6646 = vmatmul.msk.f32.gmra.mxu2 %vm181_vm0, %v6906_v14  ;;  %6774 = vmatmul.msk.f32.gmra.mxu3 %vm181_vm0, %v6906_v14 }
 0x514   :  { %v2238_v15 = vpop.f32.mrf.mxu0  ;;  %v2639_v16 = vpop.f32.mrf.mxu1 }
 0x515   :  { %v3916_v17 = vmul.f32 %v7203_v29, %v2238_v15  ;;  %v3917_v18 = vmul.f32 %v7203_v29, %v2639_v16  ;;  %v3040_v19 = vpop.f32.mrf.mxu2  ;;  %v3441_v20 = vpop.f32.mrf.mxu3 }
 0x516   :  { %v3918_v21 = vmul.f32 %v7203_v29, %v3040_v19  ;;  %v3919_v22 = vmul.f32 %v7203_v29, %v3441_v20 }
 0x517   :  { %4940 = vst [vmem:[#allocation6 + $0x460] sm:$0xff] %v3916_v17  ;;  %6390 = vmatmul.msk.f32.gmra.mxu0 %vm181_vm0, %v6906_v14  ;;  %6518 = vmatmul.msk.f32.gmra.mxu1 %vm181_vm0, %v6906_v14  ;;  %v6913_v14 = vld [vmem:[%s9911_s1 + $0x140] sm:$0xff] }
 0x518   :  { %4941 = vst [vmem:[#allocation6 + $0x468] sm:$0xff] %v3917_v18 }
 0x519   :  { %4942 = vst [vmem:[#allocation6 + $0x470] sm:$0xff] %v3918_v21 }
 0x51a   :  { %4943 = vst [vmem:[#allocation6 + $0x478] sm:$0xff] %v3919_v22  ;;  %6647 = vmatmul.msk.f32.gmra.mxu2 %vm181_vm0, %v6907_v23  ;;  %6775 = vmatmul.msk.f32.gmra.mxu3 %vm181_vm0, %v6907_v23 }
 0x51c   :  { %v2241_v24 = vpop.f32.mrf.mxu0  ;;  %v2642_v25 = vpop.f32.mrf.mxu1 }
 0x51d   :  { %v3924_v26 = vmul.f32 %v7203_v29, %v2241_v24  ;;  %v3925_v27 = vmul.f32 %v7203_v29, %v2642_v25  ;;  %v3043_v28 = vpop.f32.mrf.mxu2  ;;  %v3444_v30 = vpop.f32.mrf.mxu3 }
 0x51e   :  { %v3926_v31 = vmul.f32 %v7203_v29, %v3043_v28  ;;  %v3927_v32 = vmul.f32 %v7203_v29, %v3444_v30 }
 0x51f   :  { %4948 = vst [vmem:[#allocation6 + $0x4a0] sm:$0xff] %v3924_v26  ;;  %6391 = vmatmul.msk.f32.gmra.mxu0 %vm181_vm0, %v6907_v23  ;;  %6519 = vmatmul.msk.f32.gmra.mxu1 %vm181_vm0, %v6907_v23  ;;  %v6914_v23 = vld [vmem:[%s9911_s1 + $0x148] sm:$0xff] }
 0x520   :  { %4949 = vst [vmem:[#allocation6 + $0x4a8] sm:$0xff] %v3925_v27 }
 0x521   :  { %4950 = vst [vmem:[#allocation6 + $0x4b0] sm:$0xff] %v3926_v31 }
 0x522   :  { %4951 = vst [vmem:[#allocation6 + $0x4b8] sm:$0xff] %v3927_v32  ;;  %6648 = vmatmul.msk.f32.gmra.mxu2 %vm181_vm0, %v6908_v33  ;;  %6776 = vmatmul.msk.f32.gmra.mxu3 %vm181_vm0, %v6908_v33 }
 0x524   :  { %v2244_v34 = vpop.f32.mrf.mxu0  ;;  %v2645_v35 = vpop.f32.mrf.mxu1 }
 0x525   :  { %v3932_v36 = vmul.f32 %v7203_v29, %v2244_v34  ;;  %v3933_v37 = vmul.f32 %v7203_v29, %v2645_v35  ;;  %v3046_v38 = vpop.f32.mrf.mxu2  ;;  %v3447_v39 = vpop.f32.mrf.mxu3 }
 0x526   :  { %v3934_v40 = vmul.f32 %v7203_v29, %v3046_v38  ;;  %v3935_v41 = vmul.f32 %v7203_v29, %v3447_v39 }
 0x527   :  { %4956 = vst [vmem:[#allocation6 + $0x4e0] sm:$0xff] %v3932_v36  ;;  %6392 = vmatmul.msk.f32.gmra.mxu0 %vm181_vm0, %v6908_v33  ;;  %6520 = vmatmul.msk.f32.gmra.mxu1 %vm181_vm0, %v6908_v33  ;;  %v6915_v33 = vld [vmem:[%s9911_s1 + $0x150] sm:$0xff] }
 0x528   :  { %4957 = vst [vmem:[#allocation6 + $0x4e8] sm:$0xff] %v3933_v37 }
 0x529   :  { %4958 = vst [vmem:[#allocation6 + $0x4f0] sm:$0xff] %v3934_v40 }
 0x52a   :  { %4959 = vst [vmem:[#allocation6 + $0x4f8] sm:$0xff] %v3935_v41  ;;  %6649 = vmatmul.msk.f32.gmra.mxu2 %vm181_vm0, %v6909_v42  ;;  %6777 = vmatmul.msk.f32.gmra.mxu3 %vm181_vm0, %v6909_v42 }
 0x52c   :  { %v2247_v43 = vpop.f32.mrf.mxu0  ;;  %v2648_v44 = vpop.f32.mrf.mxu1 }
 0x52d   :  { %v3940_v45 = vmul.f32 %v7203_v29, %v2247_v43  ;;  %v3941_v46 = vmul.f32 %v7203_v29, %v2648_v44  ;;  %v3049_v47 = vpop.f32.mrf.mxu2  ;;  %v3450_v48 = vpop.f32.mrf.mxu3 }
 0x52e   :  { %v3942_v49 = vmul.f32 %v7203_v29, %v3049_v47  ;;  %v3943_v50 = vmul.f32 %v7203_v29, %v3450_v48 }
 0x52f   :  { %4964 = vst [vmem:[#allocation6 + $0x520] sm:$0xff] %v3940_v45  ;;  %6393 = vmatmul.msk.f32.gmra.mxu0 %vm181_vm0, %v6909_v42  ;;  %6521 = vmatmul.msk.f32.gmra.mxu1 %vm181_vm0, %v6909_v42  ;;  %v6916_v42 = vld [vmem:[%s9911_s1 + $0x158] sm:$0xff] }
 0x530   :  { %4965 = vst [vmem:[#allocation6 + $0x528] sm:$0xff] %v3941_v46 }
 0x531   :  { %4966 = vst [vmem:[#allocation6 + $0x530] sm:$0xff] %v3942_v49 }
 0x532   :  { %4967 = vst [vmem:[#allocation6 + $0x538] sm:$0xff] %v3943_v50  ;;  %6650 = vmatmul.msk.f32.gmra.mxu2 %vm181_vm0, %v6910_v51  ;;  %6778 = vmatmul.msk.f32.gmra.mxu3 %vm181_vm0, %v6910_v51 }
 0x534   :  { %v2250_v52 = vpop.f32.mrf.mxu0  ;;  %v2651_v53 = vpop.f32.mrf.mxu1 }
 0x535   :  { %v3948_v54 = vmul.f32 %v7203_v29, %v2250_v52  ;;  %v3949_v55 = vmul.f32 %v7203_v29, %v2651_v53  ;;  %v3052_v56 = vpop.f32.mrf.mxu2  ;;  %v3453_v57 = vpop.f32.mrf.mxu3 }
 0x536   :  { %v3950_v58 = vmul.f32 %v7203_v29, %v3052_v56  ;;  %v3951_v59 = vmul.f32 %v7203_v29, %v3453_v57 }
 0x537   :  { %4972 = vst [vmem:[#allocation6 + $0x560] sm:$0xff] %v3948_v54  ;;  %6394 = vmatmul.msk.f32.gmra.mxu0 %vm181_vm0, %v6910_v51  ;;  %6522 = vmatmul.msk.f32.gmra.mxu1 %vm181_vm0, %v6910_v51  ;;  %v6917_v51 = vld [vmem:[%s9911_s1 + $0x160] sm:$0xff] }
 0x538   :  { %4973 = vst [vmem:[#allocation6 + $0x568] sm:$0xff] %v3949_v55 }
 0x539   :  { %4974 = vst [vmem:[#allocation6 + $0x570] sm:$0xff] %v3950_v58 }
 0x53a   :  { %4975 = vst [vmem:[#allocation6 + $0x578] sm:$0xff] %v3951_v59  ;;  %6651 = vmatmul.msk.f32.gmra.mxu2 %vm181_vm0, %v6911_v60  ;;  %6779 = vmatmul.msk.f32.gmra.mxu3 %vm181_vm0, %v6911_v60 }
 0x53c   :  { %v2253_v61 = vpop.f32.mrf.mxu0  ;;  %v2654_v62 = vpop.f32.mrf.mxu1 }
 0x53d   :  { %v3956_v63 = vmul.f32 %v7203_v29, %v2253_v61  ;;  %v3957_v0 = vmul.f32 %v7203_v29, %v2654_v62  ;;  %v3055_v1 = vpop.f32.mrf.mxu2  ;;  %v3456_v2 = vpop.f32.mrf.mxu3 }
 0x53e   :  { %v3958_v3 = vmul.f32 %v7203_v29, %v3055_v1  ;;  %v3959_v4 = vmul.f32 %v7203_v29, %v3456_v2 }
 0x53f   :  { %4980 = vst [vmem:[#allocation6 + $0x5a0] sm:$0xff] %v3956_v63  ;;  %6395 = vmatmul.msk.f32.gmra.mxu0 %vm181_vm0, %v6911_v60  ;;  %6523 = vmatmul.msk.f32.gmra.mxu1 %vm181_vm0, %v6911_v60  ;;  %v6918_v60 = vld [vmem:[%s9911_s1 + $0x168] sm:$0xff] }
 0x540   :  { %4981 = vst [vmem:[#allocation6 + $0x5a8] sm:$0xff] %v3957_v0 }
 0x541   :  { %4982 = vst [vmem:[#allocation6 + $0x5b0] sm:$0xff] %v3958_v3 }
 0x542   :  { %4983 = vst [vmem:[#allocation6 + $0x5b8] sm:$0xff] %v3959_v4  ;;  %6652 = vmatmul.msk.f32.gmra.mxu2 %vm181_vm0, %v6912_v5  ;;  %6780 = vmatmul.msk.f32.gmra.mxu3 %vm181_vm0, %v6912_v5 }
 0x544   :  { %v2256_v6 = vpop.f32.mrf.mxu0  ;;  %v2657_v7 = vpop.f32.mrf.mxu1 }
 0x545   :  { %v3964_v8 = vmul.f32 %v7203_v29, %v2256_v6  ;;  %v3965_v9 = vmul.f32 %v7203_v29, %v2657_v7  ;;  %v3058_v10 = vpop.f32.mrf.mxu2  ;;  %v3459_v11 = vpop.f32.mrf.mxu3 }
 0x546   :  { %v3966_v12 = vmul.f32 %v7203_v29, %v3058_v10  ;;  %v3967_v13 = vmul.f32 %v7203_v29, %v3459_v11 }
 0x547   :  { %4988 = vst [vmem:[#allocation6 + $0x5e0] sm:$0xff] %v3964_v8  ;;  %6396 = vmatmul.msk.f32.gmra.mxu0 %vm181_vm0, %v6912_v5  ;;  %6524 = vmatmul.msk.f32.gmra.mxu1 %vm181_vm0, %v6912_v5  ;;  %v6919_v5 = vld [vmem:[%s9911_s1 + $0x170] sm:$0xff] }
 0x548   :  { %4989 = vst [vmem:[#allocation6 + $0x5e8] sm:$0xff] %v3965_v9 }
 0x549   :  { %4990 = vst [vmem:[#allocation6 + $0x5f0] sm:$0xff] %v3966_v12 }
 0x54a   :  { %4991 = vst [vmem:[#allocation6 + $0x5f8] sm:$0xff] %v3967_v13  ;;  %6653 = vmatmul.msk.f32.gmra.mxu2 %vm181_vm0, %v6913_v14  ;;  %6781 = vmatmul.msk.f32.gmra.mxu3 %vm181_vm0, %v6913_v14 }
 0x54c   :  { %v2259_v15 = vpop.f32.mrf.mxu0  ;;  %v2660_v16 = vpop.f32.mrf.mxu1 }
 0x54d   :  { %v3972_v17 = vmul.f32 %v7203_v29, %v2259_v15  ;;  %v3973_v18 = vmul.f32 %v7203_v29, %v2660_v16  ;;  %v3061_v19 = vpop.f32.mrf.mxu2  ;;  %v3462_v20 = vpop.f32.mrf.mxu3 }
 0x54e   :  { %v3974_v21 = vmul.f32 %v7203_v29, %v3061_v19  ;;  %v3975_v22 = vmul.f32 %v7203_v29, %v3462_v20 }
 0x54f   :  { %4996 = vst [vmem:[#allocation6 + $0x620] sm:$0xff] %v3972_v17  ;;  %6397 = vmatmul.msk.f32.gmra.mxu0 %vm181_vm0, %v6913_v14  ;;  %6525 = vmatmul.msk.f32.gmra.mxu1 %vm181_vm0, %v6913_v14  ;;  %v6920_v14 = vld [vmem:[%s9911_s1 + $0x178] sm:$0xff] }
 0x550   :  { %4997 = vst [vmem:[#allocation6 + $0x628] sm:$0xff] %v3973_v18 }
 0x551   :  { %4998 = vst [vmem:[#allocation6 + $0x630] sm:$0xff] %v3974_v21 }
 0x552   :  { %4999 = vst [vmem:[#allocation6 + $0x638] sm:$0xff] %v3975_v22  ;;  %6654 = vmatmul.msk.f32.gmra.mxu2 %vm181_vm0, %v6914_v23  ;;  %6782 = vmatmul.msk.f32.gmra.mxu3 %vm181_vm0, %v6914_v23 }
 0x554   :  { %v2262_v24 = vpop.f32.mrf.mxu0  ;;  %v2663_v25 = vpop.f32.mrf.mxu1 }
 0x555   :  { %v3980_v26 = vmul.f32 %v7203_v29, %v2262_v24  ;;  %v3981_v27 = vmul.f32 %v7203_v29, %v2663_v25  ;;  %v3064_v28 = vpop.f32.mrf.mxu2  ;;  %v3465_v30 = vpop.f32.mrf.mxu3 }
 0x556   :  { %v3982_v31 = vmul.f32 %v7203_v29, %v3064_v28  ;;  %v3983_v32 = vmul.f32 %v7203_v29, %v3465_v30 }
 0x557   :  { %5004 = vst [vmem:[#allocation6 + $0x660] sm:$0xff] %v3980_v26  ;;  %6398 = vmatmul.msk.f32.gmra.mxu0 %vm181_vm0, %v6914_v23  ;;  %6526 = vmatmul.msk.f32.gmra.mxu1 %vm181_vm0, %v6914_v23  ;;  %v6921_v23 = vld [vmem:[%s9911_s1 + $0x180] sm:$0xff] }
 0x558   :  { %5005 = vst [vmem:[#allocation6 + $0x668] sm:$0xff] %v3981_v27 }
 0x559   :  { %5006 = vst [vmem:[#allocation6 + $0x670] sm:$0xff] %v3982_v31 }
 0x55a   :  { %5007 = vst [vmem:[#allocation6 + $0x678] sm:$0xff] %v3983_v32  ;;  %6655 = vmatmul.msk.f32.gmra.mxu2 %vm181_vm0, %v6915_v33  ;;  %6783 = vmatmul.msk.f32.gmra.mxu3 %vm181_vm0, %v6915_v33 }
 0x55c   :  { %v2265_v34 = vpop.f32.mrf.mxu0  ;;  %v2666_v35 = vpop.f32.mrf.mxu1 }
 0x55d   :  { %v3988_v36 = vmul.f32 %v7203_v29, %v2265_v34  ;;  %v3989_v37 = vmul.f32 %v7203_v29, %v2666_v35  ;;  %v3067_v38 = vpop.f32.mrf.mxu2  ;;  %v3468_v39 = vpop.f32.mrf.mxu3 }
 0x55e   :  { %v3990_v40 = vmul.f32 %v7203_v29, %v3067_v38  ;;  %v3991_v41 = vmul.f32 %v7203_v29, %v3468_v39 }
 0x55f   :  { %5012 = vst [vmem:[#allocation6 + $0x6a0] sm:$0xff] %v3988_v36  ;;  %6399 = vmatmul.msk.f32.gmra.mxu0 %vm181_vm0, %v6915_v33  ;;  %6527 = vmatmul.msk.f32.gmra.mxu1 %vm181_vm0, %v6915_v33  ;;  %v6922_v33 = vld [vmem:[%s9911_s1 + $0x188] sm:$0xff] }
 0x560   :  { %5013 = vst [vmem:[#allocation6 + $0x6a8] sm:$0xff] %v3989_v37 }
 0x561   :  { %5014 = vst [vmem:[#allocation6 + $0x6b0] sm:$0xff] %v3990_v40 }
 0x562   :  { %5015 = vst [vmem:[#allocation6 + $0x6b8] sm:$0xff] %v3991_v41  ;;  %6656 = vmatmul.msk.f32.gmra.mxu2 %vm181_vm0, %v6916_v42  ;;  %6784 = vmatmul.msk.f32.gmra.mxu3 %vm181_vm0, %v6916_v42 }
 0x564   :  { %v2268_v43 = vpop.f32.mrf.mxu0  ;;  %v2669_v44 = vpop.f32.mrf.mxu1 }
 0x565   :  { %v3996_v45 = vmul.f32 %v7203_v29, %v2268_v43  ;;  %v3997_v46 = vmul.f32 %v7203_v29, %v2669_v44  ;;  %v3070_v47 = vpop.f32.mrf.mxu2  ;;  %v3471_v48 = vpop.f32.mrf.mxu3 }
 0x566   :  { %v3998_v49 = vmul.f32 %v7203_v29, %v3070_v47  ;;  %v3999_v50 = vmul.f32 %v7203_v29, %v3471_v48 }
 0x567   :  { %5020 = vst [vmem:[#allocation6 + $0x6e0] sm:$0xff] %v3996_v45  ;;  %6400 = vmatmul.msk.f32.gmra.mxu0 %vm181_vm0, %v6916_v42  ;;  %6528 = vmatmul.msk.f32.gmra.mxu1 %vm181_vm0, %v6916_v42  ;;  %v6923_v42 = vld [vmem:[%s9911_s1 + $0x190] sm:$0xff] }
 0x568   :  { %5021 = vst [vmem:[#allocation6 + $0x6e8] sm:$0xff] %v3997_v46 }
 0x569   :  { %5022 = vst [vmem:[#allocation6 + $0x6f0] sm:$0xff] %v3998_v49 }
 0x56a   :  { %5023 = vst [vmem:[#allocation6 + $0x6f8] sm:$0xff] %v3999_v50  ;;  %6657 = vmatmul.msk.f32.gmra.mxu2 %vm181_vm0, %v6917_v51  ;;  %6785 = vmatmul.msk.f32.gmra.mxu3 %vm181_vm0, %v6917_v51 }
 0x56c   :  { %v2271_v52 = vpop.f32.mrf.mxu0  ;;  %v2672_v53 = vpop.f32.mrf.mxu1 }
 0x56d   :  { %v4004_v54 = vmul.f32 %v7203_v29, %v2271_v52  ;;  %v4005_v55 = vmul.f32 %v7203_v29, %v2672_v53  ;;  %v3073_v56 = vpop.f32.mrf.mxu2  ;;  %v3474_v57 = vpop.f32.mrf.mxu3 }
 0x56e   :  { %v4006_v58 = vmul.f32 %v7203_v29, %v3073_v56  ;;  %v4007_v59 = vmul.f32 %v7203_v29, %v3474_v57 }
 0x56f   :  { %5028 = vst [vmem:[#allocation6 + $0x720] sm:$0xff] %v4004_v54  ;;  %6401 = vmatmul.msk.f32.gmra.mxu0 %vm181_vm0, %v6917_v51  ;;  %6529 = vmatmul.msk.f32.gmra.mxu1 %vm181_vm0, %v6917_v51  ;;  %v6924_v51 = vld [vmem:[%s9911_s1 + $0x198] sm:$0xff] }
 0x570   :  { %5029 = vst [vmem:[#allocation6 + $0x728] sm:$0xff] %v4005_v55 }
 0x571   :  { %5030 = vst [vmem:[#allocation6 + $0x730] sm:$0xff] %v4006_v58 }
 0x572   :  { %5031 = vst [vmem:[#allocation6 + $0x738] sm:$0xff] %v4007_v59  ;;  %6658 = vmatmul.msk.f32.gmra.mxu2 %vm181_vm0, %v6918_v60  ;;  %6786 = vmatmul.msk.f32.gmra.mxu3 %vm181_vm0, %v6918_v60 }
 0x574   :  { %v2274_v61 = vpop.f32.mrf.mxu0  ;;  %v2675_v62 = vpop.f32.mrf.mxu1 }
 0x575   :  { %v4012_v63 = vmul.f32 %v7203_v29, %v2274_v61  ;;  %v4013_v0 = vmul.f32 %v7203_v29, %v2675_v62  ;;  %v3076_v1 = vpop.f32.mrf.mxu2  ;;  %v3477_v2 = vpop.f32.mrf.mxu3 }
 0x576   :  { %v4014_v3 = vmul.f32 %v7203_v29, %v3076_v1  ;;  %v4015_v4 = vmul.f32 %v7203_v29, %v3477_v2 }
 0x577   :  { %5036 = vst [vmem:[#allocation6 + $0x760] sm:$0xff] %v4012_v63  ;;  %6402 = vmatmul.msk.f32.gmra.mxu0 %vm181_vm0, %v6918_v60  ;;  %6530 = vmatmul.msk.f32.gmra.mxu1 %vm181_vm0, %v6918_v60  ;;  %v6925_v60 = vld [vmem:[%s9911_s1 + $0x1a0] sm:$0xff] }
 0x578   :  { %5037 = vst [vmem:[#allocation6 + $0x768] sm:$0xff] %v4013_v0 }
 0x579   :  { %5038 = vst [vmem:[#allocation6 + $0x770] sm:$0xff] %v4014_v3 }
 0x57a   :  { %5039 = vst [vmem:[#allocation6 + $0x778] sm:$0xff] %v4015_v4  ;;  %6659 = vmatmul.msk.f32.gmra.mxu2 %vm181_vm0, %v6919_v5  ;;  %6787 = vmatmul.msk.f32.gmra.mxu3 %vm181_vm0, %v6919_v5 }
 0x57c   :  { %v2277_v6 = vpop.f32.mrf.mxu0  ;;  %v2678_v7 = vpop.f32.mrf.mxu1 }
 0x57d   :  { %v4020_v8 = vmul.f32 %v7203_v29, %v2277_v6  ;;  %v4021_v9 = vmul.f32 %v7203_v29, %v2678_v7  ;;  %v3079_v10 = vpop.f32.mrf.mxu2  ;;  %v3480_v11 = vpop.f32.mrf.mxu3 }
 0x57e   :  { %v4022_v12 = vmul.f32 %v7203_v29, %v3079_v10  ;;  %v4023_v13 = vmul.f32 %v7203_v29, %v3480_v11 }
 0x57f   :  { %5044 = vst [vmem:[#allocation6 + $0x7a0] sm:$0xff] %v4020_v8  ;;  %6403 = vmatmul.msk.f32.gmra.mxu0 %vm181_vm0, %v6919_v5  ;;  %6531 = vmatmul.msk.f32.gmra.mxu1 %vm181_vm0, %v6919_v5  ;;  %v6926_v5 = vld [vmem:[%s9911_s1 + $0x1a8] sm:$0xff] }
 0x580   :  { %5045 = vst [vmem:[#allocation6 + $0x7a8] sm:$0xff] %v4021_v9 }
 0x581   :  { %5046 = vst [vmem:[#allocation6 + $0x7b0] sm:$0xff] %v4022_v12 }
 0x582   :  { %5047 = vst [vmem:[#allocation6 + $0x7b8] sm:$0xff] %v4023_v13  ;;  %6660 = vmatmul.msk.f32.gmra.mxu2 %vm181_vm0, %v6920_v14  ;;  %6788 = vmatmul.msk.f32.gmra.mxu3 %vm181_vm0, %v6920_v14 }
 0x584   :  { %v2280_v15 = vpop.f32.mrf.mxu0  ;;  %v2681_v16 = vpop.f32.mrf.mxu1 }
 0x585   :  { %v4028_v17 = vmul.f32 %v7203_v29, %v2280_v15  ;;  %v4029_v18 = vmul.f32 %v7203_v29, %v2681_v16  ;;  %v3082_v19 = vpop.f32.mrf.mxu2  ;;  %v3483_v20 = vpop.f32.mrf.mxu3 }
 0x586   :  { %v4030_v21 = vmul.f32 %v7203_v29, %v3082_v19  ;;  %v4031_v22 = vmul.f32 %v7203_v29, %v3483_v20 }
 0x587   :  { %5052 = vst [vmem:[#allocation6 + $0x7e0] sm:$0xff] %v4028_v17  ;;  %6404 = vmatmul.msk.f32.gmra.mxu0 %vm181_vm0, %v6920_v14  ;;  %6532 = vmatmul.msk.f32.gmra.mxu1 %vm181_vm0, %v6920_v14  ;;  %v6927_v14 = vld [vmem:[%s9911_s1 + $0x1b0] sm:$0xff] }
 0x588   :  { %5053 = vst [vmem:[#allocation6 + $0x7e8] sm:$0xff] %v4029_v18 }
 0x589   :  { %5054 = vst [vmem:[#allocation6 + $0x7f0] sm:$0xff] %v4030_v21 }
 0x58a   :  { %5055 = vst [vmem:[#allocation6 + $0x7f8] sm:$0xff] %v4031_v22  ;;  %6661 = vmatmul.msk.f32.gmra.mxu2 %vm181_vm0, %v6921_v23  ;;  %6789 = vmatmul.msk.f32.gmra.mxu3 %vm181_vm0, %v6921_v23 }
 0x58c   :  { %v2283_v24 = vpop.f32.mrf.mxu0  ;;  %v2684_v25 = vpop.f32.mrf.mxu1 }
 0x58d   :  { %v4036_v26 = vmul.f32 %v7203_v29, %v2283_v24  ;;  %v4037_v27 = vmul.f32 %v7203_v29, %v2684_v25  ;;  %v3085_v28 = vpop.f32.mrf.mxu2  ;;  %v3486_v30 = vpop.f32.mrf.mxu3 }
 0x58e   :  { %v4038_v31 = vmul.f32 %v7203_v29, %v3085_v28  ;;  %v4039_v32 = vmul.f32 %v7203_v29, %v3486_v30 }
 0x58f   :  { %5060 = vst [vmem:[#allocation6 + $0x820] sm:$0xff] %v4036_v26  ;;  %6405 = vmatmul.msk.f32.gmra.mxu0 %vm181_vm0, %v6921_v23  ;;  %6533 = vmatmul.msk.f32.gmra.mxu1 %vm181_vm0, %v6921_v23  ;;  %v6928_v23 = vld [vmem:[%s9911_s1 + $0x1b8] sm:$0xff] }
 0x590   :  { %5061 = vst [vmem:[#allocation6 + $0x828] sm:$0xff] %v4037_v27 }
 0x591   :  { %5062 = vst [vmem:[#allocation6 + $0x830] sm:$0xff] %v4038_v31 }
 0x592   :  { %5063 = vst [vmem:[#allocation6 + $0x838] sm:$0xff] %v4039_v32  ;;  %6662 = vmatmul.msk.f32.gmra.mxu2 %vm181_vm0, %v6922_v33  ;;  %6790 = vmatmul.msk.f32.gmra.mxu3 %vm181_vm0, %v6922_v33 }
 0x594   :  { %v2286_v34 = vpop.f32.mrf.mxu0  ;;  %v2687_v35 = vpop.f32.mrf.mxu1 }
 0x595   :  { %v4044_v36 = vmul.f32 %v7203_v29, %v2286_v34  ;;  %v4045_v37 = vmul.f32 %v7203_v29, %v2687_v35  ;;  %v3088_v38 = vpop.f32.mrf.mxu2  ;;  %v3489_v39 = vpop.f32.mrf.mxu3 }
 0x596   :  { %v4046_v40 = vmul.f32 %v7203_v29, %v3088_v38  ;;  %v4047_v41 = vmul.f32 %v7203_v29, %v3489_v39 }
 0x597   :  { %5068 = vst [vmem:[#allocation6 + $0x860] sm:$0xff] %v4044_v36  ;;  %6406 = vmatmul.msk.f32.gmra.mxu0 %vm181_vm0, %v6922_v33  ;;  %6534 = vmatmul.msk.f32.gmra.mxu1 %vm181_vm0, %v6922_v33  ;;  %v6929_v33 = vld [vmem:[%s9911_s1 + $0x1c0] sm:$0xff] }
 0x598   :  { %5069 = vst [vmem:[#allocation6 + $0x868] sm:$0xff] %v4045_v37 }
 0x599   :  { %5070 = vst [vmem:[#allocation6 + $0x870] sm:$0xff] %v4046_v40 }
 0x59a   :  { %5071 = vst [vmem:[#allocation6 + $0x878] sm:$0xff] %v4047_v41  ;;  %6663 = vmatmul.msk.f32.gmra.mxu2 %vm181_vm0, %v6923_v42  ;;  %6791 = vmatmul.msk.f32.gmra.mxu3 %vm181_vm0, %v6923_v42 }
 0x59c   :  { %v2289_v43 = vpop.f32.mrf.mxu0  ;;  %v2690_v44 = vpop.f32.mrf.mxu1 }
 0x59d   :  { %v4052_v45 = vmul.f32 %v7203_v29, %v2289_v43  ;;  %v4053_v46 = vmul.f32 %v7203_v29, %v2690_v44  ;;  %v3091_v47 = vpop.f32.mrf.mxu2  ;;  %v3492_v48 = vpop.f32.mrf.mxu3 }
 0x59e   :  { %v4054_v49 = vmul.f32 %v7203_v29, %v3091_v47  ;;  %v4055_v50 = vmul.f32 %v7203_v29, %v3492_v48 }
 0x59f   :  { %5076 = vst [vmem:[#allocation6 + $0x8a0] sm:$0xff] %v4052_v45  ;;  %6407 = vmatmul.msk.f32.gmra.mxu0 %vm181_vm0, %v6923_v42  ;;  %6535 = vmatmul.msk.f32.gmra.mxu1 %vm181_vm0, %v6923_v42  ;;  %v6930_v42 = vld [vmem:[%s9911_s1 + $0x1c8] sm:$0xff] }
 0x5a0   :  { %5077 = vst [vmem:[#allocation6 + $0x8a8] sm:$0xff] %v4053_v46 }
 0x5a1   :  { %5078 = vst [vmem:[#allocation6 + $0x8b0] sm:$0xff] %v4054_v49 }
 0x5a2   :  { %5079 = vst [vmem:[#allocation6 + $0x8b8] sm:$0xff] %v4055_v50  ;;  %6664 = vmatmul.msk.f32.gmra.mxu2 %vm181_vm0, %v6924_v51  ;;  %6792 = vmatmul.msk.f32.gmra.mxu3 %vm181_vm0, %v6924_v51 }
 0x5a4   :  { %v2292_v52 = vpop.f32.mrf.mxu0  ;;  %v2693_v53 = vpop.f32.mrf.mxu1 }
 0x5a5   :  { %v4060_v54 = vmul.f32 %v7203_v29, %v2292_v52  ;;  %v4061_v55 = vmul.f32 %v7203_v29, %v2693_v53  ;;  %v3094_v56 = vpop.f32.mrf.mxu2  ;;  %v3495_v57 = vpop.f32.mrf.mxu3 }
 0x5a6   :  { %v4062_v58 = vmul.f32 %v7203_v29, %v3094_v56  ;;  %v4063_v59 = vmul.f32 %v7203_v29, %v3495_v57 }
 0x5a7   :  { %5084 = vst [vmem:[#allocation6 + $0x8e0] sm:$0xff] %v4060_v54  ;;  %6408 = vmatmul.msk.f32.gmra.mxu0 %vm181_vm0, %v6924_v51  ;;  %6536 = vmatmul.msk.f32.gmra.mxu1 %vm181_vm0, %v6924_v51  ;;  %v6931_v51 = vld [vmem:[%s9911_s1 + $0x1d0] sm:$0xff] }
 0x5a8   :  { %5085 = vst [vmem:[#allocation6 + $0x8e8] sm:$0xff] %v4061_v55 }
 0x5a9   :  { %5086 = vst [vmem:[#allocation6 + $0x8f0] sm:$0xff] %v4062_v58 }
 0x5aa   :  { %5087 = vst [vmem:[#allocation6 + $0x8f8] sm:$0xff] %v4063_v59  ;;  %6665 = vmatmul.msk.f32.gmra.mxu2 %vm181_vm0, %v6925_v60  ;;  %6793 = vmatmul.msk.f32.gmra.mxu3 %vm181_vm0, %v6925_v60 }
 0x5ac   :  { %v2295_v61 = vpop.f32.mrf.mxu0  ;;  %v2696_v62 = vpop.f32.mrf.mxu1 }
 0x5ad   :  { %v4068_v63 = vmul.f32 %v7203_v29, %v2295_v61  ;;  %v4069_v0 = vmul.f32 %v7203_v29, %v2696_v62  ;;  %v3097_v1 = vpop.f32.mrf.mxu2  ;;  %v3498_v2 = vpop.f32.mrf.mxu3 }
 0x5ae   :  { %v4070_v3 = vmul.f32 %v7203_v29, %v3097_v1  ;;  %v4071_v4 = vmul.f32 %v7203_v29, %v3498_v2 }
 0x5af   :  { %5092 = vst [vmem:[#allocation6 + $0x920] sm:$0xff] %v4068_v63  ;;  %6409 = vmatmul.msk.f32.gmra.mxu0 %vm181_vm0, %v6925_v60  ;;  %6537 = vmatmul.msk.f32.gmra.mxu1 %vm181_vm0, %v6925_v60  ;;  %v6932_v60 = vld [vmem:[%s9911_s1 + $0x1d8] sm:$0xff] }
 0x5b0   :  { %5093 = vst [vmem:[#allocation6 + $0x928] sm:$0xff] %v4069_v0 }
 0x5b1   :  { %5094 = vst [vmem:[#allocation6 + $0x930] sm:$0xff] %v4070_v3 }
 0x5b2   :  { %5095 = vst [vmem:[#allocation6 + $0x938] sm:$0xff] %v4071_v4  ;;  %6666 = vmatmul.msk.f32.gmra.mxu2 %vm181_vm0, %v6926_v5  ;;  %6794 = vmatmul.msk.f32.gmra.mxu3 %vm181_vm0, %v6926_v5 }
 0x5b4   :  { %v2298_v6 = vpop.f32.mrf.mxu0  ;;  %v2699_v7 = vpop.f32.mrf.mxu1 }
 0x5b5   :  { %v4076_v8 = vmul.f32 %v7203_v29, %v2298_v6  ;;  %v4077_v9 = vmul.f32 %v7203_v29, %v2699_v7  ;;  %v3100_v10 = vpop.f32.mrf.mxu2  ;;  %v3501_v11 = vpop.f32.mrf.mxu3 }
 0x5b6   :  { %v4078_v12 = vmul.f32 %v7203_v29, %v3100_v10  ;;  %v4079_v13 = vmul.f32 %v7203_v29, %v3501_v11 }
 0x5b7   :  { %5100 = vst [vmem:[#allocation6 + $0x960] sm:$0xff] %v4076_v8  ;;  %6410 = vmatmul.msk.f32.gmra.mxu0 %vm181_vm0, %v6926_v5  ;;  %6538 = vmatmul.msk.f32.gmra.mxu1 %vm181_vm0, %v6926_v5  ;;  %v6933_v5 = vld [vmem:[%s9911_s1 + $0x1e0] sm:$0xff] }
 0x5b8   :  { %5101 = vst [vmem:[#allocation6 + $0x968] sm:$0xff] %v4077_v9 }
 0x5b9   :  { %5102 = vst [vmem:[#allocation6 + $0x970] sm:$0xff] %v4078_v12 }
 0x5ba   :  { %5103 = vst [vmem:[#allocation6 + $0x978] sm:$0xff] %v4079_v13  ;;  %6667 = vmatmul.msk.f32.gmra.mxu2 %vm181_vm0, %v6927_v14  ;;  %6795 = vmatmul.msk.f32.gmra.mxu3 %vm181_vm0, %v6927_v14 }
 0x5bc   :  { %v2301_v15 = vpop.f32.mrf.mxu0  ;;  %v2702_v16 = vpop.f32.mrf.mxu1 }
 0x5bd   :  { %v4084_v17 = vmul.f32 %v7203_v29, %v2301_v15  ;;  %v4085_v18 = vmul.f32 %v7203_v29, %v2702_v16  ;;  %v3103_v19 = vpop.f32.mrf.mxu2  ;;  %v3504_v20 = vpop.f32.mrf.mxu3 }
 0x5be   :  { %v4086_v21 = vmul.f32 %v7203_v29, %v3103_v19  ;;  %v4087_v22 = vmul.f32 %v7203_v29, %v3504_v20 }
 0x5bf   :  { %5108 = vst [vmem:[#allocation6 + $0x9a0] sm:$0xff] %v4084_v17  ;;  %6411 = vmatmul.msk.f32.gmra.mxu0 %vm181_vm0, %v6927_v14  ;;  %6539 = vmatmul.msk.f32.gmra.mxu1 %vm181_vm0, %v6927_v14  ;;  %v6934_v14 = vld [vmem:[%s9911_s1 + $0x1e8] sm:$0xff] }
 0x5c0   :  { %5109 = vst [vmem:[#allocation6 + $0x9a8] sm:$0xff] %v4085_v18 }
 0x5c1   :  { %5110 = vst [vmem:[#allocation6 + $0x9b0] sm:$0xff] %v4086_v21 }
 0x5c2   :  { %5111 = vst [vmem:[#allocation6 + $0x9b8] sm:$0xff] %v4087_v22  ;;  %6668 = vmatmul.msk.f32.gmra.mxu2 %vm181_vm0, %v6928_v23  ;;  %6796 = vmatmul.msk.f32.gmra.mxu3 %vm181_vm0, %v6928_v23 }
 0x5c4   :  { %v2304_v24 = vpop.f32.mrf.mxu0  ;;  %v2705_v25 = vpop.f32.mrf.mxu1 }
 0x5c5   :  { %v4092_v26 = vmul.f32 %v7203_v29, %v2304_v24  ;;  %v4093_v27 = vmul.f32 %v7203_v29, %v2705_v25  ;;  %v3106_v28 = vpop.f32.mrf.mxu2  ;;  %v3507_v30 = vpop.f32.mrf.mxu3 }
 0x5c6   :  { %v4094_v31 = vmul.f32 %v7203_v29, %v3106_v28  ;;  %v4095_v32 = vmul.f32 %v7203_v29, %v3507_v30 }
 0x5c7   :  { %5116 = vst [vmem:[#allocation6 + $0x9e0] sm:$0xff] %v4092_v26  ;;  %6412 = vmatmul.msk.f32.gmra.mxu0 %vm181_vm0, %v6928_v23  ;;  %6540 = vmatmul.msk.f32.gmra.mxu1 %vm181_vm0, %v6928_v23  ;;  %v6935_v23 = vld [vmem:[%s9911_s1 + $0x1f0] sm:$0xff] }
 0x5c8   :  { %5117 = vst [vmem:[#allocation6 + $0x9e8] sm:$0xff] %v4093_v27 }
 0x5c9   :  { %5118 = vst [vmem:[#allocation6 + $0x9f0] sm:$0xff] %v4094_v31 }
 0x5ca   :  { %5119 = vst [vmem:[#allocation6 + $0x9f8] sm:$0xff] %v4095_v32  ;;  %6669 = vmatmul.msk.f32.gmra.mxu2 %vm181_vm0, %v6929_v33  ;;  %6797 = vmatmul.msk.f32.gmra.mxu3 %vm181_vm0, %v6929_v33 }
 0x5cc   :  { %v2307_v34 = vpop.f32.mrf.mxu0  ;;  %v2708_v35 = vpop.f32.mrf.mxu1 }
 0x5cd   :  { %v4100_v36 = vmul.f32 %v7203_v29, %v2307_v34  ;;  %v4101_v37 = vmul.f32 %v7203_v29, %v2708_v35  ;;  %v3109_v38 = vpop.f32.mrf.mxu2  ;;  %v3510_v39 = vpop.f32.mrf.mxu3 }
 0x5ce   :  { %v4102_v40 = vmul.f32 %v7203_v29, %v3109_v38  ;;  %v4103_v41 = vmul.f32 %v7203_v29, %v3510_v39 }
 0x5cf   :  { %5124 = vst [vmem:[#allocation6 + $0xa20] sm:$0xff] %v4100_v36  ;;  %6413 = vmatmul.msk.f32.gmra.mxu0 %vm181_vm0, %v6929_v33  ;;  %6541 = vmatmul.msk.f32.gmra.mxu1 %vm181_vm0, %v6929_v33  ;;  %v6936_v33 = vld [vmem:[%s9911_s1 + $0x1f8] sm:$0xff] }
 0x5d0   :  { %5125 = vst [vmem:[#allocation6 + $0xa28] sm:$0xff] %v4101_v37 }
 0x5d1   :  { %5126 = vst [vmem:[#allocation6 + $0xa30] sm:$0xff] %v4102_v40 }
 0x5d2   :  { %5127 = vst [vmem:[#allocation6 + $0xa38] sm:$0xff] %v4103_v41  ;;  %6670 = vmatmul.msk.f32.gmra.mxu2 %vm181_vm0, %v6930_v42  ;;  %6798 = vmatmul.msk.f32.gmra.mxu3 %vm181_vm0, %v6930_v42 }
 0x5d4   :  { %v2310_v43 = vpop.f32.mrf.mxu0  ;;  %v2711_v44 = vpop.f32.mrf.mxu1 }
 0x5d5   :  { %v4108_v45 = vmul.f32 %v7203_v29, %v2310_v43  ;;  %v4109_v46 = vmul.f32 %v7203_v29, %v2711_v44  ;;  %v3112_v47 = vpop.f32.mrf.mxu2  ;;  %v3513_v48 = vpop.f32.mrf.mxu3 }
 0x5d6   :  { %v4110_v49 = vmul.f32 %v7203_v29, %v3112_v47  ;;  %v4111_v50 = vmul.f32 %v7203_v29, %v3513_v48 }
 0x5d7   :  { %5132 = vst [vmem:[#allocation6 + $0xa60] sm:$0xff] %v4108_v45  ;;  %6414 = vmatmul.msk.f32.gmra.mxu0 %vm181_vm0, %v6930_v42  ;;  %6542 = vmatmul.msk.f32.gmra.mxu1 %vm181_vm0, %v6930_v42  ;;  %v6937_v42 = vld [vmem:[%s9911_s1 + $0x200] sm:$0xff] }
 0x5d8   :  { %5133 = vst [vmem:[#allocation6 + $0xa68] sm:$0xff] %v4109_v46 }
 0x5d9   :  { %5134 = vst [vmem:[#allocation6 + $0xa70] sm:$0xff] %v4110_v49 }
 0x5da   :  { %5135 = vst [vmem:[#allocation6 + $0xa78] sm:$0xff] %v4111_v50  ;;  %6671 = vmatmul.msk.f32.gmra.mxu2 %vm181_vm0, %v6931_v51  ;;  %6799 = vmatmul.msk.f32.gmra.mxu3 %vm181_vm0, %v6931_v51 }
 0x5dc   :  { %v2313_v52 = vpop.f32.mrf.mxu0  ;;  %v2714_v53 = vpop.f32.mrf.mxu1 }
 0x5dd   :  { %v4116_v54 = vmul.f32 %v7203_v29, %v2313_v52  ;;  %v4117_v55 = vmul.f32 %v7203_v29, %v2714_v53  ;;  %v3115_v56 = vpop.f32.mrf.mxu2  ;;  %v3516_v57 = vpop.f32.mrf.mxu3 }
 0x5de   :  { %v4118_v58 = vmul.f32 %v7203_v29, %v3115_v56  ;;  %v4119_v59 = vmul.f32 %v7203_v29, %v3516_v57 }
 0x5df   :  { %5140 = vst [vmem:[#allocation6 + $0xaa0] sm:$0xff] %v4116_v54  ;;  %6415 = vmatmul.msk.f32.gmra.mxu0 %vm181_vm0, %v6931_v51  ;;  %6543 = vmatmul.msk.f32.gmra.mxu1 %vm181_vm0, %v6931_v51  ;;  %v6938_v51 = vld [vmem:[%s9911_s1 + $0x208] sm:$0xff] }
 0x5e0   :  { %5141 = vst [vmem:[#allocation6 + $0xaa8] sm:$0xff] %v4117_v55 }
 0x5e1   :  { %5142 = vst [vmem:[#allocation6 + $0xab0] sm:$0xff] %v4118_v58 }
 0x5e2   :  { %5143 = vst [vmem:[#allocation6 + $0xab8] sm:$0xff] %v4119_v59  ;;  %6672 = vmatmul.msk.f32.gmra.mxu2 %vm181_vm0, %v6932_v60  ;;  %6800 = vmatmul.msk.f32.gmra.mxu3 %vm181_vm0, %v6932_v60 }
 0x5e4   :  { %v2316_v61 = vpop.f32.mrf.mxu0  ;;  %v2717_v62 = vpop.f32.mrf.mxu1 }
 0x5e5   :  { %v4124_v63 = vmul.f32 %v7203_v29, %v2316_v61  ;;  %v4125_v0 = vmul.f32 %v7203_v29, %v2717_v62  ;;  %v3118_v1 = vpop.f32.mrf.mxu2  ;;  %v3519_v2 = vpop.f32.mrf.mxu3 }
 0x5e6   :  { %v4126_v3 = vmul.f32 %v7203_v29, %v3118_v1  ;;  %v4127_v4 = vmul.f32 %v7203_v29, %v3519_v2 }
 0x5e7   :  { %5148 = vst [vmem:[#allocation6 + $0xae0] sm:$0xff] %v4124_v63  ;;  %6416 = vmatmul.msk.f32.gmra.mxu0 %vm181_vm0, %v6932_v60  ;;  %6544 = vmatmul.msk.f32.gmra.mxu1 %vm181_vm0, %v6932_v60  ;;  %v6939_v60 = vld [vmem:[%s9911_s1 + $0x210] sm:$0xff] }
 0x5e8   :  { %5149 = vst [vmem:[#allocation6 + $0xae8] sm:$0xff] %v4125_v0 }
 0x5e9   :  { %5150 = vst [vmem:[#allocation6 + $0xaf0] sm:$0xff] %v4126_v3 }
 0x5ea   :  { %5151 = vst [vmem:[#allocation6 + $0xaf8] sm:$0xff] %v4127_v4  ;;  %6673 = vmatmul.msk.f32.gmra.mxu2 %vm181_vm0, %v6933_v5  ;;  %6801 = vmatmul.msk.f32.gmra.mxu3 %vm181_vm0, %v6933_v5 }
 0x5ec   :  { %v2319_v6 = vpop.f32.mrf.mxu0  ;;  %v2720_v7 = vpop.f32.mrf.mxu1 }
 0x5ed   :  { %v4132_v8 = vmul.f32 %v7203_v29, %v2319_v6  ;;  %v4133_v9 = vmul.f32 %v7203_v29, %v2720_v7  ;;  %v3121_v10 = vpop.f32.mrf.mxu2  ;;  %v3522_v11 = vpop.f32.mrf.mxu3 }
 0x5ee   :  { %v4134_v12 = vmul.f32 %v7203_v29, %v3121_v10  ;;  %v4135_v13 = vmul.f32 %v7203_v29, %v3522_v11 }
 0x5ef   :  { %5156 = vst [vmem:[#allocation6 + $0xb20] sm:$0xff] %v4132_v8  ;;  %6417 = vmatmul.msk.f32.gmra.mxu0 %vm181_vm0, %v6933_v5  ;;  %6545 = vmatmul.msk.f32.gmra.mxu1 %vm181_vm0, %v6933_v5  ;;  %v6940_v5 = vld [vmem:[%s9911_s1 + $0x218] sm:$0xff] }
 0x5f0   :  { %5157 = vst [vmem:[#allocation6 + $0xb28] sm:$0xff] %v4133_v9 }
 0x5f1   :  { %5158 = vst [vmem:[#allocation6 + $0xb30] sm:$0xff] %v4134_v12 }
 0x5f2   :  { %5159 = vst [vmem:[#allocation6 + $0xb38] sm:$0xff] %v4135_v13  ;;  %6674 = vmatmul.msk.f32.gmra.mxu2 %vm181_vm0, %v6934_v14  ;;  %6802 = vmatmul.msk.f32.gmra.mxu3 %vm181_vm0, %v6934_v14 }
 0x5f4   :  { %v2322_v15 = vpop.f32.mrf.mxu0  ;;  %v2723_v16 = vpop.f32.mrf.mxu1 }
 0x5f5   :  { %v4140_v17 = vmul.f32 %v7203_v29, %v2322_v15  ;;  %v4141_v18 = vmul.f32 %v7203_v29, %v2723_v16  ;;  %v3124_v19 = vpop.f32.mrf.mxu2  ;;  %v3525_v20 = vpop.f32.mrf.mxu3 }
 0x5f6   :  { %v4142_v21 = vmul.f32 %v7203_v29, %v3124_v19  ;;  %v4143_v22 = vmul.f32 %v7203_v29, %v3525_v20 }
 0x5f7   :  { %5164 = vst [vmem:[#allocation6 + $0xb60] sm:$0xff] %v4140_v17  ;;  %6418 = vmatmul.msk.f32.gmra.mxu0 %vm181_vm0, %v6934_v14  ;;  %6546 = vmatmul.msk.f32.gmra.mxu1 %vm181_vm0, %v6934_v14  ;;  %v6941_v14 = vld [vmem:[%s9911_s1 + $0x220] sm:$0xff] }
 0x5f8   :  { %5165 = vst [vmem:[#allocation6 + $0xb68] sm:$0xff] %v4141_v18 }
 0x5f9   :  { %5166 = vst [vmem:[#allocation6 + $0xb70] sm:$0xff] %v4142_v21 }
 0x5fa   :  { %5167 = vst [vmem:[#allocation6 + $0xb78] sm:$0xff] %v4143_v22  ;;  %6675 = vmatmul.msk.f32.gmra.mxu2 %vm181_vm0, %v6935_v23  ;;  %6803 = vmatmul.msk.f32.gmra.mxu3 %vm181_vm0, %v6935_v23 }
 0x5fc   :  { %v2325_v24 = vpop.f32.mrf.mxu0  ;;  %v2726_v25 = vpop.f32.mrf.mxu1 }
 0x5fd   :  { %v4148_v26 = vmul.f32 %v7203_v29, %v2325_v24  ;;  %v4149_v27 = vmul.f32 %v7203_v29, %v2726_v25  ;;  %v3127_v28 = vpop.f32.mrf.mxu2  ;;  %v3528_v30 = vpop.f32.mrf.mxu3 }
 0x5fe   :  { %v4150_v31 = vmul.f32 %v7203_v29, %v3127_v28  ;;  %v4151_v32 = vmul.f32 %v7203_v29, %v3528_v30 }
 0x5ff   :  { %5172 = vst [vmem:[#allocation6 + $0xba0] sm:$0xff] %v4148_v26  ;;  %6419 = vmatmul.msk.f32.gmra.mxu0 %vm181_vm0, %v6935_v23  ;;  %6547 = vmatmul.msk.f32.gmra.mxu1 %vm181_vm0, %v6935_v23  ;;  %v6942_v23 = vld [vmem:[%s9911_s1 + $0x228] sm:$0xff] }
 0x600   :  { %5173 = vst [vmem:[#allocation6 + $0xba8] sm:$0xff] %v4149_v27 }
 0x601   :  { %5174 = vst [vmem:[#allocation6 + $0xbb0] sm:$0xff] %v4150_v31 }
 0x602   :  { %5175 = vst [vmem:[#allocation6 + $0xbb8] sm:$0xff] %v4151_v32  ;;  %6676 = vmatmul.msk.f32.gmra.mxu2 %vm181_vm0, %v6936_v33  ;;  %6804 = vmatmul.msk.f32.gmra.mxu3 %vm181_vm0, %v6936_v33 }
 0x604   :  { %v2328_v34 = vpop.f32.mrf.mxu0  ;;  %v2729_v35 = vpop.f32.mrf.mxu1 }
 0x605   :  { %v4156_v36 = vmul.f32 %v7203_v29, %v2328_v34  ;;  %v4157_v37 = vmul.f32 %v7203_v29, %v2729_v35  ;;  %v3130_v38 = vpop.f32.mrf.mxu2  ;;  %v3531_v39 = vpop.f32.mrf.mxu3 }
 0x606   :  { %v4158_v40 = vmul.f32 %v7203_v29, %v3130_v38  ;;  %v4159_v41 = vmul.f32 %v7203_v29, %v3531_v39 }
 0x607   :  { %5180 = vst [vmem:[#allocation6 + $0xbe0] sm:$0xff] %v4156_v36  ;;  %6420 = vmatmul.msk.f32.gmra.mxu0 %vm181_vm0, %v6936_v33  ;;  %6548 = vmatmul.msk.f32.gmra.mxu1 %vm181_vm0, %v6936_v33  ;;  %v6943_v33 = vld [vmem:[%s9911_s1 + $0x230] sm:$0xff] }
 0x608   :  { %5181 = vst [vmem:[#allocation6 + $0xbe8] sm:$0xff] %v4157_v37 }
 0x609   :  { %5182 = vst [vmem:[#allocation6 + $0xbf0] sm:$0xff] %v4158_v40 }
 0x60a   :  { %5183 = vst [vmem:[#allocation6 + $0xbf8] sm:$0xff] %v4159_v41  ;;  %6677 = vmatmul.msk.f32.gmra.mxu2 %vm181_vm0, %v6937_v42  ;;  %6805 = vmatmul.msk.f32.gmra.mxu3 %vm181_vm0, %v6937_v42 }
 0x60c   :  { %v2331_v43 = vpop.f32.mrf.mxu0  ;;  %v2732_v44 = vpop.f32.mrf.mxu1 }
 0x60d   :  { %v4164_v45 = vmul.f32 %v7203_v29, %v2331_v43  ;;  %v4165_v46 = vmul.f32 %v7203_v29, %v2732_v44  ;;  %v3133_v47 = vpop.f32.mrf.mxu2  ;;  %v3534_v48 = vpop.f32.mrf.mxu3 }
 0x60e   :  { %v4166_v49 = vmul.f32 %v7203_v29, %v3133_v47  ;;  %v4167_v50 = vmul.f32 %v7203_v29, %v3534_v48 }
 0x60f   :  { %5188 = vst [vmem:[#allocation6 + $0xc20] sm:$0xff] %v4164_v45  ;;  %6421 = vmatmul.msk.f32.gmra.mxu0 %vm181_vm0, %v6937_v42  ;;  %6549 = vmatmul.msk.f32.gmra.mxu1 %vm181_vm0, %v6937_v42  ;;  %v6944_v42 = vld [vmem:[%s9911_s1 + $0x238] sm:$0xff] }
 0x610   :  { %5189 = vst [vmem:[#allocation6 + $0xc28] sm:$0xff] %v4165_v46 }
 0x611   :  { %5190 = vst [vmem:[#allocation6 + $0xc30] sm:$0xff] %v4166_v49 }
 0x612   :  { %5191 = vst [vmem:[#allocation6 + $0xc38] sm:$0xff] %v4167_v50  ;;  %6678 = vmatmul.msk.f32.gmra.mxu2 %vm181_vm0, %v6938_v51  ;;  %6806 = vmatmul.msk.f32.gmra.mxu3 %vm181_vm0, %v6938_v51 }
 0x614   :  { %v2334_v52 = vpop.f32.mrf.mxu0  ;;  %v2735_v53 = vpop.f32.mrf.mxu1 }
 0x615   :  { %v4172_v54 = vmul.f32 %v7203_v29, %v2334_v52  ;;  %v4173_v55 = vmul.f32 %v7203_v29, %v2735_v53  ;;  %v3136_v56 = vpop.f32.mrf.mxu2  ;;  %v3537_v57 = vpop.f32.mrf.mxu3 }
 0x616   :  { %v4174_v58 = vmul.f32 %v7203_v29, %v3136_v56  ;;  %v4175_v59 = vmul.f32 %v7203_v29, %v3537_v57 }
 0x617   :  { %5196 = vst [vmem:[#allocation6 + $0xc60] sm:$0xff] %v4172_v54  ;;  %6422 = vmatmul.msk.f32.gmra.mxu0 %vm181_vm0, %v6938_v51  ;;  %6550 = vmatmul.msk.f32.gmra.mxu1 %vm181_vm0, %v6938_v51  ;;  %v6945_v51 = vld [vmem:[%s9911_s1 + $0x240] sm:$0xff] }
 0x618   :  { %5197 = vst [vmem:[#allocation6 + $0xc68] sm:$0xff] %v4173_v55 }
 0x619   :  { %5198 = vst [vmem:[#allocation6 + $0xc70] sm:$0xff] %v4174_v58 }
 0x61a   :  { %5199 = vst [vmem:[#allocation6 + $0xc78] sm:$0xff] %v4175_v59  ;;  %6679 = vmatmul.msk.f32.gmra.mxu2 %vm181_vm0, %v6939_v60  ;;  %6807 = vmatmul.msk.f32.gmra.mxu3 %vm181_vm0, %v6939_v60 }
 0x61c   :  { %v2337_v61 = vpop.f32.mrf.mxu0  ;;  %v2738_v62 = vpop.f32.mrf.mxu1 }
 0x61d   :  { %v4180_v63 = vmul.f32 %v7203_v29, %v2337_v61  ;;  %v4181_v0 = vmul.f32 %v7203_v29, %v2738_v62  ;;  %v3139_v1 = vpop.f32.mrf.mxu2  ;;  %v3540_v2 = vpop.f32.mrf.mxu3 }
 0x61e   :  { %v4182_v3 = vmul.f32 %v7203_v29, %v3139_v1  ;;  %v4183_v4 = vmul.f32 %v7203_v29, %v3540_v2 }
 0x61f   :  { %5204 = vst [vmem:[#allocation6 + $0xca0] sm:$0xff] %v4180_v63  ;;  %6423 = vmatmul.msk.f32.gmra.mxu0 %vm181_vm0, %v6939_v60  ;;  %6551 = vmatmul.msk.f32.gmra.mxu1 %vm181_vm0, %v6939_v60  ;;  %v6946_v60 = vld [vmem:[%s9911_s1 + $0x248] sm:$0xff] }
 0x620   :  { %5205 = vst [vmem:[#allocation6 + $0xca8] sm:$0xff] %v4181_v0 }
 0x621   :  { %5206 = vst [vmem:[#allocation6 + $0xcb0] sm:$0xff] %v4182_v3 }
 0x622   :  { %5207 = vst [vmem:[#allocation6 + $0xcb8] sm:$0xff] %v4183_v4  ;;  %6680 = vmatmul.msk.f32.gmra.mxu2 %vm181_vm0, %v6940_v5  ;;  %6808 = vmatmul.msk.f32.gmra.mxu3 %vm181_vm0, %v6940_v5 }
 0x624   :  { %v2340_v6 = vpop.f32.mrf.mxu0  ;;  %v2741_v7 = vpop.f32.mrf.mxu1 }
 0x625   :  { %v4188_v8 = vmul.f32 %v7203_v29, %v2340_v6  ;;  %v4189_v9 = vmul.f32 %v7203_v29, %v2741_v7  ;;  %v3142_v10 = vpop.f32.mrf.mxu2  ;;  %v3543_v11 = vpop.f32.mrf.mxu3 }
 0x626   :  { %v4190_v12 = vmul.f32 %v7203_v29, %v3142_v10  ;;  %v4191_v13 = vmul.f32 %v7203_v29, %v3543_v11 }
 0x627   :  { %5212 = vst [vmem:[#allocation6 + $0xce0] sm:$0xff] %v4188_v8  ;;  %6424 = vmatmul.msk.f32.gmra.mxu0 %vm181_vm0, %v6940_v5  ;;  %6552 = vmatmul.msk.f32.gmra.mxu1 %vm181_vm0, %v6940_v5  ;;  %v6947_v5 = vld [vmem:[%s9911_s1 + $0x250] sm:$0xff] }
 0x628   :  { %5213 = vst [vmem:[#allocation6 + $0xce8] sm:$0xff] %v4189_v9 }
 0x629   :  { %5214 = vst [vmem:[#allocation6 + $0xcf0] sm:$0xff] %v4190_v12 }
 0x62a   :  { %5215 = vst [vmem:[#allocation6 + $0xcf8] sm:$0xff] %v4191_v13  ;;  %6681 = vmatmul.msk.f32.gmra.mxu2 %vm181_vm0, %v6941_v14  ;;  %6809 = vmatmul.msk.f32.gmra.mxu3 %vm181_vm0, %v6941_v14 }
 0x62c   :  { %v2343_v15 = vpop.f32.mrf.mxu0  ;;  %v2744_v16 = vpop.f32.mrf.mxu1 }
 0x62d   :  { %v4196_v17 = vmul.f32 %v7203_v29, %v2343_v15  ;;  %v4197_v18 = vmul.f32 %v7203_v29, %v2744_v16  ;;  %v3145_v19 = vpop.f32.mrf.mxu2  ;;  %v3546_v20 = vpop.f32.mrf.mxu3 }
 0x62e   :  { %v4198_v21 = vmul.f32 %v7203_v29, %v3145_v19  ;;  %v4199_v22 = vmul.f32 %v7203_v29, %v3546_v20 }
 0x62f   :  { %5220 = vst [vmem:[#allocation6 + $0xd20] sm:$0xff] %v4196_v17  ;;  %6425 = vmatmul.msk.f32.gmra.mxu0 %vm181_vm0, %v6941_v14  ;;  %6553 = vmatmul.msk.f32.gmra.mxu1 %vm181_vm0, %v6941_v14  ;;  %v6948_v14 = vld [vmem:[%s9911_s1 + $0x258] sm:$0xff] }
 0x630   :  { %5221 = vst [vmem:[#allocation6 + $0xd28] sm:$0xff] %v4197_v18 }
 0x631   :  { %5222 = vst [vmem:[#allocation6 + $0xd30] sm:$0xff] %v4198_v21 }
 0x632   :  { %5223 = vst [vmem:[#allocation6 + $0xd38] sm:$0xff] %v4199_v22  ;;  %6682 = vmatmul.msk.f32.gmra.mxu2 %vm181_vm0, %v6942_v23  ;;  %6810 = vmatmul.msk.f32.gmra.mxu3 %vm181_vm0, %v6942_v23 }
 0x634   :  { %v2346_v24 = vpop.f32.mrf.mxu0  ;;  %v2747_v25 = vpop.f32.mrf.mxu1 }
 0x635   :  { %v4204_v26 = vmul.f32 %v7203_v29, %v2346_v24  ;;  %v4205_v27 = vmul.f32 %v7203_v29, %v2747_v25  ;;  %v3148_v28 = vpop.f32.mrf.mxu2  ;;  %v3549_v30 = vpop.f32.mrf.mxu3 }
 0x636   :  { %v4206_v31 = vmul.f32 %v7203_v29, %v3148_v28  ;;  %v4207_v32 = vmul.f32 %v7203_v29, %v3549_v30 }
 0x637   :  { %5228 = vst [vmem:[#allocation6 + $0xd60] sm:$0xff] %v4204_v26  ;;  %6426 = vmatmul.msk.f32.gmra.mxu0 %vm181_vm0, %v6942_v23  ;;  %6554 = vmatmul.msk.f32.gmra.mxu1 %vm181_vm0, %v6942_v23  ;;  %v6949_v23 = vld [vmem:[%s9911_s1 + $0x260] sm:$0xff] }
 0x638   :  { %5229 = vst [vmem:[#allocation6 + $0xd68] sm:$0xff] %v4205_v27 }
 0x639   :  { %5230 = vst [vmem:[#allocation6 + $0xd70] sm:$0xff] %v4206_v31 }
 0x63a   :  { %5231 = vst [vmem:[#allocation6 + $0xd78] sm:$0xff] %v4207_v32  ;;  %6683 = vmatmul.msk.f32.gmra.mxu2 %vm181_vm0, %v6943_v33  ;;  %6811 = vmatmul.msk.f32.gmra.mxu3 %vm181_vm0, %v6943_v33 }
 0x63c   :  { %v2349_v34 = vpop.f32.mrf.mxu0  ;;  %v2750_v35 = vpop.f32.mrf.mxu1 }
 0x63d   :  { %v4212_v36 = vmul.f32 %v7203_v29, %v2349_v34  ;;  %v4213_v37 = vmul.f32 %v7203_v29, %v2750_v35  ;;  %v3151_v38 = vpop.f32.mrf.mxu2  ;;  %v3552_v39 = vpop.f32.mrf.mxu3 }
 0x63e   :  { %v4214_v40 = vmul.f32 %v7203_v29, %v3151_v38  ;;  %v4215_v41 = vmul.f32 %v7203_v29, %v3552_v39 }
 0x63f   :  { %5236 = vst [vmem:[#allocation6 + $0xda0] sm:$0xff] %v4212_v36  ;;  %6427 = vmatmul.msk.f32.gmra.mxu0 %vm181_vm0, %v6943_v33  ;;  %6555 = vmatmul.msk.f32.gmra.mxu1 %vm181_vm0, %v6943_v33  ;;  %v6950_v33 = vld [vmem:[%s9911_s1 + $0x268] sm:$0xff] }
 0x640   :  { %5237 = vst [vmem:[#allocation6 + $0xda8] sm:$0xff] %v4213_v37 }
 0x641   :  { %5238 = vst [vmem:[#allocation6 + $0xdb0] sm:$0xff] %v4214_v40 }
 0x642   :  { %5239 = vst [vmem:[#allocation6 + $0xdb8] sm:$0xff] %v4215_v41  ;;  %6684 = vmatmul.msk.f32.gmra.mxu2 %vm181_vm0, %v6944_v42  ;;  %6812 = vmatmul.msk.f32.gmra.mxu3 %vm181_vm0, %v6944_v42 }
 0x644   :  { %v2352_v43 = vpop.f32.mrf.mxu0  ;;  %v2753_v44 = vpop.f32.mrf.mxu1 }
 0x645   :  { %v4220_v45 = vmul.f32 %v7203_v29, %v2352_v43  ;;  %v4221_v46 = vmul.f32 %v7203_v29, %v2753_v44  ;;  %v3154_v47 = vpop.f32.mrf.mxu2  ;;  %v3555_v48 = vpop.f32.mrf.mxu3 }
 0x646   :  { %v4222_v49 = vmul.f32 %v7203_v29, %v3154_v47  ;;  %v4223_v50 = vmul.f32 %v7203_v29, %v3555_v48 }
 0x647   :  { %5244 = vst [vmem:[#allocation6 + $0xde0] sm:$0xff] %v4220_v45  ;;  %6428 = vmatmul.msk.f32.gmra.mxu0 %vm181_vm0, %v6944_v42  ;;  %6556 = vmatmul.msk.f32.gmra.mxu1 %vm181_vm0, %v6944_v42  ;;  %v6951_v42 = vld [vmem:[%s9911_s1 + $0x270] sm:$0xff] }
 0x648   :  { %5245 = vst [vmem:[#allocation6 + $0xde8] sm:$0xff] %v4221_v46 }
 0x649   :  { %5246 = vst [vmem:[#allocation6 + $0xdf0] sm:$0xff] %v4222_v49 }
 0x64a   :  { %5247 = vst [vmem:[#allocation6 + $0xdf8] sm:$0xff] %v4223_v50  ;;  %6685 = vmatmul.msk.f32.gmra.mxu2 %vm181_vm0, %v6945_v51  ;;  %6813 = vmatmul.msk.f32.gmra.mxu3 %vm181_vm0, %v6945_v51 }
 0x64c   :  { %v2355_v52 = vpop.f32.mrf.mxu0  ;;  %v2756_v53 = vpop.f32.mrf.mxu1 }
 0x64d   :  { %v4228_v54 = vmul.f32 %v7203_v29, %v2355_v52  ;;  %v4229_v55 = vmul.f32 %v7203_v29, %v2756_v53  ;;  %v3157_v56 = vpop.f32.mrf.mxu2  ;;  %v3558_v57 = vpop.f32.mrf.mxu3 }
 0x64e   :  { %v4230_v58 = vmul.f32 %v7203_v29, %v3157_v56  ;;  %v4231_v59 = vmul.f32 %v7203_v29, %v3558_v57 }
 0x64f   :  { %5252 = vst [vmem:[#allocation6 + $0xe20] sm:$0xff] %v4228_v54  ;;  %6429 = vmatmul.msk.f32.gmra.mxu0 %vm181_vm0, %v6945_v51  ;;  %6557 = vmatmul.msk.f32.gmra.mxu1 %vm181_vm0, %v6945_v51  ;;  %v6952_v51 = vld [vmem:[%s9911_s1 + $0x278] sm:$0xff] }
 0x650   :  { %5253 = vst [vmem:[#allocation6 + $0xe28] sm:$0xff] %v4229_v55 }
 0x651   :  { %5254 = vst [vmem:[#allocation6 + $0xe30] sm:$0xff] %v4230_v58 }
 0x652   :  { %5255 = vst [vmem:[#allocation6 + $0xe38] sm:$0xff] %v4231_v59  ;;  %6686 = vmatmul.msk.f32.gmra.mxu2 %vm181_vm0, %v6946_v60  ;;  %6814 = vmatmul.msk.f32.gmra.mxu3 %vm181_vm0, %v6946_v60 }
 0x654   :  { %v2358_v61 = vpop.f32.mrf.mxu0  ;;  %v2759_v62 = vpop.f32.mrf.mxu1 }
 0x655   :  { %v4236_v63 = vmul.f32 %v7203_v29, %v2358_v61  ;;  %v4237_v0 = vmul.f32 %v7203_v29, %v2759_v62  ;;  %v3160_v1 = vpop.f32.mrf.mxu2  ;;  %v3561_v2 = vpop.f32.mrf.mxu3 }
 0x656   :  { %v4238_v3 = vmul.f32 %v7203_v29, %v3160_v1  ;;  %v4239_v4 = vmul.f32 %v7203_v29, %v3561_v2 }
 0x657   :  { %5260 = vst [vmem:[#allocation6 + $0xe60] sm:$0xff] %v4236_v63  ;;  %6430 = vmatmul.msk.f32.gmra.mxu0 %vm181_vm0, %v6946_v60  ;;  %6558 = vmatmul.msk.f32.gmra.mxu1 %vm181_vm0, %v6946_v60  ;;  %v6953_v60 = vld [vmem:[%s9911_s1 + $0x280] sm:$0xff] }
 0x658   :  { %5261 = vst [vmem:[#allocation6 + $0xe68] sm:$0xff] %v4237_v0 }
 0x659   :  { %5262 = vst [vmem:[#allocation6 + $0xe70] sm:$0xff] %v4238_v3 }
 0x65a   :  { %5263 = vst [vmem:[#allocation6 + $0xe78] sm:$0xff] %v4239_v4  ;;  %6687 = vmatmul.msk.f32.gmra.mxu2 %vm181_vm0, %v6947_v5  ;;  %6815 = vmatmul.msk.f32.gmra.mxu3 %vm181_vm0, %v6947_v5 }
 0x65c   :  { %v2361_v6 = vpop.f32.mrf.mxu0  ;;  %v2762_v7 = vpop.f32.mrf.mxu1 }
 0x65d   :  { %v4244_v8 = vmul.f32 %v7203_v29, %v2361_v6  ;;  %v4245_v9 = vmul.f32 %v7203_v29, %v2762_v7  ;;  %v3163_v10 = vpop.f32.mrf.mxu2  ;;  %v3564_v11 = vpop.f32.mrf.mxu3 }
 0x65e   :  { %v4246_v12 = vmul.f32 %v7203_v29, %v3163_v10  ;;  %v4247_v13 = vmul.f32 %v7203_v29, %v3564_v11 }
 0x65f   :  { %5268 = vst [vmem:[#allocation6 + $0xea0] sm:$0xff] %v4244_v8  ;;  %6431 = vmatmul.msk.f32.gmra.mxu0 %vm181_vm0, %v6947_v5  ;;  %6559 = vmatmul.msk.f32.gmra.mxu1 %vm181_vm0, %v6947_v5  ;;  %v6954_v5 = vld [vmem:[%s9911_s1 + $0x288] sm:$0xff] }
 0x660   :  { %5269 = vst [vmem:[#allocation6 + $0xea8] sm:$0xff] %v4245_v9 }
 0x661   :  { %5270 = vst [vmem:[#allocation6 + $0xeb0] sm:$0xff] %v4246_v12 }
 0x662   :  { %5271 = vst [vmem:[#allocation6 + $0xeb8] sm:$0xff] %v4247_v13  ;;  %6688 = vmatmul.msk.f32.gmra.mxu2 %vm181_vm0, %v6948_v14  ;;  %6816 = vmatmul.msk.f32.gmra.mxu3 %vm181_vm0, %v6948_v14 }
 0x664   :  { %v2364_v15 = vpop.f32.mrf.mxu0  ;;  %v2765_v16 = vpop.f32.mrf.mxu1 }
 0x665   :  { %v4252_v17 = vmul.f32 %v7203_v29, %v2364_v15  ;;  %v4253_v18 = vmul.f32 %v7203_v29, %v2765_v16  ;;  %v3166_v19 = vpop.f32.mrf.mxu2  ;;  %v3567_v20 = vpop.f32.mrf.mxu3 }
 0x666   :  { %v4254_v21 = vmul.f32 %v7203_v29, %v3166_v19  ;;  %v4255_v22 = vmul.f32 %v7203_v29, %v3567_v20 }
 0x667   :  { %5276 = vst [vmem:[#allocation6 + $0xee0] sm:$0xff] %v4252_v17  ;;  %6432 = vmatmul.msk.f32.gmra.mxu0 %vm181_vm0, %v6948_v14  ;;  %6560 = vmatmul.msk.f32.gmra.mxu1 %vm181_vm0, %v6948_v14  ;;  %v6955_v14 = vld [vmem:[%s9911_s1 + $0x290] sm:$0xff] }
 0x668   :  { %5277 = vst [vmem:[#allocation6 + $0xee8] sm:$0xff] %v4253_v18 }
 0x669   :  { %5278 = vst [vmem:[#allocation6 + $0xef0] sm:$0xff] %v4254_v21 }
 0x66a   :  { %5279 = vst [vmem:[#allocation6 + $0xef8] sm:$0xff] %v4255_v22  ;;  %6689 = vmatmul.msk.f32.gmra.mxu2 %vm181_vm0, %v6949_v23  ;;  %6817 = vmatmul.msk.f32.gmra.mxu3 %vm181_vm0, %v6949_v23 }
 0x66c   :  { %v2367_v24 = vpop.f32.mrf.mxu0  ;;  %v2768_v25 = vpop.f32.mrf.mxu1 }
 0x66d   :  { %v4260_v26 = vmul.f32 %v7203_v29, %v2367_v24  ;;  %v4261_v27 = vmul.f32 %v7203_v29, %v2768_v25  ;;  %v3169_v28 = vpop.f32.mrf.mxu2  ;;  %v3570_v30 = vpop.f32.mrf.mxu3 }
 0x66e   :  { %v4262_v31 = vmul.f32 %v7203_v29, %v3169_v28  ;;  %v4263_v32 = vmul.f32 %v7203_v29, %v3570_v30 }
 0x66f   :  { %5284 = vst [vmem:[#allocation6 + $0xf20] sm:$0xff] %v4260_v26  ;;  %6433 = vmatmul.msk.f32.gmra.mxu0 %vm181_vm0, %v6949_v23  ;;  %6561 = vmatmul.msk.f32.gmra.mxu1 %vm181_vm0, %v6949_v23  ;;  %v6956_v23 = vld [vmem:[%s9911_s1 + $0x298] sm:$0xff] }
 0x670   :  { %5285 = vst [vmem:[#allocation6 + $0xf28] sm:$0xff] %v4261_v27 }
 0x671   :  { %5286 = vst [vmem:[#allocation6 + $0xf30] sm:$0xff] %v4262_v31 }
 0x672   :  { %5287 = vst [vmem:[#allocation6 + $0xf38] sm:$0xff] %v4263_v32  ;;  %6690 = vmatmul.msk.f32.gmra.mxu2 %vm181_vm0, %v6950_v33  ;;  %6818 = vmatmul.msk.f32.gmra.mxu3 %vm181_vm0, %v6950_v33 }
 0x674   :  { %v2370_v34 = vpop.f32.mrf.mxu0  ;;  %v2771_v35 = vpop.f32.mrf.mxu1 }
 0x675   :  { %v4268_v36 = vmul.f32 %v7203_v29, %v2370_v34  ;;  %v4269_v37 = vmul.f32 %v7203_v29, %v2771_v35  ;;  %v3172_v38 = vpop.f32.mrf.mxu2  ;;  %v3573_v39 = vpop.f32.mrf.mxu3 }
 0x676   :  { %v4270_v40 = vmul.f32 %v7203_v29, %v3172_v38  ;;  %v4271_v41 = vmul.f32 %v7203_v29, %v3573_v39 }
 0x677   :  { %5292 = vst [vmem:[#allocation6 + $0xf60] sm:$0xff] %v4268_v36  ;;  %6434 = vmatmul.msk.f32.gmra.mxu0 %vm181_vm0, %v6950_v33  ;;  %6562 = vmatmul.msk.f32.gmra.mxu1 %vm181_vm0, %v6950_v33  ;;  %v6957_v33 = vld [vmem:[%s9911_s1 + $0x2a0] sm:$0xff] }
 0x678   :  { %5293 = vst [vmem:[#allocation6 + $0xf68] sm:$0xff] %v4269_v37 }
 0x679   :  { %5294 = vst [vmem:[#allocation6 + $0xf70] sm:$0xff] %v4270_v40 }
 0x67a   :  { %5295 = vst [vmem:[#allocation6 + $0xf78] sm:$0xff] %v4271_v41  ;;  %6691 = vmatmul.msk.f32.gmra.mxu2 %vm181_vm0, %v6951_v42  ;;  %6819 = vmatmul.msk.f32.gmra.mxu3 %vm181_vm0, %v6951_v42 }
 0x67c   :  { %v2373_v43 = vpop.f32.mrf.mxu0  ;;  %v2774_v44 = vpop.f32.mrf.mxu1 }
 0x67d   :  { %v4276_v45 = vmul.f32 %v7203_v29, %v2373_v43  ;;  %v4277_v46 = vmul.f32 %v7203_v29, %v2774_v44  ;;  %v3175_v47 = vpop.f32.mrf.mxu2  ;;  %v3576_v48 = vpop.f32.mrf.mxu3 }
 0x67e   :  { %v4278_v49 = vmul.f32 %v7203_v29, %v3175_v47  ;;  %v4279_v50 = vmul.f32 %v7203_v29, %v3576_v48 }
 0x67f   :  { %5300 = vst [vmem:[#allocation6 + $0xfa0] sm:$0xff] %v4276_v45  ;;  %6435 = vmatmul.msk.f32.gmra.mxu0 %vm181_vm0, %v6951_v42  ;;  %6563 = vmatmul.msk.f32.gmra.mxu1 %vm181_vm0, %v6951_v42  ;;  %v6958_v42 = vld [vmem:[%s9911_s1 + $0x2a8] sm:$0xff] }
 0x680   :  { %5301 = vst [vmem:[#allocation6 + $0xfa8] sm:$0xff] %v4277_v46 }
 0x681   :  { %5302 = vst [vmem:[#allocation6 + $0xfb0] sm:$0xff] %v4278_v49 }
 0x682   :  { %5303 = vst [vmem:[#allocation6 + $0xfb8] sm:$0xff] %v4279_v50  ;;  %6692 = vmatmul.msk.f32.gmra.mxu2 %vm181_vm0, %v6952_v51  ;;  %6820 = vmatmul.msk.f32.gmra.mxu3 %vm181_vm0, %v6952_v51 }
 0x684   :  { %v2376_v52 = vpop.f32.mrf.mxu0  ;;  %v2777_v53 = vpop.f32.mrf.mxu1 }
 0x685   :  { %v4284_v54 = vmul.f32 %v7203_v29, %v2376_v52  ;;  %v4285_v55 = vmul.f32 %v7203_v29, %v2777_v53  ;;  %v3178_v56 = vpop.f32.mrf.mxu2  ;;  %v3579_v57 = vpop.f32.mrf.mxu3 }
 0x686   :  { %v4286_v58 = vmul.f32 %v7203_v29, %v3178_v56  ;;  %v4287_v59 = vmul.f32 %v7203_v29, %v3579_v57 }
 0x687   :  { %5308 = vst [vmem:[#allocation6 + $0xfe0] sm:$0xff] %v4284_v54  ;;  %6436 = vmatmul.msk.f32.gmra.mxu0 %vm181_vm0, %v6952_v51  ;;  %6564 = vmatmul.msk.f32.gmra.mxu1 %vm181_vm0, %v6952_v51  ;;  %v6959_v51 = vld [vmem:[%s9911_s1 + $0x2b0] sm:$0xff] }
 0x688   :  { %5309 = vst [vmem:[#allocation6 + $0xfe8] sm:$0xff] %v4285_v55 }
 0x689   :  { %5310 = vst [vmem:[#allocation6 + $0xff0] sm:$0xff] %v4286_v58 }
 0x68a   :  { %5311 = vst [vmem:[#allocation6 + $0xff8] sm:$0xff] %v4287_v59  ;;  %6693 = vmatmul.msk.f32.gmra.mxu2 %vm181_vm0, %v6953_v60  ;;  %6821 = vmatmul.msk.f32.gmra.mxu3 %vm181_vm0, %v6953_v60 }
 0x68c   :  { %v2379_v61 = vpop.f32.mrf.mxu0  ;;  %v2780_v62 = vpop.f32.mrf.mxu1 }
 0x68d   :  { %v4292_v63 = vmul.f32 %v7203_v29, %v2379_v61  ;;  %v4293_v0 = vmul.f32 %v7203_v29, %v2780_v62  ;;  %v3181_v1 = vpop.f32.mrf.mxu2  ;;  %v3582_v2 = vpop.f32.mrf.mxu3 }
 0x68e   :  { %v4294_v3 = vmul.f32 %v7203_v29, %v3181_v1  ;;  %v4295_v4 = vmul.f32 %v7203_v29, %v3582_v2 }
 0x68f   :  { %5316 = vst [vmem:[#allocation6 + $0x1020] sm:$0xff] %v4292_v63  ;;  %6437 = vmatmul.msk.f32.gmra.mxu0 %vm181_vm0, %v6953_v60  ;;  %6565 = vmatmul.msk.f32.gmra.mxu1 %vm181_vm0, %v6953_v60  ;;  %v6960_v60 = vld [vmem:[%s9911_s1 + $0x2b8] sm:$0xff] }
 0x690   :  { %5317 = vst [vmem:[#allocation6 + $0x1028] sm:$0xff] %v4293_v0 }
 0x691   :  { %5318 = vst [vmem:[#allocation6 + $0x1030] sm:$0xff] %v4294_v3 }
 0x692   :  { %5319 = vst [vmem:[#allocation6 + $0x1038] sm:$0xff] %v4295_v4  ;;  %6694 = vmatmul.msk.f32.gmra.mxu2 %vm181_vm0, %v6954_v5  ;;  %6822 = vmatmul.msk.f32.gmra.mxu3 %vm181_vm0, %v6954_v5 }
 0x694   :  { %v2382_v6 = vpop.f32.mrf.mxu0  ;;  %v2783_v7 = vpop.f32.mrf.mxu1 }
 0x695   :  { %v4300_v8 = vmul.f32 %v7203_v29, %v2382_v6  ;;  %v4301_v9 = vmul.f32 %v7203_v29, %v2783_v7  ;;  %v3184_v10 = vpop.f32.mrf.mxu2  ;;  %v3585_v11 = vpop.f32.mrf.mxu3 }
 0x696   :  { %v4302_v12 = vmul.f32 %v7203_v29, %v3184_v10  ;;  %v4303_v13 = vmul.f32 %v7203_v29, %v3585_v11 }
 0x697   :  { %5324 = vst [vmem:[#allocation6 + $0x1060] sm:$0xff] %v4300_v8  ;;  %6438 = vmatmul.msk.f32.gmra.mxu0 %vm181_vm0, %v6954_v5  ;;  %6566 = vmatmul.msk.f32.gmra.mxu1 %vm181_vm0, %v6954_v5  ;;  %v6961_v5 = vld [vmem:[%s9911_s1 + $0x2c0] sm:$0xff] }
 0x698   :  { %5325 = vst [vmem:[#allocation6 + $0x1068] sm:$0xff] %v4301_v9 }
 0x699   :  { %5326 = vst [vmem:[#allocation6 + $0x1070] sm:$0xff] %v4302_v12 }
 0x69a   :  { %5327 = vst [vmem:[#allocation6 + $0x1078] sm:$0xff] %v4303_v13  ;;  %6695 = vmatmul.msk.f32.gmra.mxu2 %vm181_vm0, %v6955_v14  ;;  %6823 = vmatmul.msk.f32.gmra.mxu3 %vm181_vm0, %v6955_v14 }
 0x69c   :  { %v2385_v15 = vpop.f32.mrf.mxu0  ;;  %v2786_v16 = vpop.f32.mrf.mxu1 }
 0x69d   :  { %v4308_v17 = vmul.f32 %v7203_v29, %v2385_v15  ;;  %v4309_v18 = vmul.f32 %v7203_v29, %v2786_v16  ;;  %v3187_v19 = vpop.f32.mrf.mxu2  ;;  %v3588_v20 = vpop.f32.mrf.mxu3 }
 0x69e   :  { %v4310_v21 = vmul.f32 %v7203_v29, %v3187_v19  ;;  %v4311_v22 = vmul.f32 %v7203_v29, %v3588_v20 }
 0x69f   :  { %5332 = vst [vmem:[#allocation6 + $0x10a0] sm:$0xff] %v4308_v17  ;;  %6439 = vmatmul.msk.f32.gmra.mxu0 %vm181_vm0, %v6955_v14  ;;  %6567 = vmatmul.msk.f32.gmra.mxu1 %vm181_vm0, %v6955_v14  ;;  %v6962_v14 = vld [vmem:[%s9911_s1 + $0x2c8] sm:$0xff] }
 0x6a0   :  { %5333 = vst [vmem:[#allocation6 + $0x10a8] sm:$0xff] %v4309_v18 }
 0x6a1   :  { %5334 = vst [vmem:[#allocation6 + $0x10b0] sm:$0xff] %v4310_v21 }
 0x6a2   :  { %5335 = vst [vmem:[#allocation6 + $0x10b8] sm:$0xff] %v4311_v22  ;;  %6696 = vmatmul.msk.f32.gmra.mxu2 %vm181_vm0, %v6956_v23  ;;  %6824 = vmatmul.msk.f32.gmra.mxu3 %vm181_vm0, %v6956_v23 }
 0x6a4   :  { %v2388_v24 = vpop.f32.mrf.mxu0  ;;  %v2789_v25 = vpop.f32.mrf.mxu1 }
 0x6a5   :  { %v4316_v26 = vmul.f32 %v7203_v29, %v2388_v24  ;;  %v4317_v27 = vmul.f32 %v7203_v29, %v2789_v25  ;;  %v3190_v28 = vpop.f32.mrf.mxu2  ;;  %v3591_v30 = vpop.f32.mrf.mxu3 }
 0x6a6   :  { %v4318_v31 = vmul.f32 %v7203_v29, %v3190_v28  ;;  %v4319_v32 = vmul.f32 %v7203_v29, %v3591_v30 }
 0x6a7   :  { %5340 = vst [vmem:[#allocation6 + $0x10e0] sm:$0xff] %v4316_v26  ;;  %6440 = vmatmul.msk.f32.gmra.mxu0 %vm181_vm0, %v6956_v23  ;;  %6568 = vmatmul.msk.f32.gmra.mxu1 %vm181_vm0, %v6956_v23  ;;  %v6963_v23 = vld [vmem:[%s9911_s1 + $0x2d0] sm:$0xff] }
 0x6a8   :  { %5341 = vst [vmem:[#allocation6 + $0x10e8] sm:$0xff] %v4317_v27 }
 0x6a9   :  { %5342 = vst [vmem:[#allocation6 + $0x10f0] sm:$0xff] %v4318_v31 }
 0x6aa   :  { %5343 = vst [vmem:[#allocation6 + $0x10f8] sm:$0xff] %v4319_v32  ;;  %6697 = vmatmul.msk.f32.gmra.mxu2 %vm181_vm0, %v6957_v33  ;;  %6825 = vmatmul.msk.f32.gmra.mxu3 %vm181_vm0, %v6957_v33 }
 0x6ac   :  { %v2391_v34 = vpop.f32.mrf.mxu0  ;;  %v2792_v35 = vpop.f32.mrf.mxu1 }
 0x6ad   :  { %v4324_v36 = vmul.f32 %v7203_v29, %v2391_v34  ;;  %v4325_v37 = vmul.f32 %v7203_v29, %v2792_v35  ;;  %v3193_v38 = vpop.f32.mrf.mxu2  ;;  %v3594_v39 = vpop.f32.mrf.mxu3 }
 0x6ae   :  { %v4326_v40 = vmul.f32 %v7203_v29, %v3193_v38  ;;  %v4327_v41 = vmul.f32 %v7203_v29, %v3594_v39 }
 0x6af   :  { %5348 = vst [vmem:[#allocation6 + $0x1120] sm:$0xff] %v4324_v36  ;;  %6441 = vmatmul.msk.f32.gmra.mxu0 %vm181_vm0, %v6957_v33  ;;  %6569 = vmatmul.msk.f32.gmra.mxu1 %vm181_vm0, %v6957_v33  ;;  %v6964_v33 = vld [vmem:[%s9911_s1 + $0x2d8] sm:$0xff] }
 0x6b0   :  { %5349 = vst [vmem:[#allocation6 + $0x1128] sm:$0xff] %v4325_v37 }
 0x6b1   :  { %5350 = vst [vmem:[#allocation6 + $0x1130] sm:$0xff] %v4326_v40 }
 0x6b2   :  { %5351 = vst [vmem:[#allocation6 + $0x1138] sm:$0xff] %v4327_v41  ;;  %6698 = vmatmul.msk.f32.gmra.mxu2 %vm181_vm0, %v6958_v42  ;;  %6826 = vmatmul.msk.f32.gmra.mxu3 %vm181_vm0, %v6958_v42 }
 0x6b4   :  { %v2394_v43 = vpop.f32.mrf.mxu0  ;;  %v2795_v44 = vpop.f32.mrf.mxu1 }
 0x6b5   :  { %v4332_v45 = vmul.f32 %v7203_v29, %v2394_v43  ;;  %v4333_v46 = vmul.f32 %v7203_v29, %v2795_v44  ;;  %v3196_v47 = vpop.f32.mrf.mxu2  ;;  %v3597_v48 = vpop.f32.mrf.mxu3 }
 0x6b6   :  { %v4334_v49 = vmul.f32 %v7203_v29, %v3196_v47  ;;  %v4335_v50 = vmul.f32 %v7203_v29, %v3597_v48 }
 0x6b7   :  { %5356 = vst [vmem:[#allocation6 + $0x1160] sm:$0xff] %v4332_v45  ;;  %6442 = vmatmul.msk.f32.gmra.mxu0 %vm181_vm0, %v6958_v42  ;;  %6570 = vmatmul.msk.f32.gmra.mxu1 %vm181_vm0, %v6958_v42  ;;  %v6965_v42 = vld [vmem:[%s9911_s1 + $0x2e0] sm:$0xff] }
 0x6b8   :  { %5357 = vst [vmem:[#allocation6 + $0x1168] sm:$0xff] %v4333_v46 }
 0x6b9   :  { %5358 = vst [vmem:[#allocation6 + $0x1170] sm:$0xff] %v4334_v49 }
 0x6ba   :  { %5359 = vst [vmem:[#allocation6 + $0x1178] sm:$0xff] %v4335_v50  ;;  %6699 = vmatmul.msk.f32.gmra.mxu2 %vm181_vm0, %v6959_v51  ;;  %6827 = vmatmul.msk.f32.gmra.mxu3 %vm181_vm0, %v6959_v51 }
 0x6bc   :  { %v2397_v52 = vpop.f32.mrf.mxu0  ;;  %v2798_v53 = vpop.f32.mrf.mxu1 }
 0x6bd   :  { %v4340_v54 = vmul.f32 %v7203_v29, %v2397_v52  ;;  %v4341_v55 = vmul.f32 %v7203_v29, %v2798_v53  ;;  %v3199_v56 = vpop.f32.mrf.mxu2  ;;  %v3600_v57 = vpop.f32.mrf.mxu3 }
 0x6be   :  { %v4342_v58 = vmul.f32 %v7203_v29, %v3199_v56  ;;  %v4343_v59 = vmul.f32 %v7203_v29, %v3600_v57 }
 0x6bf   :  { %5364 = vst [vmem:[#allocation6 + $0x11a0] sm:$0xff] %v4340_v54  ;;  %6443 = vmatmul.msk.f32.gmra.mxu0 %vm181_vm0, %v6959_v51  ;;  %6571 = vmatmul.msk.f32.gmra.mxu1 %vm181_vm0, %v6959_v51  ;;  %v6966_v51 = vld [vmem:[%s9911_s1 + $0x2e8] sm:$0xff] }
 0x6c0   :  { %5365 = vst [vmem:[#allocation6 + $0x11a8] sm:$0xff] %v4341_v55 }
 0x6c1   :  { %5366 = vst [vmem:[#allocation6 + $0x11b0] sm:$0xff] %v4342_v58 }
 0x6c2   :  { %5367 = vst [vmem:[#allocation6 + $0x11b8] sm:$0xff] %v4343_v59  ;;  %6700 = vmatmul.msk.f32.gmra.mxu2 %vm181_vm0, %v6960_v60  ;;  %6828 = vmatmul.msk.f32.gmra.mxu3 %vm181_vm0, %v6960_v60 }
 0x6c4   :  { %v2400_v61 = vpop.f32.mrf.mxu0  ;;  %v2801_v62 = vpop.f32.mrf.mxu1 }
 0x6c5   :  { %v4348_v63 = vmul.f32 %v7203_v29, %v2400_v61  ;;  %v4349_v0 = vmul.f32 %v7203_v29, %v2801_v62  ;;  %v3202_v1 = vpop.f32.mrf.mxu2  ;;  %v3603_v2 = vpop.f32.mrf.mxu3 }
 0x6c6   :  { %v4350_v3 = vmul.f32 %v7203_v29, %v3202_v1  ;;  %v4351_v4 = vmul.f32 %v7203_v29, %v3603_v2 }
 0x6c7   :  { %5372 = vst [vmem:[#allocation6 + $0x11e0] sm:$0xff] %v4348_v63  ;;  %6444 = vmatmul.msk.f32.gmra.mxu0 %vm181_vm0, %v6960_v60  ;;  %6572 = vmatmul.msk.f32.gmra.mxu1 %vm181_vm0, %v6960_v60  ;;  %v6967_v60 = vld [vmem:[%s9911_s1 + $0x2f0] sm:$0xff] }
 0x6c8   :  { %5373 = vst [vmem:[#allocation6 + $0x11e8] sm:$0xff] %v4349_v0 }
 0x6c9   :  { %5374 = vst [vmem:[#allocation6 + $0x11f0] sm:$0xff] %v4350_v3 }
 0x6ca   :  { %5375 = vst [vmem:[#allocation6 + $0x11f8] sm:$0xff] %v4351_v4  ;;  %6701 = vmatmul.msk.f32.gmra.mxu2 %vm181_vm0, %v6961_v5  ;;  %6829 = vmatmul.msk.f32.gmra.mxu3 %vm181_vm0, %v6961_v5 }
 0x6cc   :  { %v2403_v6 = vpop.f32.mrf.mxu0  ;;  %v2804_v7 = vpop.f32.mrf.mxu1 }
 0x6cd   :  { %v4356_v8 = vmul.f32 %v7203_v29, %v2403_v6  ;;  %v4357_v9 = vmul.f32 %v7203_v29, %v2804_v7  ;;  %v3205_v10 = vpop.f32.mrf.mxu2  ;;  %v3606_v11 = vpop.f32.mrf.mxu3 }
 0x6ce   :  { %v4358_v12 = vmul.f32 %v7203_v29, %v3205_v10  ;;  %v4359_v13 = vmul.f32 %v7203_v29, %v3606_v11 }
 0x6cf   :  { %5380 = vst [vmem:[#allocation6 + $0x1220] sm:$0xff] %v4356_v8  ;;  %6445 = vmatmul.msk.f32.gmra.mxu0 %vm181_vm0, %v6961_v5  ;;  %6573 = vmatmul.msk.f32.gmra.mxu1 %vm181_vm0, %v6961_v5  ;;  %v6968_v5 = vld [vmem:[%s9911_s1 + $0x2f8] sm:$0xff] }
 0x6d0   :  { %5381 = vst [vmem:[#allocation6 + $0x1228] sm:$0xff] %v4357_v9 }
 0x6d1   :  { %5382 = vst [vmem:[#allocation6 + $0x1230] sm:$0xff] %v4358_v12 }
 0x6d2   :  { %5383 = vst [vmem:[#allocation6 + $0x1238] sm:$0xff] %v4359_v13  ;;  %6702 = vmatmul.msk.f32.gmra.mxu2 %vm181_vm0, %v6962_v14  ;;  %6830 = vmatmul.msk.f32.gmra.mxu3 %vm181_vm0, %v6962_v14 }
 0x6d4   :  { %v2406_v15 = vpop.f32.mrf.mxu0  ;;  %v2807_v16 = vpop.f32.mrf.mxu1 }
 0x6d5   :  { %v4364_v17 = vmul.f32 %v7203_v29, %v2406_v15  ;;  %v4365_v18 = vmul.f32 %v7203_v29, %v2807_v16  ;;  %v3208_v19 = vpop.f32.mrf.mxu2  ;;  %v3609_v20 = vpop.f32.mrf.mxu3 }
 0x6d6   :  { %v4366_v21 = vmul.f32 %v7203_v29, %v3208_v19  ;;  %v4367_v22 = vmul.f32 %v7203_v29, %v3609_v20 }
 0x6d7   :  { %5388 = vst [vmem:[#allocation6 + $0x1260] sm:$0xff] %v4364_v17  ;;  %6446 = vmatmul.msk.f32.gmra.mxu0 %vm181_vm0, %v6962_v14  ;;  %6574 = vmatmul.msk.f32.gmra.mxu1 %vm181_vm0, %v6962_v14  ;;  %v6969_v14 = vld [vmem:[%s9911_s1 + $0x300] sm:$0xff] }
 0x6d8   :  { %5389 = vst [vmem:[#allocation6 + $0x1268] sm:$0xff] %v4365_v18 }
 0x6d9   :  { %5390 = vst [vmem:[#allocation6 + $0x1270] sm:$0xff] %v4366_v21 }
 0x6da   :  { %5391 = vst [vmem:[#allocation6 + $0x1278] sm:$0xff] %v4367_v22  ;;  %6703 = vmatmul.msk.f32.gmra.mxu2 %vm181_vm0, %v6963_v23  ;;  %6831 = vmatmul.msk.f32.gmra.mxu3 %vm181_vm0, %v6963_v23 }
 0x6dc   :  { %v2409_v24 = vpop.f32.mrf.mxu0  ;;  %v2810_v25 = vpop.f32.mrf.mxu1 }
 0x6dd   :  { %v4372_v26 = vmul.f32 %v7203_v29, %v2409_v24  ;;  %v4373_v27 = vmul.f32 %v7203_v29, %v2810_v25  ;;  %v3211_v28 = vpop.f32.mrf.mxu2  ;;  %v3612_v30 = vpop.f32.mrf.mxu3 }
 0x6de   :  { %v4374_v31 = vmul.f32 %v7203_v29, %v3211_v28  ;;  %v4375_v32 = vmul.f32 %v7203_v29, %v3612_v30 }
 0x6df   :  { %5396 = vst [vmem:[#allocation6 + $0x12a0] sm:$0xff] %v4372_v26  ;;  %6447 = vmatmul.msk.f32.gmra.mxu0 %vm181_vm0, %v6963_v23  ;;  %6575 = vmatmul.msk.f32.gmra.mxu1 %vm181_vm0, %v6963_v23  ;;  %v6970_v23 = vld [vmem:[%s9911_s1 + $0x308] sm:$0xff] }
 0x6e0   :  { %5397 = vst [vmem:[#allocation6 + $0x12a8] sm:$0xff] %v4373_v27 }
 0x6e1   :  { %5398 = vst [vmem:[#allocation6 + $0x12b0] sm:$0xff] %v4374_v31 }
 0x6e2   :  { %5399 = vst [vmem:[#allocation6 + $0x12b8] sm:$0xff] %v4375_v32  ;;  %6704 = vmatmul.msk.f32.gmra.mxu2 %vm181_vm0, %v6964_v33  ;;  %6832 = vmatmul.msk.f32.gmra.mxu3 %vm181_vm0, %v6964_v33 }
 0x6e4   :  { %v2412_v34 = vpop.f32.mrf.mxu0  ;;  %v2813_v35 = vpop.f32.mrf.mxu1 }
 0x6e5   :  { %v4380_v36 = vmul.f32 %v7203_v29, %v2412_v34  ;;  %v4381_v37 = vmul.f32 %v7203_v29, %v2813_v35  ;;  %v3214_v38 = vpop.f32.mrf.mxu2  ;;  %v3615_v39 = vpop.f32.mrf.mxu3 }
 0x6e6   :  { %v4382_v40 = vmul.f32 %v7203_v29, %v3214_v38  ;;  %v4383_v41 = vmul.f32 %v7203_v29, %v3615_v39 }
 0x6e7   :  { %5404 = vst [vmem:[#allocation6 + $0x12e0] sm:$0xff] %v4380_v36  ;;  %6448 = vmatmul.msk.f32.gmra.mxu0 %vm181_vm0, %v6964_v33  ;;  %6576 = vmatmul.msk.f32.gmra.mxu1 %vm181_vm0, %v6964_v33  ;;  %v6971_v33 = vld [vmem:[%s9911_s1 + $0x310] sm:$0xff] }
 0x6e8   :  { %5405 = vst [vmem:[#allocation6 + $0x12e8] sm:$0xff] %v4381_v37 }
 0x6e9   :  { %5406 = vst [vmem:[#allocation6 + $0x12f0] sm:$0xff] %v4382_v40 }
 0x6ea   :  { %5407 = vst [vmem:[#allocation6 + $0x12f8] sm:$0xff] %v4383_v41  ;;  %6705 = vmatmul.msk.f32.gmra.mxu2 %vm181_vm0, %v6965_v42  ;;  %6833 = vmatmul.msk.f32.gmra.mxu3 %vm181_vm0, %v6965_v42 }
 0x6ec   :  { %v2415_v43 = vpop.f32.mrf.mxu0  ;;  %v2816_v44 = vpop.f32.mrf.mxu1 }
 0x6ed   :  { %v4388_v45 = vmul.f32 %v7203_v29, %v2415_v43  ;;  %v4389_v46 = vmul.f32 %v7203_v29, %v2816_v44  ;;  %v3217_v47 = vpop.f32.mrf.mxu2  ;;  %v3618_v48 = vpop.f32.mrf.mxu3 }
 0x6ee   :  { %v4390_v49 = vmul.f32 %v7203_v29, %v3217_v47  ;;  %v4391_v50 = vmul.f32 %v7203_v29, %v3618_v48 }
 0x6ef   :  { %5412 = vst [vmem:[#allocation6 + $0x1320] sm:$0xff] %v4388_v45  ;;  %6449 = vmatmul.msk.f32.gmra.mxu0 %vm181_vm0, %v6965_v42  ;;  %6577 = vmatmul.msk.f32.gmra.mxu1 %vm181_vm0, %v6965_v42  ;;  %v6972_v42 = vld [vmem:[%s9911_s1 + $0x318] sm:$0xff] }
 0x6f0   :  { %5413 = vst [vmem:[#allocation6 + $0x1328] sm:$0xff] %v4389_v46 }
 0x6f1   :  { %5414 = vst [vmem:[#allocation6 + $0x1330] sm:$0xff] %v4390_v49 }
 0x6f2   :  { %5415 = vst [vmem:[#allocation6 + $0x1338] sm:$0xff] %v4391_v50  ;;  %6706 = vmatmul.msk.f32.gmra.mxu2 %vm181_vm0, %v6966_v51  ;;  %6834 = vmatmul.msk.f32.gmra.mxu3 %vm181_vm0, %v6966_v51 }
 0x6f4   :  { %v2418_v52 = vpop.f32.mrf.mxu0  ;;  %v2819_v53 = vpop.f32.mrf.mxu1 }
 0x6f5   :  { %v4396_v54 = vmul.f32 %v7203_v29, %v2418_v52  ;;  %v4397_v55 = vmul.f32 %v7203_v29, %v2819_v53  ;;  %v3220_v56 = vpop.f32.mrf.mxu2  ;;  %v3621_v57 = vpop.f32.mrf.mxu3 }
 0x6f6   :  { %v4398_v58 = vmul.f32 %v7203_v29, %v3220_v56  ;;  %v4399_v59 = vmul.f32 %v7203_v29, %v3621_v57 }
 0x6f7   :  { %5420 = vst [vmem:[#allocation6 + $0x1360] sm:$0xff] %v4396_v54  ;;  %6450 = vmatmul.msk.f32.gmra.mxu0 %vm181_vm0, %v6966_v51  ;;  %6578 = vmatmul.msk.f32.gmra.mxu1 %vm181_vm0, %v6966_v51  ;;  %v6973_v51 = vld [vmem:[%s9911_s1 + $0x320] sm:$0xff] }
 0x6f8   :  { %5421 = vst [vmem:[#allocation6 + $0x1368] sm:$0xff] %v4397_v55 }
 0x6f9   :  { %5422 = vst [vmem:[#allocation6 + $0x1370] sm:$0xff] %v4398_v58 }
 0x6fa   :  { %5423 = vst [vmem:[#allocation6 + $0x1378] sm:$0xff] %v4399_v59  ;;  %6707 = vmatmul.msk.f32.gmra.mxu2 %vm181_vm0, %v6967_v60  ;;  %6835 = vmatmul.msk.f32.gmra.mxu3 %vm181_vm0, %v6967_v60 }
 0x6fc   :  { %v2421_v61 = vpop.f32.mrf.mxu0  ;;  %v2822_v62 = vpop.f32.mrf.mxu1 }
 0x6fd   :  { %v4404_v63 = vmul.f32 %v7203_v29, %v2421_v61  ;;  %v4405_v0 = vmul.f32 %v7203_v29, %v2822_v62  ;;  %v3223_v1 = vpop.f32.mrf.mxu2  ;;  %v3624_v2 = vpop.f32.mrf.mxu3 }
 0x6fe   :  { %v4406_v3 = vmul.f32 %v7203_v29, %v3223_v1  ;;  %v4407_v4 = vmul.f32 %v7203_v29, %v3624_v2 }
 0x6ff   :  { %5428 = vst [vmem:[#allocation6 + $0x13a0] sm:$0xff] %v4404_v63  ;;  %6451 = vmatmul.msk.f32.gmra.mxu0 %vm181_vm0, %v6967_v60  ;;  %6579 = vmatmul.msk.f32.gmra.mxu1 %vm181_vm0, %v6967_v60  ;;  %v6974_v60 = vld [vmem:[%s9911_s1 + $0x328] sm:$0xff] }
 0x700   :  { %5429 = vst [vmem:[#allocation6 + $0x13a8] sm:$0xff] %v4405_v0 }
 0x701   :  { %5430 = vst [vmem:[#allocation6 + $0x13b0] sm:$0xff] %v4406_v3 }
 0x702   :  { %5431 = vst [vmem:[#allocation6 + $0x13b8] sm:$0xff] %v4407_v4  ;;  %6708 = vmatmul.msk.f32.gmra.mxu2 %vm181_vm0, %v6968_v5  ;;  %6836 = vmatmul.msk.f32.gmra.mxu3 %vm181_vm0, %v6968_v5 }
 0x704   :  { %v2424_v6 = vpop.f32.mrf.mxu0  ;;  %v2825_v7 = vpop.f32.mrf.mxu1 }
 0x705   :  { %v4412_v8 = vmul.f32 %v7203_v29, %v2424_v6  ;;  %v4413_v9 = vmul.f32 %v7203_v29, %v2825_v7  ;;  %v3226_v10 = vpop.f32.mrf.mxu2  ;;  %v3627_v11 = vpop.f32.mrf.mxu3 }
 0x706   :  { %v4414_v12 = vmul.f32 %v7203_v29, %v3226_v10  ;;  %v4415_v13 = vmul.f32 %v7203_v29, %v3627_v11 }
 0x707   :  { %5436 = vst [vmem:[#allocation6 + $0x13e0] sm:$0xff] %v4412_v8  ;;  %6452 = vmatmul.msk.f32.gmra.mxu0 %vm181_vm0, %v6968_v5  ;;  %6580 = vmatmul.msk.f32.gmra.mxu1 %vm181_vm0, %v6968_v5  ;;  %v6975_v5 = vld [vmem:[%s9911_s1 + $0x330] sm:$0xff] }
 0x708   :  { %5437 = vst [vmem:[#allocation6 + $0x13e8] sm:$0xff] %v4413_v9 }
 0x709   :  { %5438 = vst [vmem:[#allocation6 + $0x13f0] sm:$0xff] %v4414_v12 }
 0x70a   :  { %5439 = vst [vmem:[#allocation6 + $0x13f8] sm:$0xff] %v4415_v13  ;;  %6709 = vmatmul.msk.f32.gmra.mxu2 %vm181_vm0, %v6969_v14  ;;  %6837 = vmatmul.msk.f32.gmra.mxu3 %vm181_vm0, %v6969_v14 }
 0x70c   :  { %v2427_v15 = vpop.f32.mrf.mxu0  ;;  %v2828_v16 = vpop.f32.mrf.mxu1 }
 0x70d   :  { %v4420_v17 = vmul.f32 %v7203_v29, %v2427_v15  ;;  %v4421_v18 = vmul.f32 %v7203_v29, %v2828_v16  ;;  %v3229_v19 = vpop.f32.mrf.mxu2  ;;  %v3630_v20 = vpop.f32.mrf.mxu3 }
 0x70e   :  { %v4422_v21 = vmul.f32 %v7203_v29, %v3229_v19  ;;  %v4423_v22 = vmul.f32 %v7203_v29, %v3630_v20 }
 0x70f   :  { %5444 = vst [vmem:[#allocation6 + $0x1420] sm:$0xff] %v4420_v17  ;;  %6453 = vmatmul.msk.f32.gmra.mxu0 %vm181_vm0, %v6969_v14  ;;  %6581 = vmatmul.msk.f32.gmra.mxu1 %vm181_vm0, %v6969_v14  ;;  %v6976_v14 = vld [vmem:[%s9911_s1 + $0x338] sm:$0xff] }
 0x710   :  { %5445 = vst [vmem:[#allocation6 + $0x1428] sm:$0xff] %v4421_v18 }
 0x711   :  { %5446 = vst [vmem:[#allocation6 + $0x1430] sm:$0xff] %v4422_v21 }
 0x712   :  { %5447 = vst [vmem:[#allocation6 + $0x1438] sm:$0xff] %v4423_v22  ;;  %6710 = vmatmul.msk.f32.gmra.mxu2 %vm181_vm0, %v6970_v23  ;;  %6838 = vmatmul.msk.f32.gmra.mxu3 %vm181_vm0, %v6970_v23 }
 0x714   :  { %v2430_v24 = vpop.f32.mrf.mxu0  ;;  %v2831_v25 = vpop.f32.mrf.mxu1 }
 0x715   :  { %v4428_v26 = vmul.f32 %v7203_v29, %v2430_v24  ;;  %v4429_v27 = vmul.f32 %v7203_v29, %v2831_v25  ;;  %v3232_v28 = vpop.f32.mrf.mxu2  ;;  %v3633_v30 = vpop.f32.mrf.mxu3 }
 0x716   :  { %v4430_v31 = vmul.f32 %v7203_v29, %v3232_v28  ;;  %v4431_v32 = vmul.f32 %v7203_v29, %v3633_v30 }
 0x717   :  { %5452 = vst [vmem:[#allocation6 + $0x1460] sm:$0xff] %v4428_v26  ;;  %6454 = vmatmul.msk.f32.gmra.mxu0 %vm181_vm0, %v6970_v23  ;;  %6582 = vmatmul.msk.f32.gmra.mxu1 %vm181_vm0, %v6970_v23  ;;  %v6977_v23 = vld [vmem:[%s9911_s1 + $0x340] sm:$0xff] }
 0x718   :  { %5453 = vst [vmem:[#allocation6 + $0x1468] sm:$0xff] %v4429_v27 }
 0x719   :  { %5454 = vst [vmem:[#allocation6 + $0x1470] sm:$0xff] %v4430_v31 }
 0x71a   :  { %5455 = vst [vmem:[#allocation6 + $0x1478] sm:$0xff] %v4431_v32  ;;  %6711 = vmatmul.msk.f32.gmra.mxu2 %vm181_vm0, %v6971_v33  ;;  %6839 = vmatmul.msk.f32.gmra.mxu3 %vm181_vm0, %v6971_v33 }
 0x71c   :  { %v2433_v34 = vpop.f32.mrf.mxu0  ;;  %v2834_v35 = vpop.f32.mrf.mxu1 }
 0x71d   :  { %v4436_v36 = vmul.f32 %v7203_v29, %v2433_v34  ;;  %v4437_v37 = vmul.f32 %v7203_v29, %v2834_v35  ;;  %v3235_v38 = vpop.f32.mrf.mxu2  ;;  %v3636_v39 = vpop.f32.mrf.mxu3 }
 0x71e   :  { %v4438_v40 = vmul.f32 %v7203_v29, %v3235_v38  ;;  %v4439_v41 = vmul.f32 %v7203_v29, %v3636_v39 }
 0x71f   :  { %5460 = vst [vmem:[#allocation6 + $0x14a0] sm:$0xff] %v4436_v36  ;;  %6455 = vmatmul.msk.f32.gmra.mxu0 %vm181_vm0, %v6971_v33  ;;  %6583 = vmatmul.msk.f32.gmra.mxu1 %vm181_vm0, %v6971_v33  ;;  %v6978_v33 = vld [vmem:[%s9911_s1 + $0x348] sm:$0xff] }
 0x720   :  { %5461 = vst [vmem:[#allocation6 + $0x14a8] sm:$0xff] %v4437_v37 }
 0x721   :  { %5462 = vst [vmem:[#allocation6 + $0x14b0] sm:$0xff] %v4438_v40 }
 0x722   :  { %5463 = vst [vmem:[#allocation6 + $0x14b8] sm:$0xff] %v4439_v41  ;;  %6712 = vmatmul.msk.f32.gmra.mxu2 %vm181_vm0, %v6972_v42  ;;  %6840 = vmatmul.msk.f32.gmra.mxu3 %vm181_vm0, %v6972_v42 }
 0x724   :  { %v2436_v43 = vpop.f32.mrf.mxu0  ;;  %v2837_v44 = vpop.f32.mrf.mxu1 }
 0x725   :  { %v4444_v45 = vmul.f32 %v7203_v29, %v2436_v43  ;;  %v4445_v46 = vmul.f32 %v7203_v29, %v2837_v44  ;;  %v3238_v47 = vpop.f32.mrf.mxu2  ;;  %v3639_v48 = vpop.f32.mrf.mxu3 }
 0x726   :  { %v4446_v49 = vmul.f32 %v7203_v29, %v3238_v47  ;;  %v4447_v50 = vmul.f32 %v7203_v29, %v3639_v48 }
 0x727   :  { %5468 = vst [vmem:[#allocation6 + $0x14e0] sm:$0xff] %v4444_v45  ;;  %6456 = vmatmul.msk.f32.gmra.mxu0 %vm181_vm0, %v6972_v42  ;;  %6584 = vmatmul.msk.f32.gmra.mxu1 %vm181_vm0, %v6972_v42  ;;  %v6979_v42 = vld [vmem:[%s9911_s1 + $0x350] sm:$0xff] }
 0x728   :  { %5469 = vst [vmem:[#allocation6 + $0x14e8] sm:$0xff] %v4445_v46 }
 0x729   :  { %5470 = vst [vmem:[#allocation6 + $0x14f0] sm:$0xff] %v4446_v49 }
 0x72a   :  { %5471 = vst [vmem:[#allocation6 + $0x14f8] sm:$0xff] %v4447_v50  ;;  %6713 = vmatmul.msk.f32.gmra.mxu2 %vm181_vm0, %v6973_v51  ;;  %6841 = vmatmul.msk.f32.gmra.mxu3 %vm181_vm0, %v6973_v51 }
 0x72c   :  { %v2439_v52 = vpop.f32.mrf.mxu0  ;;  %v2840_v53 = vpop.f32.mrf.mxu1 }
 0x72d   :  { %v4452_v54 = vmul.f32 %v7203_v29, %v2439_v52  ;;  %v4453_v55 = vmul.f32 %v7203_v29, %v2840_v53  ;;  %v3241_v56 = vpop.f32.mrf.mxu2  ;;  %v3642_v57 = vpop.f32.mrf.mxu3 }
 0x72e   :  { %v4454_v58 = vmul.f32 %v7203_v29, %v3241_v56  ;;  %v4455_v59 = vmul.f32 %v7203_v29, %v3642_v57 }
 0x72f   :  { %5476 = vst [vmem:[#allocation6 + $0x1520] sm:$0xff] %v4452_v54  ;;  %6457 = vmatmul.msk.f32.gmra.mxu0 %vm181_vm0, %v6973_v51  ;;  %6585 = vmatmul.msk.f32.gmra.mxu1 %vm181_vm0, %v6973_v51  ;;  %v6980_v51 = vld [vmem:[%s9911_s1 + $0x358] sm:$0xff] }
 0x730   :  { %5477 = vst [vmem:[#allocation6 + $0x1528] sm:$0xff] %v4453_v55 }
 0x731   :  { %5478 = vst [vmem:[#allocation6 + $0x1530] sm:$0xff] %v4454_v58 }
 0x732   :  { %5479 = vst [vmem:[#allocation6 + $0x1538] sm:$0xff] %v4455_v59  ;;  %6714 = vmatmul.msk.f32.gmra.mxu2 %vm181_vm0, %v6974_v60  ;;  %6842 = vmatmul.msk.f32.gmra.mxu3 %vm181_vm0, %v6974_v60 }
 0x734   :  { %v2442_v61 = vpop.f32.mrf.mxu0  ;;  %v2843_v62 = vpop.f32.mrf.mxu1 }
 0x735   :  { %v4460_v63 = vmul.f32 %v7203_v29, %v2442_v61  ;;  %v4461_v0 = vmul.f32 %v7203_v29, %v2843_v62  ;;  %v3244_v1 = vpop.f32.mrf.mxu2  ;;  %v3645_v2 = vpop.f32.mrf.mxu3 }
 0x736   :  { %v4462_v3 = vmul.f32 %v7203_v29, %v3244_v1  ;;  %v4463_v4 = vmul.f32 %v7203_v29, %v3645_v2 }
 0x737   :  { %5484 = vst [vmem:[#allocation6 + $0x1560] sm:$0xff] %v4460_v63  ;;  %6458 = vmatmul.msk.f32.gmra.mxu0 %vm181_vm0, %v6974_v60  ;;  %6586 = vmatmul.msk.f32.gmra.mxu1 %vm181_vm0, %v6974_v60  ;;  %v6981_v60 = vld [vmem:[%s9911_s1 + $0x360] sm:$0xff] }
 0x738   :  { %5485 = vst [vmem:[#allocation6 + $0x1568] sm:$0xff] %v4461_v0 }
 0x739   :  { %5486 = vst [vmem:[#allocation6 + $0x1570] sm:$0xff] %v4462_v3 }
 0x73a   :  { %5487 = vst [vmem:[#allocation6 + $0x1578] sm:$0xff] %v4463_v4  ;;  %6715 = vmatmul.msk.f32.gmra.mxu2 %vm181_vm0, %v6975_v5  ;;  %6843 = vmatmul.msk.f32.gmra.mxu3 %vm181_vm0, %v6975_v5 }
 0x73c   :  { %v2445_v6 = vpop.f32.mrf.mxu0  ;;  %v2846_v7 = vpop.f32.mrf.mxu1 }
 0x73d   :  { %v4468_v8 = vmul.f32 %v7203_v29, %v2445_v6  ;;  %v4469_v9 = vmul.f32 %v7203_v29, %v2846_v7  ;;  %v3247_v10 = vpop.f32.mrf.mxu2  ;;  %v3648_v11 = vpop.f32.mrf.mxu3 }
 0x73e   :  { %v4470_v12 = vmul.f32 %v7203_v29, %v3247_v10  ;;  %v4471_v13 = vmul.f32 %v7203_v29, %v3648_v11 }
 0x73f   :  { %5492 = vst [vmem:[#allocation6 + $0x15a0] sm:$0xff] %v4468_v8  ;;  %6459 = vmatmul.msk.f32.gmra.mxu0 %vm181_vm0, %v6975_v5  ;;  %6587 = vmatmul.msk.f32.gmra.mxu1 %vm181_vm0, %v6975_v5  ;;  %v6982_v5 = vld [vmem:[%s9911_s1 + $0x368] sm:$0xff] }
 0x740   :  { %5493 = vst [vmem:[#allocation6 + $0x15a8] sm:$0xff] %v4469_v9 }
 0x741   :  { %5494 = vst [vmem:[#allocation6 + $0x15b0] sm:$0xff] %v4470_v12 }
 0x742   :  { %5495 = vst [vmem:[#allocation6 + $0x15b8] sm:$0xff] %v4471_v13  ;;  %6716 = vmatmul.msk.f32.gmra.mxu2 %vm181_vm0, %v6976_v14  ;;  %6844 = vmatmul.msk.f32.gmra.mxu3 %vm181_vm0, %v6976_v14 }
 0x744   :  { %v2448_v15 = vpop.f32.mrf.mxu0  ;;  %v2849_v16 = vpop.f32.mrf.mxu1 }
 0x745   :  { %v4476_v17 = vmul.f32 %v7203_v29, %v2448_v15  ;;  %v4477_v18 = vmul.f32 %v7203_v29, %v2849_v16  ;;  %v3250_v19 = vpop.f32.mrf.mxu2  ;;  %v3651_v20 = vpop.f32.mrf.mxu3 }
 0x746   :  { %v4478_v21 = vmul.f32 %v7203_v29, %v3250_v19  ;;  %v4479_v22 = vmul.f32 %v7203_v29, %v3651_v20 }
 0x747   :  { %5500 = vst [vmem:[#allocation6 + $0x15e0] sm:$0xff] %v4476_v17  ;;  %6460 = vmatmul.msk.f32.gmra.mxu0 %vm181_vm0, %v6976_v14  ;;  %6588 = vmatmul.msk.f32.gmra.mxu1 %vm181_vm0, %v6976_v14  ;;  %v6983_v14 = vld [vmem:[%s9911_s1 + $0x370] sm:$0xff] }
 0x748   :  { %5501 = vst [vmem:[#allocation6 + $0x15e8] sm:$0xff] %v4477_v18 }
 0x749   :  { %5502 = vst [vmem:[#allocation6 + $0x15f0] sm:$0xff] %v4478_v21 }
 0x74a   :  { %5503 = vst [vmem:[#allocation6 + $0x15f8] sm:$0xff] %v4479_v22  ;;  %6717 = vmatmul.msk.f32.gmra.mxu2 %vm181_vm0, %v6977_v23  ;;  %6845 = vmatmul.msk.f32.gmra.mxu3 %vm181_vm0, %v6977_v23 }
 0x74c   :  { %v2451_v24 = vpop.f32.mrf.mxu0  ;;  %v2852_v25 = vpop.f32.mrf.mxu1 }
 0x74d   :  { %v4484_v26 = vmul.f32 %v7203_v29, %v2451_v24  ;;  %v4485_v27 = vmul.f32 %v7203_v29, %v2852_v25  ;;  %v3253_v28 = vpop.f32.mrf.mxu2  ;;  %v3654_v30 = vpop.f32.mrf.mxu3 }
 0x74e   :  { %v4486_v31 = vmul.f32 %v7203_v29, %v3253_v28  ;;  %v4487_v32 = vmul.f32 %v7203_v29, %v3654_v30 }
 0x74f   :  { %5508 = vst [vmem:[#allocation6 + $0x1620] sm:$0xff] %v4484_v26  ;;  %6461 = vmatmul.msk.f32.gmra.mxu0 %vm181_vm0, %v6977_v23  ;;  %6589 = vmatmul.msk.f32.gmra.mxu1 %vm181_vm0, %v6977_v23  ;;  %v6984_v23 = vld [vmem:[%s9911_s1 + $0x378] sm:$0xff] }
 0x750   :  { %5509 = vst [vmem:[#allocation6 + $0x1628] sm:$0xff] %v4485_v27 }
 0x751   :  { %5510 = vst [vmem:[#allocation6 + $0x1630] sm:$0xff] %v4486_v31 }
 0x752   :  { %5511 = vst [vmem:[#allocation6 + $0x1638] sm:$0xff] %v4487_v32  ;;  %6718 = vmatmul.msk.f32.gmra.mxu2 %vm181_vm0, %v6978_v33  ;;  %6846 = vmatmul.msk.f32.gmra.mxu3 %vm181_vm0, %v6978_v33 }
 0x754   :  { %v2454_v34 = vpop.f32.mrf.mxu0  ;;  %v2855_v35 = vpop.f32.mrf.mxu1 }
 0x755   :  { %v4492_v36 = vmul.f32 %v7203_v29, %v2454_v34  ;;  %v4493_v37 = vmul.f32 %v7203_v29, %v2855_v35  ;;  %v3256_v38 = vpop.f32.mrf.mxu2  ;;  %v3657_v39 = vpop.f32.mrf.mxu3 }
 0x756   :  { %v4494_v40 = vmul.f32 %v7203_v29, %v3256_v38  ;;  %v4495_v41 = vmul.f32 %v7203_v29, %v3657_v39 }
 0x757   :  { %5516 = vst [vmem:[#allocation6 + $0x1660] sm:$0xff] %v4492_v36  ;;  %6462 = vmatmul.msk.f32.gmra.mxu0 %vm181_vm0, %v6978_v33  ;;  %6590 = vmatmul.msk.f32.gmra.mxu1 %vm181_vm0, %v6978_v33  ;;  %v6985_v33 = vld [vmem:[%s9911_s1 + $0x380] sm:$0xff] }
 0x758   :  { %5517 = vst [vmem:[#allocation6 + $0x1668] sm:$0xff] %v4493_v37 }
 0x759   :  { %5518 = vst [vmem:[#allocation6 + $0x1670] sm:$0xff] %v4494_v40 }
 0x75a   :  { %5519 = vst [vmem:[#allocation6 + $0x1678] sm:$0xff] %v4495_v41  ;;  %6719 = vmatmul.msk.f32.gmra.mxu2 %vm181_vm0, %v6979_v42  ;;  %6847 = vmatmul.msk.f32.gmra.mxu3 %vm181_vm0, %v6979_v42 }
 0x75c   :  { %v2457_v43 = vpop.f32.mrf.mxu0  ;;  %v2858_v44 = vpop.f32.mrf.mxu1 }
 0x75d   :  { %v4500_v45 = vmul.f32 %v7203_v29, %v2457_v43  ;;  %v4501_v46 = vmul.f32 %v7203_v29, %v2858_v44  ;;  %v3259_v47 = vpop.f32.mrf.mxu2  ;;  %v3660_v48 = vpop.f32.mrf.mxu3 }
 0x75e   :  { %v4502_v49 = vmul.f32 %v7203_v29, %v3259_v47  ;;  %v4503_v50 = vmul.f32 %v7203_v29, %v3660_v48 }
 0x75f   :  { %5524 = vst [vmem:[#allocation6 + $0x16a0] sm:$0xff] %v4500_v45  ;;  %6463 = vmatmul.msk.f32.gmra.mxu0 %vm181_vm0, %v6979_v42  ;;  %6591 = vmatmul.msk.f32.gmra.mxu1 %vm181_vm0, %v6979_v42  ;;  %v6986_v42 = vld [vmem:[%s9911_s1 + $0x388] sm:$0xff] }
 0x760   :  { %5525 = vst [vmem:[#allocation6 + $0x16a8] sm:$0xff] %v4501_v46 }
 0x761   :  { %5526 = vst [vmem:[#allocation6 + $0x16b0] sm:$0xff] %v4502_v49 }
 0x762   :  { %5527 = vst [vmem:[#allocation6 + $0x16b8] sm:$0xff] %v4503_v50  ;;  %6720 = vmatmul.msk.f32.gmra.mxu2 %vm181_vm0, %v6980_v51  ;;  %6848 = vmatmul.msk.f32.gmra.mxu3 %vm181_vm0, %v6980_v51 }
 0x764   :  { %v2460_v52 = vpop.f32.mrf.mxu0  ;;  %v2861_v53 = vpop.f32.mrf.mxu1 }
 0x765   :  { %v4508_v54 = vmul.f32 %v7203_v29, %v2460_v52  ;;  %v4509_v55 = vmul.f32 %v7203_v29, %v2861_v53  ;;  %v3262_v56 = vpop.f32.mrf.mxu2  ;;  %v3663_v57 = vpop.f32.mrf.mxu3 }
 0x766   :  { %v4510_v58 = vmul.f32 %v7203_v29, %v3262_v56  ;;  %v4511_v59 = vmul.f32 %v7203_v29, %v3663_v57 }
 0x767   :  { %5532 = vst [vmem:[#allocation6 + $0x16e0] sm:$0xff] %v4508_v54  ;;  %6464 = vmatmul.msk.f32.gmra.mxu0 %vm181_vm0, %v6980_v51  ;;  %6592 = vmatmul.msk.f32.gmra.mxu1 %vm181_vm0, %v6980_v51  ;;  %v6987_v51 = vld [vmem:[%s9911_s1 + $0x390] sm:$0xff] }
 0x768   :  { %5533 = vst [vmem:[#allocation6 + $0x16e8] sm:$0xff] %v4509_v55 }
 0x769   :  { %5534 = vst [vmem:[#allocation6 + $0x16f0] sm:$0xff] %v4510_v58 }
 0x76a   :  { %5535 = vst [vmem:[#allocation6 + $0x16f8] sm:$0xff] %v4511_v59  ;;  %6721 = vmatmul.msk.f32.gmra.mxu2 %vm181_vm0, %v6981_v60  ;;  %6849 = vmatmul.msk.f32.gmra.mxu3 %vm181_vm0, %v6981_v60 }
 0x76c   :  { %v2463_v61 = vpop.f32.mrf.mxu0  ;;  %v2864_v62 = vpop.f32.mrf.mxu1 }
 0x76d   :  { %v4516_v63 = vmul.f32 %v7203_v29, %v2463_v61  ;;  %v4517_v0 = vmul.f32 %v7203_v29, %v2864_v62  ;;  %v3265_v1 = vpop.f32.mrf.mxu2  ;;  %v3666_v2 = vpop.f32.mrf.mxu3 }
 0x76e   :  { %v4518_v3 = vmul.f32 %v7203_v29, %v3265_v1  ;;  %v4519_v4 = vmul.f32 %v7203_v29, %v3666_v2 }
 0x76f   :  { %5540 = vst [vmem:[#allocation6 + $0x1720] sm:$0xff] %v4516_v63  ;;  %6465 = vmatmul.msk.f32.gmra.mxu0 %vm181_vm0, %v6981_v60  ;;  %6593 = vmatmul.msk.f32.gmra.mxu1 %vm181_vm0, %v6981_v60  ;;  %v6988_v60 = vld [vmem:[%s9911_s1 + $0x398] sm:$0xff] }
 0x770   :  { %5541 = vst [vmem:[#allocation6 + $0x1728] sm:$0xff] %v4517_v0 }
 0x771   :  { %5542 = vst [vmem:[#allocation6 + $0x1730] sm:$0xff] %v4518_v3 }
 0x772   :  { %5543 = vst [vmem:[#allocation6 + $0x1738] sm:$0xff] %v4519_v4  ;;  %6722 = vmatmul.msk.f32.gmra.mxu2 %vm181_vm0, %v6982_v5  ;;  %6850 = vmatmul.msk.f32.gmra.mxu3 %vm181_vm0, %v6982_v5 }
 0x774   :  { %v2466_v6 = vpop.f32.mrf.mxu0  ;;  %v2867_v7 = vpop.f32.mrf.mxu1 }
 0x775   :  { %v4524_v8 = vmul.f32 %v7203_v29, %v2466_v6  ;;  %v4525_v9 = vmul.f32 %v7203_v29, %v2867_v7  ;;  %v3268_v10 = vpop.f32.mrf.mxu2  ;;  %v3669_v11 = vpop.f32.mrf.mxu3 }
 0x776   :  { %v4526_v12 = vmul.f32 %v7203_v29, %v3268_v10  ;;  %v4527_v13 = vmul.f32 %v7203_v29, %v3669_v11 }
 0x777   :  { %5548 = vst [vmem:[#allocation6 + $0x1760] sm:$0xff] %v4524_v8  ;;  %6466 = vmatmul.msk.f32.gmra.mxu0 %vm181_vm0, %v6982_v5  ;;  %6594 = vmatmul.msk.f32.gmra.mxu1 %vm181_vm0, %v6982_v5  ;;  %v6989_v5 = vld [vmem:[%s9911_s1 + $0x3a0] sm:$0xff] }
 0x778   :  { %5549 = vst [vmem:[#allocation6 + $0x1768] sm:$0xff] %v4525_v9 }
 0x779   :  { %5550 = vst [vmem:[#allocation6 + $0x1770] sm:$0xff] %v4526_v12 }
 0x77a   :  { %5551 = vst [vmem:[#allocation6 + $0x1778] sm:$0xff] %v4527_v13  ;;  %6723 = vmatmul.msk.f32.gmra.mxu2 %vm181_vm0, %v6983_v14  ;;  %6851 = vmatmul.msk.f32.gmra.mxu3 %vm181_vm0, %v6983_v14 }
 0x77c   :  { %v2469_v15 = vpop.f32.mrf.mxu0  ;;  %v2870_v16 = vpop.f32.mrf.mxu1 }
 0x77d   :  { %v4532_v17 = vmul.f32 %v7203_v29, %v2469_v15  ;;  %v4533_v18 = vmul.f32 %v7203_v29, %v2870_v16  ;;  %v3271_v19 = vpop.f32.mrf.mxu2  ;;  %v3672_v20 = vpop.f32.mrf.mxu3 }
 0x77e   :  { %v4534_v21 = vmul.f32 %v7203_v29, %v3271_v19  ;;  %v4535_v22 = vmul.f32 %v7203_v29, %v3672_v20 }
 0x77f   :  { %5556 = vst [vmem:[#allocation6 + $0x17a0] sm:$0xff] %v4532_v17  ;;  %6467 = vmatmul.msk.f32.gmra.mxu0 %vm181_vm0, %v6983_v14  ;;  %6595 = vmatmul.msk.f32.gmra.mxu1 %vm181_vm0, %v6983_v14  ;;  %v6990_v14 = vld [vmem:[%s9911_s1 + $0x3a8] sm:$0xff] }
 0x780   :  { %5557 = vst [vmem:[#allocation6 + $0x17a8] sm:$0xff] %v4533_v18 }
 0x781   :  { %5558 = vst [vmem:[#allocation6 + $0x17b0] sm:$0xff] %v4534_v21 }
 0x782   :  { %5559 = vst [vmem:[#allocation6 + $0x17b8] sm:$0xff] %v4535_v22  ;;  %6724 = vmatmul.msk.f32.gmra.mxu2 %vm181_vm0, %v6984_v23  ;;  %6852 = vmatmul.msk.f32.gmra.mxu3 %vm181_vm0, %v6984_v23 }
 0x784   :  { %v2472_v24 = vpop.f32.mrf.mxu0  ;;  %v2873_v25 = vpop.f32.mrf.mxu1 }
 0x785   :  { %v4540_v26 = vmul.f32 %v7203_v29, %v2472_v24  ;;  %v4541_v27 = vmul.f32 %v7203_v29, %v2873_v25  ;;  %v3274_v28 = vpop.f32.mrf.mxu2  ;;  %v3675_v30 = vpop.f32.mrf.mxu3 }
 0x786   :  { %v4542_v31 = vmul.f32 %v7203_v29, %v3274_v28  ;;  %v4543_v32 = vmul.f32 %v7203_v29, %v3675_v30 }
 0x787   :  { %5564 = vst [vmem:[#allocation6 + $0x17e0] sm:$0xff] %v4540_v26  ;;  %6468 = vmatmul.msk.f32.gmra.mxu0 %vm181_vm0, %v6984_v23  ;;  %6596 = vmatmul.msk.f32.gmra.mxu1 %vm181_vm0, %v6984_v23  ;;  %v6991_v23 = vld [vmem:[%s9911_s1 + $0x3b0] sm:$0xff] }
 0x788   :  { %5565 = vst [vmem:[#allocation6 + $0x17e8] sm:$0xff] %v4541_v27 }
 0x789   :  { %5566 = vst [vmem:[#allocation6 + $0x17f0] sm:$0xff] %v4542_v31 }
 0x78a   :  { %5567 = vst [vmem:[#allocation6 + $0x17f8] sm:$0xff] %v4543_v32  ;;  %6725 = vmatmul.msk.f32.gmra.mxu2 %vm181_vm0, %v6985_v33  ;;  %6853 = vmatmul.msk.f32.gmra.mxu3 %vm181_vm0, %v6985_v33 }
 0x78c   :  { %v2475_v34 = vpop.f32.mrf.mxu0  ;;  %v2876_v35 = vpop.f32.mrf.mxu1 }
 0x78d   :  { %v4548_v36 = vmul.f32 %v7203_v29, %v2475_v34  ;;  %v4549_v37 = vmul.f32 %v7203_v29, %v2876_v35  ;;  %v3277_v38 = vpop.f32.mrf.mxu2  ;;  %v3678_v39 = vpop.f32.mrf.mxu3 }
 0x78e   :  { %v4550_v40 = vmul.f32 %v7203_v29, %v3277_v38  ;;  %v4551_v41 = vmul.f32 %v7203_v29, %v3678_v39 }
 0x78f   :  { %5572 = vst [vmem:[#allocation6 + $0x1820] sm:$0xff] %v4548_v36  ;;  %6469 = vmatmul.msk.f32.gmra.mxu0 %vm181_vm0, %v6985_v33  ;;  %6597 = vmatmul.msk.f32.gmra.mxu1 %vm181_vm0, %v6985_v33  ;;  %v6992_v33 = vld [vmem:[%s9911_s1 + $0x3b8] sm:$0xff] }
 0x790   :  { %5573 = vst [vmem:[#allocation6 + $0x1828] sm:$0xff] %v4549_v37 }
 0x791   :  { %5574 = vst [vmem:[#allocation6 + $0x1830] sm:$0xff] %v4550_v40 }
 0x792   :  { %5575 = vst [vmem:[#allocation6 + $0x1838] sm:$0xff] %v4551_v41  ;;  %6726 = vmatmul.msk.f32.gmra.mxu2 %vm181_vm0, %v6986_v42  ;;  %6854 = vmatmul.msk.f32.gmra.mxu3 %vm181_vm0, %v6986_v42 }
 0x794   :  { %v2478_v43 = vpop.f32.mrf.mxu0  ;;  %v2879_v44 = vpop.f32.mrf.mxu1 }
 0x795   :  { %v4556_v45 = vmul.f32 %v7203_v29, %v2478_v43  ;;  %v4557_v46 = vmul.f32 %v7203_v29, %v2879_v44  ;;  %v3280_v47 = vpop.f32.mrf.mxu2  ;;  %v3681_v48 = vpop.f32.mrf.mxu3 }
 0x796   :  { %v4558_v49 = vmul.f32 %v7203_v29, %v3280_v47  ;;  %v4559_v50 = vmul.f32 %v7203_v29, %v3681_v48 }
 0x797   :  { %5580 = vst [vmem:[#allocation6 + $0x1860] sm:$0xff] %v4556_v45  ;;  %6470 = vmatmul.msk.f32.gmra.mxu0 %vm181_vm0, %v6986_v42  ;;  %6598 = vmatmul.msk.f32.gmra.mxu1 %vm181_vm0, %v6986_v42  ;;  %v6993_v42 = vld [vmem:[%s9911_s1 + $0x3c0] sm:$0xff] }
 0x798   :  { %5581 = vst [vmem:[#allocation6 + $0x1868] sm:$0xff] %v4557_v46 }
 0x799   :  { %5582 = vst [vmem:[#allocation6 + $0x1870] sm:$0xff] %v4558_v49 }
 0x79a   :  { %5583 = vst [vmem:[#allocation6 + $0x1878] sm:$0xff] %v4559_v50  ;;  %6727 = vmatmul.msk.f32.gmra.mxu2 %vm181_vm0, %v6987_v51  ;;  %6855 = vmatmul.msk.f32.gmra.mxu3 %vm181_vm0, %v6987_v51 }
 0x79c   :  { %v2481_v52 = vpop.f32.mrf.mxu0  ;;  %v2882_v53 = vpop.f32.mrf.mxu1 }
 0x79d   :  { %v4564_v54 = vmul.f32 %v7203_v29, %v2481_v52  ;;  %v4565_v55 = vmul.f32 %v7203_v29, %v2882_v53  ;;  %v3283_v56 = vpop.f32.mrf.mxu2  ;;  %v3684_v57 = vpop.f32.mrf.mxu3 }
 0x79e   :  { %v4566_v58 = vmul.f32 %v7203_v29, %v3283_v56  ;;  %v4567_v59 = vmul.f32 %v7203_v29, %v3684_v57 }
 0x79f   :  { %5588 = vst [vmem:[#allocation6 + $0x18a0] sm:$0xff] %v4564_v54  ;;  %6471 = vmatmul.msk.f32.gmra.mxu0 %vm181_vm0, %v6987_v51  ;;  %6599 = vmatmul.msk.f32.gmra.mxu1 %vm181_vm0, %v6987_v51  ;;  %v6994_v51 = vld [vmem:[%s9911_s1 + $0x3c8] sm:$0xff] }
 0x7a0   :  { %5589 = vst [vmem:[#allocation6 + $0x18a8] sm:$0xff] %v4565_v55 }
 0x7a1   :  { %5590 = vst [vmem:[#allocation6 + $0x18b0] sm:$0xff] %v4566_v58 }
 0x7a2   :  { %5591 = vst [vmem:[#allocation6 + $0x18b8] sm:$0xff] %v4567_v59  ;;  %6728 = vmatmul.msk.f32.gmra.mxu2 %vm181_vm0, %v6988_v60  ;;  %6856 = vmatmul.msk.f32.gmra.mxu3 %vm181_vm0, %v6988_v60 }
 0x7a4   :  { %v2484_v61 = vpop.f32.mrf.mxu0  ;;  %v2885_v62 = vpop.f32.mrf.mxu1 }
 0x7a5   :  { %v4572_v63 = vmul.f32 %v7203_v29, %v2484_v61  ;;  %v4573_v0 = vmul.f32 %v7203_v29, %v2885_v62  ;;  %v3286_v1 = vpop.f32.mrf.mxu2  ;;  %v3687_v2 = vpop.f32.mrf.mxu3 }
 0x7a6   :  { %v4574_v3 = vmul.f32 %v7203_v29, %v3286_v1  ;;  %v4575_v4 = vmul.f32 %v7203_v29, %v3687_v2 }
 0x7a7   :  { %5596 = vst [vmem:[#allocation6 + $0x18e0] sm:$0xff] %v4572_v63  ;;  %6472 = vmatmul.msk.f32.gmra.mxu0 %vm181_vm0, %v6988_v60  ;;  %6600 = vmatmul.msk.f32.gmra.mxu1 %vm181_vm0, %v6988_v60  ;;  %v6995_v60 = vld [vmem:[%s9911_s1 + $0x3d0] sm:$0xff] }
 0x7a8   :  { %5597 = vst [vmem:[#allocation6 + $0x18e8] sm:$0xff] %v4573_v0 }
 0x7a9   :  { %5598 = vst [vmem:[#allocation6 + $0x18f0] sm:$0xff] %v4574_v3 }
 0x7aa   :  { %5599 = vst [vmem:[#allocation6 + $0x18f8] sm:$0xff] %v4575_v4  ;;  %6729 = vmatmul.msk.f32.gmra.mxu2 %vm181_vm0, %v6989_v5  ;;  %6857 = vmatmul.msk.f32.gmra.mxu3 %vm181_vm0, %v6989_v5 }
 0x7ac   :  { %v2487_v6 = vpop.f32.mrf.mxu0  ;;  %v2888_v7 = vpop.f32.mrf.mxu1 }
 0x7ad   :  { %v4580_v8 = vmul.f32 %v7203_v29, %v2487_v6  ;;  %v4581_v9 = vmul.f32 %v7203_v29, %v2888_v7  ;;  %v3289_v10 = vpop.f32.mrf.mxu2  ;;  %v3690_v11 = vpop.f32.mrf.mxu3 }
 0x7ae   :  { %v4582_v12 = vmul.f32 %v7203_v29, %v3289_v10  ;;  %v4583_v13 = vmul.f32 %v7203_v29, %v3690_v11 }
 0x7af   :  { %5604 = vst [vmem:[#allocation6 + $0x1920] sm:$0xff] %v4580_v8  ;;  %6473 = vmatmul.msk.f32.gmra.mxu0 %vm181_vm0, %v6989_v5  ;;  %6601 = vmatmul.msk.f32.gmra.mxu1 %vm181_vm0, %v6989_v5  ;;  %v6996_v5 = vld [vmem:[%s9911_s1 + $0x3d8] sm:$0xff] }
 0x7b0   :  { %5605 = vst [vmem:[#allocation6 + $0x1928] sm:$0xff] %v4581_v9 }
 0x7b1   :  { %5606 = vst [vmem:[#allocation6 + $0x1930] sm:$0xff] %v4582_v12 }
 0x7b2   :  { %5607 = vst [vmem:[#allocation6 + $0x1938] sm:$0xff] %v4583_v13  ;;  %6730 = vmatmul.msk.f32.gmra.mxu2 %vm181_vm0, %v6990_v14  ;;  %6858 = vmatmul.msk.f32.gmra.mxu3 %vm181_vm0, %v6990_v14 }
 0x7b4   :  { %v2490_v15 = vpop.f32.mrf.mxu0  ;;  %v2891_v16 = vpop.f32.mrf.mxu1 }
 0x7b5   :  { %v4588_v17 = vmul.f32 %v7203_v29, %v2490_v15  ;;  %v4589_v18 = vmul.f32 %v7203_v29, %v2891_v16  ;;  %v3292_v19 = vpop.f32.mrf.mxu2  ;;  %v3693_v20 = vpop.f32.mrf.mxu3 }
 0x7b6   :  { %v4590_v21 = vmul.f32 %v7203_v29, %v3292_v19  ;;  %v4591_v22 = vmul.f32 %v7203_v29, %v3693_v20 }
 0x7b7   :  { %5612 = vst [vmem:[#allocation6 + $0x1960] sm:$0xff] %v4588_v17  ;;  %6474 = vmatmul.msk.f32.gmra.mxu0 %vm181_vm0, %v6990_v14  ;;  %6602 = vmatmul.msk.f32.gmra.mxu1 %vm181_vm0, %v6990_v14  ;;  %v6997_v14 = vld [vmem:[%s9911_s1 + $0x3e0] sm:$0xff] }
 0x7b8   :  { %5613 = vst [vmem:[#allocation6 + $0x1968] sm:$0xff] %v4589_v18 }
 0x7b9   :  { %5614 = vst [vmem:[#allocation6 + $0x1970] sm:$0xff] %v4590_v21 }
 0x7ba   :  { %5615 = vst [vmem:[#allocation6 + $0x1978] sm:$0xff] %v4591_v22  ;;  %6731 = vmatmul.msk.f32.gmra.mxu2 %vm181_vm0, %v6991_v23  ;;  %6859 = vmatmul.msk.f32.gmra.mxu3 %vm181_vm0, %v6991_v23 }
 0x7bc   :  { %v2493_v24 = vpop.f32.mrf.mxu0  ;;  %v2894_v25 = vpop.f32.mrf.mxu1 }
 0x7bd   :  { %v4596_v26 = vmul.f32 %v7203_v29, %v2493_v24  ;;  %v4597_v27 = vmul.f32 %v7203_v29, %v2894_v25  ;;  %v3295_v28 = vpop.f32.mrf.mxu2  ;;  %v3696_v30 = vpop.f32.mrf.mxu3 }
 0x7be   :  { %v4598_v31 = vmul.f32 %v7203_v29, %v3295_v28  ;;  %v4599_v32 = vmul.f32 %v7203_v29, %v3696_v30 }
 0x7bf   :  { %5620 = vst [vmem:[#allocation6 + $0x19a0] sm:$0xff] %v4596_v26  ;;  %6475 = vmatmul.msk.f32.gmra.mxu0 %vm181_vm0, %v6991_v23  ;;  %6603 = vmatmul.msk.f32.gmra.mxu1 %vm181_vm0, %v6991_v23  ;;  %v6998_v23 = vld [vmem:[%s9911_s1 + $0x3e8] sm:$0xff] }
 0x7c0   :  { %5621 = vst [vmem:[#allocation6 + $0x19a8] sm:$0xff] %v4597_v27 }
 0x7c1   :  { %5622 = vst [vmem:[#allocation6 + $0x19b0] sm:$0xff] %v4598_v31 }
 0x7c2   :  { %5623 = vst [vmem:[#allocation6 + $0x19b8] sm:$0xff] %v4599_v32  ;;  %6732 = vmatmul.msk.f32.gmra.mxu2 %vm181_vm0, %v6992_v33  ;;  %6860 = vmatmul.msk.f32.gmra.mxu3 %vm181_vm0, %v6992_v33 }
 0x7c4   :  { %v2496_v34 = vpop.f32.mrf.mxu0  ;;  %v2897_v35 = vpop.f32.mrf.mxu1 }
 0x7c5   :  { %v4604_v36 = vmul.f32 %v7203_v29, %v2496_v34  ;;  %v4605_v37 = vmul.f32 %v7203_v29, %v2897_v35  ;;  %v3298_v38 = vpop.f32.mrf.mxu2  ;;  %v3699_v39 = vpop.f32.mrf.mxu3 }
 0x7c6   :  { %v4606_v40 = vmul.f32 %v7203_v29, %v3298_v38  ;;  %v4607_v41 = vmul.f32 %v7203_v29, %v3699_v39 }
 0x7c7   :  { %5628 = vst [vmem:[#allocation6 + $0x19e0] sm:$0xff] %v4604_v36  ;;  %6476 = vmatmul.msk.f32.gmra.mxu0 %vm181_vm0, %v6992_v33  ;;  %6604 = vmatmul.msk.f32.gmra.mxu1 %vm181_vm0, %v6992_v33  ;;  %v6999_v33 = vld [vmem:[%s9911_s1 + $0x3f0] sm:$0xff] }
 0x7c8   :  { %5629 = vst [vmem:[#allocation6 + $0x19e8] sm:$0xff] %v4605_v37 }
 0x7c9   :  { %5630 = vst [vmem:[#allocation6 + $0x19f0] sm:$0xff] %v4606_v40 }
 0x7ca   :  { %5631 = vst [vmem:[#allocation6 + $0x19f8] sm:$0xff] %v4607_v41  ;;  %6733 = vmatmul.msk.f32.gmra.mxu2 %vm181_vm0, %v6993_v42  ;;  %6861 = vmatmul.msk.f32.gmra.mxu3 %vm181_vm0, %v6993_v42 }
 0x7cc   :  { %v2499_v43 = vpop.f32.mrf.mxu0  ;;  %v2900_v44 = vpop.f32.mrf.mxu1 }
 0x7cd   :  { %v4612_v45 = vmul.f32 %v7203_v29, %v2499_v43  ;;  %v4613_v46 = vmul.f32 %v7203_v29, %v2900_v44  ;;  %v3301_v47 = vpop.f32.mrf.mxu2  ;;  %v3702_v48 = vpop.f32.mrf.mxu3 }
 0x7ce   :  { %v4614_v49 = vmul.f32 %v7203_v29, %v3301_v47  ;;  %v4615_v50 = vmul.f32 %v7203_v29, %v3702_v48 }
 0x7cf   :  { %5636 = vst [vmem:[#allocation6 + $0x1a20] sm:$0xff] %v4612_v45  ;;  %6477 = vmatmul.msk.f32.gmra.mxu0 %vm181_vm0, %v6993_v42  ;;  %6605 = vmatmul.msk.f32.gmra.mxu1 %vm181_vm0, %v6993_v42  ;;  %v7000_v42 = vld [vmem:[%s9911_s1 + $0x3f8] sm:$0xff]  ;;  %s7056_s1 = smov [#allocation6]  }
 0x7d0   :  { %5637 = vst [vmem:[#allocation6 + $0x1a28] sm:$0xff] %v4613_v46  ;;  %s5828_s20 = sshll.u32 %s7056_s1, 4  ;;  %s5829_s20 = int_to_ptr.vmem [resolvable:$true] %s5828_s20 }
 0x7d1   :  { %5638 = vst [vmem:[#allocation6 + $0x1a30] sm:$0xff] %v4614_v49 }
 0x7d2   :  { %5639 = vst [vmem:[#allocation6 + $0x1a38] sm:$0xff] %v4615_v50  ;;  %6734 = vmatmul.msk.f32.gmra.mxu2 %vm181_vm0, %v6994_v51  ;;  %6862 = vmatmul.msk.f32.gmra.mxu3 %vm181_vm0, %v6994_v51 }
 0x7d4   :  { %v2502_v52 = vpop.f32.mrf.mxu0  ;;  %v2903_v53 = vpop.f32.mrf.mxu1 }
 0x7d5   :  { %v4620_v54 = vmul.f32 %v7203_v29, %v2502_v52  ;;  %v4621_v55 = vmul.f32 %v7203_v29, %v2903_v53  ;;  %v3304_v56 = vpop.f32.mrf.mxu2  ;;  %v3705_v57 = vpop.f32.mrf.mxu3 }
 0x7d6   :  { %v4622_v58 = vmul.f32 %v7203_v29, %v3304_v56  ;;  %v4623_v59 = vmul.f32 %v7203_v29, %v3705_v57 }
 0x7d7   :  { %5644 = vst [vmem:[#allocation6 + $0x1a60] sm:$0xff] %v4620_v54  ;;  %6478 = vmatmul.msk.f32.gmra.mxu0 %vm181_vm0, %v6994_v51  ;;  %6606 = vmatmul.msk.f32.gmra.mxu1 %vm181_vm0, %v6994_v51 }
 0x7d8   :  { %5645 = vst [vmem:[#allocation6 + $0x1a68] sm:$0xff] %v4621_v55 }
 0x7d9   :  { %5646 = vst [vmem:[#allocation6 + $0x1a70] sm:$0xff] %v4622_v58 }
 0x7da   :  { %5647 = vst [vmem:[#allocation6 + $0x1a78] sm:$0xff] %v4623_v59  ;;  %6735 = vmatmul.msk.f32.gmra.mxu2 %vm181_vm0, %v6995_v60  ;;  %6863 = vmatmul.msk.f32.gmra.mxu3 %vm181_vm0, %v6995_v60 }
 0x7dc   :  { %v2505_v61 = vpop.f32.mrf.mxu0  ;;  %v2906_v62 = vpop.f32.mrf.mxu1 }
 0x7dd   :  { %v4628_v63 = vmul.f32 %v7203_v29, %v2505_v61  ;;  %v4629_v0 = vmul.f32 %v7203_v29, %v2906_v62  ;;  %v3307_v1 = vpop.f32.mrf.mxu2  ;;  %v3708_v2 = vpop.f32.mrf.mxu3 }
 0x7de   :  { %v4630_v3 = vmul.f32 %v7203_v29, %v3307_v1  ;;  %v4631_v4 = vmul.f32 %v7203_v29, %v3708_v2 }
 0x7df   :  { %5652 = vst [vmem:[#allocation6 + $0x1aa0] sm:$0xff] %v4628_v63  ;;  %6479 = vmatmul.msk.f32.gmra.mxu0 %vm181_vm0, %v6995_v60  ;;  %6607 = vmatmul.msk.f32.gmra.mxu1 %vm181_vm0, %v6995_v60 }
 0x7e0   :  { %5653 = vst [vmem:[#allocation6 + $0x1aa8] sm:$0xff] %v4629_v0 }
 0x7e1   :  { %5654 = vst [vmem:[#allocation6 + $0x1ab0] sm:$0xff] %v4630_v3 }
 0x7e2   :  { %5655 = vst [vmem:[#allocation6 + $0x1ab8] sm:$0xff] %v4631_v4  ;;  %6736 = vmatmul.msk.f32.gmra.mxu2 %vm181_vm0, %v6996_v5  ;;  %6864 = vmatmul.msk.f32.gmra.mxu3 %vm181_vm0, %v6996_v5 }
 0x7e4   :  { %v2508_v6 = vpop.f32.mrf.mxu0  ;;  %v2909_v7 = vpop.f32.mrf.mxu1 }
 0x7e5   :  { %v4636_v8 = vmul.f32 %v7203_v29, %v2508_v6  ;;  %v4637_v9 = vmul.f32 %v7203_v29, %v2909_v7  ;;  %v3310_v10 = vpop.f32.mrf.mxu2  ;;  %v3711_v11 = vpop.f32.mrf.mxu3 }
 0x7e6   :  { %v4638_v12 = vmul.f32 %v7203_v29, %v3310_v10  ;;  %v4639_v13 = vmul.f32 %v7203_v29, %v3711_v11 }
 0x7e7   :  { %5660 = vst [vmem:[#allocation6 + $0x1ae0] sm:$0xff] %v4636_v8  ;;  %6480 = vmatmul.msk.f32.gmra.mxu0 %vm181_vm0, %v6996_v5  ;;  %6608 = vmatmul.msk.f32.gmra.mxu1 %vm181_vm0, %v6996_v5 }
 0x7e8   :  { %5661 = vst [vmem:[#allocation6 + $0x1ae8] sm:$0xff] %v4637_v9 }
 0x7e9   :  { %5662 = vst [vmem:[#allocation6 + $0x1af0] sm:$0xff] %v4638_v12 }
 0x7ea   :  { %5663 = vst [vmem:[#allocation6 + $0x1af8] sm:$0xff] %v4639_v13  ;;  %6737 = vmatmul.msk.f32.gmra.mxu2 %vm181_vm0, %v6997_v14  ;;  %6865 = vmatmul.msk.f32.gmra.mxu3 %vm181_vm0, %v6997_v14 }
 0x7ec   :  { %v2511_v15 = vpop.f32.mrf.mxu0  ;;  %v2912_v16 = vpop.f32.mrf.mxu1 }
 0x7ed   :  { %v4644_v17 = vmul.f32 %v7203_v29, %v2511_v15  ;;  %v4645_v18 = vmul.f32 %v7203_v29, %v2912_v16  ;;  %v3313_v19 = vpop.f32.mrf.mxu2  ;;  %v3714_v20 = vpop.f32.mrf.mxu3 }
 0x7ee   :  { %v4646_v21 = vmul.f32 %v7203_v29, %v3313_v19  ;;  %v4647_v22 = vmul.f32 %v7203_v29, %v3714_v20 }
 0x7ef   :  { %5668 = vst [vmem:[#allocation6 + $0x1b20] sm:$0xff] %v4644_v17  ;;  %6481 = vmatmul.msk.f32.gmra.mxu0 %vm181_vm0, %v6997_v14  ;;  %6609 = vmatmul.msk.f32.gmra.mxu1 %vm181_vm0, %v6997_v14 }
 0x7f0   :  { %5669 = vst [vmem:[#allocation6 + $0x1b28] sm:$0xff] %v4645_v18 }
 0x7f1   :  { %5670 = vst [vmem:[#allocation6 + $0x1b30] sm:$0xff] %v4646_v21 }
 0x7f2   :  { %5671 = vst [vmem:[#allocation6 + $0x1b38] sm:$0xff] %v4647_v22  ;;  %6738 = vmatmul.msk.f32.gmra.mxu2 %vm181_vm0, %v6998_v23  ;;  %6866 = vmatmul.msk.f32.gmra.mxu3 %vm181_vm0, %v6998_v23 }
 0x7f4   :  { %v2514_v24 = vpop.f32.mrf.mxu0  ;;  %v2915_v25 = vpop.f32.mrf.mxu1 }
 0x7f5   :  { %v4652_v26 = vmul.f32 %v7203_v29, %v2514_v24  ;;  %v4653_v27 = vmul.f32 %v7203_v29, %v2915_v25  ;;  %v3316_v28 = vpop.f32.mrf.mxu2  ;;  %v3717_v30 = vpop.f32.mrf.mxu3 }
 0x7f6   :  { %v4654_v31 = vmul.f32 %v7203_v29, %v3316_v28  ;;  %v4655_v32 = vmul.f32 %v7203_v29, %v3717_v30 }
 0x7f7   :  { %5676 = vst [vmem:[#allocation6 + $0x1b60] sm:$0xff] %v4652_v26  ;;  %6482 = vmatmul.msk.f32.gmra.mxu0 %vm181_vm0, %v6998_v23  ;;  %6610 = vmatmul.msk.f32.gmra.mxu1 %vm181_vm0, %v6998_v23 }
 0x7f8   :  { %5677 = vst [vmem:[#allocation6 + $0x1b68] sm:$0xff] %v4653_v27 }
 0x7f9   :  { %5678 = vst [vmem:[#allocation6 + $0x1b70] sm:$0xff] %v4654_v31 }
 0x7fa   :  { %5679 = vst [vmem:[#allocation6 + $0x1b78] sm:$0xff] %v4655_v32  ;;  %6739 = vmatmul.msk.f32.gmra.mxu2 %vm181_vm0, %v6999_v33  ;;  %6867 = vmatmul.msk.f32.gmra.mxu3 %vm181_vm0, %v6999_v33 }
 0x7fc   :  { %v2517_v34 = vpop.f32.mrf.mxu0  ;;  %v2918_v35 = vpop.f32.mrf.mxu1 }
 0x7fd   :  { %v4660_v36 = vmul.f32 %v7203_v29, %v2517_v34  ;;  %v4661_v37 = vmul.f32 %v7203_v29, %v2918_v35  ;;  %v3319_v38 = vpop.f32.mrf.mxu2  ;;  %v3720_v39 = vpop.f32.mrf.mxu3 }
 0x7fe   :  { %v4662_v40 = vmul.f32 %v7203_v29, %v3319_v38  ;;  %v4663_v41 = vmul.f32 %v7203_v29, %v3720_v39 }
 0x7ff   :  { %5684 = vst [vmem:[#allocation6 + $0x1ba0] sm:$0xff] %v4660_v36  ;;  %6483 = vmatmul.msk.f32.gmra.mxu0 %vm181_vm0, %v6999_v33  ;;  %6611 = vmatmul.msk.f32.gmra.mxu1 %vm181_vm0, %v6999_v33 }
 0x800   :  { %5685 = vst [vmem:[#allocation6 + $0x1ba8] sm:$0xff] %v4661_v37 }
 0x801   :  { %5686 = vst [vmem:[#allocation6 + $0x1bb0] sm:$0xff] %v4662_v40 }
 0x802   :  { %5687 = vst [vmem:[#allocation6 + $0x1bb8] sm:$0xff] %v4663_v41  ;;  %6740 = vmatmul.msk.f32.gmra.mxu2 %vm181_vm0, %v7000_v42  ;;  %6868 = vmatmul.msk.f32.gmra.mxu3 %vm181_vm0, %v7000_v42 }
 0x804   :  { %v2520_v43 = vpop.f32.mrf.mxu0  ;;  %v2921_v44 = vpop.f32.mrf.mxu1 }
 0x805   :  { %v4668_v45 = vmul.f32 %v7203_v29, %v2520_v43  ;;  %v4669_v46 = vmul.f32 %v7203_v29, %v2921_v44  ;;  %v3322_v47 = vpop.f32.mrf.mxu2  ;;  %v3723_v48 = vpop.f32.mrf.mxu3 }
 0x806   :  { %v4670_v49 = vmul.f32 %v7203_v29, %v3322_v47  ;;  %v4671_v50 = vmul.f32 %v7203_v29, %v3723_v48 }
 0x807   :  { %5692 = vst [vmem:[#allocation6 + $0x1be0] sm:$0xff] %v4668_v45  ;;  %6484 = vmatmul.msk.f32.gmra.mxu0 %vm181_vm0, %v7000_v42  ;;  %6612 = vmatmul.msk.f32.gmra.mxu1 %vm181_vm0, %v7000_v42 }
 0x808   :  { %5693 = vst [vmem:[#allocation6 + $0x1be8] sm:$0xff] %v4669_v46 }
 0x809   :  { %5694 = vst [vmem:[#allocation6 + $0x1bf0] sm:$0xff] %v4670_v49 }
 0x80a   :  { %5695 = vst [vmem:[#allocation6 + $0x1bf8] sm:$0xff] %v4671_v50 }
 0x80c   :  { %v2523_v51 = vpop.f32.mrf.mxu0  ;;  %v2924_v52 = vpop.f32.mrf.mxu1 }
 0x80d   :  { %v4676_v53 = vmul.f32 %v7203_v29, %v2523_v51  ;;  %v4677_v54 = vmul.f32 %v7203_v29, %v2924_v52  ;;  %v3325_v55 = vpop.f32.mrf.mxu2  ;;  %v3726_v56 = vpop.f32.mrf.mxu3 }
 0x80e   :  { %v4678_v57 = vmul.f32 %v7203_v29, %v3325_v55  ;;  %v4679_v58 = vmul.f32 %v7203_v29, %v3726_v56 }
 0x80f   :  { %5700 = vst [vmem:[#allocation6 + $0x1c20] sm:$0xff] %v4676_v53 }
 0x810   :  { %5701 = vst [vmem:[#allocation6 + $0x1c28] sm:$0xff] %v4677_v54 }
 0x811   :  { %5702 = vst [vmem:[#allocation6 + $0x1c30] sm:$0xff] %v4678_v57 }
 0x812   :  { %5703 = vst [vmem:[#allocation6 + $0x1c38] sm:$0xff] %v4679_v58 }
 0x814   :  { %v2526_v59 = vpop.f32.mrf.mxu0  ;;  %v2927_v60 = vpop.f32.mrf.mxu1 }
 0x815   :  { %v4684_v61 = vmul.f32 %v7203_v29, %v2526_v59  ;;  %v4685_v62 = vmul.f32 %v7203_v29, %v2927_v60  ;;  %v3328_v63 = vpop.f32.mrf.mxu2  ;;  %v3729_v0 = vpop.f32.mrf.mxu3 }
 0x816   :  { %v4686_v1 = vmul.f32 %v7203_v29, %v3328_v63  ;;  %v4687_v2 = vmul.f32 %v7203_v29, %v3729_v0 }
 0x817   :  { %5708 = vst [vmem:[#allocation6 + $0x1c60] sm:$0xff] %v4684_v61 }
 0x818   :  { %5709 = vst [vmem:[#allocation6 + $0x1c68] sm:$0xff] %v4685_v62 }
 0x819   :  { %5710 = vst [vmem:[#allocation6 + $0x1c70] sm:$0xff] %v4686_v1 }
 0x81a   :  { %5711 = vst [vmem:[#allocation6 + $0x1c78] sm:$0xff] %v4687_v2 }
 0x81c   :  { %v2529_v3 = vpop.f32.mrf.mxu0  ;;  %v2930_v4 = vpop.f32.mrf.mxu1 }
 0x81d   :  { %v4692_v5 = vmul.f32 %v7203_v29, %v2529_v3  ;;  %v4693_v6 = vmul.f32 %v7203_v29, %v2930_v4  ;;  %v3331_v7 = vpop.f32.mrf.mxu2  ;;  %v3732_v8 = vpop.f32.mrf.mxu3 }
 0x81e   :  { %v4694_v9 = vmul.f32 %v7203_v29, %v3331_v7  ;;  %v4695_v10 = vmul.f32 %v7203_v29, %v3732_v8 }
 0x81f   :  { %5716 = vst [vmem:[#allocation6 + $0x1ca0] sm:$0xff] %v4692_v5 }
 0x820   :  { %5717 = vst [vmem:[#allocation6 + $0x1ca8] sm:$0xff] %v4693_v6 }
 0x821   :  { %5718 = vst [vmem:[#allocation6 + $0x1cb0] sm:$0xff] %v4694_v9 }
 0x822   :  { %5719 = vst [vmem:[#allocation6 + $0x1cb8] sm:$0xff] %v4695_v10 }
 0x824   :  { %v2532_v11 = vpop.f32.mrf.mxu0  ;;  %v2933_v12 = vpop.f32.mrf.mxu1 }
 0x825   :  { %v4700_v13 = vmul.f32 %v7203_v29, %v2532_v11  ;;  %v4701_v14 = vmul.f32 %v7203_v29, %v2933_v12  ;;  %v3334_v15 = vpop.f32.mrf.mxu2  ;;  %v3735_v16 = vpop.f32.mrf.mxu3 }
 0x826   :  { %v4702_v17 = vmul.f32 %v7203_v29, %v3334_v15  ;;  %v4703_v18 = vmul.f32 %v7203_v29, %v3735_v16 }
 0x827   :  { %5724 = vst [vmem:[#allocation6 + $0x1ce0] sm:$0xff] %v4700_v13 }
 0x828   :  { %5725 = vst [vmem:[#allocation6 + $0x1ce8] sm:$0xff] %v4701_v14 }
 0x829   :  { %5726 = vst [vmem:[#allocation6 + $0x1cf0] sm:$0xff] %v4702_v17 }
 0x82a   :  { %5727 = vst [vmem:[#allocation6 + $0x1cf8] sm:$0xff] %v4703_v18 }
 0x82c   :  { %v2535_v19 = vpop.f32.mrf.mxu0  ;;  %v2936_v20 = vpop.f32.mrf.mxu1 }
 0x82d   :  { %v4708_v21 = vmul.f32 %v7203_v29, %v2535_v19  ;;  %v4709_v22 = vmul.f32 %v7203_v29, %v2936_v20  ;;  %v3337_v23 = vpop.f32.mrf.mxu2  ;;  %v3738_v24 = vpop.f32.mrf.mxu3 }
 0x82e   :  { %v4710_v25 = vmul.f32 %v7203_v29, %v3337_v23  ;;  %v4711_v26 = vmul.f32 %v7203_v29, %v3738_v24 }
 0x82f   :  { %5732 = vst [vmem:[#allocation6 + $0x1d20] sm:$0xff] %v4708_v21 }
 0x830   :  { %5733 = vst [vmem:[#allocation6 + $0x1d28] sm:$0xff] %v4709_v22 }
 0x831   :  { %5734 = vst [vmem:[#allocation6 + $0x1d30] sm:$0xff] %v4710_v25 }
 0x832   :  { %5735 = vst [vmem:[#allocation6 + $0x1d38] sm:$0xff] %v4711_v26 }
 0x834   :  { %v2538_v27 = vpop.f32.mrf.mxu0  ;;  %v2939_v28 = vpop.f32.mrf.mxu1 }
 0x835   :  { %v4716_v30 = vmul.f32 %v7203_v29, %v2538_v27  ;;  %v4717_v31 = vmul.f32 %v7203_v29, %v2939_v28  ;;  %v3340_v32 = vpop.f32.mrf.mxu2  ;;  %v3741_v33 = vpop.f32.mrf.mxu3 }
 0x836   :  { %v4718_v34 = vmul.f32 %v7203_v29, %v3340_v32  ;;  %v4719_v35 = vmul.f32 %v7203_v29, %v3741_v33 }
 0x837   :  { %5740 = vst [vmem:[#allocation6 + $0x1d60] sm:$0xff] %v4716_v30 }
 0x838   :  { %5741 = vst [vmem:[#allocation6 + $0x1d68] sm:$0xff] %v4717_v31 }
 0x839   :  { %5742 = vst [vmem:[#allocation6 + $0x1d70] sm:$0xff] %v4718_v34 }
 0x83a   :  { %5743 = vst [vmem:[#allocation6 + $0x1d78] sm:$0xff] %v4719_v35 }
 0x83c   :  { %v2541_v36 = vpop.f32.mrf.mxu0  ;;  %v2942_v37 = vpop.f32.mrf.mxu1 }
 0x83d   :  { %v4724_v38 = vmul.f32 %v7203_v29, %v2541_v36  ;;  %v4725_v39 = vmul.f32 %v7203_v29, %v2942_v37  ;;  %v3343_v40 = vpop.f32.mrf.mxu2  ;;  %v3744_v41 = vpop.f32.mrf.mxu3 }
 0x83e   :  { %v4726_v42 = vmul.f32 %v7203_v29, %v3343_v40  ;;  %v4727_v43 = vmul.f32 %v7203_v29, %v3744_v41 }
 0x83f   :  { %5748 = vst [vmem:[#allocation6 + $0x1da0] sm:$0xff] %v4724_v38 }
 0x840   :  { %5749 = vst [vmem:[#allocation6 + $0x1da8] sm:$0xff] %v4725_v39 }
 0x841   :  { %5750 = vst [vmem:[#allocation6 + $0x1db0] sm:$0xff] %v4726_v42 }
 0x842   :  { %5751 = vst [vmem:[#allocation6 + $0x1db8] sm:$0xff] %v4727_v43 }
 0x844   :  { %v2544_v44 = vpop.f32.mrf.mxu0  ;;  %v2945_v45 = vpop.f32.mrf.mxu1 }
 0x845   :  { %v4732_v46 = vmul.f32 %v7203_v29, %v2544_v44  ;;  %v4733_v47 = vmul.f32 %v7203_v29, %v2945_v45  ;;  %v3346_v48 = vpop.f32.mrf.mxu2  ;;  %v3747_v49 = vpop.f32.mrf.mxu3 }
 0x846   :  { %v4734_v50 = vmul.f32 %v7203_v29, %v3346_v48  ;;  %v4735_v51 = vmul.f32 %v7203_v29, %v3747_v49 }
 0x847   :  { %5756 = vst [vmem:[#allocation6 + $0x1de0] sm:$0xff] %v4732_v46 }
 0x848   :  { %5757 = vst [vmem:[#allocation6 + $0x1de8] sm:$0xff] %v4733_v47 }
 0x849   :  { %5758 = vst [vmem:[#allocation6 + $0x1df0] sm:$0xff] %v4734_v50 }
 0x84a   :  { %5759 = vst [vmem:[#allocation6 + $0x1df8] sm:$0xff] %v4735_v51 }
 0x84c   :  { %v2547_v52 = vpop.f32.mrf.mxu0  ;;  %v2948_v53 = vpop.f32.mrf.mxu1 }
 0x84d   :  { %v4740_v54 = vmul.f32 %v7203_v29, %v2547_v52  ;;  %v4741_v55 = vmul.f32 %v7203_v29, %v2948_v53  ;;  %v3349_v56 = vpop.f32.mrf.mxu2  ;;  %v3750_v57 = vpop.f32.mrf.mxu3 }
 0x84e   :  { %v4742_v58 = vmul.f32 %v7203_v29, %v3349_v56  ;;  %v4743_v59 = vmul.f32 %v7203_v29, %v3750_v57 }
 0x84f   :  { %5764 = vst [vmem:[#allocation6 + $0x1e20] sm:$0xff] %v4740_v54 }
 0x850   :  { %5765 = vst [vmem:[#allocation6 + $0x1e28] sm:$0xff] %v4741_v55 }
 0x851   :  { %5766 = vst [vmem:[#allocation6 + $0x1e30] sm:$0xff] %v4742_v58 }
 0x852   :  { %5767 = vst [vmem:[#allocation6 + $0x1e38] sm:$0xff] %v4743_v59 }
 0x854   :  { %v2550_v60 = vpop.f32.mrf.mxu0  ;;  %v2951_v61 = vpop.f32.mrf.mxu1 }
 0x855   :  { %v4748_v62 = vmul.f32 %v7203_v29, %v2550_v60  ;;  %v4749_v63 = vmul.f32 %v7203_v29, %v2951_v61  ;;  %v3352_v0 = vpop.f32.mrf.mxu2  ;;  %v3753_v1 = vpop.f32.mrf.mxu3 }
 0x856   :  { %v4750_v2 = vmul.f32 %v7203_v29, %v3352_v0  ;;  %v4751_v3 = vmul.f32 %v7203_v29, %v3753_v1 }
 0x857   :  { %5772 = vst [vmem:[#allocation6 + $0x1e60] sm:$0xff] %v4748_v62 }
 0x858   :  { %5773 = vst [vmem:[#allocation6 + $0x1e68] sm:$0xff] %v4749_v63 }
 0x859   :  { %5774 = vst [vmem:[#allocation6 + $0x1e70] sm:$0xff] %v4750_v2 }
 0x85a   :  { %5775 = vst [vmem:[#allocation6 + $0x1e78] sm:$0xff] %v4751_v3 }
 0x85c   :  { %v2553_v4 = vpop.f32.mrf.mxu0  ;;  %v2954_v5 = vpop.f32.mrf.mxu1 }
 0x85d   :  { %v4756_v6 = vmul.f32 %v7203_v29, %v2553_v4  ;;  %v4757_v7 = vmul.f32 %v7203_v29, %v2954_v5  ;;  %v3355_v8 = vpop.f32.mrf.mxu2  ;;  %v3756_v9 = vpop.f32.mrf.mxu3 }
 0x85e   :  { %v4758_v10 = vmul.f32 %v7203_v29, %v3355_v8  ;;  %v4759_v11 = vmul.f32 %v7203_v29, %v3756_v9 }
 0x85f   :  { %5780 = vst [vmem:[#allocation6 + $0x1ea0] sm:$0xff] %v4756_v6 }
 0x860   :  { %5781 = vst [vmem:[#allocation6 + $0x1ea8] sm:$0xff] %v4757_v7 }
 0x861   :  { %5782 = vst [vmem:[#allocation6 + $0x1eb0] sm:$0xff] %v4758_v10 }
 0x862   :  { %5783 = vst [vmem:[#allocation6 + $0x1eb8] sm:$0xff] %v4759_v11 }
 0x864   :  { %v2556_v12 = vpop.f32.mrf.mxu0  ;;  %v2957_v13 = vpop.f32.mrf.mxu1 }
 0x865   :  { %v4764_v14 = vmul.f32 %v7203_v29, %v2556_v12  ;;  %v4765_v15 = vmul.f32 %v7203_v29, %v2957_v13  ;;  %v3358_v16 = vpop.f32.mrf.mxu2  ;;  %v3759_v17 = vpop.f32.mrf.mxu3 }
 0x866   :  { %v4766_v18 = vmul.f32 %v7203_v29, %v3358_v16  ;;  %v4767_v19 = vmul.f32 %v7203_v29, %v3759_v17 }
 0x867   :  { %5788 = vst [vmem:[#allocation6 + $0x1ee0] sm:$0xff] %v4764_v14 }
 0x868   :  { %5789 = vst [vmem:[#allocation6 + $0x1ee8] sm:$0xff] %v4765_v15 }
 0x869   :  { %5790 = vst [vmem:[#allocation6 + $0x1ef0] sm:$0xff] %v4766_v18 }
 0x86a   :  { %5791 = vst [vmem:[#allocation6 + $0x1ef8] sm:$0xff] %v4767_v19 }
 0x86c   :  { %v2559_v20 = vpop.f32.mrf.mxu0  ;;  %v2960_v21 = vpop.f32.mrf.mxu1 }
 0x86d   :  { %v4772_v22 = vmul.f32 %v7203_v29, %v2559_v20  ;;  %v4773_v23 = vmul.f32 %v7203_v29, %v2960_v21  ;;  %v3361_v24 = vpop.f32.mrf.mxu2  ;;  %v3762_v25 = vpop.f32.mrf.mxu3 }
 0x86e   :  { %v4774_v26 = vmul.f32 %v7203_v29, %v3361_v24  ;;  %v4775_v27 = vmul.f32 %v7203_v29, %v3762_v25 }
 0x86f   :  { %5796 = vst [vmem:[#allocation6 + $0x1f20] sm:$0xff] %v4772_v22 }
 0x870   :  { %5797 = vst [vmem:[#allocation6 + $0x1f28] sm:$0xff] %v4773_v23 }
 0x871   :  { %5798 = vst [vmem:[#allocation6 + $0x1f30] sm:$0xff] %v4774_v26 }
 0x872   :  { %5799 = vst [vmem:[#allocation6 + $0x1f38] sm:$0xff] %v4775_v27 }
 0x874   :  { %v2562_v28 = vpop.f32.mrf.mxu0  ;;  %v2963_v30 = vpop.f32.mrf.mxu1 }
 0x875   :  { %v4780_v31 = vmul.f32 %v7203_v29, %v2562_v28  ;;  %v4781_v32 = vmul.f32 %v7203_v29, %v2963_v30  ;;  %v3364_v33 = vpop.f32.mrf.mxu2  ;;  %v3765_v34 = vpop.f32.mrf.mxu3 }
 0x876   :  { %v4782_v35 = vmul.f32 %v7203_v29, %v3364_v33  ;;  %v4783_v36 = vmul.f32 %v7203_v29, %v3765_v34 }
 0x877   :  { %5804 = vst [vmem:[#allocation6 + $0x1f60] sm:$0xff] %v4780_v31 }
 0x878   :  { %5805 = vst [vmem:[#allocation6 + $0x1f68] sm:$0xff] %v4781_v32 }
 0x879   :  { %5806 = vst [vmem:[#allocation6 + $0x1f70] sm:$0xff] %v4782_v35 }
 0x87a   :  { %5807 = vst [vmem:[#allocation6 + $0x1f78] sm:$0xff] %v4783_v36 }
 0x87c   :  { %v2565_v37 = vpop.f32.mrf.mxu0  ;;  %v2966_v38 = vpop.f32.mrf.mxu1 }
 0x87d   :  { %v4788_v39 = vmul.f32 %v7203_v29, %v2565_v37  ;;  %v4789_v40 = vmul.f32 %v7203_v29, %v2966_v38  ;;  %v3367_v41 = vpop.f32.mrf.mxu2  ;;  %v3768_v42 = vpop.f32.mrf.mxu3 }
 0x87e   :  { %v4790_v43 = vmul.f32 %v7203_v29, %v3367_v41  ;;  %v4791_v44 = vmul.f32 %v7203_v29, %v3768_v42 }
 0x87f   :  { %5812 = vst [vmem:[#allocation6 + $0x1fa0] sm:$0xff] %v4788_v39 }
 0x880   :  { %5813 = vst [vmem:[#allocation6 + $0x1fa8] sm:$0xff] %v4789_v40 }
 0x881   :  { %5814 = vst [vmem:[#allocation6 + $0x1fb0] sm:$0xff] %v4790_v43 }
 0x882   :  { %5815 = vst [vmem:[#allocation6 + $0x1fb8] sm:$0xff] %v4791_v44 }
 0x884   :  { %v2568_v45 = vpop.f32.mrf.mxu0  ;;  %v2969_v46 = vpop.f32.mrf.mxu1 }
 0x885   :  { %v4796_v47 = vmul.f32 %v7203_v29, %v2568_v45  ;;  %v4797_v48 = vmul.f32 %v7203_v29, %v2969_v46  ;;  %v3370_v49 = vpop.f32.mrf.mxu2  ;;  %v3771_v50 = vpop.f32.mrf.mxu3 }
 0x886   :  { %v4798_v51 = vmul.f32 %v7203_v29, %v3370_v49  ;;  %v4799_v52 = vmul.f32 %v7203_v29, %v3771_v50 }
 0x887   :  { %5820 = vst [vmem:[#allocation6 + $0x1fe0] sm:$0xff] %v4796_v47 }
 0x888   :  { %5821 = vst [vmem:[#allocation6 + $0x1fe8] sm:$0xff] %v4797_v48 }
 0x889   :  { %5822 = vst [vmem:[#allocation6 + $0x1ff0] sm:$0xff] %v4798_v51 }
 0x88a   :  { %5823 = vst [vmem:[#allocation6 + $0x1ff8] sm:$0xff] %v4799_v52 }
 0x88b   :  { %5836 = dma.vmem_to_hbm [thread:$0]  %s5829_s20, 131072, %s5831_s23, [#allocation5], %s7054_s17, %s7054_s17, %s7055_s18  }
 0x88c   :  { %7051 = dma.done.wait [#allocation5], 131072  }
 0x88d   :  { %7052 = vsyncadd [#allocation5], 4294836224 }
 0x88e   :  { %5841 = vsyncpa [#allocation4], 1 }
 0x88f   :  { %5842 = vsyncpa [#allocation5], 1 }

</bundles_post_ra>
